<compile_context>
chip_gen: v5e
topology: v5e:2x2
jax: 0.10.0
libtpu: 0.0.40
codegen_flags: <defaults>
</compile_context>

<pallas_src>
import numpy as np
import jax
import jax.numpy as jnp
from jax.experimental import pallas as pl
from jax.experimental.pallas import tpu as pltpu


# --------------------------------------------------------------------------- #
# Fused forward kernel
# --------------------------------------------------------------------------- #

def crnn_fused_kernel(
    # inputs
    x_ref,                                   # (B, 16, 16, 4)  NHWC image
    w1_ref, s1_ref, c1_ref,                  # (9, 4, 8), (1, 8), (1, 8)
    w2_ref, s2_ref, c2_ref,                  # (9, 8, 16), (1, 16), (1, 16)
    fcw_ref, fcb_ref,                        # (16, 16, 32), (1, 32)
    wih1_ref, whh1_ref, b1_ref,              # (32, 32), (32, 32), (1, 32)
    wcat2_ref, b2_ref,                       # (64, 32), (1, 32)
    fow_ref, fob_ref,                        # (32, 53), (1, 53)
    # outputs
    out_ref,                                 # (B, T, 53)
    # VMEM scratch
    pad1, y1s, m1s, pad2, y2s, m2s, x3s,
):
    f32 = jnp.float32
    B = x_ref.shape[0]

    # ----- conv block 1: 3x3 conv (pad=1) + folded BN(eval) + ReLU ---------- #
    pad1[...] = jnp.zeros_like(pad1)
    pad1[:, 1:17, 1:17, :] = x_ref[...]
    acc1 = jnp.zeros((B * 16 * 16, 8), f32)
    for di in range(3):
        for dj in range(3):
            patch = pad1[:, di:di + 16, dj:dj + 16, :].reshape(B * 16 * 16, 4)
            acc1 = acc1 + jnp.dot(patch, w1_ref[di * 3 + dj],
                                  preferred_element_type=f32)
    y1 = jnp.maximum(acc1 * s1_ref[...] + c1_ref[...], 0.0)
    y1s[...] = y1.reshape(B, 16, 16, 8)

    # ----- maxpool 2x2 (block 1) -> written straight into padded conv2 input #
    for wo in range(8):                                   # pool along W
        m1s[:, :, wo, :] = jnp.maximum(y1s[:, :, 2 * wo, :],
                                       y1s[:, :, 2 * wo + 1, :])
    pad2[...] = jnp.zeros_like(pad2)
    for ho in range(8):                                   # pool along H
        pad2[:, 1 + ho, 1:9, :] = jnp.maximum(m1s[:, 2 * ho, :, :],
                                              m1s[:, 2 * ho + 1, :, :])

    # ----- conv block 2 ------------------------------------------------------ #
    acc2 = jnp.zeros((B * 8 * 8, 16), f32)
    for di in range(3):
        for dj in range(3):
            patch = pad2[:, di:di + 8, dj:dj + 8, :].reshape(B * 8 * 8, 8)
            acc2 = acc2 + jnp.dot(patch, w2_ref[di * 3 + dj],
                                  preferred_element_type=f32)
    y2 = jnp.maximum(acc2 * s2_ref[...] + c2_ref[...], 0.0)
    y2s[...] = y2.reshape(B, 8, 8, 16)

    # ----- maxpool 2x2 (block 2) --------------------------------------------- #
    for wo in range(4):
        m2s[:, :, wo, :] = jnp.maximum(y2s[:, :, 2 * wo, :],
                                       y2s[:, :, 2 * wo + 1, :])
    for ho in range(4):
        x3s[:, ho, :, :] = jnp.maximum(m2s[:, 2 * ho, :, :],
                                       m2s[:, 2 * ho + 1, :, :])

    # ----- fc (torch NCHW-flatten folded into per-position weight slices) ---- #
    fc_dim = fcb_ref.shape[1]
    accf = jnp.zeros((B, fc_dim), f32)
    for hi in range(4):
        for wi in range(4):
            xs = x3s[:, hi, wi, :]                        # (B, C2)
            accf = accf + jnp.dot(xs, fcw_ref[hi * 4 + wi],
                                  preferred_element_type=f32)
    feat = accf + fcb_ref[...]                            # (B, 32)

    # ----- 2-layer ReLU RNN + fc_out (time loop unrolled, T small) ----------- #
    # Time-invariant input projection hoisted out of the loop.
    xproj = jnp.dot(feat, wih1_ref[...], preferred_element_type=f32) + b1_ref[...]
    H = whh1_ref.shape[0]
    h1 = jnp.zeros((B, H), f32)
    h2 = jnp.zeros((B, H), f32)
    T = out_ref.shape[1]
    for t in range(T):
        h1 = jnp.maximum(
            xproj + jnp.dot(h1, whh1_ref[...], preferred_element_type=f32), 0.0)
        hcat = jnp.concatenate([h1, h2], axis=1)          # (B, 2H)
        h2 = jnp.maximum(
            jnp.dot(hcat, wcat2_ref[...], preferred_element_type=f32)
            + b2_ref[...], 0.0)
        logits = jnp.dot(h2, fow_ref[...], preferred_element_type=f32) + fob_ref[...]
        out_ref[:, t, :] = logits


# --------------------------------------------------------------------------- #
# Wrapper
# --------------------------------------------------------------------------- #

def _crnn_forward(x_nchw, kp, max_length):
    B = x_nchw.shape[0]
    x_nhwc = jnp.transpose(x_nchw, (0, 2, 3, 1)).astype(jnp.float32)
    cin = kp["w1"].shape[1]      # 4
    ch1 = kp["w1"].shape[2]      # 8
    ch2 = kp["w2"].shape[2]      # 16
    num_classes = kp["fob"].shape[1]

    # TODO(synk): no v7x dual-TensorCore split (parallel grid axis / core_map);
    # total work is ~0.5 MFLOP so the fused single-core kernel is launch-bound.
    return pl.pallas_call(
        crnn_fused_kernel,
        out_shape=jax.ShapeDtypeStruct((B, max_length, num_classes), jnp.float32),
        scratch_shapes=[
            pltpu.VMEM((B, 18, 18, cin), jnp.float32),   # pad1 (padded input 1)
            pltpu.VMEM((B, 16, 16, ch1), jnp.float32),   # y1s  (conv1 output)
            pltpu.VMEM((B, 16, 8, ch1), jnp.float32),    # m1s  (w-pooled 1)
            pltpu.VMEM((B, 10, 10, ch1), jnp.float32),   # pad2 (padded input 2)
            pltpu.VMEM((B, 8, 8, ch2), jnp.float32),     # y2s  (conv2 output)
            pltpu.VMEM((B, 8, 4, ch2), jnp.float32),     # m2s  (w-pooled 2)
            pltpu.VMEM((B, 4, 4, ch2), jnp.float32),     # x3s  (cnn feature map)
        ],
    )(x_nhwc, kp["w1"], kp["s1"], kp["c1"], kp["w2"], kp["s2"], kp["c2"],
      kp["fcw"], kp["fcb"], kp["wih1"], kp["whh1"], kp["b1"],
      kp["wcat2"], kp["b2"], kp["fow"], kp["fob"])


crnn_forward = jax.jit(_crnn_forward, static_argnames=("max_length",))


# --------------------------------------------------------------------------- #
# Parameter construction (torch convention) and kernel-side preparation
# --------------------------------------------------------------------------- #

def make_params(key):
    """Parameters in the PyTorch CRNN convention:
    kernels=[(4,), (8,3,1), (16,3,1)], image_size=(4,16,16),
    cnn_output_size=32, rnn_hidden_size=32, num_layers=2, num_classes=53."""
    kernels = [(4,), (8, 3, 1), (16, 3, 1)]
    cnn_output_size, rnn_hidden, num_classes = 32, 32, 53
    keys = iter(jax.random.split(key, 40))

    def rnd(shape, sc=1.0):
        return sc * jax.random.normal(next(keys), shape, jnp.float32)

    conv = []
    for i in range(1, len(kernels)):
        cin, cout, k = kernels[i - 1][0], kernels[i][0], kernels[i][1]
        conv.append(dict(
            w=rnd((cout, cin, k, k), 1.0 / np.sqrt(cin * k * k)),
            b=rnd((cout,), 0.1),
            gamma=1.0 + rnd((cout,), 0.1),
            beta=rnd((cout,), 0.1),
            mean=rnd((cout,), 0.1),
            var=1.0 + 0.1 * jax.random.uniform(next(keys), (cout,), jnp.float32),
        ))

    encoder_out = 16 * 4 * 4   # 16 channels, 16x16 pooled twice -> 4x4
    H = rnn_hidden
    return dict(
        conv=conv,
        fc_w=rnd((cnn_output_size, encoder_out), 1.0 / np.sqrt(encoder_out)),
        fc_b=rnd((cnn_output_size,), 0.1),
        rnn_wih0=rnd((H, cnn_output_size), 1.0 / np.sqrt(cnn_output_size)),
        rnn_whh0=rnd((H, H), 1.0 / np.sqrt(H)),
        rnn_bih0=rnd((H,), 0.1), rnn_bhh0=rnd((H,), 0.1),
        rnn_wih1=rnd((H, H), 1.0 / np.sqrt(H)),
        rnn_whh1=rnd((H, H), 1.0 / np.sqrt(H)),
        rnn_bih1=rnd((H,), 0.1), rnn_bhh1=rnd((H,), 0.1),
        fco_w=rnd((num_classes, H), 1.0 / np.sqrt(H)),
        fco_b=rnd((num_classes,), 0.1),
    )


def _fold_conv_bn(w, b, gamma, beta, mean, var, eps=1e-5):
    """Fold conv bias + eval-mode BatchNorm2d into per-channel scale/bias and
    reshape the conv weight into per-tap (kh*kw, Cin, Cout) matmul slices."""
    scale = gamma / jnp.sqrt(var + eps)
    bias = beta + scale * (b - mean)
    cout, cin, kh, kw = w.shape
    w9 = jnp.transpose(w, (2, 3, 1, 0)).reshape(kh * kw, cin, cout)
    return w9, scale.reshape(1, cout), bias.reshape(1, cout)


def prepare_kernel_params(p, eps=1e-5):
    kp = {}
    for idx, blk in enumerate(p["conv"], start=1):
        w9, s, c = _fold_conv_bn(blk["w"], blk["b"], blk["gamma"], blk["beta"],
                                 blk["mean"], blk["var"], eps)
        kp[f"w{idx}"], kp[f"s{idx}"], kp[f"c{idx}"] = w9, s, c

    # fc weight: torch flattens NCHW, i.e. column j = c*16 + (h*4 + w).
    # Split into one (C2, 32) slice per spatial position s = h*4 + w so the
    # kernel never has to transpose / reflatten its NHWC feature map.
    c2 = p["conv"][-1]["w"].shape[0]                      # 16
    fc_w = p["fc_w"]                                      # (32, 256)
    fcw = jnp.transpose(fc_w.reshape(fc_w.shape[0], c2, 16), (2, 1, 0))
    kp["fcw"] = fcw                                       # (16, C2, 32)
    kp["fcb"] = p["fc_b"].reshape(1, -1)

    kp["wih1"] = p["rnn_wih0"].T
    kp["whh1"] = p["rnn_whh0"].T
    kp["b1"] = (p["rnn_bih0"] + p["rnn_bhh0"]).reshape(1, -1)
    kp["wcat2"] = jnp.concatenate([p["rnn_wih1"].T, p["rnn_whh1"].T], axis=0)
    kp["b2"] = (p["rnn_bih1"] + p["rnn_bhh1"]).reshape(1, -1)
    kp["fow"] = p["fco_w"].T
    kp["fob"] = p["fco_b"].reshape(1, -1)
    return kp


# --------------------------------------------------------------------------- #
# Pure-JAX reference (torch semantics) for a correctness check
# --------------------------------------------------------------------------- #

def reference_forward(x_nchw, p, max_length=8, eps=1e-5):
    with jax.default_matmul_precision("float32"):
        x = x_nchw.astype(jnp.float32)
        for blk in p["conv"]:
            x = jax.lax.conv_general_dilated(
                x, blk["w"], window_strides=(1, 1), padding=((1, 1), (1, 1)),
                dimension_numbers=("NCHW", "OIHW", "NCHW"))
            x = x + blk["b"][None, :, None, None]
            inv = (blk["gamma"] / jnp.sqrt(blk["var"] + eps))
            x = (x - blk["mean"][None, :, None, None]) * inv[None, :, None, None] \
                + blk["beta"][None, :, None, None]
            x = jnp.maximum(x, 0.0)
            Bb, C, H, W = x.shape
            x = x.reshape(Bb, C, H // 2, 2, W // 2, 2).max(axis=(3, 5))
        B = x.shape[0]
        feat = x.reshape(B, -1) @ p["fc_w"].T + p["fc_b"]
        Hh = p["rnn_whh0"].shape[0]
        h1 = jnp.zeros((B, Hh), jnp.float32)
        h2 = jnp.zeros((B, Hh), jnp.float32)
        outs = []
        for _ in range(max_length):
            h1 = jnp.maximum(feat @ p["rnn_wih0"].T + p["rnn_bih0"]
                             + h1 @ p["rnn_whh0"].T + p["rnn_bhh0"], 0.0)
            h2 = jnp.maximum(h1 @ p["rnn_wih1"].T + p["rnn_bih1"]
                             + h2 @ p["rnn_whh1"].T + p["rnn_bhh1"], 0.0)
            outs.append(h2)
        rnn_out = jnp.stack(outs, axis=1)                 # (B, T, H)
        return rnn_out @ p["fco_w"].T + p["fco_b"]


# --------------------------------------------------------------------------- #

if __name__ == "__main__":
    key = jax.random.PRNGKey(0)
    kx, kparam = jax.random.split(key)
    x = jax.random.normal(kx, (2, 4, 16, 16), dtype=jnp.float32)  # NCHW

    params = make_params(kparam)
    kernel_params = prepare_kernel_params(params)

    out = crnn_forward(x, kernel_params, max_length=8)
    out = jax.block_until_ready(out)
    assert out.shape == (2, 8, 53), out.shape

    ref = reference_forward(x, params, max_length=8)
    np.testing.assert_allclose(np.asarray(out), np.asarray(ref),
                               rtol=2e-3, atol=2e-3)
    print("KERNEL_OK")
</pallas_src>

<mosaic_0001>
module attributes {stable_mosaic.version = 11 : i64} {
  func.func @crnn_fused_kernel(%arg0: memref<2x16x16x4xf32, #tpu.memory_space<vmem>>, %arg1: memref<9x4x8xf32, #tpu.memory_space<vmem>>, %arg2: memref<1x8xf32, #tpu.memory_space<vmem>>, %arg3: memref<1x8xf32, #tpu.memory_space<vmem>>, %arg4: memref<9x8x16xf32, #tpu.memory_space<vmem>>, %arg5: memref<1x16xf32, #tpu.memory_space<vmem>>, %arg6: memref<1x16xf32, #tpu.memory_space<vmem>>, %arg7: memref<16x16x32xf32, #tpu.memory_space<vmem>>, %arg8: memref<1x32xf32, #tpu.memory_space<vmem>>, %arg9: memref<32x32xf32, #tpu.memory_space<vmem>>, %arg10: memref<32x32xf32, #tpu.memory_space<vmem>>, %arg11: memref<1x32xf32, #tpu.memory_space<vmem>>, %arg12: memref<64x32xf32, #tpu.memory_space<vmem>>, %arg13: memref<1x32xf32, #tpu.memory_space<vmem>>, %arg14: memref<32x53xf32, #tpu.memory_space<vmem>>, %arg15: memref<1x53xf32, #tpu.memory_space<vmem>>, %arg16: memref<2x8x53xf32, #tpu.memory_space<vmem>>, %arg17: memref<2x18x18x4xf32, #tpu.memory_space<vmem>>, %arg18: memref<2x16x16x8xf32, #tpu.memory_space<vmem>>, %arg19: memref<2x16x8x8xf32, #tpu.memory_space<vmem>>, %arg20: memref<2x10x10x8xf32, #tpu.memory_space<vmem>>, %arg21: memref<2x8x8x16xf32, #tpu.memory_space<vmem>>, %arg22: memref<2x8x4x16xf32, #tpu.memory_space<vmem>>, %arg23: memref<2x4x4x16xf32, #tpu.memory_space<vmem>>) attributes {dimension_semantics = [], scalar_prefetch = 0 : i64, scratch_operands = 7 : i64, tpu.core_type = #tpu.core_type<tc>} {
    %cst = arith.constant 0.000000e+00 : f32
    %0 = vector.broadcast %cst : f32 to vector<2x18x18x4xf32>
    %c0 = arith.constant 0 : index
    %c0_0 = arith.constant 0 : index
    %c0_1 = arith.constant 0 : index
    %c0_2 = arith.constant 0 : index
    %1 = vector.load %arg17[%c0, %c0_0, %c0_1, %c0_2] : memref<2x18x18x4xf32, #tpu.memory_space<vmem>>, vector<2x18x18x4xf32>
    tpu.vector_store %arg17[%c0, %c0_0, %c0_1, %c0_2], %0 {strides = array<i32>} : memref<2x18x18x4xf32, #tpu.memory_space<vmem>>, vector<2x18x18x4xf32>,
    %c0_3 = arith.constant 0 : index
    %c0_4 = arith.constant 0 : index
    %c0_5 = arith.constant 0 : index
    %c0_6 = arith.constant 0 : index
    %2 = vector.load %arg0[%c0_3, %c0_4, %c0_5, %c0_6] : memref<2x16x16x4xf32, #tpu.memory_space<vmem>>, vector<2x16x16x4xf32>
    %c0_7 = arith.constant 0 : index
    %c1 = arith.constant 1 : index
    %c1_8 = arith.constant 1 : index
    %c0_9 = arith.constant 0 : index
    %3 = vector.load %arg17[%c0_7, %c1, %c1_8, %c0_9] : memref<2x18x18x4xf32, #tpu.memory_space<vmem>>, vector<2x16x16x4xf32>
    tpu.vector_store %arg17[%c0_7, %c1, %c1_8, %c0_9], %2 {strides = array<i32>} : memref<2x18x18x4xf32, #tpu.memory_space<vmem>>, vector<2x16x16x4xf32>,
    %cst_10 = arith.constant 0.000000e+00 : f32
    %4 = vector.broadcast %cst_10 : f32 to vector<512x8xf32>
    %c0_11 = arith.constant 0 : index
    %c0_12 = arith.constant 0 : index
    %c0_13 = arith.constant 0 : index
    %c0_14 = arith.constant 0 : index
    %5 = vector.load %arg17[%c0_11, %c0_12, %c0_13, %c0_14] : memref<2x18x18x4xf32, #tpu.memory_space<vmem>>, vector<2x16x16x4xf32>
    %6 = vector.shape_cast %5 : vector<2x16x16x4xf32> to vector<512x4xf32>
    %c0_15 = arith.constant 0 : index
    %c0_16 = arith.constant 0 : index
    %c0_17 = arith.constant 0 : index
    %7 = vector.load %arg1[%c0_15, %c0_16, %c0_17] : memref<9x4x8xf32, #tpu.memory_space<vmem>>, vector<1x4x8xf32>
    %8 = vector.shape_cast %7 : vector<1x4x8xf32> to vector<4x8xf32>
    %cst_18 = arith.constant dense<0.000000e+00> : vector<512x8xf32>
    %9 = tpu.matmul %6, %8, %cst_18 {dimension_numbers = #tpu.dot_dimension_numbers<[1], [0], [0], [1], [0, 0, 1, 1], [], []>} : vector<512x4xf32>, vector<4x8xf32>, vector<512x8xf32> -> vector<512x8xf32>
    %10 = arith.addf %4, %9 : vector<512x8xf32>
    %c0_19 = arith.constant 0 : index
    %c0_20 = arith.constant 0 : index
    %c1_21 = arith.constant 1 : index
    %c0_22 = arith.constant 0 : index
    %11 = vector.load %arg17[%c0_19, %c0_20, %c1_21, %c0_22] : memref<2x18x18x4xf32, #tpu.memory_space<vmem>>, vector<2x16x16x4xf32>
    %12 = vector.shape_cast %11 : vector<2x16x16x4xf32> to vector<512x4xf32>
    %c1_23 = arith.constant 1 : index
    %c0_24 = arith.constant 0 : index
    %c0_25 = arith.constant 0 : index
    %13 = vector.load %arg1[%c1_23, %c0_24, %c0_25] : memref<9x4x8xf32, #tpu.memory_space<vmem>>, vector<1x4x8xf32>
    %14 = vector.shape_cast %13 : vector<1x4x8xf32> to vector<4x8xf32>
    %cst_26 = arith.constant dense<0.000000e+00> : vector<512x8xf32>
    %15 = tpu.matmul %12, %14, %cst_26 {dimension_numbers = #tpu.dot_dimension_numbers<[1], [0], [0], [1], [0, 0, 1, 1], [], []>} : vector<512x4xf32>, vector<4x8xf32>, vector<512x8xf32> -> vector<512x8xf32>
    %16 = arith.addf %10, %15 : vector<512x8xf32>
    %c0_27 = arith.constant 0 : index
    %c0_28 = arith.constant 0 : index
    %c2 = arith.constant 2 : index
    %c0_29 = arith.constant 0 : index
    %17 = vector.load %arg17[%c0_27, %c0_28, %c2, %c0_29] : memref<2x18x18x4xf32, #tpu.memory_space<vmem>>, vector<2x16x16x4xf32>
    %18 = vector.shape_cast %17 : vector<2x16x16x4xf32> to vector<512x4xf32>
    %c2_30 = arith.constant 2 : index
    %c0_31 = arith.constant 0 : index
    %c0_32 = arith.constant 0 : index
    %19 = vector.load %arg1[%c2_30, %c0_31, %c0_32] : memref<9x4x8xf32, #tpu.memory_space<vmem>>, vector<1x4x8xf32>
    %20 = vector.shape_cast %19 : vector<1x4x8xf32> to vector<4x8xf32>
    %cst_33 = arith.constant dense<0.000000e+00> : vector<512x8xf32>
    %21 = tpu.matmul %18, %20, %cst_33 {dimension_numbers = #tpu.dot_dimension_numbers<[1], [0], [0], [1], [0, 0, 1, 1], [], []>} : vector<512x4xf32>, vector<4x8xf32>, vector<512x8xf32> -> vector<512x8xf32>
    %22 = arith.addf %16, %21 : vector<512x8xf32>
    %c0_34 = arith.constant 0 : index
    %c1_35 = arith.constant 1 : index
    %c0_36 = arith.constant 0 : index
    %c0_37 = arith.constant 0 : index
    %23 = vector.load %arg17[%c0_34, %c1_35, %c0_36, %c0_37] : memref<2x18x18x4xf32, #tpu.memory_space<vmem>>, vector<2x16x16x4xf32>
    %24 = vector.shape_cast %23 : vector<2x16x16x4xf32> to vector<512x4xf32>
    %c3 = arith.constant 3 : index
    %c0_38 = arith.constant 0 : index
    %c0_39 = arith.constant 0 : index
    %25 = vector.load %arg1[%c3, %c0_38, %c0_39] : memref<9x4x8xf32, #tpu.memory_space<vmem>>, vector<1x4x8xf32>
    %26 = vector.shape_cast %25 : vector<1x4x8xf32> to vector<4x8xf32>
    %cst_40 = arith.constant dense<0.000000e+00> : vector<512x8xf32>
    %27 = tpu.matmul %24, %26, %cst_40 {dimension_numbers = #tpu.dot_dimension_numbers<[1], [0], [0], [1], [0, 0, 1, 1], [], []>} : vector<512x4xf32>, vector<4x8xf32>, vector<512x8xf32> -> vector<512x8xf32>
    %28 = arith.addf %22, %27 : vector<512x8xf32>
    %c0_41 = arith.constant 0 : index
    %c1_42 = arith.constant 1 : index
    %c1_43 = arith.constant 1 : index
    %c0_44 = arith.constant 0 : index
    %29 = vector.load %arg17[%c0_41, %c1_42, %c1_43, %c0_44] : memref<2x18x18x4xf32, #tpu.memory_space<vmem>>, vector<2x16x16x4xf32>
    %30 = vector.shape_cast %29 : vector<2x16x16x4xf32> to vector<512x4xf32>
    %c4 = arith.constant 4 : index
    %c0_45 = arith.constant 0 : index
    %c0_46 = arith.constant 0 : index
    %31 = vector.load %arg1[%c4, %c0_45, %c0_46] : memref<9x4x8xf32, #tpu.memory_space<vmem>>, vector<1x4x8xf32>
    %32 = vector.shape_cast %31 : vector<1x4x8xf32> to vector<4x8xf32>
    %cst_47 = arith.constant dense<0.000000e+00> : vector<512x8xf32>
    %33 = tpu.matmul %30, %32, %cst_47 {dimension_numbers = #tpu.dot_dimension_numbers<[1], [0], [0], [1], [0, 0, 1, 1], [], []>} : vector<512x4xf32>, vector<4x8xf32>, vector<512x8xf32> -> vector<512x8xf32>
    %34 = arith.addf %28, %33 : vector<512x8xf32>
    %c0_48 = arith.constant 0 : index
    %c1_49 = arith.constant 1 : index
    %c2_50 = arith.constant 2 : index
    %c0_51 = arith.constant 0 : index
    %35 = vector.load %arg17[%c0_48, %c1_49, %c2_50, %c0_51] : memref<2x18x18x4xf32, #tpu.memory_space<vmem>>, vector<2x16x16x4xf32>
    %36 = vector.shape_cast %35 : vector<2x16x16x4xf32> to vector<512x4xf32>
    %c5 = arith.constant 5 : index
    %c0_52 = arith.constant 0 : index
    %c0_53 = arith.constant 0 : index
    %37 = vector.load %arg1[%c5, %c0_52, %c0_53] : memref<9x4x8xf32, #tpu.memory_space<vmem>>, vector<1x4x8xf32>
    %38 = vector.shape_cast %37 : vector<1x4x8xf32> to vector<4x8xf32>
    %cst_54 = arith.constant dense<0.000000e+00> : vector<512x8xf32>
    %39 = tpu.matmul %36, %38, %cst_54 {dimension_numbers = #tpu.dot_dimension_numbers<[1], [0], [0], [1], [0, 0, 1, 1], [], []>} : vector<512x4xf32>, vector<4x8xf32>, vector<512x8xf32> -> vector<512x8xf32>
    %40 = arith.addf %34, %39 : vector<512x8xf32>
    %c0_55 = arith.constant 0 : index
    %c2_56 = arith.constant 2 : index
    %c0_57 = arith.constant 0 : index
    %c0_58 = arith.constant 0 : index
    %41 = vector.load %arg17[%c0_55, %c2_56, %c0_57, %c0_58] : memref<2x18x18x4xf32, #tpu.memory_space<vmem>>, vector<2x16x16x4xf32>
    %42 = vector.shape_cast %41 : vector<2x16x16x4xf32> to vector<512x4xf32>
    %c6 = arith.constant 6 : index
    %c0_59 = arith.constant 0 : index
    %c0_60 = arith.constant 0 : index
    %43 = vector.load %arg1[%c6, %c0_59, %c0_60] : memref<9x4x8xf32, #tpu.memory_space<vmem>>, vector<1x4x8xf32>
    %44 = vector.shape_cast %43 : vector<1x4x8xf32> to vector<4x8xf32>
    %cst_61 = arith.constant dense<0.000000e+00> : vector<512x8xf32>
    %45 = tpu.matmul %42, %44, %cst_61 {dimension_numbers = #tpu.dot_dimension_numbers<[1], [0], [0], [1], [0, 0, 1, 1], [], []>} : vector<512x4xf32>, vector<4x8xf32>, vector<512x8xf32> -> vector<512x8xf32>
    %46 = arith.addf %40, %45 : vector<512x8xf32>
    %c0_62 = arith.constant 0 : index
    %c2_63 = arith.constant 2 : index
    %c1_64 = arith.constant 1 : index
    %c0_65 = arith.constant 0 : index
    %47 = vector.load %arg17[%c0_62, %c2_63, %c1_64, %c0_65] : memref<2x18x18x4xf32, #tpu.memory_space<vmem>>, vector<2x16x16x4xf32>
    %48 = vector.shape_cast %47 : vector<2x16x16x4xf32> to vector<512x4xf32>
    %c7 = arith.constant 7 : index
    %c0_66 = arith.constant 0 : index
    %c0_67 = arith.constant 0 : index
    %49 = vector.load %arg1[%c7, %c0_66, %c0_67] : memref<9x4x8xf32, #tpu.memory_space<vmem>>, vector<1x4x8xf32>
    %50 = vector.shape_cast %49 : vector<1x4x8xf32> to vector<4x8xf32>
    %cst_68 = arith.constant dense<0.000000e+00> : vector<512x8xf32>
    %51 = tpu.matmul %48, %50, %cst_68 {dimension_numbers = #tpu.dot_dimension_numbers<[1], [0], [0], [1], [0, 0, 1, 1], [], []>} : vector<512x4xf32>, vector<4x8xf32>, vector<512x8xf32> -> vector<512x8xf32>
    %52 = arith.addf %46, %51 : vector<512x8xf32>
    %c0_69 = arith.constant 0 : index
    %c2_70 = arith.constant 2 : index
    %c2_71 = arith.constant 2 : index
    %c0_72 = arith.constant 0 : index
    %53 = vector.load %arg17[%c0_69, %c2_70, %c2_71, %c0_72] : memref<2x18x18x4xf32, #tpu.memory_space<vmem>>, vector<2x16x16x4xf32>
    %54 = vector.shape_cast %53 : vector<2x16x16x4xf32> to vector<512x4xf32>
    %c8 = arith.constant 8 : index
    %c0_73 = arith.constant 0 : index
    %c0_74 = arith.constant 0 : index
    %55 = vector.load %arg1[%c8, %c0_73, %c0_74] : memref<9x4x8xf32, #tpu.memory_space<vmem>>, vector<1x4x8xf32>
    %56 = vector.shape_cast %55 : vector<1x4x8xf32> to vector<4x8xf32>
    %cst_75 = arith.constant dense<0.000000e+00> : vector<512x8xf32>
    %57 = tpu.matmul %54, %56, %cst_75 {dimension_numbers = #tpu.dot_dimension_numbers<[1], [0], [0], [1], [0, 0, 1, 1], [], []>} : vector<512x4xf32>, vector<4x8xf32>, vector<512x8xf32> -> vector<512x8xf32>
    %58 = arith.addf %52, %57 : vector<512x8xf32>
    %c0_76 = arith.constant 0 : index
    %c0_77 = arith.constant 0 : index
    %59 = vector.load %arg2[%c0_76, %c0_77] : memref<1x8xf32, #tpu.memory_space<vmem>>, vector<1x8xf32>
    %60 = vector.broadcast %59 : vector<1x8xf32> to vector<512x8xf32>
    %61 = arith.mulf %58, %60 : vector<512x8xf32>
    %c0_78 = arith.constant 0 : index
    %c0_79 = arith.constant 0 : index
    %62 = vector.load %arg3[%c0_78, %c0_79] : memref<1x8xf32, #tpu.memory_space<vmem>>, vector<1x8xf32>
    %63 = vector.broadcast %62 : vector<1x8xf32> to vector<512x8xf32>
    %64 = arith.addf %61, %63 : vector<512x8xf32>
    %cst_80 = arith.constant 0.000000e+00 : f32
    %65 = vector.broadcast %cst_80 : f32 to vector<512x8xf32>
    %66 = arith.maximumf %64, %65 : vector<512x8xf32>
    %67 = vector.shape_cast %66 : vector<512x8xf32> to vector<2x16x16x8xf32>
    %c0_81 = arith.constant 0 : index
    %c0_82 = arith.constant 0 : index
    %c0_83 = arith.constant 0 : index
    %c0_84 = arith.constant 0 : index
    %68 = vector.load %arg18[%c0_81, %c0_82, %c0_83, %c0_84] : memref<2x16x16x8xf32, #tpu.memory_space<vmem>>, vector<2x16x16x8xf32>
    tpu.vector_store %arg18[%c0_81, %c0_82, %c0_83, %c0_84], %67 {strides = array<i32>} : memref<2x16x16x8xf32, #tpu.memory_space<vmem>>, vector<2x16x16x8xf32>,
    %c0_85 = arith.constant 0 : index
    %c0_86 = arith.constant 0 : index
    %c0_87 = arith.constant 0 : index
    %c0_88 = arith.constant 0 : index
    %69 = vector.load %arg18[%c0_85, %c0_86, %c0_87, %c0_88] : memref<2x16x16x8xf32, #tpu.memory_space<vmem>>, vector<2x16x1x8xf32>
    %70 = vector.shape_cast %69 : vector<2x16x1x8xf32> to vector<2x16x8xf32>
    %c0_89 = arith.constant 0 : index
    %c0_90 = arith.constant 0 : index
    %c1_91 = arith.constant 1 : index
    %c0_92 = arith.constant 0 : index
    %71 = vector.load %arg18[%c0_89, %c0_90, %c1_91, %c0_92] : memref<2x16x16x8xf32, #tpu.memory_space<vmem>>, vector<2x16x1x8xf32>
    %72 = vector.shape_cast %71 : vector<2x16x1x8xf32> to vector<2x16x8xf32>
    %73 = arith.maximumf %70, %72 : vector<2x16x8xf32>
    %c0_93 = arith.constant 0 : index
    %c0_94 = arith.constant 0 : index
    %c0_95 = arith.constant 0 : index
    %c0_96 = arith.constant 0 : index
    %74 = vector.load %arg19[%c0_93, %c0_94, %c0_95, %c0_96] : memref<2x16x8x8xf32, #tpu.memory_space<vmem>>, vector<2x16x1x8xf32>
    %75 = vector.shape_cast %74 : vector<2x16x1x8xf32> to vector<2x16x8xf32>
    %76 = vector.shape_cast %73 : vector<2x16x8xf32> to vector<2x16x1x8xf32>
    tpu.vector_store %arg19[%c0_93, %c0_94, %c0_95, %c0_96], %76 {strides = array<i32>} : memref<2x16x8x8xf32, #tpu.memory_space<vmem>>, vector<2x16x1x8xf32>,
    %c0_97 = arith.constant 0 : index
    %c0_98 = arith.constant 0 : index
    %c2_99 = arith.constant 2 : index
    %c0_100 = arith.constant 0 : index
    %77 = vector.load %arg18[%c0_97, %c0_98, %c2_99, %c0_100] : memref<2x16x16x8xf32, #tpu.memory_space<vmem>>, vector<2x16x1x8xf32>
    %78 = vector.shape_cast %77 : vector<2x16x1x8xf32> to vector<2x16x8xf32>
    %c0_101 = arith.constant 0 : index
    %c0_102 = arith.constant 0 : index
    %c3_103 = arith.constant 3 : index
    %c0_104 = arith.constant 0 : index
    %79 = vector.load %arg18[%c0_101, %c0_102, %c3_103, %c0_104] : memref<2x16x16x8xf32, #tpu.memory_space<vmem>>, vector<2x16x1x8xf32>
    %80 = vector.shape_cast %79 : vector<2x16x1x8xf32> to vector<2x16x8xf32>
    %81 = arith.maximumf %78, %80 : vector<2x16x8xf32>
    %c0_105 = arith.constant 0 : index
    %c0_106 = arith.constant 0 : index
    %c1_107 = arith.constant 1 : index
    %c0_108 = arith.constant 0 : index
    %82 = vector.load %arg19[%c0_105, %c0_106, %c1_107, %c0_108] : memref<2x16x8x8xf32, #tpu.memory_space<vmem>>, vector<2x16x1x8xf32>
    %83 = vector.shape_cast %82 : vector<2x16x1x8xf32> to vector<2x16x8xf32>
    %84 = vector.shape_cast %81 : vector<2x16x8xf32> to vector<2x16x1x8xf32>
    tpu.vector_store %arg19[%c0_105, %c0_106, %c1_107, %c0_108], %84 {strides = array<i32>} : memref<2x16x8x8xf32, #tpu.memory_space<vmem>>, vector<2x16x1x8xf32>,
    %c0_109 = arith.constant 0 : index
    %c0_110 = arith.constant 0 : index
    %c4_111 = arith.constant 4 : index
    %c0_112 = arith.constant 0 : index
    %85 = vector.load %arg18[%c0_109, %c0_110, %c4_111, %c0_112] : memref<2x16x16x8xf32, #tpu.memory_space<vmem>>, vector<2x16x1x8xf32>
    %86 = vector.shape_cast %85 : vector<2x16x1x8xf32> to vector<2x16x8xf32>
    %c0_113 = arith.constant 0 : index
    %c0_114 = arith.constant 0 : index
    %c5_115 = arith.constant 5 : index
    %c0_116 = arith.constant 0 : index
    %87 = vector.load %arg18[%c0_113, %c0_114, %c5_115, %c0_116] : memref<2x16x16x8xf32, #tpu.memory_space<vmem>>, vector<2x16x1x8xf32>
    %88 = vector.shape_cast %87 : vector<2x16x1x8xf32> to vector<2x16x8xf32>
    %89 = arith.maximumf %86, %88 : vector<2x16x8xf32>
    %c0_117 = arith.constant 0 : index
    %c0_118 = arith.constant 0 : index
    %c2_119 = arith.constant 2 : index
    %c0_120 = arith.constant 0 : index
    %90 = vector.load %arg19[%c0_117, %c0_118, %c2_119, %c0_120] : memref<2x16x8x8xf32, #tpu.memory_space<vmem>>, vector<2x16x1x8xf32>
    %91 = vector.shape_cast %90 : vector<2x16x1x8xf32> to vector<2x16x8xf32>
    %92 = vector.shape_cast %89 : vector<2x16x8xf32> to vector<2x16x1x8xf32>
    tpu.vector_store %arg19[%c0_117, %c0_118, %c2_119, %c0_120], %92 {strides = array<i32>} : memref<2x16x8x8xf32, #tpu.memory_space<vmem>>, vector<2x16x1x8xf32>,
    %c0_121 = arith.constant 0 : index
    %c0_122 = arith.constant 0 : index
    %c6_123 = arith.constant 6 : index
    %c0_124 = arith.constant 0 : index
    %93 = vector.load %arg18[%c0_121, %c0_122, %c6_123, %c0_124] : memref<2x16x16x8xf32, #tpu.memory_space<vmem>>, vector<2x16x1x8xf32>
    %94 = vector.shape_cast %93 : vector<2x16x1x8xf32> to vector<2x16x8xf32>
    %c0_125 = arith.constant 0 : index
    %c0_126 = arith.constant 0 : index
    %c7_127 = arith.constant 7 : index
    %c0_128 = arith.constant 0 : index
    %95 = vector.load %arg18[%c0_125, %c0_126, %c7_127, %c0_128] : memref<2x16x16x8xf32, #tpu.memory_space<vmem>>, vector<2x16x1x8xf32>
    %96 = vector.shape_cast %95 : vector<2x16x1x8xf32> to vector<2x16x8xf32>
    %97 = arith.maximumf %94, %96 : vector<2x16x8xf32>
    %c0_129 = arith.constant 0 : index
    %c0_130 = arith.constant 0 : index
    %c3_131 = arith.constant 3 : index
    %c0_132 = arith.constant 0 : index
    %98 = vector.load %arg19[%c0_129, %c0_130, %c3_131, %c0_132] : memref<2x16x8x8xf32, #tpu.memory_space<vmem>>, vector<2x16x1x8xf32>
    %99 = vector.shape_cast %98 : vector<2x16x1x8xf32> to vector<2x16x8xf32>
    %100 = vector.shape_cast %97 : vector<2x16x8xf32> to vector<2x16x1x8xf32>
    tpu.vector_store %arg19[%c0_129, %c0_130, %c3_131, %c0_132], %100 {strides = array<i32>} : memref<2x16x8x8xf32, #tpu.memory_space<vmem>>, vector<2x16x1x8xf32>,
    %c0_133 = arith.constant 0 : index
    %c0_134 = arith.constant 0 : index
    %c8_135 = arith.constant 8 : index
    %c0_136 = arith.constant 0 : index
    %101 = vector.load %arg18[%c0_133, %c0_134, %c8_135, %c0_136] : memref<2x16x16x8xf32, #tpu.memory_space<vmem>>, vector<2x16x1x8xf32>
    %102 = vector.shape_cast %101 : vector<2x16x1x8xf32> to vector<2x16x8xf32>
    %c0_137 = arith.constant 0 : index
    %c0_138 = arith.constant 0 : index
    %c9 = arith.constant 9 : index
    %c0_139 = arith.constant 0 : index
    %103 = vector.load %arg18[%c0_137, %c0_138, %c9, %c0_139] : memref<2x16x16x8xf32, #tpu.memory_space<vmem>>, vector<2x16x1x8xf32>
    %104 = vector.shape_cast %103 : vector<2x16x1x8xf32> to vector<2x16x8xf32>
    %105 = arith.maximumf %102, %104 : vector<2x16x8xf32>
    %c0_140 = arith.constant 0 : index
    %c0_141 = arith.constant 0 : index
    %c4_142 = arith.constant 4 : index
    %c0_143 = arith.constant 0 : index
    %106 = vector.load %arg19[%c0_140, %c0_141, %c4_142, %c0_143] : memref<2x16x8x8xf32, #tpu.memory_space<vmem>>, vector<2x16x1x8xf32>
    %107 = vector.shape_cast %106 : vector<2x16x1x8xf32> to vector<2x16x8xf32>
    %108 = vector.shape_cast %105 : vector<2x16x8xf32> to vector<2x16x1x8xf32>
    tpu.vector_store %arg19[%c0_140, %c0_141, %c4_142, %c0_143], %108 {strides = array<i32>} : memref<2x16x8x8xf32, #tpu.memory_space<vmem>>, vector<2x16x1x8xf32>,
    %c0_144 = arith.constant 0 : index
    %c0_145 = arith.constant 0 : index
    %c10 = arith.constant 10 : index
    %c0_146 = arith.constant 0 : index
    %109 = vector.load %arg18[%c0_144, %c0_145, %c10, %c0_146] : memref<2x16x16x8xf32, #tpu.memory_space<vmem>>, vector<2x16x1x8xf32>
    %110 = vector.shape_cast %109 : vector<2x16x1x8xf32> to vector<2x16x8xf32>
    %c0_147 = arith.constant 0 : index
    %c0_148 = arith.constant 0 : index
    %c11 = arith.constant 11 : index
    %c0_149 = arith.constant 0 : index
    %111 = vector.load %arg18[%c0_147, %c0_148, %c11, %c0_149] : memref<2x16x16x8xf32, #tpu.memory_space<vmem>>, vector<2x16x1x8xf32>
    %112 = vector.shape_cast %111 : vector<2x16x1x8xf32> to vector<2x16x8xf32>
    %113 = arith.maximumf %110, %112 : vector<2x16x8xf32>
    %c0_150 = arith.constant 0 : index
    %c0_151 = arith.constant 0 : index
    %c5_152 = arith.constant 5 : index
    %c0_153 = arith.constant 0 : index
    %114 = vector.load %arg19[%c0_150, %c0_151, %c5_152, %c0_153] : memref<2x16x8x8xf32, #tpu.memory_space<vmem>>, vector<2x16x1x8xf32>
    %115 = vector.shape_cast %114 : vector<2x16x1x8xf32> to vector<2x16x8xf32>
    %116 = vector.shape_cast %113 : vector<2x16x8xf32> to vector<2x16x1x8xf32>
    tpu.vector_store %arg19[%c0_150, %c0_151, %c5_152, %c0_153], %116 {strides = array<i32>} : memref<2x16x8x8xf32, #tpu.memory_space<vmem>>, vector<2x16x1x8xf32>,
    %c0_154 = arith.constant 0 : index
    %c0_155 = arith.constant 0 : index
    %c12 = arith.constant 12 : index
    %c0_156 = arith.constant 0 : index
    %117 = vector.load %arg18[%c0_154, %c0_155, %c12, %c0_156] : memref<2x16x16x8xf32, #tpu.memory_space<vmem>>, vector<2x16x1x8xf32>
    %118 = vector.shape_cast %117 : vector<2x16x1x8xf32> to vector<2x16x8xf32>
    %c0_157 = arith.constant 0 : index
    %c0_158 = arith.constant 0 : index
    %c13 = arith.constant 13 : index
    %c0_159 = arith.constant 0 : index
    %119 = vector.load %arg18[%c0_157, %c0_158, %c13, %c0_159] : memref<2x16x16x8xf32, #tpu.memory_space<vmem>>, vector<2x16x1x8xf32>
    %120 = vector.shape_cast %119 : vector<2x16x1x8xf32> to vector<2x16x8xf32>
    %121 = arith.maximumf %118, %120 : vector<2x16x8xf32>
    %c0_160 = arith.constant 0 : index
    %c0_161 = arith.constant 0 : index
    %c6_162 = arith.constant 6 : index
    %c0_163 = arith.constant 0 : index
    %122 = vector.load %arg19[%c0_160, %c0_161, %c6_162, %c0_163] : memref<2x16x8x8xf32, #tpu.memory_space<vmem>>, vector<2x16x1x8xf32>
    %123 = vector.shape_cast %122 : vector<2x16x1x8xf32> to vector<2x16x8xf32>
    %124 = vector.shape_cast %121 : vector<2x16x8xf32> to vector<2x16x1x8xf32>
    tpu.vector_store %arg19[%c0_160, %c0_161, %c6_162, %c0_163], %124 {strides = array<i32>} : memref<2x16x8x8xf32, #tpu.memory_space<vmem>>, vector<2x16x1x8xf32>,
    %c0_164 = arith.constant 0 : index
    %c0_165 = arith.constant 0 : index
    %c14 = arith.constant 14 : index
    %c0_166 = arith.constant 0 : index
    %125 = vector.load %arg18[%c0_164, %c0_165, %c14, %c0_166] : memref<2x16x16x8xf32, #tpu.memory_space<vmem>>, vector<2x16x1x8xf32>
    %126 = vector.shape_cast %125 : vector<2x16x1x8xf32> to vector<2x16x8xf32>
    %c0_167 = arith.constant 0 : index
    %c0_168 = arith.constant 0 : index
    %c15 = arith.constant 15 : index
    %c0_169 = arith.constant 0 : index
    %127 = vector.load %arg18[%c0_167, %c0_168, %c15, %c0_169] : memref<2x16x16x8xf32, #tpu.memory_space<vmem>>, vector<2x16x1x8xf32>
    %128 = vector.shape_cast %127 : vector<2x16x1x8xf32> to vector<2x16x8xf32>
    %129 = arith.maximumf %126, %128 : vector<2x16x8xf32>
    %c0_170 = arith.constant 0 : index
    %c0_171 = arith.constant 0 : index
    %c7_172 = arith.constant 7 : index
    %c0_173 = arith.constant 0 : index
    %130 = vector.load %arg19[%c0_170, %c0_171, %c7_172, %c0_173] : memref<2x16x8x8xf32, #tpu.memory_space<vmem>>, vector<2x16x1x8xf32>
    %131 = vector.shape_cast %130 : vector<2x16x1x8xf32> to vector<2x16x8xf32>
    %132 = vector.shape_cast %129 : vector<2x16x8xf32> to vector<2x16x1x8xf32>
    tpu.vector_store %arg19[%c0_170, %c0_171, %c7_172, %c0_173], %132 {strides = array<i32>} : memref<2x16x8x8xf32, #tpu.memory_space<vmem>>, vector<2x16x1x8xf32>,
    %cst_174 = arith.constant 0.000000e+00 : f32
    %133 = vector.broadcast %cst_174 : f32 to vector<2x10x10x8xf32>
    %c0_175 = arith.constant 0 : index
    %c0_176 = arith.constant 0 : index
    %c0_177 = arith.constant 0 : index
    %c0_178 = arith.constant 0 : index
    %134 = vector.load %arg20[%c0_175, %c0_176, %c0_177, %c0_178] : memref<2x10x10x8xf32, #tpu.memory_space<vmem>>, vector<2x10x10x8xf32>
    tpu.vector_store %arg20[%c0_175, %c0_176, %c0_177, %c0_178], %133 {strides = array<i32>} : memref<2x10x10x8xf32, #tpu.memory_space<vmem>>, vector<2x10x10x8xf32>,
    %c0_179 = arith.constant 0 : index
    %c0_180 = arith.constant 0 : index
    %c0_181 = arith.constant 0 : index
    %c0_182 = arith.constant 0 : index
    %135 = vector.load %arg19[%c0_179, %c0_180, %c0_181, %c0_182] : memref<2x16x8x8xf32, #tpu.memory_space<vmem>>, vector<2x1x8x8xf32>
    %136 = vector.shape_cast %135 : vector<2x1x8x8xf32> to vector<2x8x8xf32>
    %c0_183 = arith.constant 0 : index
    %c1_184 = arith.constant 1 : index
    %c0_185 = arith.constant 0 : index
    %c0_186 = arith.constant 0 : index
    %137 = vector.load %arg19[%c0_183, %c1_184, %c0_185, %c0_186] : memref<2x16x8x8xf32, #tpu.memory_space<vmem>>, vector<2x1x8x8xf32>
    %138 = vector.shape_cast %137 : vector<2x1x8x8xf32> to vector<2x8x8xf32>
    %139 = arith.maximumf %136, %138 : vector<2x8x8xf32>
    %c0_187 = arith.constant 0 : index
    %c1_188 = arith.constant 1 : index
    %c1_189 = arith.constant 1 : index
    %c0_190 = arith.constant 0 : index
    %140 = vector.load %arg20[%c0_187, %c1_188, %c1_189, %c0_190] : memref<2x10x10x8xf32, #tpu.memory_space<vmem>>, vector<2x1x8x8xf32>
    %141 = vector.shape_cast %140 : vector<2x1x8x8xf32> to vector<2x8x8xf32>
    %142 = vector.shape_cast %139 : vector<2x8x8xf32> to vector<2x1x8x8xf32>
    tpu.vector_store %arg20[%c0_187, %c1_188, %c1_189, %c0_190], %142 {strides = array<i32>} : memref<2x10x10x8xf32, #tpu.memory_space<vmem>>, vector<2x1x8x8xf32>,
    %c0_191 = arith.constant 0 : index
    %c2_192 = arith.constant 2 : index
    %c0_193 = arith.constant 0 : index
    %c0_194 = arith.constant 0 : index
    %143 = vector.load %arg19[%c0_191, %c2_192, %c0_193, %c0_194] : memref<2x16x8x8xf32, #tpu.memory_space<vmem>>, vector<2x1x8x8xf32>
    %144 = vector.shape_cast %143 : vector<2x1x8x8xf32> to vector<2x8x8xf32>
    %c0_195 = arith.constant 0 : index
    %c3_196 = arith.constant 3 : index
    %c0_197 = arith.constant 0 : index
    %c0_198 = arith.constant 0 : index
    %145 = vector.load %arg19[%c0_195, %c3_196, %c0_197, %c0_198] : memref<2x16x8x8xf32, #tpu.memory_space<vmem>>, vector<2x1x8x8xf32>
    %146 = vector.shape_cast %145 : vector<2x1x8x8xf32> to vector<2x8x8xf32>
    %147 = arith.maximumf %144, %146 : vector<2x8x8xf32>
    %c0_199 = arith.constant 0 : index
    %c2_200 = arith.constant 2 : index
    %c1_201 = arith.constant 1 : index
    %c0_202 = arith.constant 0 : index
    %148 = vector.load %arg20[%c0_199, %c2_200, %c1_201, %c0_202] : memref<2x10x10x8xf32, #tpu.memory_space<vmem>>, vector<2x1x8x8xf32>
    %149 = vector.shape_cast %148 : vector<2x1x8x8xf32> to vector<2x8x8xf32>
    %150 = vector.shape_cast %147 : vector<2x8x8xf32> to vector<2x1x8x8xf32>
    tpu.vector_store %arg20[%c0_199, %c2_200, %c1_201, %c0_202], %150 {strides = array<i32>} : memref<2x10x10x8xf32, #tpu.memory_space<vmem>>, vector<2x1x8x8xf32>,
    %c0_203 = arith.constant 0 : index
    %c4_204 = arith.constant 4 : index
    %c0_205 = arith.constant 0 : index
    %c0_206 = arith.constant 0 : index
    %151 = vector.load %arg19[%c0_203, %c4_204, %c0_205, %c0_206] : memref<2x16x8x8xf32, #tpu.memory_space<vmem>>, vector<2x1x8x8xf32>
    %152 = vector.shape_cast %151 : vector<2x1x8x8xf32> to vector<2x8x8xf32>
    %c0_207 = arith.constant 0 : index
    %c5_208 = arith.constant 5 : index
    %c0_209 = arith.constant 0 : index
    %c0_210 = arith.constant 0 : index
    %153 = vector.load %arg19[%c0_207, %c5_208, %c0_209, %c0_210] : memref<2x16x8x8xf32, #tpu.memory_space<vmem>>, vector<2x1x8x8xf32>
    %154 = vector.shape_cast %153 : vector<2x1x8x8xf32> to vector<2x8x8xf32>
    %155 = arith.maximumf %152, %154 : vector<2x8x8xf32>
    %c0_211 = arith.constant 0 : index
    %c3_212 = arith.constant 3 : index
    %c1_213 = arith.constant 1 : index
    %c0_214 = arith.constant 0 : index
    %156 = vector.load %arg20[%c0_211, %c3_212, %c1_213, %c0_214] : memref<2x10x10x8xf32, #tpu.memory_space<vmem>>, vector<2x1x8x8xf32>
    %157 = vector.shape_cast %156 : vector<2x1x8x8xf32> to vector<2x8x8xf32>
    %158 = vector.shape_cast %155 : vector<2x8x8xf32> to vector<2x1x8x8xf32>
    tpu.vector_store %arg20[%c0_211, %c3_212, %c1_213, %c0_214], %158 {strides = array<i32>} : memref<2x10x10x8xf32, #tpu.memory_space<vmem>>, vector<2x1x8x8xf32>,
    %c0_215 = arith.constant 0 : index
    %c6_216 = arith.constant 6 : index
    %c0_217 = arith.constant 0 : index
    %c0_218 = arith.constant 0 : index
    %159 = vector.load %arg19[%c0_215, %c6_216, %c0_217, %c0_218] : memref<2x16x8x8xf32, #tpu.memory_space<vmem>>, vector<2x1x8x8xf32>
    %160 = vector.shape_cast %159 : vector<2x1x8x8xf32> to vector<2x8x8xf32>
    %c0_219 = arith.constant 0 : index
    %c7_220 = arith.constant 7 : index
    %c0_221 = arith.constant 0 : index
    %c0_222 = arith.constant 0 : index
    %161 = vector.load %arg19[%c0_219, %c7_220, %c0_221, %c0_222] : memref<2x16x8x8xf32, #tpu.memory_space<vmem>>, vector<2x1x8x8xf32>
    %162 = vector.shape_cast %161 : vector<2x1x8x8xf32> to vector<2x8x8xf32>
    %163 = arith.maximumf %160, %162 : vector<2x8x8xf32>
    %c0_223 = arith.constant 0 : index
    %c4_224 = arith.constant 4 : index
    %c1_225 = arith.constant 1 : index
    %c0_226 = arith.constant 0 : index
    %164 = vector.load %arg20[%c0_223, %c4_224, %c1_225, %c0_226] : memref<2x10x10x8xf32, #tpu.memory_space<vmem>>, vector<2x1x8x8xf32>
    %165 = vector.shape_cast %164 : vector<2x1x8x8xf32> to vector<2x8x8xf32>
    %166 = vector.shape_cast %163 : vector<2x8x8xf32> to vector<2x1x8x8xf32>
    tpu.vector_store %arg20[%c0_223, %c4_224, %c1_225, %c0_226], %166 {strides = array<i32>} : memref<2x10x10x8xf32, #tpu.memory_space<vmem>>, vector<2x1x8x8xf32>,
    %c0_227 = arith.constant 0 : index
    %c8_228 = arith.constant 8 : index
    %c0_229 = arith.constant 0 : index
    %c0_230 = arith.constant 0 : index
    %167 = vector.load %arg19[%c0_227, %c8_228, %c0_229, %c0_230] : memref<2x16x8x8xf32, #tpu.memory_space<vmem>>, vector<2x1x8x8xf32>
    %168 = vector.shape_cast %167 : vector<2x1x8x8xf32> to vector<2x8x8xf32>
    %c0_231 = arith.constant 0 : index
    %c9_232 = arith.constant 9 : index
    %c0_233 = arith.constant 0 : index
    %c0_234 = arith.constant 0 : index
    %169 = vector.load %arg19[%c0_231, %c9_232, %c0_233, %c0_234] : memref<2x16x8x8xf32, #tpu.memory_space<vmem>>, vector<2x1x8x8xf32>
    %170 = vector.shape_cast %169 : vector<2x1x8x8xf32> to vector<2x8x8xf32>
    %171 = arith.maximumf %168, %170 : vector<2x8x8xf32>
    %c0_235 = arith.constant 0 : index
    %c5_236 = arith.constant 5 : index
    %c1_237 = arith.constant 1 : index
    %c0_238 = arith.constant 0 : index
    %172 = vector.load %arg20[%c0_235, %c5_236, %c1_237, %c0_238] : memref<2x10x10x8xf32, #tpu.memory_space<vmem>>, vector<2x1x8x8xf32>
    %173 = vector.shape_cast %172 : vector<2x1x8x8xf32> to vector<2x8x8xf32>
    %174 = vector.shape_cast %171 : vector<2x8x8xf32> to vector<2x1x8x8xf32>
    tpu.vector_store %arg20[%c0_235, %c5_236, %c1_237, %c0_238], %174 {strides = array<i32>} : memref<2x10x10x8xf32, #tpu.memory_space<vmem>>, vector<2x1x8x8xf32>,
    %c0_239 = arith.constant 0 : index
    %c10_240 = arith.constant 10 : index
    %c0_241 = arith.constant 0 : index
    %c0_242 = arith.constant 0 : index
    %175 = vector.load %arg19[%c0_239, %c10_240, %c0_241, %c0_242] : memref<2x16x8x8xf32, #tpu.memory_space<vmem>>, vector<2x1x8x8xf32>
    %176 = vector.shape_cast %175 : vector<2x1x8x8xf32> to vector<2x8x8xf32>
    %c0_243 = arith.constant 0 : index
    %c11_244 = arith.constant 11 : index
    %c0_245 = arith.constant 0 : index
    %c0_246 = arith.constant 0 : index
    %177 = vector.load %arg19[%c0_243, %c11_244, %c0_245, %c0_246] : memref<2x16x8x8xf32, #tpu.memory_space<vmem>>, vector<2x1x8x8xf32>
    %178 = vector.shape_cast %177 : vector<2x1x8x8xf32> to vector<2x8x8xf32>
    %179 = arith.maximumf %176, %178 : vector<2x8x8xf32>
    %c0_247 = arith.constant 0 : index
    %c6_248 = arith.constant 6 : index
    %c1_249 = arith.constant 1 : index
    %c0_250 = arith.constant 0 : index
    %180 = vector.load %arg20[%c0_247, %c6_248, %c1_249, %c0_250] : memref<2x10x10x8xf32, #tpu.memory_space<vmem>>, vector<2x1x8x8xf32>
    %181 = vector.shape_cast %180 : vector<2x1x8x8xf32> to vector<2x8x8xf32>
    %182 = vector.shape_cast %179 : vector<2x8x8xf32> to vector<2x1x8x8xf32>
    tpu.vector_store %arg20[%c0_247, %c6_248, %c1_249, %c0_250], %182 {strides = array<i32>} : memref<2x10x10x8xf32, #tpu.memory_space<vmem>>, vector<2x1x8x8xf32>,
    %c0_251 = arith.constant 0 : index
    %c12_252 = arith.constant 12 : index
    %c0_253 = arith.constant 0 : index
    %c0_254 = arith.constant 0 : index
    %183 = vector.load %arg19[%c0_251, %c12_252, %c0_253, %c0_254] : memref<2x16x8x8xf32, #tpu.memory_space<vmem>>, vector<2x1x8x8xf32>
    %184 = vector.shape_cast %183 : vector<2x1x8x8xf32> to vector<2x8x8xf32>
    %c0_255 = arith.constant 0 : index
    %c13_256 = arith.constant 13 : index
    %c0_257 = arith.constant 0 : index
    %c0_258 = arith.constant 0 : index
    %185 = vector.load %arg19[%c0_255, %c13_256, %c0_257, %c0_258] : memref<2x16x8x8xf32, #tpu.memory_space<vmem>>, vector<2x1x8x8xf32>
    %186 = vector.shape_cast %185 : vector<2x1x8x8xf32> to vector<2x8x8xf32>
    %187 = arith.maximumf %184, %186 : vector<2x8x8xf32>
    %c0_259 = arith.constant 0 : index
    %c7_260 = arith.constant 7 : index
    %c1_261 = arith.constant 1 : index
    %c0_262 = arith.constant 0 : index
    %188 = vector.load %arg20[%c0_259, %c7_260, %c1_261, %c0_262] : memref<2x10x10x8xf32, #tpu.memory_space<vmem>>, vector<2x1x8x8xf32>
    %189 = vector.shape_cast %188 : vector<2x1x8x8xf32> to vector<2x8x8xf32>
    %190 = vector.shape_cast %187 : vector<2x8x8xf32> to vector<2x1x8x8xf32>
    tpu.vector_store %arg20[%c0_259, %c7_260, %c1_261, %c0_262], %190 {strides = array<i32>} : memref<2x10x10x8xf32, #tpu.memory_space<vmem>>, vector<2x1x8x8xf32>,
    %c0_263 = arith.constant 0 : index
    %c14_264 = arith.constant 14 : index
    %c0_265 = arith.constant 0 : index
    %c0_266 = arith.constant 0 : index
    %191 = vector.load %arg19[%c0_263, %c14_264, %c0_265, %c0_266] : memref<2x16x8x8xf32, #tpu.memory_space<vmem>>, vector<2x1x8x8xf32>
    %192 = vector.shape_cast %191 : vector<2x1x8x8xf32> to vector<2x8x8xf32>
    %c0_267 = arith.constant 0 : index
    %c15_268 = arith.constant 15 : index
    %c0_269 = arith.constant 0 : index
    %c0_270 = arith.constant 0 : index
    %193 = vector.load %arg19[%c0_267, %c15_268, %c0_269, %c0_270] : memref<2x16x8x8xf32, #tpu.memory_space<vmem>>, vector<2x1x8x8xf32>
    %194 = vector.shape_cast %193 : vector<2x1x8x8xf32> to vector<2x8x8xf32>
    %195 = arith.maximumf %192, %194 : vector<2x8x8xf32>
    %c0_271 = arith.constant 0 : index
    %c8_272 = arith.constant 8 : index
    %c1_273 = arith.constant 1 : index
    %c0_274 = arith.constant 0 : index
    %196 = vector.load %arg20[%c0_271, %c8_272, %c1_273, %c0_274] : memref<2x10x10x8xf32, #tpu.memory_space<vmem>>, vector<2x1x8x8xf32>
    %197 = vector.shape_cast %196 : vector<2x1x8x8xf32> to vector<2x8x8xf32>
    %198 = vector.shape_cast %195 : vector<2x8x8xf32> to vector<2x1x8x8xf32>
    tpu.vector_store %arg20[%c0_271, %c8_272, %c1_273, %c0_274], %198 {strides = array<i32>} : memref<2x10x10x8xf32, #tpu.memory_space<vmem>>, vector<2x1x8x8xf32>,
    %cst_275 = arith.constant 0.000000e+00 : f32
    %199 = vector.broadcast %cst_275 : f32 to vector<128x16xf32>
    %c0_276 = arith.constant 0 : index
    %c0_277 = arith.constant 0 : index
    %c0_278 = arith.constant 0 : index
    %c0_279 = arith.constant 0 : index
    %200 = vector.load %arg20[%c0_276, %c0_277, %c0_278, %c0_279] : memref<2x10x10x8xf32, #tpu.memory_space<vmem>>, vector<2x8x8x8xf32>
    %201 = vector.shape_cast %200 : vector<2x8x8x8xf32> to vector<128x8xf32>
    %c0_280 = arith.constant 0 : index
    %c0_281 = arith.constant 0 : index
    %c0_282 = arith.constant 0 : index
    %202 = vector.load %arg4[%c0_280, %c0_281, %c0_282] : memref<9x8x16xf32, #tpu.memory_space<vmem>>, vector<1x8x16xf32>
    %203 = vector.shape_cast %202 : vector<1x8x16xf32> to vector<8x16xf32>
    %cst_283 = arith.constant dense<0.000000e+00> : vector<128x16xf32>
    %204 = tpu.matmul %201, %203, %cst_283 {dimension_numbers = #tpu.dot_dimension_numbers<[1], [0], [0], [1], [0, 0, 1, 1], [], []>} : vector<128x8xf32>, vector<8x16xf32>, vector<128x16xf32> -> vector<128x16xf32>
    %205 = arith.addf %199, %204 : vector<128x16xf32>
    %c0_284 = arith.constant 0 : index
    %c0_285 = arith.constant 0 : index
    %c1_286 = arith.constant 1 : index
    %c0_287 = arith.constant 0 : index
    %206 = vector.load %arg20[%c0_284, %c0_285, %c1_286, %c0_287] : memref<2x10x10x8xf32, #tpu.memory_space<vmem>>, vector<2x8x8x8xf32>
    %207 = vector.shape_cast %206 : vector<2x8x8x8xf32> to vector<128x8xf32>
    %c1_288 = arith.constant 1 : index
    %c0_289 = arith.constant 0 : index
    %c0_290 = arith.constant 0 : index
    %208 = vector.load %arg4[%c1_288, %c0_289, %c0_290] : memref<9x8x16xf32, #tpu.memory_space<vmem>>, vector<1x8x16xf32>
    %209 = vector.shape_cast %208 : vector<1x8x16xf32> to vector<8x16xf32>
    %cst_291 = arith.constant dense<0.000000e+00> : vector<128x16xf32>
    %210 = tpu.matmul %207, %209, %cst_291 {dimension_numbers = #tpu.dot_dimension_numbers<[1], [0], [0], [1], [0, 0, 1, 1], [], []>} : vector<128x8xf32>, vector<8x16xf32>, vector<128x16xf32> -> vector<128x16xf32>
    %211 = arith.addf %205, %210 : vector<128x16xf32>
    %c0_292 = arith.constant 0 : index
    %c0_293 = arith.constant 0 : index
    %c2_294 = arith.constant 2 : index
    %c0_295 = arith.constant 0 : index
    %212 = vector.load %arg20[%c0_292, %c0_293, %c2_294, %c0_295] : memref<2x10x10x8xf32, #tpu.memory_space<vmem>>, vector<2x8x8x8xf32>
    %213 = vector.shape_cast %212 : vector<2x8x8x8xf32> to vector<128x8xf32>
    %c2_296 = arith.constant 2 : index
    %c0_297 = arith.constant 0 : index
    %c0_298 = arith.constant 0 : index
    %214 = vector.load %arg4[%c2_296, %c0_297, %c0_298] : memref<9x8x16xf32, #tpu.memory_space<vmem>>, vector<1x8x16xf32>
    %215 = vector.shape_cast %214 : vector<1x8x16xf32> to vector<8x16xf32>
    %cst_299 = arith.constant dense<0.000000e+00> : vector<128x16xf32>
    %216 = tpu.matmul %213, %215, %cst_299 {dimension_numbers = #tpu.dot_dimension_numbers<[1], [0], [0], [1], [0, 0, 1, 1], [], []>} : vector<128x8xf32>, vector<8x16xf32>, vector<128x16xf32> -> vector<128x16xf32>
    %217 = arith.addf %211, %216 : vector<128x16xf32>
    %c0_300 = arith.constant 0 : index
    %c1_301 = arith.constant 1 : index
    %c0_302 = arith.constant 0 : index
    %c0_303 = arith.constant 0 : index
    %218 = vector.load %arg20[%c0_300, %c1_301, %c0_302, %c0_303] : memref<2x10x10x8xf32, #tpu.memory_space<vmem>>, vector<2x8x8x8xf32>
    %219 = vector.shape_cast %218 : vector<2x8x8x8xf32> to vector<128x8xf32>
    %c3_304 = arith.constant 3 : index
    %c0_305 = arith.constant 0 : index
    %c0_306 = arith.constant 0 : index
    %220 = vector.load %arg4[%c3_304, %c0_305, %c0_306] : memref<9x8x16xf32, #tpu.memory_space<vmem>>, vector<1x8x16xf32>
    %221 = vector.shape_cast %220 : vector<1x8x16xf32> to vector<8x16xf32>
    %cst_307 = arith.constant dense<0.000000e+00> : vector<128x16xf32>
    %222 = tpu.matmul %219, %221, %cst_307 {dimension_numbers = #tpu.dot_dimension_numbers<[1], [0], [0], [1], [0, 0, 1, 1], [], []>} : vector<128x8xf32>, vector<8x16xf32>, vector<128x16xf32> -> vector<128x16xf32>
    %223 = arith.addf %217, %222 : vector<128x16xf32>
    %c0_308 = arith.constant 0 : index
    %c1_309 = arith.constant 1 : index
    %c1_310 = arith.constant 1 : index
    %c0_311 = arith.constant 0 : index
    %224 = vector.load %arg20[%c0_308, %c1_309, %c1_310, %c0_311] : memref<2x10x10x8xf32, #tpu.memory_space<vmem>>, vector<2x8x8x8xf32>
    %225 = vector.shape_cast %224 : vector<2x8x8x8xf32> to vector<128x8xf32>
    %c4_312 = arith.constant 4 : index
    %c0_313 = arith.constant 0 : index
    %c0_314 = arith.constant 0 : index
    %226 = vector.load %arg4[%c4_312, %c0_313, %c0_314] : memref<9x8x16xf32, #tpu.memory_space<vmem>>, vector<1x8x16xf32>
    %227 = vector.shape_cast %226 : vector<1x8x16xf32> to vector<8x16xf32>
    %cst_315 = arith.constant dense<0.000000e+00> : vector<128x16xf32>
    %228 = tpu.matmul %225, %227, %cst_315 {dimension_numbers = #tpu.dot_dimension_numbers<[1], [0], [0], [1], [0, 0, 1, 1], [], []>} : vector<128x8xf32>, vector<8x16xf32>, vector<128x16xf32> -> vector<128x16xf32>
    %229 = arith.addf %223, %228 : vector<128x16xf32>
    %c0_316 = arith.constant 0 : index
    %c1_317 = arith.constant 1 : index
    %c2_318 = arith.constant 2 : index
    %c0_319 = arith.constant 0 : index
    %230 = vector.load %arg20[%c0_316, %c1_317, %c2_318, %c0_319] : memref<2x10x10x8xf32, #tpu.memory_space<vmem>>, vector<2x8x8x8xf32>
    %231 = vector.shape_cast %230 : vector<2x8x8x8xf32> to vector<128x8xf32>
    %c5_320 = arith.constant 5 : index
    %c0_321 = arith.constant 0 : index
    %c0_322 = arith.constant 0 : index
    %232 = vector.load %arg4[%c5_320, %c0_321, %c0_322] : memref<9x8x16xf32, #tpu.memory_space<vmem>>, vector<1x8x16xf32>
    %233 = vector.shape_cast %232 : vector<1x8x16xf32> to vector<8x16xf32>
    %cst_323 = arith.constant dense<0.000000e+00> : vector<128x16xf32>
    %234 = tpu.matmul %231, %233, %cst_323 {dimension_numbers = #tpu.dot_dimension_numbers<[1], [0], [0], [1], [0, 0, 1, 1], [], []>} : vector<128x8xf32>, vector<8x16xf32>, vector<128x16xf32> -> vector<128x16xf32>
    %235 = arith.addf %229, %234 : vector<128x16xf32>
    %c0_324 = arith.constant 0 : index
    %c2_325 = arith.constant 2 : index
    %c0_326 = arith.constant 0 : index
    %c0_327 = arith.constant 0 : index
    %236 = vector.load %arg20[%c0_324, %c2_325, %c0_326, %c0_327] : memref<2x10x10x8xf32, #tpu.memory_space<vmem>>, vector<2x8x8x8xf32>
    %237 = vector.shape_cast %236 : vector<2x8x8x8xf32> to vector<128x8xf32>
    %c6_328 = arith.constant 6 : index
    %c0_329 = arith.constant 0 : index
    %c0_330 = arith.constant 0 : index
    %238 = vector.load %arg4[%c6_328, %c0_329, %c0_330] : memref<9x8x16xf32, #tpu.memory_space<vmem>>, vector<1x8x16xf32>
    %239 = vector.shape_cast %238 : vector<1x8x16xf32> to vector<8x16xf32>
    %cst_331 = arith.constant dense<0.000000e+00> : vector<128x16xf32>
    %240 = tpu.matmul %237, %239, %cst_331 {dimension_numbers = #tpu.dot_dimension_numbers<[1], [0], [0], [1], [0, 0, 1, 1], [], []>} : vector<128x8xf32>, vector<8x16xf32>, vector<128x16xf32> -> vector<128x16xf32>
    %241 = arith.addf %235, %240 : vector<128x16xf32>
    %c0_332 = arith.constant 0 : index
    %c2_333 = arith.constant 2 : index
    %c1_334 = arith.constant 1 : index
    %c0_335 = arith.constant 0 : index
    %242 = vector.load %arg20[%c0_332, %c2_333, %c1_334, %c0_335] : memref<2x10x10x8xf32, #tpu.memory_space<vmem>>, vector<2x8x8x8xf32>
    %243 = vector.shape_cast %242 : vector<2x8x8x8xf32> to vector<128x8xf32>
    %c7_336 = arith.constant 7 : index
    %c0_337 = arith.constant 0 : index
    %c0_338 = arith.constant 0 : index
    %244 = vector.load %arg4[%c7_336, %c0_337, %c0_338] : memref<9x8x16xf32, #tpu.memory_space<vmem>>, vector<1x8x16xf32>
    %245 = vector.shape_cast %244 : vector<1x8x16xf32> to vector<8x16xf32>
    %cst_339 = arith.constant dense<0.000000e+00> : vector<128x16xf32>
    %246 = tpu.matmul %243, %245, %cst_339 {dimension_numbers = #tpu.dot_dimension_numbers<[1], [0], [0], [1], [0, 0, 1, 1], [], []>} : vector<128x8xf32>, vector<8x16xf32>, vector<128x16xf32> -> vector<128x16xf32>
    %247 = arith.addf %241, %246 : vector<128x16xf32>
    %c0_340 = arith.constant 0 : index
    %c2_341 = arith.constant 2 : index
    %c2_342 = arith.constant 2 : index
    %c0_343 = arith.constant 0 : index
    %248 = vector.load %arg20[%c0_340, %c2_341, %c2_342, %c0_343] : memref<2x10x10x8xf32, #tpu.memory_space<vmem>>, vector<2x8x8x8xf32>
    %249 = vector.shape_cast %248 : vector<2x8x8x8xf32> to vector<128x8xf32>
    %c8_344 = arith.constant 8 : index
    %c0_345 = arith.constant 0 : index
    %c0_346 = arith.constant 0 : index
    %250 = vector.load %arg4[%c8_344, %c0_345, %c0_346] : memref<9x8x16xf32, #tpu.memory_space<vmem>>, vector<1x8x16xf32>
    %251 = vector.shape_cast %250 : vector<1x8x16xf32> to vector<8x16xf32>
    %cst_347 = arith.constant dense<0.000000e+00> : vector<128x16xf32>
    %252 = tpu.matmul %249, %251, %cst_347 {dimension_numbers = #tpu.dot_dimension_numbers<[1], [0], [0], [1], [0, 0, 1, 1], [], []>} : vector<128x8xf32>, vector<8x16xf32>, vector<128x16xf32> -> vector<128x16xf32>
    %253 = arith.addf %247, %252 : vector<128x16xf32>
    %c0_348 = arith.constant 0 : index
    %c0_349 = arith.constant 0 : index
    %254 = vector.load %arg5[%c0_348, %c0_349] : memref<1x16xf32, #tpu.memory_space<vmem>>, vector<1x16xf32>
    %255 = vector.broadcast %254 : vector<1x16xf32> to vector<128x16xf32>
    %256 = arith.mulf %253, %255 : vector<128x16xf32>
    %c0_350 = arith.constant 0 : index
    %c0_351 = arith.constant 0 : index
    %257 = vector.load %arg6[%c0_350, %c0_351] : memref<1x16xf32, #tpu.memory_space<vmem>>, vector<1x16xf32>
    %258 = vector.broadcast %257 : vector<1x16xf32> to vector<128x16xf32>
    %259 = arith.addf %256, %258 : vector<128x16xf32>
    %cst_352 = arith.constant 0.000000e+00 : f32
    %260 = vector.broadcast %cst_352 : f32 to vector<128x16xf32>
    %261 = arith.maximumf %259, %260 : vector<128x16xf32>
    %262 = vector.shape_cast %261 : vector<128x16xf32> to vector<2x8x8x16xf32>
    %c0_353 = arith.constant 0 : index
    %c0_354 = arith.constant 0 : index
    %c0_355 = arith.constant 0 : index
    %c0_356 = arith.constant 0 : index
    %263 = vector.load %arg21[%c0_353, %c0_354, %c0_355, %c0_356] : memref<2x8x8x16xf32, #tpu.memory_space<vmem>>, vector<2x8x8x16xf32>
    tpu.vector_store %arg21[%c0_353, %c0_354, %c0_355, %c0_356], %262 {strides = array<i32>} : memref<2x8x8x16xf32, #tpu.memory_space<vmem>>, vector<2x8x8x16xf32>,
    %c0_357 = arith.constant 0 : index
    %c0_358 = arith.constant 0 : index
    %c0_359 = arith.constant 0 : index
    %c0_360 = arith.constant 0 : index
    %264 = vector.load %arg21[%c0_357, %c0_358, %c0_359, %c0_360] : memref<2x8x8x16xf32, #tpu.memory_space<vmem>>, vector<2x8x1x16xf32>
    %265 = vector.shape_cast %264 : vector<2x8x1x16xf32> to vector<2x8x16xf32>
    %c0_361 = arith.constant 0 : index
    %c0_362 = arith.constant 0 : index
    %c1_363 = arith.constant 1 : index
    %c0_364 = arith.constant 0 : index
    %266 = vector.load %arg21[%c0_361, %c0_362, %c1_363, %c0_364] : memref<2x8x8x16xf32, #tpu.memory_space<vmem>>, vector<2x8x1x16xf32>
    %267 = vector.shape_cast %266 : vector<2x8x1x16xf32> to vector<2x8x16xf32>
    %268 = arith.maximumf %265, %267 : vector<2x8x16xf32>
    %c0_365 = arith.constant 0 : index
    %c0_366 = arith.constant 0 : index
    %c0_367 = arith.constant 0 : index
    %c0_368 = arith.constant 0 : index
    %269 = vector.load %arg22[%c0_365, %c0_366, %c0_367, %c0_368] : memref<2x8x4x16xf32, #tpu.memory_space<vmem>>, vector<2x8x1x16xf32>
    %270 = vector.shape_cast %269 : vector<2x8x1x16xf32> to vector<2x8x16xf32>
    %271 = vector.shape_cast %268 : vector<2x8x16xf32> to vector<2x8x1x16xf32>
    tpu.vector_store %arg22[%c0_365, %c0_366, %c0_367, %c0_368], %271 {strides = array<i32>} : memref<2x8x4x16xf32, #tpu.memory_space<vmem>>, vector<2x8x1x16xf32>,
    %c0_369 = arith.constant 0 : index
    %c0_370 = arith.constant 0 : index
    %c2_371 = arith.constant 2 : index
    %c0_372 = arith.constant 0 : index
    %272 = vector.load %arg21[%c0_369, %c0_370, %c2_371, %c0_372] : memref<2x8x8x16xf32, #tpu.memory_space<vmem>>, vector<2x8x1x16xf32>
    %273 = vector.shape_cast %272 : vector<2x8x1x16xf32> to vector<2x8x16xf32>
    %c0_373 = arith.constant 0 : index
    %c0_374 = arith.constant 0 : index
    %c3_375 = arith.constant 3 : index
    %c0_376 = arith.constant 0 : index
    %274 = vector.load %arg21[%c0_373, %c0_374, %c3_375, %c0_376] : memref<2x8x8x16xf32, #tpu.memory_space<vmem>>, vector<2x8x1x16xf32>
    %275 = vector.shape_cast %274 : vector<2x8x1x16xf32> to vector<2x8x16xf32>
    %276 = arith.maximumf %273, %275 : vector<2x8x16xf32>
    %c0_377 = arith.constant 0 : index
    %c0_378 = arith.constant 0 : index
    %c1_379 = arith.constant 1 : index
    %c0_380 = arith.constant 0 : index
    %277 = vector.load %arg22[%c0_377, %c0_378, %c1_379, %c0_380] : memref<2x8x4x16xf32, #tpu.memory_space<vmem>>, vector<2x8x1x16xf32>
    %278 = vector.shape_cast %277 : vector<2x8x1x16xf32> to vector<2x8x16xf32>
    %279 = vector.shape_cast %276 : vector<2x8x16xf32> to vector<2x8x1x16xf32>
    tpu.vector_store %arg22[%c0_377, %c0_378, %c1_379, %c0_380], %279 {strides = array<i32>} : memref<2x8x4x16xf32, #tpu.memory_space<vmem>>, vector<2x8x1x16xf32>,
    %c0_381 = arith.constant 0 : index
    %c0_382 = arith.constant 0 : index
    %c4_383 = arith.constant 4 : index
    %c0_384 = arith.constant 0 : index
    %280 = vector.load %arg21[%c0_381, %c0_382, %c4_383, %c0_384] : memref<2x8x8x16xf32, #tpu.memory_space<vmem>>, vector<2x8x1x16xf32>
    %281 = vector.shape_cast %280 : vector<2x8x1x16xf32> to vector<2x8x16xf32>
    %c0_385 = arith.constant 0 : index
    %c0_386 = arith.constant 0 : index
    %c5_387 = arith.constant 5 : index
    %c0_388 = arith.constant 0 : index
    %282 = vector.load %arg21[%c0_385, %c0_386, %c5_387, %c0_388] : memref<2x8x8x16xf32, #tpu.memory_space<vmem>>, vector<2x8x1x16xf32>
    %283 = vector.shape_cast %282 : vector<2x8x1x16xf32> to vector<2x8x16xf32>
    %284 = arith.maximumf %281, %283 : vector<2x8x16xf32>
    %c0_389 = arith.constant 0 : index
    %c0_390 = arith.constant 0 : index
    %c2_391 = arith.constant 2 : index
    %c0_392 = arith.constant 0 : index
    %285 = vector.load %arg22[%c0_389, %c0_390, %c2_391, %c0_392] : memref<2x8x4x16xf32, #tpu.memory_space<vmem>>, vector<2x8x1x16xf32>
    %286 = vector.shape_cast %285 : vector<2x8x1x16xf32> to vector<2x8x16xf32>
    %287 = vector.shape_cast %284 : vector<2x8x16xf32> to vector<2x8x1x16xf32>
    tpu.vector_store %arg22[%c0_389, %c0_390, %c2_391, %c0_392], %287 {strides = array<i32>} : memref<2x8x4x16xf32, #tpu.memory_space<vmem>>, vector<2x8x1x16xf32>,
    %c0_393 = arith.constant 0 : index
    %c0_394 = arith.constant 0 : index
    %c6_395 = arith.constant 6 : index
    %c0_396 = arith.constant 0 : index
    %288 = vector.load %arg21[%c0_393, %c0_394, %c6_395, %c0_396] : memref<2x8x8x16xf32, #tpu.memory_space<vmem>>, vector<2x8x1x16xf32>
    %289 = vector.shape_cast %288 : vector<2x8x1x16xf32> to vector<2x8x16xf32>
    %c0_397 = arith.constant 0 : index
    %c0_398 = arith.constant 0 : index
    %c7_399 = arith.constant 7 : index
    %c0_400 = arith.constant 0 : index
    %290 = vector.load %arg21[%c0_397, %c0_398, %c7_399, %c0_400] : memref<2x8x8x16xf32, #tpu.memory_space<vmem>>, vector<2x8x1x16xf32>
    %291 = vector.shape_cast %290 : vector<2x8x1x16xf32> to vector<2x8x16xf32>
    %292 = arith.maximumf %289, %291 : vector<2x8x16xf32>
    %c0_401 = arith.constant 0 : index
    %c0_402 = arith.constant 0 : index
    %c3_403 = arith.constant 3 : index
    %c0_404 = arith.constant 0 : index
    %293 = vector.load %arg22[%c0_401, %c0_402, %c3_403, %c0_404] : memref<2x8x4x16xf32, #tpu.memory_space<vmem>>, vector<2x8x1x16xf32>
    %294 = vector.shape_cast %293 : vector<2x8x1x16xf32> to vector<2x8x16xf32>
    %295 = vector.shape_cast %292 : vector<2x8x16xf32> to vector<2x8x1x16xf32>
    tpu.vector_store %arg22[%c0_401, %c0_402, %c3_403, %c0_404], %295 {strides = array<i32>} : memref<2x8x4x16xf32, #tpu.memory_space<vmem>>, vector<2x8x1x16xf32>,
    %c0_405 = arith.constant 0 : index
    %c0_406 = arith.constant 0 : index
    %c0_407 = arith.constant 0 : index
    %c0_408 = arith.constant 0 : index
    %296 = vector.load %arg22[%c0_405, %c0_406, %c0_407, %c0_408] : memref<2x8x4x16xf32, #tpu.memory_space<vmem>>, vector<2x1x4x16xf32>
    %297 = vector.shape_cast %296 : vector<2x1x4x16xf32> to vector<2x4x16xf32>
    %c0_409 = arith.constant 0 : index
    %c1_410 = arith.constant 1 : index
    %c0_411 = arith.constant 0 : index
    %c0_412 = arith.constant 0 : index
    %298 = vector.load %arg22[%c0_409, %c1_410, %c0_411, %c0_412] : memref<2x8x4x16xf32, #tpu.memory_space<vmem>>, vector<2x1x4x16xf32>
    %299 = vector.shape_cast %298 : vector<2x1x4x16xf32> to vector<2x4x16xf32>
    %300 = arith.maximumf %297, %299 : vector<2x4x16xf32>
    %c0_413 = arith.constant 0 : index
    %c0_414 = arith.constant 0 : index
    %c0_415 = arith.constant 0 : index
    %c0_416 = arith.constant 0 : index
    %301 = vector.load %arg23[%c0_413, %c0_414, %c0_415, %c0_416] : memref<2x4x4x16xf32, #tpu.memory_space<vmem>>, vector<2x1x4x16xf32>
    %302 = vector.shape_cast %301 : vector<2x1x4x16xf32> to vector<2x4x16xf32>
    %303 = vector.shape_cast %300 : vector<2x4x16xf32> to vector<2x1x4x16xf32>
    tpu.vector_store %arg23[%c0_413, %c0_414, %c0_415, %c0_416], %303 {strides = array<i32>} : memref<2x4x4x16xf32, #tpu.memory_space<vmem>>, vector<2x1x4x16xf32>,
    %c0_417 = arith.constant 0 : index
    %c2_418 = arith.constant 2 : index
    %c0_419 = arith.constant 0 : index
    %c0_420 = arith.constant 0 : index
    %304 = vector.load %arg22[%c0_417, %c2_418, %c0_419, %c0_420] : memref<2x8x4x16xf32, #tpu.memory_space<vmem>>, vector<2x1x4x16xf32>
    %305 = vector.shape_cast %304 : vector<2x1x4x16xf32> to vector<2x4x16xf32>
    %c0_421 = arith.constant 0 : index
    %c3_422 = arith.constant 3 : index
    %c0_423 = arith.constant 0 : index
    %c0_424 = arith.constant 0 : index
    %306 = vector.load %arg22[%c0_421, %c3_422, %c0_423, %c0_424] : memref<2x8x4x16xf32, #tpu.memory_space<vmem>>, vector<2x1x4x16xf32>
    %307 = vector.shape_cast %306 : vector<2x1x4x16xf32> to vector<2x4x16xf32>
    %308 = arith.maximumf %305, %307 : vector<2x4x16xf32>
    %c0_425 = arith.constant 0 : index
    %c1_426 = arith.constant 1 : index
    %c0_427 = arith.constant 0 : index
    %c0_428 = arith.constant 0 : index
    %309 = vector.load %arg23[%c0_425, %c1_426, %c0_427, %c0_428] : memref<2x4x4x16xf32, #tpu.memory_space<vmem>>, vector<2x1x4x16xf32>
    %310 = vector.shape_cast %309 : vector<2x1x4x16xf32> to vector<2x4x16xf32>
    %311 = vector.shape_cast %308 : vector<2x4x16xf32> to vector<2x1x4x16xf32>
    tpu.vector_store %arg23[%c0_425, %c1_426, %c0_427, %c0_428], %311 {strides = array<i32>} : memref<2x4x4x16xf32, #tpu.memory_space<vmem>>, vector<2x1x4x16xf32>,
    %c0_429 = arith.constant 0 : index
    %c4_430 = arith.constant 4 : index
    %c0_431 = arith.constant 0 : index
    %c0_432 = arith.constant 0 : index
    %312 = vector.load %arg22[%c0_429, %c4_430, %c0_431, %c0_432] : memref<2x8x4x16xf32, #tpu.memory_space<vmem>>, vector<2x1x4x16xf32>
    %313 = vector.shape_cast %312 : vector<2x1x4x16xf32> to vector<2x4x16xf32>
    %c0_433 = arith.constant 0 : index
    %c5_434 = arith.constant 5 : index
    %c0_435 = arith.constant 0 : index
    %c0_436 = arith.constant 0 : index
    %314 = vector.load %arg22[%c0_433, %c5_434, %c0_435, %c0_436] : memref<2x8x4x16xf32, #tpu.memory_space<vmem>>, vector<2x1x4x16xf32>
    %315 = vector.shape_cast %314 : vector<2x1x4x16xf32> to vector<2x4x16xf32>
    %316 = arith.maximumf %313, %315 : vector<2x4x16xf32>
    %c0_437 = arith.constant 0 : index
    %c2_438 = arith.constant 2 : index
    %c0_439 = arith.constant 0 : index
    %c0_440 = arith.constant 0 : index
    %317 = vector.load %arg23[%c0_437, %c2_438, %c0_439, %c0_440] : memref<2x4x4x16xf32, #tpu.memory_space<vmem>>, vector<2x1x4x16xf32>
    %318 = vector.shape_cast %317 : vector<2x1x4x16xf32> to vector<2x4x16xf32>
    %319 = vector.shape_cast %316 : vector<2x4x16xf32> to vector<2x1x4x16xf32>
    tpu.vector_store %arg23[%c0_437, %c2_438, %c0_439, %c0_440], %319 {strides = array<i32>} : memref<2x4x4x16xf32, #tpu.memory_space<vmem>>, vector<2x1x4x16xf32>,
    %c0_441 = arith.constant 0 : index
    %c6_442 = arith.constant 6 : index
    %c0_443 = arith.constant 0 : index
    %c0_444 = arith.constant 0 : index
    %320 = vector.load %arg22[%c0_441, %c6_442, %c0_443, %c0_444] : memref<2x8x4x16xf32, #tpu.memory_space<vmem>>, vector<2x1x4x16xf32>
    %321 = vector.shape_cast %320 : vector<2x1x4x16xf32> to vector<2x4x16xf32>
    %c0_445 = arith.constant 0 : index
    %c7_446 = arith.constant 7 : index
    %c0_447 = arith.constant 0 : index
    %c0_448 = arith.constant 0 : index
    %322 = vector.load %arg22[%c0_445, %c7_446, %c0_447, %c0_448] : memref<2x8x4x16xf32, #tpu.memory_space<vmem>>, vector<2x1x4x16xf32>
    %323 = vector.shape_cast %322 : vector<2x1x4x16xf32> to vector<2x4x16xf32>
    %324 = arith.maximumf %321, %323 : vector<2x4x16xf32>
    %c0_449 = arith.constant 0 : index
    %c3_450 = arith.constant 3 : index
    %c0_451 = arith.constant 0 : index
    %c0_452 = arith.constant 0 : index
    %325 = vector.load %arg23[%c0_449, %c3_450, %c0_451, %c0_452] : memref<2x4x4x16xf32, #tpu.memory_space<vmem>>, vector<2x1x4x16xf32>
    %326 = vector.shape_cast %325 : vector<2x1x4x16xf32> to vector<2x4x16xf32>
    %327 = vector.shape_cast %324 : vector<2x4x16xf32> to vector<2x1x4x16xf32>
    tpu.vector_store %arg23[%c0_449, %c3_450, %c0_451, %c0_452], %327 {strides = array<i32>} : memref<2x4x4x16xf32, #tpu.memory_space<vmem>>, vector<2x1x4x16xf32>,
    %cst_453 = arith.constant 0.000000e+00 : f32
    %328 = vector.broadcast %cst_453 : f32 to vector<2x32xf32>
    %c0_454 = arith.constant 0 : index
    %c0_455 = arith.constant 0 : index
    %c0_456 = arith.constant 0 : index
    %c0_457 = arith.constant 0 : index
    %329 = vector.load %arg23[%c0_454, %c0_455, %c0_456, %c0_457] : memref<2x4x4x16xf32, #tpu.memory_space<vmem>>, vector<2x1x1x16xf32>
    %330 = vector.shape_cast %329 : vector<2x1x1x16xf32> to vector<2x16xf32>
    %c0_458 = arith.constant 0 : index
    %c0_459 = arith.constant 0 : index
    %c0_460 = arith.constant 0 : index
    %331 = vector.load %arg7[%c0_458, %c0_459, %c0_460] : memref<16x16x32xf32, #tpu.memory_space<vmem>>, vector<1x16x32xf32>
    %332 = vector.shape_cast %331 : vector<1x16x32xf32> to vector<16x32xf32>
    %cst_461 = arith.constant dense<0.000000e+00> : vector<2x32xf32>
    %333 = tpu.matmul %330, %332, %cst_461 {dimension_numbers = #tpu.dot_dimension_numbers<[1], [0], [0], [1], [0, 0, 1, 1], [], []>} : vector<2x16xf32>, vector<16x32xf32>, vector<2x32xf32> -> vector<2x32xf32>
    %334 = arith.addf %328, %333 : vector<2x32xf32>
    %c0_462 = arith.constant 0 : index
    %c0_463 = arith.constant 0 : index
    %c1_464 = arith.constant 1 : index
    %c0_465 = arith.constant 0 : index
    %335 = vector.load %arg23[%c0_462, %c0_463, %c1_464, %c0_465] : memref<2x4x4x16xf32, #tpu.memory_space<vmem>>, vector<2x1x1x16xf32>
    %336 = vector.shape_cast %335 : vector<2x1x1x16xf32> to vector<2x16xf32>
    %c1_466 = arith.constant 1 : index
    %c0_467 = arith.constant 0 : index
    %c0_468 = arith.constant 0 : index
    %337 = vector.load %arg7[%c1_466, %c0_467, %c0_468] : memref<16x16x32xf32, #tpu.memory_space<vmem>>, vector<1x16x32xf32>
    %338 = vector.shape_cast %337 : vector<1x16x32xf32> to vector<16x32xf32>
    %cst_469 = arith.constant dense<0.000000e+00> : vector<2x32xf32>
    %339 = tpu.matmul %336, %338, %cst_469 {dimension_numbers = #tpu.dot_dimension_numbers<[1], [0], [0], [1], [0, 0, 1, 1], [], []>} : vector<2x16xf32>, vector<16x32xf32>, vector<2x32xf32> -> vector<2x32xf32>
    %340 = arith.addf %334, %339 : vector<2x32xf32>
    %c0_470 = arith.constant 0 : index
    %c0_471 = arith.constant 0 : index
    %c2_472 = arith.constant 2 : index
    %c0_473 = arith.constant 0 : index
    %341 = vector.load %arg23[%c0_470, %c0_471, %c2_472, %c0_473] : memref<2x4x4x16xf32, #tpu.memory_space<vmem>>, vector<2x1x1x16xf32>
    %342 = vector.shape_cast %341 : vector<2x1x1x16xf32> to vector<2x16xf32>
    %c2_474 = arith.constant 2 : index
    %c0_475 = arith.constant 0 : index
    %c0_476 = arith.constant 0 : index
    %343 = vector.load %arg7[%c2_474, %c0_475, %c0_476] : memref<16x16x32xf32, #tpu.memory_space<vmem>>, vector<1x16x32xf32>
    %344 = vector.shape_cast %343 : vector<1x16x32xf32> to vector<16x32xf32>
    %cst_477 = arith.constant dense<0.000000e+00> : vector<2x32xf32>
    %345 = tpu.matmul %342, %344, %cst_477 {dimension_numbers = #tpu.dot_dimension_numbers<[1], [0], [0], [1], [0, 0, 1, 1], [], []>} : vector<2x16xf32>, vector<16x32xf32>, vector<2x32xf32> -> vector<2x32xf32>
    %346 = arith.addf %340, %345 : vector<2x32xf32>
    %c0_478 = arith.constant 0 : index
    %c0_479 = arith.constant 0 : index
    %c3_480 = arith.constant 3 : index
    %c0_481 = arith.constant 0 : index
    %347 = vector.load %arg23[%c0_478, %c0_479, %c3_480, %c0_481] : memref<2x4x4x16xf32, #tpu.memory_space<vmem>>, vector<2x1x1x16xf32>
    %348 = vector.shape_cast %347 : vector<2x1x1x16xf32> to vector<2x16xf32>
    %c3_482 = arith.constant 3 : index
    %c0_483 = arith.constant 0 : index
    %c0_484 = arith.constant 0 : index
    %349 = vector.load %arg7[%c3_482, %c0_483, %c0_484] : memref<16x16x32xf32, #tpu.memory_space<vmem>>, vector<1x16x32xf32>
    %350 = vector.shape_cast %349 : vector<1x16x32xf32> to vector<16x32xf32>
    %cst_485 = arith.constant dense<0.000000e+00> : vector<2x32xf32>
    %351 = tpu.matmul %348, %350, %cst_485 {dimension_numbers = #tpu.dot_dimension_numbers<[1], [0], [0], [1], [0, 0, 1, 1], [], []>} : vector<2x16xf32>, vector<16x32xf32>, vector<2x32xf32> -> vector<2x32xf32>
    %352 = arith.addf %346, %351 : vector<2x32xf32>
    %c0_486 = arith.constant 0 : index
    %c1_487 = arith.constant 1 : index
    %c0_488 = arith.constant 0 : index
    %c0_489 = arith.constant 0 : index
    %353 = vector.load %arg23[%c0_486, %c1_487, %c0_488, %c0_489] : memref<2x4x4x16xf32, #tpu.memory_space<vmem>>, vector<2x1x1x16xf32>
    %354 = vector.shape_cast %353 : vector<2x1x1x16xf32> to vector<2x16xf32>
    %c4_490 = arith.constant 4 : index
    %c0_491 = arith.constant 0 : index
    %c0_492 = arith.constant 0 : index
    %355 = vector.load %arg7[%c4_490, %c0_491, %c0_492] : memref<16x16x32xf32, #tpu.memory_space<vmem>>, vector<1x16x32xf32>
    %356 = vector.shape_cast %355 : vector<1x16x32xf32> to vector<16x32xf32>
    %cst_493 = arith.constant dense<0.000000e+00> : vector<2x32xf32>
    %357 = tpu.matmul %354, %356, %cst_493 {dimension_numbers = #tpu.dot_dimension_numbers<[1], [0], [0], [1], [0, 0, 1, 1], [], []>} : vector<2x16xf32>, vector<16x32xf32>, vector<2x32xf32> -> vector<2x32xf32>
    %358 = arith.addf %352, %357 : vector<2x32xf32>
    %c0_494 = arith.constant 0 : index
    %c1_495 = arith.constant 1 : index
    %c1_496 = arith.constant 1 : index
    %c0_497 = arith.constant 0 : index
    %359 = vector.load %arg23[%c0_494, %c1_495, %c1_496, %c0_497] : memref<2x4x4x16xf32, #tpu.memory_space<vmem>>, vector<2x1x1x16xf32>
    %360 = vector.shape_cast %359 : vector<2x1x1x16xf32> to vector<2x16xf32>
    %c5_498 = arith.constant 5 : index
    %c0_499 = arith.constant 0 : index
    %c0_500 = arith.constant 0 : index
    %361 = vector.load %arg7[%c5_498, %c0_499, %c0_500] : memref<16x16x32xf32, #tpu.memory_space<vmem>>, vector<1x16x32xf32>
    %362 = vector.shape_cast %361 : vector<1x16x32xf32> to vector<16x32xf32>
    %cst_501 = arith.constant dense<0.000000e+00> : vector<2x32xf32>
    %363 = tpu.matmul %360, %362, %cst_501 {dimension_numbers = #tpu.dot_dimension_numbers<[1], [0], [0], [1], [0, 0, 1, 1], [], []>} : vector<2x16xf32>, vector<16x32xf32>, vector<2x32xf32> -> vector<2x32xf32>
    %364 = arith.addf %358, %363 : vector<2x32xf32>
    %c0_502 = arith.constant 0 : index
    %c1_503 = arith.constant 1 : index
    %c2_504 = arith.constant 2 : index
    %c0_505 = arith.constant 0 : index
    %365 = vector.load %arg23[%c0_502, %c1_503, %c2_504, %c0_505] : memref<2x4x4x16xf32, #tpu.memory_space<vmem>>, vector<2x1x1x16xf32>
    %366 = vector.shape_cast %365 : vector<2x1x1x16xf32> to vector<2x16xf32>
    %c6_506 = arith.constant 6 : index
    %c0_507 = arith.constant 0 : index
    %c0_508 = arith.constant 0 : index
    %367 = vector.load %arg7[%c6_506, %c0_507, %c0_508] : memref<16x16x32xf32, #tpu.memory_space<vmem>>, vector<1x16x32xf32>
    %368 = vector.shape_cast %367 : vector<1x16x32xf32> to vector<16x32xf32>
    %cst_509 = arith.constant dense<0.000000e+00> : vector<2x32xf32>
    %369 = tpu.matmul %366, %368, %cst_509 {dimension_numbers = #tpu.dot_dimension_numbers<[1], [0], [0], [1], [0, 0, 1, 1], [], []>} : vector<2x16xf32>, vector<16x32xf32>, vector<2x32xf32> -> vector<2x32xf32>
    %370 = arith.addf %364, %369 : vector<2x32xf32>
    %c0_510 = arith.constant 0 : index
    %c1_511 = arith.constant 1 : index
    %c3_512 = arith.constant 3 : index
    %c0_513 = arith.constant 0 : index
    %371 = vector.load %arg23[%c0_510, %c1_511, %c3_512, %c0_513] : memref<2x4x4x16xf32, #tpu.memory_space<vmem>>, vector<2x1x1x16xf32>
    %372 = vector.shape_cast %371 : vector<2x1x1x16xf32> to vector<2x16xf32>
    %c7_514 = arith.constant 7 : index
    %c0_515 = arith.constant 0 : index
    %c0_516 = arith.constant 0 : index
    %373 = vector.load %arg7[%c7_514, %c0_515, %c0_516] : memref<16x16x32xf32, #tpu.memory_space<vmem>>, vector<1x16x32xf32>
    %374 = vector.shape_cast %373 : vector<1x16x32xf32> to vector<16x32xf32>
    %cst_517 = arith.constant dense<0.000000e+00> : vector<2x32xf32>
    %375 = tpu.matmul %372, %374, %cst_517 {dimension_numbers = #tpu.dot_dimension_numbers<[1], [0], [0], [1], [0, 0, 1, 1], [], []>} : vector<2x16xf32>, vector<16x32xf32>, vector<2x32xf32> -> vector<2x32xf32>
    %376 = arith.addf %370, %375 : vector<2x32xf32>
    %c0_518 = arith.constant 0 : index
    %c2_519 = arith.constant 2 : index
    %c0_520 = arith.constant 0 : index
    %c0_521 = arith.constant 0 : index
    %377 = vector.load %arg23[%c0_518, %c2_519, %c0_520, %c0_521] : memref<2x4x4x16xf32, #tpu.memory_space<vmem>>, vector<2x1x1x16xf32>
    %378 = vector.shape_cast %377 : vector<2x1x1x16xf32> to vector<2x16xf32>
    %c8_522 = arith.constant 8 : index
    %c0_523 = arith.constant 0 : index
    %c0_524 = arith.constant 0 : index
    %379 = vector.load %arg7[%c8_522, %c0_523, %c0_524] : memref<16x16x32xf32, #tpu.memory_space<vmem>>, vector<1x16x32xf32>
    %380 = vector.shape_cast %379 : vector<1x16x32xf32> to vector<16x32xf32>
    %cst_525 = arith.constant dense<0.000000e+00> : vector<2x32xf32>
    %381 = tpu.matmul %378, %380, %cst_525 {dimension_numbers = #tpu.dot_dimension_numbers<[1], [0], [0], [1], [0, 0, 1, 1], [], []>} : vector<2x16xf32>, vector<16x32xf32>, vector<2x32xf32> -> vector<2x32xf32>
    %382 = arith.addf %376, %381 : vector<2x32xf32>
    %c0_526 = arith.constant 0 : index
    %c2_527 = arith.constant 2 : index
    %c1_528 = arith.constant 1 : index
    %c0_529 = arith.constant 0 : index
    %383 = vector.load %arg23[%c0_526, %c2_527, %c1_528, %c0_529] : memref<2x4x4x16xf32, #tpu.memory_space<vmem>>, vector<2x1x1x16xf32>
    %384 = vector.shape_cast %383 : vector<2x1x1x16xf32> to vector<2x16xf32>
    %c9_530 = arith.constant 9 : index
    %c0_531 = arith.constant 0 : index
    %c0_532 = arith.constant 0 : index
    %385 = vector.load %arg7[%c9_530, %c0_531, %c0_532] : memref<16x16x32xf32, #tpu.memory_space<vmem>>, vector<1x16x32xf32>
    %386 = vector.shape_cast %385 : vector<1x16x32xf32> to vector<16x32xf32>
    %cst_533 = arith.constant dense<0.000000e+00> : vector<2x32xf32>
    %387 = tpu.matmul %384, %386, %cst_533 {dimension_numbers = #tpu.dot_dimension_numbers<[1], [0], [0], [1], [0, 0, 1, 1], [], []>} : vector<2x16xf32>, vector<16x32xf32>, vector<2x32xf32> -> vector<2x32xf32>
    %388 = arith.addf %382, %387 : vector<2x32xf32>
    %c0_534 = arith.constant 0 : index
    %c2_535 = arith.constant 2 : index
    %c2_536 = arith.constant 2 : index
    %c0_537 = arith.constant 0 : index
    %389 = vector.load %arg23[%c0_534, %c2_535, %c2_536, %c0_537] : memref<2x4x4x16xf32, #tpu.memory_space<vmem>>, vector<2x1x1x16xf32>
    %390 = vector.shape_cast %389 : vector<2x1x1x16xf32> to vector<2x16xf32>
    %c10_538 = arith.constant 10 : index
    %c0_539 = arith.constant 0 : index
    %c0_540 = arith.constant 0 : index
    %391 = vector.load %arg7[%c10_538, %c0_539, %c0_540] : memref<16x16x32xf32, #tpu.memory_space<vmem>>, vector<1x16x32xf32>
    %392 = vector.shape_cast %391 : vector<1x16x32xf32> to vector<16x32xf32>
    %cst_541 = arith.constant dense<0.000000e+00> : vector<2x32xf32>
    %393 = tpu.matmul %390, %392, %cst_541 {dimension_numbers = #tpu.dot_dimension_numbers<[1], [0], [0], [1], [0, 0, 1, 1], [], []>} : vector<2x16xf32>, vector<16x32xf32>, vector<2x32xf32> -> vector<2x32xf32>
    %394 = arith.addf %388, %393 : vector<2x32xf32>
    %c0_542 = arith.constant 0 : index
    %c2_543 = arith.constant 2 : index
    %c3_544 = arith.constant 3 : index
    %c0_545 = arith.constant 0 : index
    %395 = vector.load %arg23[%c0_542, %c2_543, %c3_544, %c0_545] : memref<2x4x4x16xf32, #tpu.memory_space<vmem>>, vector<2x1x1x16xf32>
    %396 = vector.shape_cast %395 : vector<2x1x1x16xf32> to vector<2x16xf32>
    %c11_546 = arith.constant 11 : index
    %c0_547 = arith.constant 0 : index
    %c0_548 = arith.constant 0 : index
    %397 = vector.load %arg7[%c11_546, %c0_547, %c0_548] : memref<16x16x32xf32, #tpu.memory_space<vmem>>, vector<1x16x32xf32>
    %398 = vector.shape_cast %397 : vector<1x16x32xf32> to vector<16x32xf32>
    %cst_549 = arith.constant dense<0.000000e+00> : vector<2x32xf32>
    %399 = tpu.matmul %396, %398, %cst_549 {dimension_numbers = #tpu.dot_dimension_numbers<[1], [0], [0], [1], [0, 0, 1, 1], [], []>} : vector<2x16xf32>, vector<16x32xf32>, vector<2x32xf32> -> vector<2x32xf32>
    %400 = arith.addf %394, %399 : vector<2x32xf32>
    %c0_550 = arith.constant 0 : index
    %c3_551 = arith.constant 3 : index
    %c0_552 = arith.constant 0 : index
    %c0_553 = arith.constant 0 : index
    %401 = vector.load %arg23[%c0_550, %c3_551, %c0_552, %c0_553] : memref<2x4x4x16xf32, #tpu.memory_space<vmem>>, vector<2x1x1x16xf32>
    %402 = vector.shape_cast %401 : vector<2x1x1x16xf32> to vector<2x16xf32>
    %c12_554 = arith.constant 12 : index
    %c0_555 = arith.constant 0 : index
    %c0_556 = arith.constant 0 : index
    %403 = vector.load %arg7[%c12_554, %c0_555, %c0_556] : memref<16x16x32xf32, #tpu.memory_space<vmem>>, vector<1x16x32xf32>
    %404 = vector.shape_cast %403 : vector<1x16x32xf32> to vector<16x32xf32>
    %cst_557 = arith.constant dense<0.000000e+00> : vector<2x32xf32>
    %405 = tpu.matmul %402, %404, %cst_557 {dimension_numbers = #tpu.dot_dimension_numbers<[1], [0], [0], [1], [0, 0, 1, 1], [], []>} : vector<2x16xf32>, vector<16x32xf32>, vector<2x32xf32> -> vector<2x32xf32>
    %406 = arith.addf %400, %405 : vector<2x32xf32>
    %c0_558 = arith.constant 0 : index
    %c3_559 = arith.constant 3 : index
    %c1_560 = arith.constant 1 : index
    %c0_561 = arith.constant 0 : index
    %407 = vector.load %arg23[%c0_558, %c3_559, %c1_560, %c0_561] : memref<2x4x4x16xf32, #tpu.memory_space<vmem>>, vector<2x1x1x16xf32>
    %408 = vector.shape_cast %407 : vector<2x1x1x16xf32> to vector<2x16xf32>
    %c13_562 = arith.constant 13 : index
    %c0_563 = arith.constant 0 : index
    %c0_564 = arith.constant 0 : index
    %409 = vector.load %arg7[%c13_562, %c0_563, %c0_564] : memref<16x16x32xf32, #tpu.memory_space<vmem>>, vector<1x16x32xf32>
    %410 = vector.shape_cast %409 : vector<1x16x32xf32> to vector<16x32xf32>
    %cst_565 = arith.constant dense<0.000000e+00> : vector<2x32xf32>
    %411 = tpu.matmul %408, %410, %cst_565 {dimension_numbers = #tpu.dot_dimension_numbers<[1], [0], [0], [1], [0, 0, 1, 1], [], []>} : vector<2x16xf32>, vector<16x32xf32>, vector<2x32xf32> -> vector<2x32xf32>
    %412 = arith.addf %406, %411 : vector<2x32xf32>
    %c0_566 = arith.constant 0 : index
    %c3_567 = arith.constant 3 : index
    %c2_568 = arith.constant 2 : index
    %c0_569 = arith.constant 0 : index
    %413 = vector.load %arg23[%c0_566, %c3_567, %c2_568, %c0_569] : memref<2x4x4x16xf32, #tpu.memory_space<vmem>>, vector<2x1x1x16xf32>
    %414 = vector.shape_cast %413 : vector<2x1x1x16xf32> to vector<2x16xf32>
    %c14_570 = arith.constant 14 : index
    %c0_571 = arith.constant 0 : index
    %c0_572 = arith.constant 0 : index
    %415 = vector.load %arg7[%c14_570, %c0_571, %c0_572] : memref<16x16x32xf32, #tpu.memory_space<vmem>>, vector<1x16x32xf32>
    %416 = vector.shape_cast %415 : vector<1x16x32xf32> to vector<16x32xf32>
    %cst_573 = arith.constant dense<0.000000e+00> : vector<2x32xf32>
    %417 = tpu.matmul %414, %416, %cst_573 {dimension_numbers = #tpu.dot_dimension_numbers<[1], [0], [0], [1], [0, 0, 1, 1], [], []>} : vector<2x16xf32>, vector<16x32xf32>, vector<2x32xf32> -> vector<2x32xf32>
    %418 = arith.addf %412, %417 : vector<2x32xf32>
    %c0_574 = arith.constant 0 : index
    %c3_575 = arith.constant 3 : index
    %c3_576 = arith.constant 3 : index
    %c0_577 = arith.constant 0 : index
    %419 = vector.load %arg23[%c0_574, %c3_575, %c3_576, %c0_577] : memref<2x4x4x16xf32, #tpu.memory_space<vmem>>, vector<2x1x1x16xf32>
    %420 = vector.shape_cast %419 : vector<2x1x1x16xf32> to vector<2x16xf32>
    %c15_578 = arith.constant 15 : index
    %c0_579 = arith.constant 0 : index
    %c0_580 = arith.constant 0 : index
    %421 = vector.load %arg7[%c15_578, %c0_579, %c0_580] : memref<16x16x32xf32, #tpu.memory_space<vmem>>, vector<1x16x32xf32>
    %422 = vector.shape_cast %421 : vector<1x16x32xf32> to vector<16x32xf32>
    %cst_581 = arith.constant dense<0.000000e+00> : vector<2x32xf32>
    %423 = tpu.matmul %420, %422, %cst_581 {dimension_numbers = #tpu.dot_dimension_numbers<[1], [0], [0], [1], [0, 0, 1, 1], [], []>} : vector<2x16xf32>, vector<16x32xf32>, vector<2x32xf32> -> vector<2x32xf32>
    %424 = arith.addf %418, %423 : vector<2x32xf32>
    %c0_582 = arith.constant 0 : index
    %c0_583 = arith.constant 0 : index
    %425 = vector.load %arg8[%c0_582, %c0_583] : memref<1x32xf32, #tpu.memory_space<vmem>>, vector<1x32xf32>
    %426 = vector.broadcast %425 : vector<1x32xf32> to vector<2x32xf32>
    %427 = arith.addf %424, %426 : vector<2x32xf32>
    %c0_584 = arith.constant 0 : index
    %c0_585 = arith.constant 0 : index
    %428 = vector.load %arg9[%c0_584, %c0_585] : memref<32x32xf32, #tpu.memory_space<vmem>>, vector<32x32xf32>
    %cst_586 = arith.constant dense<0.000000e+00> : vector<2x32xf32>
    %429 = tpu.matmul %427, %428, %cst_586 {dimension_numbers = #tpu.dot_dimension_numbers<[1], [0], [0], [1], [0, 0, 1, 1], [], []>} : vector<2x32xf32>, vector<32x32xf32>, vector<2x32xf32> -> vector<2x32xf32>
    %c0_587 = arith.constant 0 : index
    %c0_588 = arith.constant 0 : index
    %430 = vector.load %arg11[%c0_587, %c0_588] : memref<1x32xf32, #tpu.memory_space<vmem>>, vector<1x32xf32>
    %431 = vector.broadcast %430 : vector<1x32xf32> to vector<2x32xf32>
    %432 = arith.addf %429, %431 : vector<2x32xf32>
    %cst_589 = arith.constant 0.000000e+00 : f32
    %433 = vector.broadcast %cst_589 : f32 to vector<2x32xf32>
    %cst_590 = arith.constant 0.000000e+00 : f32
    %434 = vector.broadcast %cst_590 : f32 to vector<2x32xf32>
    %c0_591 = arith.constant 0 : index
    %c0_592 = arith.constant 0 : index
    %435 = vector.load %arg10[%c0_591, %c0_592] : memref<32x32xf32, #tpu.memory_space<vmem>>, vector<32x32xf32>
    %cst_593 = arith.constant dense<0.000000e+00> : vector<2x32xf32>
    %436 = tpu.matmul %433, %435, %cst_593 {dimension_numbers = #tpu.dot_dimension_numbers<[1], [0], [0], [1], [0, 0, 1, 1], [], []>} : vector<2x32xf32>, vector<32x32xf32>, vector<2x32xf32> -> vector<2x32xf32>
    %437 = arith.addf %432, %436 : vector<2x32xf32>
    %cst_594 = arith.constant 0.000000e+00 : f32
    %438 = vector.broadcast %cst_594 : f32 to vector<2x32xf32>
    %439 = arith.maximumf %437, %438 : vector<2x32xf32>
    %440 = tpu.concatenate %439, %434 in 1 : vector<2x32xf32>, vector<2x32xf32> -> vector<2x64xf32>
    %c0_595 = arith.constant 0 : index
    %c0_596 = arith.constant 0 : index
    %441 = vector.load %arg12[%c0_595, %c0_596] : memref<64x32xf32, #tpu.memory_space<vmem>>, vector<64x32xf32>
    %cst_597 = arith.constant dense<0.000000e+00> : vector<2x32xf32>
    %442 = tpu.matmul %440, %441, %cst_597 {dimension_numbers = #tpu.dot_dimension_numbers<[1], [0], [0], [1], [0, 0, 1, 1], [], []>} : vector<2x64xf32>, vector<64x32xf32>, vector<2x32xf32> -> vector<2x32xf32>
    %c0_598 = arith.constant 0 : index
    %c0_599 = arith.constant 0 : index
    %443 = vector.load %arg13[%c0_598, %c0_599] : memref<1x32xf32, #tpu.memory_space<vmem>>, vector<1x32xf32>
    %444 = vector.broadcast %443 : vector<1x32xf32> to vector<2x32xf32>
    %445 = arith.addf %442, %444 : vector<2x32xf32>
    %cst_600 = arith.constant 0.000000e+00 : f32
    %446 = vector.broadcast %cst_600 : f32 to vector<2x32xf32>
    %447 = arith.maximumf %445, %446 : vector<2x32xf32>
    %c0_601 = arith.constant 0 : index
    %c0_602 = arith.constant 0 : index
    %448 = vector.load %arg14[%c0_601, %c0_602] : memref<32x53xf32, #tpu.memory_space<vmem>>, vector<32x53xf32>
    %cst_603 = arith.constant dense<0.000000e+00> : vector<2x53xf32>
    %449 = tpu.matmul %447, %448, %cst_603 {dimension_numbers = #tpu.dot_dimension_numbers<[1], [0], [0], [1], [0, 0, 1, 1], [], []>} : vector<2x32xf32>, vector<32x53xf32>, vector<2x53xf32> -> vector<2x53xf32>
    %c0_604 = arith.constant 0 : index
    %c0_605 = arith.constant 0 : index
    %450 = vector.load %arg15[%c0_604, %c0_605] : memref<1x53xf32, #tpu.memory_space<vmem>>, vector<1x53xf32>
    %451 = vector.broadcast %450 : vector<1x53xf32> to vector<2x53xf32>
    %452 = arith.addf %449, %451 : vector<2x53xf32>
    %c0_606 = arith.constant 0 : index
    %c0_607 = arith.constant 0 : index
    %c0_608 = arith.constant 0 : index
    %453 = vector.load %arg16[%c0_606, %c0_607, %c0_608] : memref<2x8x53xf32, #tpu.memory_space<vmem>>, vector<2x1x53xf32>
    %454 = vector.shape_cast %453 : vector<2x1x53xf32> to vector<2x53xf32>
    %455 = vector.shape_cast %452 : vector<2x53xf32> to vector<2x1x53xf32>
    tpu.vector_store %arg16[%c0_606, %c0_607, %c0_608], %455 {strides = array<i32>} : memref<2x8x53xf32, #tpu.memory_space<vmem>>, vector<2x1x53xf32>,
    %c0_609 = arith.constant 0 : index
    %c0_610 = arith.constant 0 : index
    %456 = vector.load %arg10[%c0_609, %c0_610] : memref<32x32xf32, #tpu.memory_space<vmem>>, vector<32x32xf32>
    %cst_611 = arith.constant dense<0.000000e+00> : vector<2x32xf32>
    %457 = tpu.matmul %439, %456, %cst_611 {dimension_numbers = #tpu.dot_dimension_numbers<[1], [0], [0], [1], [0, 0, 1, 1], [], []>} : vector<2x32xf32>, vector<32x32xf32>, vector<2x32xf32> -> vector<2x32xf32>
    %458 = arith.addf %432, %457 : vector<2x32xf32>
    %cst_612 = arith.constant 0.000000e+00 : f32
    %459 = vector.broadcast %cst_612 : f32 to vector<2x32xf32>
    %460 = arith.maximumf %458, %459 : vector<2x32xf32>
    %461 = tpu.concatenate %460, %447 in 1 : vector<2x32xf32>, vector<2x32xf32> -> vector<2x64xf32>
    %c0_613 = arith.constant 0 : index
    %c0_614 = arith.constant 0 : index
    %462 = vector.load %arg12[%c0_613, %c0_614] : memref<64x32xf32, #tpu.memory_space<vmem>>, vector<64x32xf32>
    %cst_615 = arith.constant dense<0.000000e+00> : vector<2x32xf32>
    %463 = tpu.matmul %461, %462, %cst_615 {dimension_numbers = #tpu.dot_dimension_numbers<[1], [0], [0], [1], [0, 0, 1, 1], [], []>} : vector<2x64xf32>, vector<64x32xf32>, vector<2x32xf32> -> vector<2x32xf32>
    %c0_616 = arith.constant 0 : index
    %c0_617 = arith.constant 0 : index
    %464 = vector.load %arg13[%c0_616, %c0_617] : memref<1x32xf32, #tpu.memory_space<vmem>>, vector<1x32xf32>
    %465 = vector.broadcast %464 : vector<1x32xf32> to vector<2x32xf32>
    %466 = arith.addf %463, %465 : vector<2x32xf32>
    %cst_618 = arith.constant 0.000000e+00 : f32
    %467 = vector.broadcast %cst_618 : f32 to vector<2x32xf32>
    %468 = arith.maximumf %466, %467 : vector<2x32xf32>
    %c0_619 = arith.constant 0 : index
    %c0_620 = arith.constant 0 : index
    %469 = vector.load %arg14[%c0_619, %c0_620] : memref<32x53xf32, #tpu.memory_space<vmem>>, vector<32x53xf32>
    %cst_621 = arith.constant dense<0.000000e+00> : vector<2x53xf32>
    %470 = tpu.matmul %468, %469, %cst_621 {dimension_numbers = #tpu.dot_dimension_numbers<[1], [0], [0], [1], [0, 0, 1, 1], [], []>} : vector<2x32xf32>, vector<32x53xf32>, vector<2x53xf32> -> vector<2x53xf32>
    %c0_622 = arith.constant 0 : index
    %c0_623 = arith.constant 0 : index
    %471 = vector.load %arg15[%c0_622, %c0_623] : memref<1x53xf32, #tpu.memory_space<vmem>>, vector<1x53xf32>
    %472 = vector.broadcast %471 : vector<1x53xf32> to vector<2x53xf32>
    %473 = arith.addf %470, %472 : vector<2x53xf32>
    %c0_624 = arith.constant 0 : index
    %c1_625 = arith.constant 1 : index
    %c0_626 = arith.constant 0 : index
    %474 = vector.load %arg16[%c0_624, %c1_625, %c0_626] : memref<2x8x53xf32, #tpu.memory_space<vmem>>, vector<2x1x53xf32>
    %475 = vector.shape_cast %474 : vector<2x1x53xf32> to vector<2x53xf32>
    %476 = vector.shape_cast %473 : vector<2x53xf32> to vector<2x1x53xf32>
    tpu.vector_store %arg16[%c0_624, %c1_625, %c0_626], %476 {strides = array<i32>} : memref<2x8x53xf32, #tpu.memory_space<vmem>>, vector<2x1x53xf32>,
    %c0_627 = arith.constant 0 : index
    %c0_628 = arith.constant 0 : index
    %477 = vector.load %arg10[%c0_627, %c0_628] : memref<32x32xf32, #tpu.memory_space<vmem>>, vector<32x32xf32>
    %cst_629 = arith.constant dense<0.000000e+00> : vector<2x32xf32>
    %478 = tpu.matmul %460, %477, %cst_629 {dimension_numbers = #tpu.dot_dimension_numbers<[1], [0], [0], [1], [0, 0, 1, 1], [], []>} : vector<2x32xf32>, vector<32x32xf32>, vector<2x32xf32> -> vector<2x32xf32>
    %479 = arith.addf %432, %478 : vector<2x32xf32>
    %cst_630 = arith.constant 0.000000e+00 : f32
    %480 = vector.broadcast %cst_630 : f32 to vector<2x32xf32>
    %481 = arith.maximumf %479, %480 : vector<2x32xf32>
    %482 = tpu.concatenate %481, %468 in 1 : vector<2x32xf32>, vector<2x32xf32> -> vector<2x64xf32>
    %c0_631 = arith.constant 0 : index
    %c0_632 = arith.constant 0 : index
    %483 = vector.load %arg12[%c0_631, %c0_632] : memref<64x32xf32, #tpu.memory_space<vmem>>, vector<64x32xf32>
    %cst_633 = arith.constant dense<0.000000e+00> : vector<2x32xf32>
    %484 = tpu.matmul %482, %483, %cst_633 {dimension_numbers = #tpu.dot_dimension_numbers<[1], [0], [0], [1], [0, 0, 1, 1], [], []>} : vector<2x64xf32>, vector<64x32xf32>, vector<2x32xf32> -> vector<2x32xf32>
    %c0_634 = arith.constant 0 : index
    %c0_635 = arith.constant 0 : index
    %485 = vector.load %arg13[%c0_634, %c0_635] : memref<1x32xf32, #tpu.memory_space<vmem>>, vector<1x32xf32>
    %486 = vector.broadcast %485 : vector<1x32xf32> to vector<2x32xf32>
    %487 = arith.addf %484, %486 : vector<2x32xf32>
    %cst_636 = arith.constant 0.000000e+00 : f32
    %488 = vector.broadcast %cst_636 : f32 to vector<2x32xf32>
    %489 = arith.maximumf %487, %488 : vector<2x32xf32>
    %c0_637 = arith.constant 0 : index
    %c0_638 = arith.constant 0 : index
    %490 = vector.load %arg14[%c0_637, %c0_638] : memref<32x53xf32, #tpu.memory_space<vmem>>, vector<32x53xf32>
    %cst_639 = arith.constant dense<0.000000e+00> : vector<2x53xf32>
    %491 = tpu.matmul %489, %490, %cst_639 {dimension_numbers = #tpu.dot_dimension_numbers<[1], [0], [0], [1], [0, 0, 1, 1], [], []>} : vector<2x32xf32>, vector<32x53xf32>, vector<2x53xf32> -> vector<2x53xf32>
    %c0_640 = arith.constant 0 : index
    %c0_641 = arith.constant 0 : index
    %492 = vector.load %arg15[%c0_640, %c0_641] : memref<1x53xf32, #tpu.memory_space<vmem>>, vector<1x53xf32>
    %493 = vector.broadcast %492 : vector<1x53xf32> to vector<2x53xf32>
    %494 = arith.addf %491, %493 : vector<2x53xf32>
    %c0_642 = arith.constant 0 : index
    %c2_643 = arith.constant 2 : index
    %c0_644 = arith.constant 0 : index
    %495 = vector.load %arg16[%c0_642, %c2_643, %c0_644] : memref<2x8x53xf32, #tpu.memory_space<vmem>>, vector<2x1x53xf32>
    %496 = vector.shape_cast %495 : vector<2x1x53xf32> to vector<2x53xf32>
    %497 = vector.shape_cast %494 : vector<2x53xf32> to vector<2x1x53xf32>
    tpu.vector_store %arg16[%c0_642, %c2_643, %c0_644], %497 {strides = array<i32>} : memref<2x8x53xf32, #tpu.memory_space<vmem>>, vector<2x1x53xf32>,
    %c0_645 = arith.constant 0 : index
    %c0_646 = arith.constant 0 : index
    %498 = vector.load %arg10[%c0_645, %c0_646] : memref<32x32xf32, #tpu.memory_space<vmem>>, vector<32x32xf32>
    %cst_647 = arith.constant dense<0.000000e+00> : vector<2x32xf32>
    %499 = tpu.matmul %481, %498, %cst_647 {dimension_numbers = #tpu.dot_dimension_numbers<[1], [0], [0], [1], [0, 0, 1, 1], [], []>} : vector<2x32xf32>, vector<32x32xf32>, vector<2x32xf32> -> vector<2x32xf32>
    %500 = arith.addf %432, %499 : vector<2x32xf32>
    %cst_648 = arith.constant 0.000000e+00 : f32
    %501 = vector.broadcast %cst_648 : f32 to vector<2x32xf32>
    %502 = arith.maximumf %500, %501 : vector<2x32xf32>
    %503 = tpu.concatenate %502, %489 in 1 : vector<2x32xf32>, vector<2x32xf32> -> vector<2x64xf32>
    %c0_649 = arith.constant 0 : index
    %c0_650 = arith.constant 0 : index
    %504 = vector.load %arg12[%c0_649, %c0_650] : memref<64x32xf32, #tpu.memory_space<vmem>>, vector<64x32xf32>
    %cst_651 = arith.constant dense<0.000000e+00> : vector<2x32xf32>
    %505 = tpu.matmul %503, %504, %cst_651 {dimension_numbers = #tpu.dot_dimension_numbers<[1], [0], [0], [1], [0, 0, 1, 1], [], []>} : vector<2x64xf32>, vector<64x32xf32>, vector<2x32xf32> -> vector<2x32xf32>
    %c0_652 = arith.constant 0 : index
    %c0_653 = arith.constant 0 : index
    %506 = vector.load %arg13[%c0_652, %c0_653] : memref<1x32xf32, #tpu.memory_space<vmem>>, vector<1x32xf32>
    %507 = vector.broadcast %506 : vector<1x32xf32> to vector<2x32xf32>
    %508 = arith.addf %505, %507 : vector<2x32xf32>
    %cst_654 = arith.constant 0.000000e+00 : f32
    %509 = vector.broadcast %cst_654 : f32 to vector<2x32xf32>
    %510 = arith.maximumf %508, %509 : vector<2x32xf32>
    %c0_655 = arith.constant 0 : index
    %c0_656 = arith.constant 0 : index
    %511 = vector.load %arg14[%c0_655, %c0_656] : memref<32x53xf32, #tpu.memory_space<vmem>>, vector<32x53xf32>
    %cst_657 = arith.constant dense<0.000000e+00> : vector<2x53xf32>
    %512 = tpu.matmul %510, %511, %cst_657 {dimension_numbers = #tpu.dot_dimension_numbers<[1], [0], [0], [1], [0, 0, 1, 1], [], []>} : vector<2x32xf32>, vector<32x53xf32>, vector<2x53xf32> -> vector<2x53xf32>
    %c0_658 = arith.constant 0 : index
    %c0_659 = arith.constant 0 : index
    %513 = vector.load %arg15[%c0_658, %c0_659] : memref<1x53xf32, #tpu.memory_space<vmem>>, vector<1x53xf32>
    %514 = vector.broadcast %513 : vector<1x53xf32> to vector<2x53xf32>
    %515 = arith.addf %512, %514 : vector<2x53xf32>
    %c0_660 = arith.constant 0 : index
    %c3_661 = arith.constant 3 : index
    %c0_662 = arith.constant 0 : index
    %516 = vector.load %arg16[%c0_660, %c3_661, %c0_662] : memref<2x8x53xf32, #tpu.memory_space<vmem>>, vector<2x1x53xf32>
    %517 = vector.shape_cast %516 : vector<2x1x53xf32> to vector<2x53xf32>
    %518 = vector.shape_cast %515 : vector<2x53xf32> to vector<2x1x53xf32>
    tpu.vector_store %arg16[%c0_660, %c3_661, %c0_662], %518 {strides = array<i32>} : memref<2x8x53xf32, #tpu.memory_space<vmem>>, vector<2x1x53xf32>,
    %c0_663 = arith.constant 0 : index
    %c0_664 = arith.constant 0 : index
    %519 = vector.load %arg10[%c0_663, %c0_664] : memref<32x32xf32, #tpu.memory_space<vmem>>, vector<32x32xf32>
    %cst_665 = arith.constant dense<0.000000e+00> : vector<2x32xf32>
    %520 = tpu.matmul %502, %519, %cst_665 {dimension_numbers = #tpu.dot_dimension_numbers<[1], [0], [0], [1], [0, 0, 1, 1], [], []>} : vector<2x32xf32>, vector<32x32xf32>, vector<2x32xf32> -> vector<2x32xf32>
    %521 = arith.addf %432, %520 : vector<2x32xf32>
    %cst_666 = arith.constant 0.000000e+00 : f32
    %522 = vector.broadcast %cst_666 : f32 to vector<2x32xf32>
    %523 = arith.maximumf %521, %522 : vector<2x32xf32>
    %524 = tpu.concatenate %523, %510 in 1 : vector<2x32xf32>, vector<2x32xf32> -> vector<2x64xf32>
    %c0_667 = arith.constant 0 : index
    %c0_668 = arith.constant 0 : index
    %525 = vector.load %arg12[%c0_667, %c0_668] : memref<64x32xf32, #tpu.memory_space<vmem>>, vector<64x32xf32>
    %cst_669 = arith.constant dense<0.000000e+00> : vector<2x32xf32>
    %526 = tpu.matmul %524, %525, %cst_669 {dimension_numbers = #tpu.dot_dimension_numbers<[1], [0], [0], [1], [0, 0, 1, 1], [], []>} : vector<2x64xf32>, vector<64x32xf32>, vector<2x32xf32> -> vector<2x32xf32>
    %c0_670 = arith.constant 0 : index
    %c0_671 = arith.constant 0 : index
    %527 = vector.load %arg13[%c0_670, %c0_671] : memref<1x32xf32, #tpu.memory_space<vmem>>, vector<1x32xf32>
    %528 = vector.broadcast %527 : vector<1x32xf32> to vector<2x32xf32>
    %529 = arith.addf %526, %528 : vector<2x32xf32>
    %cst_672 = arith.constant 0.000000e+00 : f32
    %530 = vector.broadcast %cst_672 : f32 to vector<2x32xf32>
    %531 = arith.maximumf %529, %530 : vector<2x32xf32>
    %c0_673 = arith.constant 0 : index
    %c0_674 = arith.constant 0 : index
    %532 = vector.load %arg14[%c0_673, %c0_674] : memref<32x53xf32, #tpu.memory_space<vmem>>, vector<32x53xf32>
    %cst_675 = arith.constant dense<0.000000e+00> : vector<2x53xf32>
    %533 = tpu.matmul %531, %532, %cst_675 {dimension_numbers = #tpu.dot_dimension_numbers<[1], [0], [0], [1], [0, 0, 1, 1], [], []>} : vector<2x32xf32>, vector<32x53xf32>, vector<2x53xf32> -> vector<2x53xf32>
    %c0_676 = arith.constant 0 : index
    %c0_677 = arith.constant 0 : index
    %534 = vector.load %arg15[%c0_676, %c0_677] : memref<1x53xf32, #tpu.memory_space<vmem>>, vector<1x53xf32>
    %535 = vector.broadcast %534 : vector<1x53xf32> to vector<2x53xf32>
    %536 = arith.addf %533, %535 : vector<2x53xf32>
    %c0_678 = arith.constant 0 : index
    %c4_679 = arith.constant 4 : index
    %c0_680 = arith.constant 0 : index
    %537 = vector.load %arg16[%c0_678, %c4_679, %c0_680] : memref<2x8x53xf32, #tpu.memory_space<vmem>>, vector<2x1x53xf32>
    %538 = vector.shape_cast %537 : vector<2x1x53xf32> to vector<2x53xf32>
    %539 = vector.shape_cast %536 : vector<2x53xf32> to vector<2x1x53xf32>
    tpu.vector_store %arg16[%c0_678, %c4_679, %c0_680], %539 {strides = array<i32>} : memref<2x8x53xf32, #tpu.memory_space<vmem>>, vector<2x1x53xf32>,
    %c0_681 = arith.constant 0 : index
    %c0_682 = arith.constant 0 : index
    %540 = vector.load %arg10[%c0_681, %c0_682] : memref<32x32xf32, #tpu.memory_space<vmem>>, vector<32x32xf32>
    %cst_683 = arith.constant dense<0.000000e+00> : vector<2x32xf32>
    %541 = tpu.matmul %523, %540, %cst_683 {dimension_numbers = #tpu.dot_dimension_numbers<[1], [0], [0], [1], [0, 0, 1, 1], [], []>} : vector<2x32xf32>, vector<32x32xf32>, vector<2x32xf32> -> vector<2x32xf32>
    %542 = arith.addf %432, %541 : vector<2x32xf32>
    %cst_684 = arith.constant 0.000000e+00 : f32
    %543 = vector.broadcast %cst_684 : f32 to vector<2x32xf32>
    %544 = arith.maximumf %542, %543 : vector<2x32xf32>
    %545 = tpu.concatenate %544, %531 in 1 : vector<2x32xf32>, vector<2x32xf32> -> vector<2x64xf32>
    %c0_685 = arith.constant 0 : index
    %c0_686 = arith.constant 0 : index
    %546 = vector.load %arg12[%c0_685, %c0_686] : memref<64x32xf32, #tpu.memory_space<vmem>>, vector<64x32xf32>
    %cst_687 = arith.constant dense<0.000000e+00> : vector<2x32xf32>
    %547 = tpu.matmul %545, %546, %cst_687 {dimension_numbers = #tpu.dot_dimension_numbers<[1], [0], [0], [1], [0, 0, 1, 1], [], []>} : vector<2x64xf32>, vector<64x32xf32>, vector<2x32xf32> -> vector<2x32xf32>
    %c0_688 = arith.constant 0 : index
    %c0_689 = arith.constant 0 : index
    %548 = vector.load %arg13[%c0_688, %c0_689] : memref<1x32xf32, #tpu.memory_space<vmem>>, vector<1x32xf32>
    %549 = vector.broadcast %548 : vector<1x32xf32> to vector<2x32xf32>
    %550 = arith.addf %547, %549 : vector<2x32xf32>
    %cst_690 = arith.constant 0.000000e+00 : f32
    %551 = vector.broadcast %cst_690 : f32 to vector<2x32xf32>
    %552 = arith.maximumf %550, %551 : vector<2x32xf32>
    %c0_691 = arith.constant 0 : index
    %c0_692 = arith.constant 0 : index
    %553 = vector.load %arg14[%c0_691, %c0_692] : memref<32x53xf32, #tpu.memory_space<vmem>>, vector<32x53xf32>
    %cst_693 = arith.constant dense<0.000000e+00> : vector<2x53xf32>
    %554 = tpu.matmul %552, %553, %cst_693 {dimension_numbers = #tpu.dot_dimension_numbers<[1], [0], [0], [1], [0, 0, 1, 1], [], []>} : vector<2x32xf32>, vector<32x53xf32>, vector<2x53xf32> -> vector<2x53xf32>
    %c0_694 = arith.constant 0 : index
    %c0_695 = arith.constant 0 : index
    %555 = vector.load %arg15[%c0_694, %c0_695] : memref<1x53xf32, #tpu.memory_space<vmem>>, vector<1x53xf32>
    %556 = vector.broadcast %555 : vector<1x53xf32> to vector<2x53xf32>
    %557 = arith.addf %554, %556 : vector<2x53xf32>
    %c0_696 = arith.constant 0 : index
    %c5_697 = arith.constant 5 : index
    %c0_698 = arith.constant 0 : index
    %558 = vector.load %arg16[%c0_696, %c5_697, %c0_698] : memref<2x8x53xf32, #tpu.memory_space<vmem>>, vector<2x1x53xf32>
    %559 = vector.shape_cast %558 : vector<2x1x53xf32> to vector<2x53xf32>
    %560 = vector.shape_cast %557 : vector<2x53xf32> to vector<2x1x53xf32>
    tpu.vector_store %arg16[%c0_696, %c5_697, %c0_698], %560 {strides = array<i32>} : memref<2x8x53xf32, #tpu.memory_space<vmem>>, vector<2x1x53xf32>,
    %c0_699 = arith.constant 0 : index
    %c0_700 = arith.constant 0 : index
    %561 = vector.load %arg10[%c0_699, %c0_700] : memref<32x32xf32, #tpu.memory_space<vmem>>, vector<32x32xf32>
    %cst_701 = arith.constant dense<0.000000e+00> : vector<2x32xf32>
    %562 = tpu.matmul %544, %561, %cst_701 {dimension_numbers = #tpu.dot_dimension_numbers<[1], [0], [0], [1], [0, 0, 1, 1], [], []>} : vector<2x32xf32>, vector<32x32xf32>, vector<2x32xf32> -> vector<2x32xf32>
    %563 = arith.addf %432, %562 : vector<2x32xf32>
    %cst_702 = arith.constant 0.000000e+00 : f32
    %564 = vector.broadcast %cst_702 : f32 to vector<2x32xf32>
    %565 = arith.maximumf %563, %564 : vector<2x32xf32>
    %566 = tpu.concatenate %565, %552 in 1 : vector<2x32xf32>, vector<2x32xf32> -> vector<2x64xf32>
    %c0_703 = arith.constant 0 : index
    %c0_704 = arith.constant 0 : index
    %567 = vector.load %arg12[%c0_703, %c0_704] : memref<64x32xf32, #tpu.memory_space<vmem>>, vector<64x32xf32>
    %cst_705 = arith.constant dense<0.000000e+00> : vector<2x32xf32>
    %568 = tpu.matmul %566, %567, %cst_705 {dimension_numbers = #tpu.dot_dimension_numbers<[1], [0], [0], [1], [0, 0, 1, 1], [], []>} : vector<2x64xf32>, vector<64x32xf32>, vector<2x32xf32> -> vector<2x32xf32>
    %c0_706 = arith.constant 0 : index
    %c0_707 = arith.constant 0 : index
    %569 = vector.load %arg13[%c0_706, %c0_707] : memref<1x32xf32, #tpu.memory_space<vmem>>, vector<1x32xf32>
    %570 = vector.broadcast %569 : vector<1x32xf32> to vector<2x32xf32>
    %571 = arith.addf %568, %570 : vector<2x32xf32>
    %cst_708 = arith.constant 0.000000e+00 : f32
    %572 = vector.broadcast %cst_708 : f32 to vector<2x32xf32>
    %573 = arith.maximumf %571, %572 : vector<2x32xf32>
    %c0_709 = arith.constant 0 : index
    %c0_710 = arith.constant 0 : index
    %574 = vector.load %arg14[%c0_709, %c0_710] : memref<32x53xf32, #tpu.memory_space<vmem>>, vector<32x53xf32>
    %cst_711 = arith.constant dense<0.000000e+00> : vector<2x53xf32>
    %575 = tpu.matmul %573, %574, %cst_711 {dimension_numbers = #tpu.dot_dimension_numbers<[1], [0], [0], [1], [0, 0, 1, 1], [], []>} : vector<2x32xf32>, vector<32x53xf32>, vector<2x53xf32> -> vector<2x53xf32>
    %c0_712 = arith.constant 0 : index
    %c0_713 = arith.constant 0 : index
    %576 = vector.load %arg15[%c0_712, %c0_713] : memref<1x53xf32, #tpu.memory_space<vmem>>, vector<1x53xf32>
    %577 = vector.broadcast %576 : vector<1x53xf32> to vector<2x53xf32>
    %578 = arith.addf %575, %577 : vector<2x53xf32>
    %c0_714 = arith.constant 0 : index
    %c6_715 = arith.constant 6 : index
    %c0_716 = arith.constant 0 : index
    %579 = vector.load %arg16[%c0_714, %c6_715, %c0_716] : memref<2x8x53xf32, #tpu.memory_space<vmem>>, vector<2x1x53xf32>
    %580 = vector.shape_cast %579 : vector<2x1x53xf32> to vector<2x53xf32>
    %581 = vector.shape_cast %578 : vector<2x53xf32> to vector<2x1x53xf32>
    tpu.vector_store %arg16[%c0_714, %c6_715, %c0_716], %581 {strides = array<i32>} : memref<2x8x53xf32, #tpu.memory_space<vmem>>, vector<2x1x53xf32>,
    %c0_717 = arith.constant 0 : index
    %c0_718 = arith.constant 0 : index
    %582 = vector.load %arg10[%c0_717, %c0_718] : memref<32x32xf32, #tpu.memory_space<vmem>>, vector<32x32xf32>
    %cst_719 = arith.constant dense<0.000000e+00> : vector<2x32xf32>
    %583 = tpu.matmul %565, %582, %cst_719 {dimension_numbers = #tpu.dot_dimension_numbers<[1], [0], [0], [1], [0, 0, 1, 1], [], []>} : vector<2x32xf32>, vector<32x32xf32>, vector<2x32xf32> -> vector<2x32xf32>
    %584 = arith.addf %432, %583 : vector<2x32xf32>
    %cst_720 = arith.constant 0.000000e+00 : f32
    %585 = vector.broadcast %cst_720 : f32 to vector<2x32xf32>
    %586 = arith.maximumf %584, %585 : vector<2x32xf32>
    %587 = tpu.concatenate %586, %573 in 1 : vector<2x32xf32>, vector<2x32xf32> -> vector<2x64xf32>
    %c0_721 = arith.constant 0 : index
    %c0_722 = arith.constant 0 : index
    %588 = vector.load %arg12[%c0_721, %c0_722] : memref<64x32xf32, #tpu.memory_space<vmem>>, vector<64x32xf32>
    %cst_723 = arith.constant dense<0.000000e+00> : vector<2x32xf32>
    %589 = tpu.matmul %587, %588, %cst_723 {dimension_numbers = #tpu.dot_dimension_numbers<[1], [0], [0], [1], [0, 0, 1, 1], [], []>} : vector<2x64xf32>, vector<64x32xf32>, vector<2x32xf32> -> vector<2x32xf32>
    %c0_724 = arith.constant 0 : index
    %c0_725 = arith.constant 0 : index
    %590 = vector.load %arg13[%c0_724, %c0_725] : memref<1x32xf32, #tpu.memory_space<vmem>>, vector<1x32xf32>
    %591 = vector.broadcast %590 : vector<1x32xf32> to vector<2x32xf32>
    %592 = arith.addf %589, %591 : vector<2x32xf32>
    %cst_726 = arith.constant 0.000000e+00 : f32
    %593 = vector.broadcast %cst_726 : f32 to vector<2x32xf32>
    %594 = arith.maximumf %592, %593 : vector<2x32xf32>
    %c0_727 = arith.constant 0 : index
    %c0_728 = arith.constant 0 : index
    %595 = vector.load %arg14[%c0_727, %c0_728] : memref<32x53xf32, #tpu.memory_space<vmem>>, vector<32x53xf32>
    %cst_729 = arith.constant dense<0.000000e+00> : vector<2x53xf32>
    %596 = tpu.matmul %594, %595, %cst_729 {dimension_numbers = #tpu.dot_dimension_numbers<[1], [0], [0], [1], [0, 0, 1, 1], [], []>} : vector<2x32xf32>, vector<32x53xf32>, vector<2x53xf32> -> vector<2x53xf32>
    %c0_730 = arith.constant 0 : index
    %c0_731 = arith.constant 0 : index
    %597 = vector.load %arg15[%c0_730, %c0_731] : memref<1x53xf32, #tpu.memory_space<vmem>>, vector<1x53xf32>
    %598 = vector.broadcast %597 : vector<1x53xf32> to vector<2x53xf32>
    %599 = arith.addf %596, %598 : vector<2x53xf32>
    %c0_732 = arith.constant 0 : index
    %c7_733 = arith.constant 7 : index
    %c0_734 = arith.constant 0 : index
    %600 = vector.load %arg16[%c0_732, %c7_733, %c0_734] : memref<2x8x53xf32, #tpu.memory_space<vmem>>, vector<2x1x53xf32>
    %601 = vector.shape_cast %600 : vector<2x1x53xf32> to vector<2x53xf32>
    %602 = vector.shape_cast %599 : vector<2x53xf32> to vector<2x1x53xf32>
    tpu.vector_store %arg16[%c0_732, %c7_733, %c0_734], %602 {strides = array<i32>} : memref<2x8x53xf32, #tpu.memory_space<vmem>>, vector<2x1x53xf32>,
    return
  }
}

</mosaic_0001>

<bundles_post_ra>
// kernel: _crnn_forward.1
= control target key start
LH: loop header
LB: loop body
LE: loop exit
PB: predicated region body
PF: predicated region fallthrough
CT: control target
= control target key end

     0   :  { %s13819_s0 = inlined_call_operand.vmem [shape: f32[2,16,16,4], index: 0, kind: input, shape index: {}]   ;;  %s13820_s1 = inlined_call_operand.vmem [shape: f32[9,4,8], index: 1, kind: input, shape index: {}]   ;;  %s13821_s2 = inlined_call_operand.vmem [shape: f32[1,8], index: 2, kind: input, shape index: {}]   ;;  %s13822_s3 = inlined_call_operand.vmem [shape: f32[1,8], index: 3, kind: input, shape index: {}]   ;;  %s13823_s4 = inlined_call_operand.vmem [shape: f32[9,8,16], index: 4, kind: input, shape index: {}]   ;;  %s13824_s5 = inlined_call_operand.vmem [shape: f32[1,16], index: 5, kind: input, shape index: {}]   ;;  %s13825_s6 = inlined_call_operand.vmem [shape: f32[1,16], index: 6, kind: input, shape index: {}]   ;;  %s13826_s7 = inlined_call_operand.vmem [shape: f32[16,16,32], index: 7, kind: input, shape index: {}]   ;;  %s13827_s8 = inlined_call_operand.vmem [shape: f32[1,32], index: 8, kind: input, shape index: {}]   ;;  %s13828_s9 = inlined_call_operand.vmem [shape: f32[32,32], index: 9, kind: input, shape index: {}]   ;;  %s13829_s10 = inlined_call_operand.vmem [shape: f32[32,32], index: 10, kind: input, shape index: {}]   ;;  %s13830_s11 = inlined_call_operand.vmem [shape: f32[1,32], index: 11, kind: input, shape index: {}]   ;;  %s13831_s12 = inlined_call_operand.vmem [shape: f32[64,32], index: 12, kind: input, shape index: {}]   ;;  %s13832_s13 = inlined_call_operand.vmem [shape: f32[1,32], index: 13, kind: input, shape index: {}]   ;;  %s13833_s14 = inlined_call_operand.vmem [shape: f32[32,53], index: 14, kind: input, shape index: {}]   ;;  %s13834_s15 = inlined_call_operand.vmem [shape: f32[1,53], index: 15, kind: input, shape index: {}]   ;;  %s13835_s16 = inlined_call_operand.hbm [shape: f32[2,8,53], index: 16, kind: output, shape index: {}]  }
   0x1   :  { %13844 = sst [smem:[#allocation55_spill]] %s13819_s0 }
   0x2   :  { %v9457_v0 = vld [vmem:[%s13820_s1 + $0x4] sm:$0xf]  ;;  %vm616_vm0 = vcmask 1043456   ;;  %v357_v1 = vld [vmem:[%s13820_s1] sm:$0xf]  ;;  %vm54_vm1 = vcmask 31744  }
   0x3   :  { %9458 = vmatpush.msk.msra.mxu0 %vm616_vm0, %v9457_v0  ;;  %9523 = vmatpush.msk.msra.mxu1 %vm616_vm0, %v357_v1  ;;  %v9588_v2 = vld [vmem:[%s13820_s1 + $0x8] sm:$0xf]  ;;  %v13837_v3 = vmov 0.0  }
   0x4   :  { %9589 = vmatpush.msk.msra.mxu2 %vm616_vm0, %v9588_v2  ;;  %10272 = vmatpush.msk.msra.mxu3 %vm616_vm0, %v9457_v0  ;;  %55 = vst.msk [vmem:[#allocation2] sm:$0xff] %vm54_vm1, %v13837_v3 }
   0x5   :  { %56 = vst.msk [vmem:[#allocation2 + $0x8] sm:$0xff] %vm54_vm1, %v13837_v3 }
   0x6   :  { %59 = vst.msk [vmem:[#allocation2 + $0x18] sm:$0xff] %vm54_vm1, %v13837_v3 }
   0x7   :  { %60 = vst.msk [vmem:[#allocation2 + $0x20] sm:$0xff] %vm54_vm1, %v13837_v3 }
   0x8   :  { %62 = vst.msk [vmem:[#allocation2 + $0x30] sm:$0xff] %vm54_vm1, %v13837_v3 }
   0x9   :  { %63 = vst.msk [vmem:[#allocation2 + $0x38] sm:$0xff] %vm54_vm1, %v13837_v3 }
   0xa   :  { %65 = vst.msk [vmem:[#allocation2 + $0x48] sm:$0xff] %vm54_vm1, %v13837_v3 }
   0xb   :  { %66 = vst.msk [vmem:[#allocation2 + $0x50] sm:$0xff] %vm54_vm1, %v13837_v3 }
   0xc   :  { %v358_v4 = vld [vmem:[#allocation2 + $0x1] sm:$0xff]  ;;  %68 = vst.msk [vmem:[#allocation2 + $0x60] sm:$0xff] %vm54_vm1, %v13837_v3 }
   0xd   :  { %9459 = vmatmul.msk.f32.vlgmr.msra.gmra.mxu0 %vm54_vm1, %v358_v4  ;;  %69 = vst.msk [vmem:[#allocation2 + $0x68] sm:$0xff] %vm54_vm1, %v13837_v3 }
   0xe   :  { %71 = vst.msk [vmem:[#allocation2 + $0x78] sm:$0xff] %vm54_vm1, %v13837_v3 }
   0xf   :  { %21 = vsyncpa [#allocation10], 0  ;;  %72 = vst.msk [vmem:[#allocation2 + $0x80] sm:$0xff] %vm54_vm1, %v13837_v3  ;;  %v293_v5 = vld [vmem:[#allocation2] sm:$0xff]  ;;  %v9720_v7 = vld [vmem:[%s13820_s1 + $0x10] sm:$0xf] }
  0x10   :  { %74 = vst.msk [vmem:[#allocation2 + $0x90] sm:$0xff] %vm54_vm1, %v13837_v3  ;;  %v1233_v6 = vld [vmem:[#allocation2 + $0x2] sm:$0xff]  ;;  %9524 = vmatmul.msk.f32.vlgmr.msra.gmra.mxu1 %vm54_vm1, %v293_v5  ;;  %9721 = vmatpush.msk.msrb.mxu0 %vm616_vm0, %v9720_v7  ;;  %v9654_v9 = vld [vmem:[%s13820_s1 + $0xc] sm:$0xf]  ;;  %vm57_vm2 = vcmask 25600   ;;  %s13845_s18 = sld [smem:[#allocation55_spill]] }
  0x11   :  { %75 = vst.msk [vmem:[#allocation2 + $0x98] sm:$0xff] %vm54_vm1, %v13837_v3  ;;  %9590 = vmatmul.msk.f32.vlgmr.msra.gmra.mxu2 %vm54_vm1, %v1233_v6  ;;  %v294_v8 = vld [vmem:[#allocation2 + $0x8] sm:$0xff]  ;;  %9655 = vmatpush.msk.msrb.mxu3 %vm616_vm0, %v9654_v9  ;;  %vm5172_vm3 = vcmask 64512   ;;  %vm5333_vm4 = vcmask 57344   ;;  %vm6263_vm5 = vcmask 58368   ;;  %vm7736_vm6 = vcmask 130048  }
  0x12   :  { %77 = vst.msk [vmem:[#allocation2 + $0xa8] sm:$0xff] %vm54_vm1, %v13837_v3  ;;  %vm7801_vm7 = vcmask 122880   ;;  %vm8017_vm8 = vcmask 125952   ;;  %vm8065_vm9 = vcmask 1041409   ;;  %vm8576_vm10 = vcmask 261120   ;;  %s10337_s27 = smov [#allocation9]  }
  0x13   :  { %78 = vst.msk [vmem:[#allocation2 + $0xb0] sm:$0xff] %vm54_vm1, %v13837_v3  ;;  %vm8642_vm11 = vcmask 523264   ;;  %vm8701_vm12 = vcmask 425984   ;;  %s9445_s29 = sshll.u32 %s13835_s16, 4  ;;  %s10339_s30 = smov 8   ;;  %s9446_s29 = int_to_ptr.hbm [resolvable:$true] %s9445_s29 }
  0x14   :  { %80 = vst.msk [vmem:[#allocation2 + $0xc0] sm:$0xff] %vm54_vm1, %v13837_v3 }
  0x15   :  { %81 = vst.msk [vmem:[#allocation2 + $0xc8] sm:$0xff] %vm54_vm1, %v13837_v3 }
  0x16   :  { %83 = vst.msk [vmem:[#allocation2 + $0xd8] sm:$0xff] %vm54_vm1, %v13837_v3  ;;  %v225_v10 = vld [vmem:[%s13845_s18 + $0x1e8] sm:$0xff]  ;;  %v164_v14 = vld [vmem:[%s13845_s18] sm:$0xff]  ;;  %v166_v16 = vld [vmem:[%s13845_s18 + $0x10] sm:$0xff] }
  0x17   :  { %84 = vst.msk [vmem:[#allocation2 + $0xe0] sm:$0xff] %vm54_vm1, %v13837_v3  ;;  %v165_v15 = vld [vmem:[%s13845_s18 + $0x8] sm:$0xff]  ;;  %v167_v17 = vld [vmem:[%s13845_s18 + $0x18] sm:$0xff]  ;;  %v168_v18 = vld [vmem:[%s13845_s18 + $0x20] sm:$0xff] }
  0x18   :  { %86 = vst.msk [vmem:[#allocation2 + $0xf0] sm:$0xff] %vm54_vm1, %v13837_v3  ;;  %9525 = vmatmul.msk.f32.gmra.mxu1 %vm54_vm1, %v294_v8  ;;  %v169_v19 = vld [vmem:[%s13845_s18 + $0x28] sm:$0xff]  ;;  %v170_v26 = vld [vmem:[%s13845_s18 + $0x30] sm:$0xff]  ;;  %v171_v30 = vld [vmem:[%s13845_s18 + $0x38] sm:$0xff] }
  0x19   :  { %87 = vst.msk [vmem:[#allocation2 + $0xf8] sm:$0xff] %vm54_vm1, %v13837_v3  ;;  %v172_v34 = vld [vmem:[%s13845_s18 + $0x40] sm:$0xff]  ;;  %v173_v38 = vld [vmem:[%s13845_s18 + $0x48] sm:$0xff]  ;;  %v174_v42 = vld [vmem:[%s13845_s18 + $0x50] sm:$0xff] }
  0x1a   :  { %89 = vst.msk [vmem:[#allocation2 + $0x108] sm:$0xff] %vm54_vm1, %v13837_v3  ;;  %v175_v46 = vld [vmem:[%s13845_s18 + $0x58] sm:$0xff]  ;;  %v176_v50 = vld [vmem:[%s13845_s18 + $0x60] sm:$0xff]  ;;  %v177_v54 = vld [vmem:[%s13845_s18 + $0x68] sm:$0xff] }
  0x1b   :  { %90 = vst.msk [vmem:[#allocation2 + $0x110] sm:$0xff] %vm54_vm1, %v13837_v3  ;;  %v178_v58 = vld [vmem:[%s13845_s18 + $0x70] sm:$0xff]  ;;  %v179_v62 = vld [vmem:[%s13845_s18 + $0x78] sm:$0xff]  ;;  %v180_v2 = vld [vmem:[%s13845_s18 + $0x80] sm:$0xff] }
  0x1c   :  { %92 = vst.msk [vmem:[#allocation2 + $0x120] sm:$0xff] %vm54_vm1, %v13837_v3  ;;  %v181_v7 = vld [vmem:[%s13845_s18 + $0x88] sm:$0xff] }
  0x1d   :  { %93 = vst.msk [vmem:[#allocation2 + $0x128] sm:$0xff] %vm54_vm1, %v13837_v3 }
  0x1e   :  { %95 = vst.msk [vmem:[#allocation2 + $0x138] sm:$0xff] %vm54_vm1, %v13837_v3 }
  0x1f   :  { %96 = vst.msk [vmem:[#allocation2 + $0x140] sm:$0xff] %vm54_vm1, %v13837_v3 }
  0x20   :  { %98 = vst.msk [vmem:[#allocation2 + $0x150] sm:$0xff] %vm54_vm1, %v13837_v3 }
  0x21   :  { %99 = vst.msk [vmem:[#allocation2 + $0x158] sm:$0xff] %vm54_vm1, %v13837_v3 }
  0x22   :  { %101 = vst.msk [vmem:[#allocation2 + $0x168] sm:$0xff] %vm54_vm1, %v13837_v3 }
  0x23   :  { %102 = vst.msk [vmem:[#allocation2 + $0x170] sm:$0xff] %vm54_vm1, %v13837_v3 }
  0x24   :  { %104 = vst.msk [vmem:[#allocation2 + $0x180] sm:$0xff] %vm54_vm1, %v13837_v3 }
  0x25   :  { %105 = vst.msk [vmem:[#allocation2 + $0x188] sm:$0xff] %vm54_vm1, %v13837_v3 }
  0x26   :  { %107 = vst.msk [vmem:[#allocation2 + $0x198] sm:$0xff] %vm54_vm1, %v13837_v3 }
  0x27   :  { %108 = vst.msk [vmem:[#allocation2 + $0x1a0] sm:$0xff] %vm54_vm1, %v13837_v3 }
  0x28   :  { %110 = vst.msk [vmem:[#allocation2 + $0x1b0] sm:$0xff] %vm54_vm1, %v13837_v3 }
  0x29   :  { %111 = vst.msk [vmem:[#allocation2 + $0x1b8] sm:$0xff] %vm54_vm1, %v13837_v3 }
  0x2a   :  { %113 = vst.msk [vmem:[#allocation2 + $0x1c8] sm:$0xff] %vm54_vm1, %v13837_v3 }
  0x2b   :  { %114 = vst.msk [vmem:[#allocation2 + $0x1d0] sm:$0xff] %vm54_vm1, %v13837_v3 }
  0x2c   :  { %116 = vst.msk [vmem:[#allocation2 + $0x1e0] sm:$0xff] %vm54_vm1, %v13837_v3 }
  0x2d   :  { %117 = vst.msk [vmem:[#allocation2 + $0x1e8] sm:$0xff] %vm54_vm1, %v13837_v3 }
  0x2e   :  { %119 = vst.msk [vmem:[#allocation2 + $0x1f8] sm:$0xff] %vm54_vm1, %v13837_v3 }
  0x2f   :  { %120 = vst.msk [vmem:[#allocation2 + $0x200] sm:$0xff] %vm54_vm1, %v13837_v3 }
  0x30   :  { %122 = vst.msk [vmem:[#allocation2 + $0x210] sm:$0xff] %vm54_vm1, %v13837_v3 }
  0x31   :  { %123 = vst.msk [vmem:[#allocation2 + $0x218] sm:$0xff] %vm54_vm1, %v13837_v3 }
  0x32   :  { %125 = vst.msk [vmem:[#allocation2 + $0x228] sm:$0xff] %vm54_vm1, %v13837_v3 }
  0x33   :  { %126 = vst.msk [vmem:[#allocation2 + $0x230] sm:$0xff] %vm54_vm1, %v13837_v3 }
  0x34   :  { %128 = vst.msk [vmem:[#allocation2 + $0x240] sm:$0xff] %vm54_vm1, %v13837_v3 }
  0x35   :  { %129 = vst.msk [vmem:[#allocation2 + $0x248] sm:$0xff] %vm54_vm1, %v13837_v3 }
  0x36   :  { %131 = vst.msk [vmem:[#allocation2 + $0x258] sm:$0xff] %vm54_vm1, %v13837_v3 }
  0x37   :  { %132 = vst.msk [vmem:[#allocation2 + $0x260] sm:$0xff] %vm54_vm1, %v13837_v3 }
  0x38   :  { %134 = vst.msk [vmem:[#allocation2 + $0x270] sm:$0xff] %vm54_vm1, %v13837_v3 }
  0x39   :  { %135 = vst.msk [vmem:[#allocation2 + $0x278] sm:$0xff] %vm54_vm1, %v13837_v3 }
  0x3a   :  { %137 = vst.msk [vmem:[#allocation2 + $0x288] sm:$0xff] %vm54_vm1, %v13837_v3 }
  0x3b   :  { %138 = vst.msk [vmem:[#allocation2 + $0x290] sm:$0xff] %vm54_vm1, %v13837_v3 }
  0x3c   :  { %140 = vst.msk [vmem:[#allocation2 + $0x2a0] sm:$0xff] %vm54_vm1, %v13837_v3 }
  0x3d   :  { %141 = vst.msk [vmem:[#allocation2 + $0x2a8] sm:$0xff] %vm54_vm1, %v13837_v3 }
  0x3e   :  { %143 = vst.msk [vmem:[#allocation2 + $0x2b8] sm:$0xff] %vm54_vm1, %v13837_v3 }
  0x3f   :  { %144 = vst.msk [vmem:[#allocation2 + $0x2c0] sm:$0xff] %vm54_vm1, %v13837_v3 }
  0x40   :  { %146 = vst.msk [vmem:[#allocation2 + $0x2d0] sm:$0xff] %vm54_vm1, %v13837_v3 }
  0x41   :  { %147 = vst.msk [vmem:[#allocation2 + $0x2d8] sm:$0xff] %vm54_vm1, %v13837_v3 }
  0x42   :  { %149 = vst.msk [vmem:[#allocation2 + $0x2e8] sm:$0xff] %vm54_vm1, %v13837_v3 }
  0x43   :  { %150 = vst.msk [vmem:[#allocation2 + $0x2f0] sm:$0xff] %vm54_vm1, %v13837_v3 }
  0x44   :  { %152 = vst.msk [vmem:[#allocation2 + $0x300] sm:$0xff] %vm54_vm1, %v13837_v3 }
  0x45   :  { %153 = vst.msk [vmem:[#allocation2 + $0x308] sm:$0xff] %vm54_vm1, %v13837_v3 }
  0x46   :  { %155 = vst.msk [vmem:[#allocation2 + $0x318] sm:$0xff] %vm54_vm1, %v13837_v3 }
  0x47   :  { %156 = vst.msk [vmem:[#allocation2 + $0x320] sm:$0xff] %vm54_vm1, %v13837_v3 }
  0x48   :  { %158 = vst.msk [vmem:[#allocation2 + $0x330] sm:$0xff] %vm54_vm1, %v13837_v3 }
  0x49   :  { %159 = vst.msk [vmem:[#allocation2 + $0x338] sm:$0xff] %vm54_vm1, %v13837_v3 }
  0x4a   :  { %161 = vst.msk [vmem:[#allocation2 + $0x348] sm:$0xff] %vm54_vm1, %v13837_v3 }
  0x4b   :  { %162 = vst.msk [vmem:[#allocation2 + $0x350] sm:$0xff] %vm54_vm1, %v13837_v3 }
  0x4c   :  { %157 = vst.msk [vmem:[#allocation2 + $0x328] sm:$0x3] %vm57_vm2, %v13837_v3 }
  0x4d   :  { %290 = vst.msk [vmem:[#allocation2 + $0x321] sm:$0xff] %vm54_vm1, %v225_v10 }
  0x4e   :  { %58 = vst.msk [vmem:[#allocation2 + $0x10] sm:$0x3] %vm57_vm2, %v13837_v3 }
  0x4f   :  { %61 = vst.msk [vmem:[#allocation2 + $0x28] sm:$0x3] %vm57_vm2, %v13837_v3 }
  0x50   :  { %64 = vst.msk [vmem:[#allocation2 + $0x40] sm:$0x3] %vm57_vm2, %v13837_v3 }
  0x51   :  { %67 = vst.msk [vmem:[#allocation2 + $0x58] sm:$0x3] %vm57_vm2, %v13837_v3 }
  0x52   :  { %70 = vst.msk [vmem:[#allocation2 + $0x70] sm:$0x3] %vm57_vm2, %v13837_v3 }
  0x53   :  { %73 = vst.msk [vmem:[#allocation2 + $0x88] sm:$0x3] %vm57_vm2, %v13837_v3 }
  0x54   :  { %v421_v11 = vld [vmem:[#allocation2 + $0x321] sm:$0xff]  ;;  %76 = vst.msk [vmem:[#allocation2 + $0xa0] sm:$0x3] %vm57_vm2, %v13837_v3 }
  0x55   :  { %9522 = vmatmul.msk.f32.vlgmr.msra.gmra.mxu3 %vm54_vm1, %v421_v11  ;;  %79 = vst.msk [vmem:[#allocation2 + $0xb8] sm:$0x3] %vm57_vm2, %v13837_v3  ;;  %v359_v12 = vld [vmem:[#allocation2 + $0x9] sm:$0xff] }
  0x56   :  { %v1234_v13 = vld [vmem:[#allocation2 + $0xa] sm:$0xff]  ;;  %82 = vst.msk [vmem:[#allocation2 + $0xd0] sm:$0x3] %vm57_vm2, %v13837_v3  ;;  %9460 = vmatmul.msk.f32.gmra.mxu0 %vm54_vm1, %v359_v12 }
  0x57   :  { %9591 = vmatmul.msk.f32.gmra.mxu2 %vm54_vm1, %v1234_v13  ;;  %85 = vst.msk [vmem:[#allocation2 + $0xe8] sm:$0x3] %vm57_vm2, %v13837_v3  ;;  %v182_v11 = vld [vmem:[%s13845_s18 + $0x90] sm:$0xff] }
  0x58   :  { %88 = vst.msk [vmem:[#allocation2 + $0x100] sm:$0x3] %vm57_vm2, %v13837_v3 }
  0x59   :  { %91 = vst.msk [vmem:[#allocation2 + $0x118] sm:$0x3] %vm57_vm2, %v13837_v3 }
  0x5a   :  { %94 = vst.msk [vmem:[#allocation2 + $0x130] sm:$0x3] %vm57_vm2, %v13837_v3 }
  0x5b   :  { %97 = vst.msk [vmem:[#allocation2 + $0x148] sm:$0x3] %vm57_vm2, %v13837_v3 }
  0x5c   :  { %100 = vst.msk [vmem:[#allocation2 + $0x160] sm:$0x3] %vm57_vm2, %v13837_v3 }
  0x5d   :  { %103 = vst.msk [vmem:[#allocation2 + $0x178] sm:$0x3] %vm57_vm2, %v13837_v3 }
  0x5e   :  { %106 = vst.msk [vmem:[#allocation2 + $0x190] sm:$0x3] %vm57_vm2, %v13837_v3 }
  0x5f   :  { %109 = vst.msk [vmem:[#allocation2 + $0x1a8] sm:$0x3] %vm57_vm2, %v13837_v3 }
  0x60   :  { %112 = vst.msk [vmem:[#allocation2 + $0x1c0] sm:$0x3] %vm57_vm2, %v13837_v3 }
  0x61   :  { %115 = vst.msk [vmem:[#allocation2 + $0x1d8] sm:$0x3] %vm57_vm2, %v13837_v3 }
  0x62   :  { %118 = vst.msk [vmem:[#allocation2 + $0x1f0] sm:$0x3] %vm57_vm2, %v13837_v3 }
  0x63   :  { %121 = vst.msk [vmem:[#allocation2 + $0x208] sm:$0x3] %vm57_vm2, %v13837_v3 }
  0x64   :  { %124 = vst.msk [vmem:[#allocation2 + $0x220] sm:$0x3] %vm57_vm2, %v13837_v3 }
  0x65   :  { %127 = vst.msk [vmem:[#allocation2 + $0x238] sm:$0x3] %vm57_vm2, %v13837_v3 }
  0x66   :  { %130 = vst.msk [vmem:[#allocation2 + $0x250] sm:$0x3] %vm57_vm2, %v13837_v3 }
  0x67   :  { %133 = vst.msk [vmem:[#allocation2 + $0x268] sm:$0x3] %vm57_vm2, %v13837_v3 }
  0x68   :  { %136 = vst.msk [vmem:[#allocation2 + $0x280] sm:$0x3] %vm57_vm2, %v13837_v3 }
  0x69   :  { %139 = vst.msk [vmem:[#allocation2 + $0x298] sm:$0x3] %vm57_vm2, %v13837_v3 }
  0x6a   :  { %142 = vst.msk [vmem:[#allocation2 + $0x2b0] sm:$0x3] %vm57_vm2, %v13837_v3 }
  0x6b   :  { %145 = vst.msk [vmem:[#allocation2 + $0x2c8] sm:$0x3] %vm57_vm2, %v13837_v3 }
  0x6c   :  { %148 = vst.msk [vmem:[#allocation2 + $0x2e0] sm:$0x3] %vm57_vm2, %v13837_v3 }
  0x6d   :  { %151 = vst.msk [vmem:[#allocation2 + $0x2f8] sm:$0x3] %vm57_vm2, %v13837_v3 }
  0x6e   :  { %154 = vst.msk [vmem:[#allocation2 + $0x310] sm:$0x3] %vm57_vm2, %v13837_v3 }
  0x6f   :  { %160 = vst.msk [vmem:[#allocation2 + $0x340] sm:$0x3] %vm57_vm2, %v13837_v3 }
  0x70   :  { %163 = vst.msk [vmem:[#allocation2 + $0x358] sm:$0x3] %vm57_vm2, %v13837_v3 }
  0x71   :  { %229 = vst.msk [vmem:[#allocation2 + $0x19] sm:$0xff] %vm54_vm1, %v164_v14 }
  0x72   :  { %230 = vst.msk [vmem:[#allocation2 + $0x21] sm:$0xff] %vm54_vm1, %v165_v15 }
  0x73   :  { %231 = vst.msk [vmem:[#allocation2 + $0x31] sm:$0xff] %vm54_vm1, %v166_v16 }
  0x74   :  { %232 = vst.msk [vmem:[#allocation2 + $0x39] sm:$0xff] %vm54_vm1, %v167_v17  ;;  %v183_v17 = vld [vmem:[%s13845_s18 + $0x98] sm:$0xff] }
  0x75   :  { %233 = vst.msk [vmem:[#allocation2 + $0x49] sm:$0xff] %vm54_vm1, %v168_v18 }
  0x76   :  { %234 = vst.msk [vmem:[#allocation2 + $0x51] sm:$0xff] %vm54_vm1, %v169_v19 }
  0x77   :  { %235 = vst.msk [vmem:[#allocation2 + $0x61] sm:$0xff] %vm54_vm1, %v170_v26 }
  0x78   :  { %v1767_v20 = vld [vmem:[#allocation2 + $0x18] sm:$0xff]  ;;  %236 = vst.msk [vmem:[#allocation2 + $0x69] sm:$0xff] %vm54_vm1, %v171_v30 }
  0x79   :  { %v360_v21 = vld [vmem:[#allocation2 + $0x19] sm:$0xff]  ;;  %9656 = vmatmul.msk.f32.vlgmr.msrb.gmra.mxu3 %vm54_vm1, %v1767_v20  ;;  %9526 = vmatmul.msk.f32.gmra.mxu1 %vm54_vm1, %v1767_v20  ;;  %v361_v24 = vld [vmem:[#allocation2 + $0x21] sm:$0xff]  ;;  %237 = vst.msk [vmem:[#allocation2 + $0x79] sm:$0xff] %vm54_vm1, %v172_v34 }
  0x7a   :  { %9461 = vmatmul.msk.f32.gmra.mxu0 %vm54_vm1, %v360_v21  ;;  %v1235_v22 = vld [vmem:[#allocation2 + $0x1a] sm:$0xff]  ;;  %v1236_v25 = vld [vmem:[#allocation2 + $0x22] sm:$0xff]  ;;  %v1769_v27 = vld [vmem:[#allocation2 + $0x30] sm:$0xff]  ;;  %238 = vst.msk [vmem:[#allocation2 + $0x81] sm:$0xff] %vm54_vm1, %v173_v38 }
  0x7b   :  { %9592 = vmatmul.msk.f32.gmra.mxu2 %vm54_vm1, %v1235_v22  ;;  %v1768_v23 = vld [vmem:[#allocation2 + $0x20] sm:$0xff]  ;;  %v362_v28 = vld [vmem:[#allocation2 + $0x31] sm:$0xff]  ;;  %239 = vst.msk [vmem:[#allocation2 + $0x91] sm:$0xff] %vm54_vm1, %v174_v42 }
  0x7c   :  { %v1237_v29 = vld [vmem:[#allocation2 + $0x32] sm:$0xff]  ;;  %v1238_v33 = vld [vmem:[#allocation2 + $0x3a] sm:$0xff]  ;;  %v1771_v35 = vld [vmem:[#allocation2 + $0x48] sm:$0xff]  ;;  %240 = vst.msk [vmem:[#allocation2 + $0x99] sm:$0xff] %vm54_vm1, %v175_v46 }
  0x7d   :  { %v1770_v31 = vld [vmem:[#allocation2 + $0x38] sm:$0xff]  ;;  %v364_v36 = vld [vmem:[#allocation2 + $0x49] sm:$0xff]  ;;  %241 = vst.msk [vmem:[#allocation2 + $0xa9] sm:$0xff] %vm54_vm1, %v176_v50 }
  0x7e   :  { %v363_v32 = vld [vmem:[#allocation2 + $0x39] sm:$0xff]  ;;  %v1239_v37 = vld [vmem:[#allocation2 + $0x4a] sm:$0xff]  ;;  %v366_v44 = vld [vmem:[#allocation2 + $0x61] sm:$0xff]  ;;  %242 = vst.msk [vmem:[#allocation2 + $0xb1] sm:$0xff] %vm54_vm1, %v177_v54 }
  0x7f   :  { %v1772_v39 = vld [vmem:[#allocation2 + $0x50] sm:$0xff]  ;;  %v1773_v43 = vld [vmem:[#allocation2 + $0x60] sm:$0xff]  ;;  %v1774_v47 = vld [vmem:[#allocation2 + $0x68] sm:$0xff]  ;;  %243 = vst.msk [vmem:[#allocation2 + $0xc1] sm:$0xff] %vm54_vm1, %v178_v58 }
  0x80   :  { %v365_v40 = vld [vmem:[#allocation2 + $0x51] sm:$0xff]  ;;  %v1241_v45 = vld [vmem:[#allocation2 + $0x62] sm:$0xff]  ;;  %v368_v52 = vld [vmem:[#allocation2 + $0x79] sm:$0xff]  ;;  %244 = vst.msk [vmem:[#allocation2 + $0xc9] sm:$0xff] %vm54_vm1, %v179_v62 }
  0x81   :  { %9657 = vmatmul.msk.f32.gmra.mxu3 %vm54_vm1, %v1768_v23  ;;  %9527 = vmatmul.msk.f32.gmra.mxu1 %vm54_vm1, %v1768_v23  ;;  %v1240_v41 = vld [vmem:[#allocation2 + $0x52] sm:$0xff]  ;;  %v367_v48 = vld [vmem:[#allocation2 + $0x69] sm:$0xff]  ;;  %v1243_v53 = vld [vmem:[#allocation2 + $0x7a] sm:$0xff]  ;;  %245 = vst.msk [vmem:[#allocation2 + $0xd9] sm:$0xff] %vm54_vm1, %v180_v2 }
  0x82   :  { %9462 = vmatmul.msk.f32.gmra.mxu0 %vm54_vm1, %v361_v24  ;;  %v1242_v49 = vld [vmem:[#allocation2 + $0x6a] sm:$0xff]  ;;  %v1775_v51 = vld [vmem:[#allocation2 + $0x78] sm:$0xff]  ;;  %v1776_v55 = vld [vmem:[#allocation2 + $0x80] sm:$0xff]  ;;  %246 = vst.msk [vmem:[#allocation2 + $0xe1] sm:$0xff] %vm54_vm1, %v181_v7 }
  0x83   :  { %9593 = vmatmul.msk.f32.gmra.mxu2 %vm54_vm1, %v1236_v25  ;;  %v369_v56 = vld [vmem:[#allocation2 + $0x81] sm:$0xff]  ;;  %v1777_v59 = vld [vmem:[#allocation2 + $0x90] sm:$0xff]  ;;  %v1778_v63 = vld [vmem:[#allocation2 + $0x98] sm:$0xff]  ;;  %247 = vst.msk [vmem:[#allocation2 + $0xf1] sm:$0xff] %vm54_vm1, %v182_v11 }
  0x84   :  { %v1244_v57 = vld [vmem:[#allocation2 + $0x82] sm:$0xff]  ;;  %v370_v60 = vld [vmem:[#allocation2 + $0x91] sm:$0xff]  ;;  %v371_v0 = vld [vmem:[#allocation2 + $0x99] sm:$0xff]  ;;  %248 = vst.msk [vmem:[#allocation2 + $0xf9] sm:$0xff] %vm54_vm1, %v183_v17 }
  0x85   :  { %v1245_v61 = vld [vmem:[#allocation2 + $0x92] sm:$0xff]  ;;  %v1246_v1 = vld [vmem:[#allocation2 + $0x9a] sm:$0xff]  ;;  %v1779_v4 = vld [vmem:[#allocation2 + $0xa8] sm:$0xff] }
  0x86   :  { %v372_v5 = vld [vmem:[#allocation2 + $0xa9] sm:$0xff]  ;;  %v373_v9 = vld [vmem:[#allocation2 + $0xb1] sm:$0xff]  ;;  %v1781_v14 = vld [vmem:[#allocation2 + $0xc0] sm:$0xff] }
  0x87   :  { %v1247_v6 = vld [vmem:[#allocation2 + $0xaa] sm:$0xff]  ;;  %v1248_v10 = vld [vmem:[#allocation2 + $0xb2] sm:$0xff]  ;;  %v374_v15 = vld [vmem:[#allocation2 + $0xc1] sm:$0xff] }
  0x88   :  { %v1780_v8 = vld [vmem:[#allocation2 + $0xb0] sm:$0xff]  ;;  %v1249_v16 = vld [vmem:[#allocation2 + $0xc2] sm:$0xff] }
  0x89   :  { %9658 = vmatmul.msk.f32.gmra.mxu3 %vm54_vm1, %v1769_v27  ;;  %9528 = vmatmul.msk.f32.gmra.mxu1 %vm54_vm1, %v1769_v27  ;;  %v1782_v21 = vld [vmem:[#allocation2 + $0xc8] sm:$0xff]  ;;  %v184_v24 = vld [vmem:[%s13845_s18 + $0xa0] sm:$0xff]  ;;  %v1783_v27 = vld [vmem:[#allocation2 + $0xd8] sm:$0xff] }
  0x8a   :  { %9463 = vmatmul.msk.f32.gmra.mxu0 %vm54_vm1, %v362_v28  ;;  %v10805_v12 = vpop.f32.mrf.mxu0  ;;  %v375_v22 = vld [vmem:[#allocation2 + $0xc9] sm:$0xff]  ;;  %249 = vst.msk [vmem:[#allocation2 + $0x109] sm:$0xff] %vm54_vm1, %v184_v24 }
  0x8b   :  { %9594 = vmatmul.msk.f32.gmra.mxu2 %vm54_vm1, %v1237_v29  ;;  %v1250_v23 = vld [vmem:[#allocation2 + $0xca] sm:$0xff]  ;;  %v376_v29 = vld [vmem:[#allocation2 + $0xd9] sm:$0xff] }
  0x8c   :  { %v1786_v54 = vld [vmem:[#allocation2 + $0xf8] sm:$0xff]  ;;  %v189_v7 = vld [vmem:[%s13845_s18 + $0xc8] sm:$0xff] }
  0x8d   :  { %v10807_v13 = vpop.f32.mrf.mxu1  ;;  %v1254_v58 = vld [vmem:[#allocation2 + $0xfa] sm:$0xff]  ;;  %254 = vst.msk [vmem:[#allocation2 + $0x141] sm:$0xff] %vm54_vm1, %v189_v7 }
  0x91   :  { %9659 = vmatmul.msk.f32.gmra.mxu3 %vm54_vm1, %v1770_v31  ;;  %9529 = vmatmul.msk.f32.gmra.mxu1 %vm54_vm1, %v1770_v31  ;;  %v1251_v31 = vld [vmem:[#allocation2 + $0xda] sm:$0xff] }
  0x92   :  { %9464 = vmatmul.msk.f32.gmra.mxu0 %vm54_vm1, %v363_v32  ;;  %v185_v32 = vld [vmem:[%s13845_s18 + $0xa8] sm:$0xff] }
  0x93   :  { %9595 = vmatmul.msk.f32.gmra.mxu2 %vm54_vm1, %v1238_v33  ;;  %250 = vst.msk [vmem:[#allocation2 + $0x111] sm:$0xff] %vm54_vm1, %v185_v32 }
  0x94   :  { %v10815_v18 = vpop.f32.mrf.mxu2  ;;  %v385_v7 = vld [vmem:[#allocation2 + $0x141] sm:$0xff] }
  0x95   :  { %v10821_v20 = vpop.f32.mrf.mxu1 }
  0x99   :  { %9660 = vmatmul.msk.f32.gmra.mxu3 %vm54_vm1, %v1771_v35  ;;  %9530 = vmatmul.msk.f32.gmra.mxu1 %vm54_vm1, %v1771_v35  ;;  %v1784_v35 = vld [vmem:[#allocation2 + $0xe0] sm:$0xff] }
  0x9a   :  { %9465 = vmatmul.msk.f32.gmra.mxu0 %vm54_vm1, %v364_v36  ;;  %v381_v17 = vld [vmem:[#allocation2 + $0x111] sm:$0xff] }
  0x9b   :  { %9596 = vmatmul.msk.f32.gmra.mxu2 %vm54_vm1, %v1239_v37  ;;  %v377_v37 = vld [vmem:[#allocation2 + $0xe1] sm:$0xff] }
  0xa1   :  { %9661 = vmatmul.msk.f32.gmra.mxu3 %vm54_vm1, %v1772_v39  ;;  %9531 = vmatmul.msk.f32.gmra.mxu1 %vm54_vm1, %v1772_v39  ;;  %v1252_v39 = vld [vmem:[#allocation2 + $0xe2] sm:$0xff] }
  0xa2   :  { %9466 = vmatmul.msk.f32.gmra.mxu0 %vm54_vm1, %v365_v40  ;;  %v186_v40 = vld [vmem:[%s13845_s18 + $0xb0] sm:$0xff] }
  0xa3   :  { %9597 = vmatmul.msk.f32.gmra.mxu2 %vm54_vm1, %v1240_v41  ;;  %251 = vst.msk [vmem:[#allocation2 + $0x121] sm:$0xff] %vm54_vm1, %v186_v40 }
  0xa9   :  { %9662 = vmatmul.msk.f32.gmra.mxu3 %vm54_vm1, %v1773_v43  ;;  %9532 = vmatmul.msk.f32.gmra.mxu1 %vm54_vm1, %v1773_v43  ;;  %v1785_v43 = vld [vmem:[#allocation2 + $0xf0] sm:$0xff] }
  0xaa   :  { %9467 = vmatmul.msk.f32.gmra.mxu0 %vm54_vm1, %v366_v44 }
  0xab   :  { %9598 = vmatmul.msk.f32.gmra.mxu2 %vm54_vm1, %v1241_v45  ;;  %v378_v45 = vld [vmem:[#allocation2 + $0xf1] sm:$0xff] }
  0xb1   :  { %9663 = vmatmul.msk.f32.gmra.mxu3 %vm54_vm1, %v1774_v47  ;;  %9533 = vmatmul.msk.f32.gmra.mxu1 %vm54_vm1, %v1774_v47  ;;  %v1253_v47 = vld [vmem:[#allocation2 + $0xf2] sm:$0xff] }
  0xb2   :  { %9468 = vmatmul.msk.f32.gmra.mxu0 %vm54_vm1, %v367_v48  ;;  %v187_v48 = vld [vmem:[%s13845_s18 + $0xb8] sm:$0xff] }
  0xb3   :  { %9599 = vmatmul.msk.f32.gmra.mxu2 %vm54_vm1, %v1242_v49  ;;  %252 = vst.msk [vmem:[#allocation2 + $0x129] sm:$0xff] %vm54_vm1, %v187_v48 }
  0xb9   :  { %9664 = vmatmul.msk.f32.gmra.mxu3 %vm54_vm1, %v1775_v51  ;;  %9534 = vmatmul.msk.f32.gmra.mxu1 %vm54_vm1, %v1775_v51 }
  0xba   :  { %9469 = vmatmul.msk.f32.gmra.mxu0 %vm54_vm1, %v368_v52  ;;  %v1258_v48 = vld [vmem:[#allocation2 + $0x12a] sm:$0xff] }
  0xbb   :  { %9600 = vmatmul.msk.f32.gmra.mxu2 %vm54_vm1, %v1243_v53 }
  0xc1   :  { %9665 = vmatmul.msk.f32.gmra.mxu3 %vm54_vm1, %v1776_v55  ;;  %9535 = vmatmul.msk.f32.gmra.mxu1 %vm54_vm1, %v1776_v55 }
  0xc2   :  { %9470 = vmatmul.msk.f32.gmra.mxu0 %vm54_vm1, %v369_v56  ;;  %v379_v56 = vld [vmem:[#allocation2 + $0xf9] sm:$0xff] }
  0xc3   :  { %9601 = vmatmul.msk.f32.gmra.mxu2 %vm54_vm1, %v1244_v57 }
  0xc9   :  { %9666 = vmatmul.msk.f32.gmra.mxu3 %vm54_vm1, %v1777_v59  ;;  %9536 = vmatmul.msk.f32.gmra.mxu1 %vm54_vm1, %v1777_v59  ;;  %v188_v59 = vld [vmem:[%s13845_s18 + $0xc0] sm:$0xff] }
  0xca   :  { %9471 = vmatmul.msk.f32.gmra.mxu0 %vm54_vm1, %v370_v60  ;;  %253 = vst.msk [vmem:[#allocation2 + $0x139] sm:$0xff] %vm54_vm1, %v188_v59 }
  0xcb   :  { %9602 = vmatmul.msk.f32.gmra.mxu2 %vm54_vm1, %v1245_v61 }
  0xd1   :  { %9667 = vmatmul.msk.f32.gmra.mxu3 %vm54_vm1, %v1778_v63  ;;  %9537 = vmatmul.msk.f32.gmra.mxu1 %vm54_vm1, %v1778_v63 }
  0xd2   :  { %9472 = vmatmul.msk.f32.gmra.mxu0 %vm54_vm1, %v371_v0 }
  0xd3   :  { %9603 = vmatmul.msk.f32.gmra.mxu2 %vm54_vm1, %v1246_v1  ;;  %v10819_v19 = vpop.f32.mrf.mxu0  ;;  %v1787_v1 = vld [vmem:[#allocation2 + $0x108] sm:$0xff] }
  0xd8   :  { %v10829_v25 = vpop.f32.mrf.mxu3 }
  0xd9   :  { %9668 = vmatmul.msk.f32.gmra.mxu3 %vm54_vm1, %v1779_v4  ;;  %9538 = vmatmul.msk.f32.gmra.mxu1 %vm54_vm1, %v1779_v4  ;;  %v380_v4 = vld [vmem:[#allocation2 + $0x109] sm:$0xff] }
  0xda   :  { %9473 = vmatmul.msk.f32.gmra.mxu0 %vm54_vm1, %v372_v5  ;;  %v10833_v26 = vpop.f32.mrf.mxu2 }
  0xdb   :  { %9604 = vmatmul.msk.f32.gmra.mxu2 %vm54_vm1, %v1247_v6  ;;  %v1255_v6 = vld [vmem:[#allocation2 + $0x10a] sm:$0xff] }
  0xe1   :  { %9669 = vmatmul.msk.f32.gmra.mxu3 %vm54_vm1, %v1780_v8  ;;  %9539 = vmatmul.msk.f32.gmra.mxu1 %vm54_vm1, %v1780_v8 }
  0xe2   :  { %9474 = vmatmul.msk.f32.gmra.mxu0 %vm54_vm1, %v373_v9 }
  0xe3   :  { %9605 = vmatmul.msk.f32.gmra.mxu2 %vm54_vm1, %v1248_v10 }
  0xe9   :  { %9670 = vmatmul.msk.f32.gmra.mxu3 %vm54_vm1, %v1781_v14  ;;  %9540 = vmatmul.msk.f32.gmra.mxu1 %vm54_vm1, %v1781_v14 }
  0xea   :  { %9475 = vmatmul.msk.f32.gmra.mxu0 %vm54_vm1, %v374_v15  ;;  %v1788_v15 = vld [vmem:[#allocation2 + $0x110] sm:$0xff] }
  0xeb   :  { %9606 = vmatmul.msk.f32.gmra.mxu2 %vm54_vm1, %v1249_v16 }
  0xf1   :  { %9671 = vmatmul.msk.f32.gmra.mxu3 %vm54_vm1, %v1782_v21  ;;  %9541 = vmatmul.msk.f32.gmra.mxu1 %vm54_vm1, %v1782_v21 }
  0xf2   :  { %9476 = vmatmul.msk.f32.gmra.mxu0 %vm54_vm1, %v375_v22  ;;  %v1256_v22 = vld [vmem:[#allocation2 + $0x112] sm:$0xff] }
  0xf3   :  { %9607 = vmatmul.msk.f32.gmra.mxu2 %vm54_vm1, %v1250_v23  ;;  %v190_v23 = vld [vmem:[%s13845_s18 + $0xd0] sm:$0xff] }
  0xf4   :  { %255 = vst.msk [vmem:[#allocation2 + $0x151] sm:$0xff] %vm54_vm1, %v190_v23 }
  0xf6   :  { %v1047_v30 = vpop.f32.mrf.mxu1 }
  0xf7   :  { %v643_v28 = vpop.f32.mrf.mxu0 }
  0xf8   :  { %v1048_v49 = vadd.f32 %v1047_v30, %v643_v28 }
  0xf9   :  { %9672 = vmatmul.msk.f32.gmra.mxu3 %vm54_vm1, %v1783_v27  ;;  %9542 = vmatmul.msk.f32.gmra.mxu1 %vm54_vm1, %v1783_v27 }
  0xfa   :  { %9477 = vmatmul.msk.f32.gmra.mxu0 %vm54_vm1, %v376_v29 }
  0xfb   :  { %9608 = vmatmul.msk.f32.gmra.mxu2 %vm54_vm1, %v1251_v31  ;;  %v1789_v31 = vld [vmem:[#allocation2 + $0x120] sm:$0xff] }
  0xfc   :  { %v10843_v33 = vpop.f32.mrf.mxu3 }
  0xfe   :  { %v1517_v34 = vpop.f32.mrf.mxu2  ;;  %v1050_v38 = vpop.f32.mrf.mxu1 }
  0xff   :  { %v646_v36 = vpop.f32.mrf.mxu0  ;;  %v1705_v50 = vadd.f32 %v1517_v34, %v1048_v49  ;;  %v382_v34 = vld [vmem:[#allocation2 + $0x121] sm:$0xff] }
 0x100   :  { %v1051_v60 = vadd.f32 %v1050_v38, %v646_v36  ;;  %v1257_v36 = vld [vmem:[#allocation2 + $0x122] sm:$0xff] }
 0x101   :  { %9673 = vmatmul.msk.f32.gmra.mxu3 %vm54_vm1, %v1784_v35  ;;  %9543 = vmatmul.msk.f32.gmra.mxu1 %vm54_vm1, %v1784_v35  ;;  %v192_v49 = vld [vmem:[%s13845_s18 + $0xe0] sm:$0xff] }
 0x102   :  { %9478 = vmatmul.msk.f32.gmra.mxu0 %vm54_vm1, %v377_v37  ;;  %v191_v37 = vld [vmem:[%s13845_s18 + $0xd8] sm:$0xff]  ;;  %257 = vst.msk [vmem:[#allocation2 + $0x169] sm:$0xff] %vm54_vm1, %v192_v49 }
 0x103   :  { %9609 = vmatmul.msk.f32.gmra.mxu2 %vm54_vm1, %v1252_v39  ;;  %256 = vst.msk [vmem:[#allocation2 + $0x159] sm:$0xff] %vm54_vm1, %v191_v37 }
 0x104   :  { %v10853_v41 = vpop.f32.mrf.mxu3 }
 0x106   :  { %v1520_v42 = vpop.f32.mrf.mxu2  ;;  %v1053_v46 = vpop.f32.mrf.mxu1 }
 0x107   :  { %v649_v44 = vpop.f32.mrf.mxu0  ;;  %v1706_v61 = vadd.f32 %v1520_v42, %v1051_v60  ;;  %v1259_v60 = vld [vmem:[#allocation2 + $0x13a] sm:$0xff] }
 0x108   :  { %v1054_v8 = vadd.f32 %v1053_v46, %v649_v44  ;;  %v1790_v44 = vld [vmem:[#allocation2 + $0x128] sm:$0xff] }
 0x109   :  { %9674 = vmatmul.msk.f32.gmra.mxu3 %vm54_vm1, %v1785_v43  ;;  %9544 = vmatmul.msk.f32.gmra.mxu1 %vm54_vm1, %v1785_v43  ;;  %v383_v46 = vld [vmem:[#allocation2 + $0x129] sm:$0xff] }
 0x10a   :  { %9479 = vmatmul.msk.f32.gmra.mxu0 %vm54_vm1, %v378_v45  ;;  %v1794_v37 = vld [vmem:[#allocation2 + $0x158] sm:$0xff] }
 0x10b   :  { %9610 = vmatmul.msk.f32.gmra.mxu2 %vm54_vm1, %v1253_v47 }
 0x10c   :  { %v2051_v51 = vpop.f32.mrf.mxu3 }
 0x10d   :  { %v10863_v52 = vadd.f32 %v2051_v51, %v1705_v50 }
 0x10e   :  { %v1523_v53 = vpop.f32.mrf.mxu2  ;;  %v1056_v57 = vpop.f32.mrf.mxu1 }
 0x10f   :  { %v652_v55 = vpop.f32.mrf.mxu0  ;;  %v1707_v9 = vadd.f32 %v1523_v53, %v1054_v8 }
 0x110   :  { %v1057_v24 = vadd.f32 %v1056_v57, %v652_v55 }
 0x111   :  { %9675 = vmatmul.msk.f32.gmra.mxu3 %vm54_vm1, %v1786_v54  ;;  %9545 = vmatmul.msk.f32.gmra.mxu1 %vm54_vm1, %v1786_v54 }
 0x112   :  { %9480 = vmatmul.msk.f32.gmra.mxu0 %vm54_vm1, %v379_v56  ;;  %v1791_v56 = vld [vmem:[#allocation2 + $0x138] sm:$0xff] }
 0x113   :  { %9611 = vmatmul.msk.f32.gmra.mxu2 %vm54_vm1, %v1254_v58  ;;  %v384_v58 = vld [vmem:[#allocation2 + $0x139] sm:$0xff] }
 0x114   :  { %v2054_v62 = vpop.f32.mrf.mxu3 }
 0x115   :  { %v10873_v63 = vadd.f32 %v2054_v62, %v1706_v61  ;;  %v193_v61 = vld [vmem:[%s13845_s18 + $0xe8] sm:$0xff] }
 0x116   :  { %v1526_v0 = vpop.f32.mrf.mxu2  ;;  %v1059_v5 = vpop.f32.mrf.mxu1  ;;  %258 = vst.msk [vmem:[#allocation2 + $0x171] sm:$0xff] %vm54_vm1, %v193_v61 }
 0x117   :  { %v655_v2 = vpop.f32.mrf.mxu0  ;;  %v1708_v27 = vadd.f32 %v1526_v0, %v1057_v24  ;;  %v386_v24 = vld [vmem:[#allocation2 + $0x151] sm:$0xff] }
 0x118   :  { %v1060_v38 = vadd.f32 %v1059_v5, %v655_v2  ;;  %v1792_v5 = vld [vmem:[#allocation2 + $0x140] sm:$0xff] }
 0x119   :  { %9676 = vmatmul.msk.f32.gmra.mxu3 %vm54_vm1, %v1787_v1  ;;  %9546 = vmatmul.msk.f32.gmra.mxu1 %vm54_vm1, %v1787_v1 }
 0x11a   :  { %9481 = vmatmul.msk.f32.gmra.mxu0 %vm54_vm1, %v380_v4 }
 0x11b   :  { %9612 = vmatmul.msk.f32.gmra.mxu2 %vm54_vm1, %v1255_v6 }
 0x11c   :  { %v2057_v10 = vpop.f32.mrf.mxu3 }
 0x11d   :  { %v10883_v11 = vadd.f32 %v2057_v10, %v1707_v9  ;;  %v1260_v9 = vld [vmem:[#allocation2 + $0x142] sm:$0xff]  ;;  %v194_v10 = vld [vmem:[%s13845_s18 + $0xf0] sm:$0xff] }
 0x11e   :  { %v1529_v14 = vpop.f32.mrf.mxu2  ;;  %v1062_v21 = vpop.f32.mrf.mxu1  ;;  %259 = vst.msk [vmem:[#allocation2 + $0x181] sm:$0xff] %vm54_vm1, %v194_v10 }
 0x11f   :  { %v658_v16 = vpop.f32.mrf.mxu0  ;;  %v1709_v39 = vadd.f32 %v1529_v14, %v1060_v38 }
 0x120   :  { %v1063_v50 = vadd.f32 %v1062_v21, %v658_v16 }
 0x121   :  { %9677 = vmatmul.msk.f32.gmra.mxu3 %vm54_vm1, %v1788_v15  ;;  %9547 = vmatmul.msk.f32.gmra.mxu1 %vm54_vm1, %v1788_v15 }
 0x122   :  { %9482 = vmatmul.msk.f32.gmra.mxu0 %vm54_vm1, %v381_v17 }
 0x123   :  { %9613 = vmatmul.msk.f32.gmra.mxu2 %vm54_vm1, %v1256_v22  ;;  %v1793_v22 = vld [vmem:[#allocation2 + $0x150] sm:$0xff] }
 0x124   :  { %v2060_v28 = vpop.f32.mrf.mxu3 }
 0x125   :  { %v10893_v29 = vadd.f32 %v2060_v28, %v1708_v27  ;;  %v1261_v28 = vld [vmem:[#allocation2 + $0x152] sm:$0xff] }
 0x126   :  { %v1532_v30 = vpop.f32.mrf.mxu2  ;;  %v1065_v35 = vpop.f32.mrf.mxu1 }
 0x127   :  { %v661_v32 = vpop.f32.mrf.mxu0  ;;  %v1710_v51 = vadd.f32 %v1532_v30, %v1063_v50  ;;  %v195_v30 = vld [vmem:[%s13845_s18 + $0xf8] sm:$0xff]  ;;  %v1795_v50 = vld [vmem:[#allocation2 + $0x168] sm:$0xff] }
 0x128   :  { %v1066_v62 = vadd.f32 %v1065_v35, %v661_v32  ;;  %260 = vst.msk [vmem:[#allocation2 + $0x189] sm:$0xff] %vm54_vm1, %v195_v30 }
 0x129   :  { %9678 = vmatmul.msk.f32.gmra.mxu3 %vm54_vm1, %v1789_v31  ;;  %9548 = vmatmul.msk.f32.gmra.mxu1 %vm54_vm1, %v1789_v31 }
 0x12a   :  { %9483 = vmatmul.msk.f32.gmra.mxu0 %vm54_vm1, %v382_v34 }
 0x12b   :  { %9614 = vmatmul.msk.f32.gmra.mxu2 %vm54_vm1, %v1257_v36 }
 0x12c   :  { %v2063_v40 = vpop.f32.mrf.mxu3 }
 0x12d   :  { %v10903_v42 = vadd.f32 %v2063_v40, %v1709_v39  ;;  %v387_v39 = vld [vmem:[#allocation2 + $0x159] sm:$0xff] }
 0x12e   :  { %v1535_v43 = vpop.f32.mrf.mxu2  ;;  %v1068_v47 = vpop.f32.mrf.mxu1 }
 0x12f   :  { %v664_v45 = vpop.f32.mrf.mxu0  ;;  %v1711_v0 = vadd.f32 %v1535_v43, %v1066_v62  ;;  %v1262_v43 = vld [vmem:[#allocation2 + $0x15a] sm:$0xff] }
 0x130   :  { %v1069_v14 = vadd.f32 %v1068_v47, %v664_v45 }
 0x131   :  { %9679 = vmatmul.msk.f32.gmra.mxu3 %vm54_vm1, %v1790_v44  ;;  %9549 = vmatmul.msk.f32.gmra.mxu1 %vm54_vm1, %v1790_v44  ;;  %v196_v44 = vld [vmem:[%s13845_s18 + $0x100] sm:$0xff] }
 0x132   :  { %9484 = vmatmul.msk.f32.gmra.mxu0 %vm54_vm1, %v383_v46  ;;  %261 = vst.msk [vmem:[#allocation2 + $0x1c9] sm:$0xff] %vm54_vm1, %v196_v44  ;;  %v1266_v44 = vld [vmem:[#allocation2 + $0x1ba] sm:$0xff] }
 0x133   :  { %9615 = vmatmul.msk.f32.gmra.mxu2 %vm54_vm1, %v1258_v48 }
 0x134   :  { %v2066_v53 = vpop.f32.mrf.mxu3 }
 0x135   :  { %v10913_v54 = vadd.f32 %v2066_v53, %v1710_v51  ;;  %v388_v53 = vld [vmem:[#allocation2 + $0x169] sm:$0xff] }
 0x136   :  { %v1538_v55 = vpop.f32.mrf.mxu2  ;;  %v1071_v59 = vpop.f32.mrf.mxu1 }
 0x137   :  { %v667_v57 = vpop.f32.mrf.mxu0  ;;  %v1712_v15 = vadd.f32 %v1538_v55, %v1069_v14 }
 0x138   :  { %v1072_v31 = vadd.f32 %v1071_v59, %v667_v57  ;;  %v197_v57 = vld [vmem:[%s13845_s18 + $0x108] sm:$0xff] }
 0x139   :  { %9680 = vmatmul.msk.f32.gmra.mxu3 %vm54_vm1, %v1791_v56  ;;  %9550 = vmatmul.msk.f32.gmra.mxu1 %vm54_vm1, %v1791_v56  ;;  %v1263_v56 = vld [vmem:[#allocation2 + $0x16a] sm:$0xff]  ;;  %262 = vst.msk [vmem:[#allocation2 + $0x1d1] sm:$0xff] %vm54_vm1, %v197_v57 }
 0x13a   :  { %9485 = vmatmul.msk.f32.gmra.mxu0 %vm54_vm1, %v384_v58 }
 0x13b   :  { %9616 = vmatmul.msk.f32.gmra.mxu2 %vm54_vm1, %v1259_v60 }
 0x13c   :  { %v2069_v1 = vpop.f32.mrf.mxu3 }
 0x13d   :  { %v10923_v2 = vadd.f32 %v2069_v1, %v1711_v0  ;;  %v1796_v0 = vld [vmem:[#allocation2 + $0x170] sm:$0xff] }
 0x13e   :  { %v1541_v4 = vpop.f32.mrf.mxu2  ;;  %v1074_v8 = vpop.f32.mrf.mxu1 }
 0x13f   :  { %v670_v6 = vpop.f32.mrf.mxu0  ;;  %v1713_v32 = vadd.f32 %v1541_v4, %v1072_v31  ;;  %v389_v4 = vld [vmem:[#allocation2 + $0x171] sm:$0xff] }
 0x140   :  { %v1075_v45 = vadd.f32 %v1074_v8, %v670_v6  ;;  %v1264_v6 = vld [vmem:[#allocation2 + $0x172] sm:$0xff] }
 0x141   :  { %9681 = vmatmul.msk.f32.gmra.mxu3 %vm54_vm1, %v1792_v5  ;;  %9551 = vmatmul.msk.f32.gmra.mxu1 %vm54_vm1, %v1792_v5 }
 0x142   :  { %9486 = vmatmul.msk.f32.gmra.mxu0 %vm54_vm1, %v385_v7  ;;  %v198_v7 = vld [vmem:[%s13845_s18 + $0x110] sm:$0xff] }
 0x143   :  { %9617 = vmatmul.msk.f32.gmra.mxu2 %vm54_vm1, %v1260_v9  ;;  %263 = vst.msk [vmem:[#allocation2 + $0x1e1] sm:$0xff] %vm54_vm1, %v198_v7  ;;  %v393_v7 = vld [vmem:[#allocation2 + $0x1d1] sm:$0xff] }
 0x144   :  { %v2072_v16 = vpop.f32.mrf.mxu3 }
 0x145   :  { %v10933_v17 = vadd.f32 %v2072_v16, %v1712_v15  ;;  %v1797_v16 = vld [vmem:[#allocation2 + $0x180] sm:$0xff] }
 0x146   :  { %v1544_v21 = vpop.f32.mrf.mxu2  ;;  %v1077_v27 = vpop.f32.mrf.mxu1 }
 0x147   :  { %v673_v23 = vpop.f32.mrf.mxu0  ;;  %v1714_v46 = vadd.f32 %v1544_v21, %v1075_v45  ;;  %v200_v45 = vld [vmem:[%s13845_s18 + $0x120] sm:$0xff] }
 0x148   :  { %v1078_v58 = vadd.f32 %v1077_v27, %v673_v23  ;;  %v1265_v27 = vld [vmem:[#allocation2 + $0x1b2] sm:$0xff]  ;;  %265 = vst.msk [vmem:[#allocation2 + $0x1f9] sm:$0xff] %vm54_vm1, %v200_v45 }
 0x149   :  { %9682 = vmatmul.msk.f32.gmra.mxu3 %vm54_vm1, %v1793_v22  ;;  %9552 = vmatmul.msk.f32.gmra.mxu1 %vm54_vm1, %v1793_v22  ;;  %v390_v22 = vld [vmem:[#allocation2 + $0x1b1] sm:$0xff] }
 0x14a   :  { %9487 = vmatmul.msk.f32.gmra.mxu0 %vm54_vm1, %v386_v24  ;;  %v325_v24 = vld [vmem:[#allocation2 + $0x1b0] sm:$0xff] }
 0x14b   :  { %9618 = vmatmul.msk.f32.gmra.mxu2 %vm54_vm1, %v1261_v28  ;;  %v199_v28 = vld [vmem:[%s13845_s18 + $0x118] sm:$0xff] }
 0x14c   :  { %v2075_v34 = vpop.f32.mrf.mxu3  ;;  %264 = vst.msk [vmem:[#allocation2 + $0x1e9] sm:$0xff] %vm54_vm1, %v199_v28  ;;  %v394_v28 = vld [vmem:[#allocation2 + $0x1e1] sm:$0xff] }
 0x14d   :  { %v10943_v35 = vadd.f32 %v2075_v34, %v1713_v32 }
 0x14e   :  { %v1547_v36 = vpop.f32.mrf.mxu2  ;;  %v1080_v40 = vpop.f32.mrf.mxu1 }
 0x14f   :  { %v676_v38 = vpop.f32.mrf.mxu0  ;;  %v1715_v59 = vadd.f32 %v1547_v36, %v1078_v58  ;;  %v1267_v58 = vld [vmem:[#allocation2 + $0x1ca] sm:$0xff] }
 0x150   :  { %v1081_v8 = vadd.f32 %v1080_v40, %v676_v38 }
 0x151   :  { %9683 = vmatmul.msk.f32.gmra.mxu3 %vm54_vm1, %v1794_v37  ;;  %9553 = vmatmul.msk.f32.gmra.mxu1 %vm54_vm1, %v1794_v37  ;;  %v1798_v37 = vld [vmem:[#allocation2 + $0x188] sm:$0xff] }
 0x152   :  { %9488 = vmatmul.msk.f32.gmra.mxu0 %vm54_vm1, %v387_v39  ;;  %v391_v39 = vld [vmem:[#allocation2 + $0x1b9] sm:$0xff] }
 0x153   :  { %9619 = vmatmul.msk.f32.gmra.mxu2 %vm54_vm1, %v1262_v43  ;;  %v326_v43 = vld [vmem:[#allocation2 + $0x1b8] sm:$0xff]  ;;  %v395_v45 = vld [vmem:[#allocation2 + $0x1e9] sm:$0xff] }
 0x154   :  { %v2078_v47 = vpop.f32.mrf.mxu3 }
 0x155   :  { %v10953_v48 = vadd.f32 %v2078_v47, %v1714_v46 }
 0x156   :  { %v1550_v49 = vpop.f32.mrf.mxu2  ;;  %v1083_v55 = vpop.f32.mrf.mxu1 }
 0x157   :  { %v679_v51 = vpop.f32.mrf.mxu0  ;;  %v1716_v9 = vadd.f32 %v1550_v49, %v1081_v8 }
 0x158   :  { %v1084_v30 = vadd.f32 %v1083_v55, %v679_v51 }
 0x159   :  { %9684 = vmatmul.msk.f32.gmra.mxu3 %vm54_vm1, %v1795_v50  ;;  %9554 = vmatmul.msk.f32.gmra.mxu1 %vm54_vm1, %v1795_v50 }
 0x15a   :  { %9489 = vmatmul.msk.f32.gmra.mxu0 %vm54_vm1, %v388_v53  ;;  %v1799_v53 = vld [vmem:[#allocation2 + $0x1c8] sm:$0xff] }
 0x15b   :  { %9620 = vmatmul.msk.f32.gmra.mxu2 %vm54_vm1, %v1263_v56  ;;  %v392_v56 = vld [vmem:[#allocation2 + $0x1c9] sm:$0xff] }
 0x15c   :  { %v2081_v60 = vpop.f32.mrf.mxu3 }
 0x15d   :  { %v10963_v61 = vadd.f32 %v2081_v60, %v1715_v59  ;;  %v201_v59 = vld [vmem:[%s13845_s18 + $0x128] sm:$0xff] }
 0x15e   :  { %v1553_v62 = vpop.f32.mrf.mxu2  ;;  %v1086_v5 = vpop.f32.mrf.mxu1  ;;  %266 = vst.msk [vmem:[#allocation2 + $0x201] sm:$0xff] %vm54_vm1, %v201_v59 }
 0x15f   :  { %v682_v1 = vpop.f32.mrf.mxu0  ;;  %v1717_v31 = vadd.f32 %v1553_v62, %v1084_v30 }
 0x160   :  { %v1087_v46 = vadd.f32 %v1086_v5, %v682_v1  ;;  %v1800_v5 = vld [vmem:[#allocation2 + $0x1d0] sm:$0xff] }
 0x161   :  { %9685 = vmatmul.msk.f32.gmra.mxu3 %vm54_vm1, %v1796_v0  ;;  %9555 = vmatmul.msk.f32.gmra.mxu1 %vm54_vm1, %v1796_v0 }
 0x162   :  { %9490 = vmatmul.msk.f32.gmra.mxu0 %vm54_vm1, %v389_v4 }
 0x163   :  { %9621 = vmatmul.msk.f32.gmra.mxu2 %vm54_vm1, %v1264_v6 }
 0x164   :  { %v2084_v10 = vpop.f32.mrf.mxu3 }
 0x165   :  { %v10973_v14 = vadd.f32 %v2084_v10, %v1716_v9  ;;  %v1268_v9 = vld [vmem:[#allocation2 + $0x1d2] sm:$0xff] }
 0x166   :  { %v1556_v15 = vpop.f32.mrf.mxu2  ;;  %v1089_v23 = vpop.f32.mrf.mxu1  ;;  %v202_v10 = vld [vmem:[%s13845_s18 + $0x130] sm:$0xff] }
 0x167   :  { %v685_v21 = vpop.f32.mrf.mxu0  ;;  %v1718_v47 = vadd.f32 %v1556_v15, %v1087_v46  ;;  %267 = vst.msk [vmem:[#allocation2 + $0x211] sm:$0xff] %vm54_vm1, %v202_v10  ;;  %v1804_v10 = vld [vmem:[#allocation2 + $0x200] sm:$0xff] }
 0x168   :  { %v1090_v60 = vadd.f32 %v1089_v23, %v685_v21 }
 0x169   :  { %9686 = vmatmul.msk.f32.gmra.mxu3 %vm54_vm1, %v1797_v16  ;;  %9556 = vmatmul.msk.f32.gmra.mxu1 %vm54_vm1, %v325_v24  ;;  %v1801_v24 = vld [vmem:[#allocation2 + $0x1e0] sm:$0xff] }
 0x16a   :  { %9491 = vmatmul.msk.f32.gmra.mxu0 %vm54_vm1, %v390_v22 }
 0x16b   :  { %9622 = vmatmul.msk.f32.gmra.mxu2 %vm54_vm1, %v1265_v27 }
 0x16c   :  { %v2087_v32 = vpop.f32.mrf.mxu3 }
 0x16d   :  { %v10983_v34 = vadd.f32 %v2087_v32, %v1717_v31  ;;  %v1269_v31 = vld [vmem:[#allocation2 + $0x1e2] sm:$0xff]  ;;  %v203_v32 = vld [vmem:[%s13845_s18 + $0x138] sm:$0xff] }
 0x16e   :  { %v1559_v36 = vpop.f32.mrf.mxu2  ;;  %v1092_v40 = vpop.f32.mrf.mxu1  ;;  %268 = vst.msk [vmem:[#allocation2 + $0x219] sm:$0xff] %vm54_vm1, %v203_v32 }
 0x16f   :  { %v688_v38 = vpop.f32.mrf.mxu0  ;;  %v1719_v62 = vadd.f32 %v1559_v36, %v1090_v60  ;;  %v396_v60 = vld [vmem:[#allocation2 + $0x1f9] sm:$0xff] }
 0x170   :  { %v1093_v15 = vadd.f32 %v1092_v40, %v688_v38 }
 0x171   :  { %9687 = vmatmul.msk.f32.gmra.mxu3 %vm54_vm1, %v1798_v37  ;;  %9557 = vmatmul.msk.f32.gmra.mxu1 %vm54_vm1, %v326_v43  ;;  %v1802_v43 = vld [vmem:[#allocation2 + $0x1e8] sm:$0xff] }
 0x172   :  { %9492 = vmatmul.msk.f32.gmra.mxu0 %vm54_vm1, %v391_v39 }
 0x173   :  { %9623 = vmatmul.msk.f32.gmra.mxu2 %vm54_vm1, %v1266_v44 }
 0x174   :  { %v2090_v49 = vpop.f32.mrf.mxu3 }
 0x175   :  { %v10993_v50 = vadd.f32 %v2090_v49, %v1718_v47  ;;  %v1270_v47 = vld [vmem:[#allocation2 + $0x1ea] sm:$0xff]  ;;  %v204_v49 = vld [vmem:[%s13845_s18 + $0x140] sm:$0xff] }
 0x176   :  { %v1562_v51 = vpop.f32.mrf.mxu2  ;;  %v1095_v57 = vpop.f32.mrf.mxu1  ;;  %269 = vst.msk [vmem:[#allocation2 + $0x229] sm:$0xff] %vm54_vm1, %v204_v49 }
 0x177   :  { %v691_v55 = vpop.f32.mrf.mxu0  ;;  %v1720_v16 = vadd.f32 %v1562_v51, %v1093_v15 }
 0x178   :  { %v1096_v36 = vadd.f32 %v1095_v57, %v691_v55 }
 0x179   :  { %9688 = vmatmul.msk.f32.gmra.mxu3 %vm54_vm1, %v1799_v53  ;;  %9558 = vmatmul.msk.f32.gmra.mxu1 %vm54_vm1, %v1799_v53 }
 0x17a   :  { %9493 = vmatmul.msk.f32.gmra.mxu0 %vm54_vm1, %v392_v56 }
 0x17b   :  { %9624 = vmatmul.msk.f32.gmra.mxu2 %vm54_vm1, %v1267_v58  ;;  %v1803_v58 = vld [vmem:[#allocation2 + $0x1f8] sm:$0xff] }
 0x17c   :  { %v2093_v0 = vpop.f32.mrf.mxu3 }
 0x17d   :  { %v11003_v1 = vadd.f32 %v2093_v0, %v1719_v62  ;;  %v1271_v0 = vld [vmem:[#allocation2 + $0x1fa] sm:$0xff] }
 0x17e   :  { %v1565_v4 = vpop.f32.mrf.mxu2  ;;  %v1098_v8 = vpop.f32.mrf.mxu1 }
 0x17f   :  { %v694_v6 = vpop.f32.mrf.mxu0  ;;  %v1721_v37 = vadd.f32 %v1565_v4, %v1096_v36  ;;  %v205_v4 = vld [vmem:[%s13845_s18 + $0x148] sm:$0xff]  ;;  %v1805_v36 = vld [vmem:[#allocation2 + $0x210] sm:$0xff] }
 0x180   :  { %v1099_v51 = vadd.f32 %v1098_v8, %v694_v6  ;;  %270 = vst.msk [vmem:[#allocation2 + $0x231] sm:$0xff] %vm54_vm1, %v205_v4 }
 0x181   :  { %9689 = vmatmul.msk.f32.gmra.mxu3 %vm54_vm1, %v1800_v5  ;;  %9559 = vmatmul.msk.f32.gmra.mxu1 %vm54_vm1, %v1800_v5 }
 0x182   :  { %9494 = vmatmul.msk.f32.gmra.mxu0 %vm54_vm1, %v393_v7 }
 0x183   :  { %9625 = vmatmul.msk.f32.gmra.mxu2 %vm54_vm1, %v1268_v9 }
 0x184   :  { %v2096_v21 = vpop.f32.mrf.mxu3 }
 0x185   :  { %v11013_v22 = vadd.f32 %v2096_v21, %v1720_v16  ;;  %v397_v16 = vld [vmem:[#allocation2 + $0x201] sm:$0xff] }
 0x186   :  { %v1568_v23 = vpop.f32.mrf.mxu2  ;;  %v1101_v30 = vpop.f32.mrf.mxu1 }
 0x187   :  { %v697_v27 = vpop.f32.mrf.mxu0  ;;  %v1722_v53 = vadd.f32 %v1568_v23, %v1099_v51  ;;  %v1272_v23 = vld [vmem:[#allocation2 + $0x202] sm:$0xff] }
 0x188   :  { %v1102_v5 = vadd.f32 %v1101_v30, %v697_v27 }
 0x189   :  { %9690 = vmatmul.msk.f32.gmra.mxu3 %vm54_vm1, %v1801_v24  ;;  %9560 = vmatmul.msk.f32.gmra.mxu1 %vm54_vm1, %v1801_v24  ;;  %v206_v24 = vld [vmem:[%s13845_s18 + $0x150] sm:$0xff] }
 0x18a   :  { %9495 = vmatmul.msk.f32.gmra.mxu0 %vm54_vm1, %v394_v28  ;;  %271 = vst.msk [vmem:[#allocation2 + $0x241] sm:$0xff] %vm54_vm1, %v206_v24 }
 0x18b   :  { %9626 = vmatmul.msk.f32.gmra.mxu2 %vm54_vm1, %v1269_v31 }
 0x18c   :  { %v2099_v38 = vpop.f32.mrf.mxu3 }
 0x18d   :  { %v11023_v39 = vadd.f32 %v2099_v38, %v1721_v37  ;;  %v398_v38 = vld [vmem:[#allocation2 + $0x211] sm:$0xff] }
 0x18e   :  { %v1571_v40 = vpop.f32.mrf.mxu2  ;;  %v1104_v46 = vpop.f32.mrf.mxu1 }
 0x18f   :  { %v700_v44 = vpop.f32.mrf.mxu0  ;;  %v1723_v6 = vadd.f32 %v1571_v40, %v1102_v5 }
 0x190   :  { %v1105_v27 = vadd.f32 %v1104_v46, %v700_v44  ;;  %v207_v44 = vld [vmem:[%s13845_s18 + $0x158] sm:$0xff] }
 0x191   :  { %9691 = vmatmul.msk.f32.gmra.mxu3 %vm54_vm1, %v1802_v43  ;;  %9561 = vmatmul.msk.f32.gmra.mxu1 %vm54_vm1, %v1802_v43  ;;  %v1273_v43 = vld [vmem:[#allocation2 + $0x212] sm:$0xff]  ;;  %272 = vst.msk [vmem:[#allocation2 + $0x249] sm:$0xff] %vm54_vm1, %v207_v44 }
 0x192   :  { %9496 = vmatmul.msk.f32.gmra.mxu0 %vm54_vm1, %v395_v45  ;;  %v1276_v44 = vld [vmem:[#allocation2 + $0x232] sm:$0xff] }
 0x193   :  { %9627 = vmatmul.msk.f32.gmra.mxu2 %vm54_vm1, %v1270_v47 }
 0x194   :  { %v2102_v55 = vpop.f32.mrf.mxu3 }
 0x195   :  { %v11033_v56 = vadd.f32 %v2102_v55, %v1722_v53  ;;  %v1806_v53 = vld [vmem:[#allocation2 + $0x218] sm:$0xff] }
 0x196   :  { %v1574_v57 = vpop.f32.mrf.mxu2  ;;  %v1107_v62 = vpop.f32.mrf.mxu1 }
 0x197   :  { %v703_v59 = vpop.f32.mrf.mxu0  ;;  %v1724_v28 = vadd.f32 %v1574_v57, %v1105_v27  ;;  %v399_v57 = vld [vmem:[#allocation2 + $0x219] sm:$0xff] }
 0x198   :  { %v1108_v45 = vadd.f32 %v1107_v62, %v703_v59  ;;  %v208_v59 = vld [vmem:[%s13845_s18 + $0x160] sm:$0xff] }
 0x199   :  { %9692 = vmatmul.msk.f32.gmra.mxu3 %vm54_vm1, %v1803_v58  ;;  %9562 = vmatmul.msk.f32.gmra.mxu1 %vm54_vm1, %v1803_v58  ;;  %273 = vst.msk [vmem:[#allocation2 + $0x259] sm:$0xff] %vm54_vm1, %v208_v59 }
 0x19a   :  { %9497 = vmatmul.msk.f32.gmra.mxu0 %vm54_vm1, %v396_v60  ;;  %v1274_v60 = vld [vmem:[#allocation2 + $0x21a] sm:$0xff] }
 0x19b   :  { %9628 = vmatmul.msk.f32.gmra.mxu2 %vm54_vm1, %v1271_v0 }
 0x19c   :  { %v2105_v7 = vpop.f32.mrf.mxu3 }
 0x19d   :  { %v11043_v8 = vadd.f32 %v2105_v7, %v1723_v6  ;;  %v1807_v7 = vld [vmem:[#allocation2 + $0x228] sm:$0xff] }
 0x19e   :  { %v1577_v9 = vpop.f32.mrf.mxu2  ;;  %v1110_v21 = vpop.f32.mrf.mxu1 }
 0x19f   :  { %v706_v15 = vpop.f32.mrf.mxu0  ;;  %v1725_v46 = vadd.f32 %v1577_v9, %v1108_v45 }
 0x1a0   :  { %v1111_v62 = vadd.f32 %v1110_v21, %v706_v15  ;;  %v1275_v15 = vld [vmem:[#allocation2 + $0x22a] sm:$0xff] }
 0x1a1   :  { %9693 = vmatmul.msk.f32.gmra.mxu3 %vm54_vm1, %v1804_v10  ;;  %9563 = vmatmul.msk.f32.gmra.mxu1 %vm54_vm1, %v1804_v10  ;;  %v400_v10 = vld [vmem:[#allocation2 + $0x229] sm:$0xff] }
 0x1a2   :  { %9498 = vmatmul.msk.f32.gmra.mxu0 %vm54_vm1, %v397_v16  ;;  %v209_v21 = vld [vmem:[%s13845_s18 + $0x168] sm:$0xff] }
 0x1a3   :  { %9629 = vmatmul.msk.f32.gmra.mxu2 %vm54_vm1, %v1272_v23  ;;  %274 = vst.msk [vmem:[#allocation2 + $0x261] sm:$0xff] %vm54_vm1, %v209_v21  ;;  %v403_v21 = vld [vmem:[#allocation2 + $0x249] sm:$0xff] }
 0x1a4   :  { %v2108_v30 = vpop.f32.mrf.mxu3 }
 0x1a5   :  { %v11053_v31 = vadd.f32 %v2108_v30, %v1724_v28 }
 0x1a6   :  { %v1580_v32 = vpop.f32.mrf.mxu2  ;;  %v1113_v40 = vpop.f32.mrf.mxu1 }
 0x1a7   :  { %v709_v37 = vpop.f32.mrf.mxu0  ;;  %v1726_v0 = vadd.f32 %v1580_v32, %v1111_v62  ;;  %v1808_v32 = vld [vmem:[#allocation2 + $0x230] sm:$0xff] }
 0x1a8   :  { %v1114_v23 = vadd.f32 %v1113_v40, %v709_v37  ;;  %v210_v37 = vld [vmem:[%s13845_s18 + $0x170] sm:$0xff] }
 0x1a9   :  { %9694 = vmatmul.msk.f32.gmra.mxu3 %vm54_vm1, %v1805_v36  ;;  %9564 = vmatmul.msk.f32.gmra.mxu1 %vm54_vm1, %v1805_v36  ;;  %275 = vst.msk [vmem:[#allocation2 + $0x271] sm:$0xff] %vm54_vm1, %v210_v37 }
 0x1aa   :  { %9499 = vmatmul.msk.f32.gmra.mxu0 %vm54_vm1, %v398_v38  ;;  %v401_v38 = vld [vmem:[#allocation2 + $0x231] sm:$0xff] }
 0x1ab   :  { %9630 = vmatmul.msk.f32.gmra.mxu2 %vm54_vm1, %v1273_v43 }
 0x1ac   :  { %v2111_v47 = vpop.f32.mrf.mxu3 }
 0x1ad   :  { %v11063_v49 = vadd.f32 %v2111_v47, %v1725_v46 }
 0x1ae   :  { %v1583_v51 = vpop.f32.mrf.mxu2  ;;  %v1116_v58 = vpop.f32.mrf.mxu1 }
 0x1af   :  { %v712_v55 = vpop.f32.mrf.mxu0  ;;  %v1727_v24 = vadd.f32 %v1583_v51, %v1114_v23 }
 0x1b0   :  { %v1117_v40 = vadd.f32 %v1116_v58, %v712_v55  ;;  %v1277_v55 = vld [vmem:[#allocation2 + $0x242] sm:$0xff]  ;;  %v211_v58 = vld [vmem:[%s13845_s18 + $0x178] sm:$0xff] }
 0x1b1   :  { %9695 = vmatmul.msk.f32.gmra.mxu3 %vm54_vm1, %v1806_v53  ;;  %9565 = vmatmul.msk.f32.gmra.mxu1 %vm54_vm1, %v1806_v53  ;;  %v1809_v53 = vld [vmem:[#allocation2 + $0x240] sm:$0xff]  ;;  %276 = vst.msk [vmem:[#allocation2 + $0x279] sm:$0xff] %vm54_vm1, %v211_v58 }
 0x1b2   :  { %9500 = vmatmul.msk.f32.gmra.mxu0 %vm54_vm1, %v399_v57  ;;  %v1812_v58 = vld [vmem:[#allocation2 + $0x260] sm:$0xff] }
 0x1b3   :  { %9631 = vmatmul.msk.f32.gmra.mxu2 %vm54_vm1, %v1274_v60  ;;  %v402_v60 = vld [vmem:[#allocation2 + $0x241] sm:$0xff] }
 0x1b4   :  { %v2114_v4 = vpop.f32.mrf.mxu3 }
 0x1b5   :  { %v11073_v5 = vadd.f32 %v2114_v4, %v1726_v0 }
 0x1b6   :  { %v1586_v6 = vpop.f32.mrf.mxu2  ;;  %v1119_v16 = vpop.f32.mrf.mxu1 }
 0x1b7   :  { %v715_v9 = vpop.f32.mrf.mxu0  ;;  %v1728_v45 = vadd.f32 %v1586_v6, %v1117_v40  ;;  %v404_v40 = vld [vmem:[#allocation2 + $0x259] sm:$0xff] }
 0x1b8   :  { %v1120_v62 = vadd.f32 %v1119_v16, %v715_v9  ;;  %v212_v9 = vld [vmem:[%s13845_s18 + $0x180] sm:$0xff] }
 0x1b9   :  { %9696 = vmatmul.msk.f32.gmra.mxu3 %vm54_vm1, %v1807_v7  ;;  %9566 = vmatmul.msk.f32.gmra.mxu1 %vm54_vm1, %v1807_v7  ;;  %277 = vst.msk [vmem:[#allocation2 + $0x289] sm:$0xff] %vm54_vm1, %v212_v9 }
 0x1ba   :  { %9501 = vmatmul.msk.f32.gmra.mxu0 %vm54_vm1, %v400_v10  ;;  %v1810_v10 = vld [vmem:[#allocation2 + $0x248] sm:$0xff] }
 0x1bb   :  { %9632 = vmatmul.msk.f32.gmra.mxu2 %vm54_vm1, %v1275_v15 }
 0x1bc   :  { %v2117_v27 = vpop.f32.mrf.mxu3 }
 0x1bd   :  { %v11083_v28 = vadd.f32 %v2117_v27, %v1727_v24  ;;  %v1278_v24 = vld [vmem:[#allocation2 + $0x24a] sm:$0xff] }
 0x1be   :  { %v1589_v30 = vpop.f32.mrf.mxu2  ;;  %v1122_v43 = vpop.f32.mrf.mxu1 }
 0x1bf   :  { %v718_v36 = vpop.f32.mrf.mxu0  ;;  %v1729_v0 = vadd.f32 %v1589_v30, %v1120_v62 }
 0x1c0   :  { %v1123_v16 = vadd.f32 %v1122_v43, %v718_v36  ;;  %v1279_v36 = vld [vmem:[#allocation2 + $0x25a] sm:$0xff]  ;;  %v213_v43 = vld [vmem:[%s13845_s18 + $0x188] sm:$0xff] }
 0x1c1   :  { %9697 = vmatmul.msk.f32.gmra.mxu3 %vm54_vm1, %v1808_v32  ;;  %9567 = vmatmul.msk.f32.gmra.mxu1 %vm54_vm1, %v1808_v32  ;;  %278 = vst.msk [vmem:[#allocation2 + $0x291] sm:$0xff] %vm54_vm1, %v213_v43 }
 0x1c2   :  { %9502 = vmatmul.msk.f32.gmra.mxu0 %vm54_vm1, %v401_v38 }
 0x1c3   :  { %9633 = vmatmul.msk.f32.gmra.mxu2 %vm54_vm1, %v1276_v44  ;;  %v1811_v44 = vld [vmem:[#allocation2 + $0x258] sm:$0xff] }
 0x1c4   :  { %v2120_v46 = vpop.f32.mrf.mxu3 }
 0x1c5   :  { %v11093_v47 = vadd.f32 %v2120_v46, %v1728_v45 }
 0x1c6   :  { %v1592_v51 = vpop.f32.mrf.mxu2  ;;  %v1125_v59 = vpop.f32.mrf.mxu1 }
 0x1c7   :  { %v721_v57 = vpop.f32.mrf.mxu0  ;;  %v1730_v27 = vadd.f32 %v1592_v51, %v1123_v16  ;;  %v1813_v16 = vld [vmem:[#allocation2 + $0x270] sm:$0xff] }
 0x1c8   :  { %v1126_v46 = vadd.f32 %v1125_v59, %v721_v57  ;;  %v214_v57 = vld [vmem:[%s13845_s18 + $0x190] sm:$0xff] }
 0x1c9   :  { %9698 = vmatmul.msk.f32.gmra.mxu3 %vm54_vm1, %v1809_v53  ;;  %9568 = vmatmul.msk.f32.gmra.mxu1 %vm54_vm1, %v1809_v53  ;;  %279 = vst.msk [vmem:[#allocation2 + $0x2a1] sm:$0xff] %vm54_vm1, %v214_v57 }
 0x1ca   :  { %9503 = vmatmul.msk.f32.gmra.mxu0 %vm54_vm1, %v402_v60 }
 0x1cb   :  { %9634 = vmatmul.msk.f32.gmra.mxu2 %vm54_vm1, %v1277_v55 }
 0x1cc   :  { %v2123_v4 = vpop.f32.mrf.mxu3 }
 0x1cd   :  { %v11103_v6 = vadd.f32 %v2123_v4, %v1729_v0  ;;  %v405_v0 = vld [vmem:[#allocation2 + $0x261] sm:$0xff] }
 0x1ce   :  { %v1595_v7 = vpop.f32.mrf.mxu2  ;;  %v1128_v23 = vpop.f32.mrf.mxu1 }
 0x1cf   :  { %v724_v15 = vpop.f32.mrf.mxu0  ;;  %v1731_v51 = vadd.f32 %v1595_v7, %v1126_v46 }
 0x1d0   :  { %v1129_v59 = vadd.f32 %v1128_v23, %v724_v15  ;;  %v1281_v15 = vld [vmem:[#allocation2 + $0x272] sm:$0xff] }
 0x1d1   :  { %9699 = vmatmul.msk.f32.gmra.mxu3 %vm54_vm1, %v1810_v10  ;;  %9569 = vmatmul.msk.f32.gmra.mxu1 %vm54_vm1, %v1810_v10  ;;  %v1280_v10 = vld [vmem:[#allocation2 + $0x262] sm:$0xff]  ;;  %v215_v23 = vld [vmem:[%s13845_s18 + $0x198] sm:$0xff] }
 0x1d2   :  { %9504 = vmatmul.msk.f32.gmra.mxu0 %vm54_vm1, %v403_v21  ;;  %280 = vst.msk [vmem:[#allocation2 + $0x2a9] sm:$0xff] %vm54_vm1, %v215_v23 }
 0x1d3   :  { %9635 = vmatmul.msk.f32.gmra.mxu2 %vm54_vm1, %v1278_v24 }
 0x1d4   :  { %v2126_v30 = vpop.f32.mrf.mxu3 }
 0x1d5   :  { %v11113_v32 = vadd.f32 %v2126_v30, %v1730_v27  ;;  %v406_v30 = vld [vmem:[#allocation2 + $0x271] sm:$0xff] }
 0x1d6   :  { %v1598_v38 = vpop.f32.mrf.mxu2  ;;  %v1131_v45 = vpop.f32.mrf.mxu1 }
 0x1d7   :  { %v727_v37 = vpop.f32.mrf.mxu0  ;;  %v1732_v7 = vadd.f32 %v1598_v38, %v1129_v59 }
 0x1d9   :  { %9700 = vmatmul.msk.f32.gmra.mxu3 %vm54_vm1, %v1811_v44  ;;  %9570 = vmatmul.msk.f32.gmra.mxu1 %vm54_vm1, %v1811_v44 }
 0x1da   :  { %9505 = vmatmul.msk.f32.gmra.mxu0 %vm54_vm1, %v404_v40  ;;  %v1132_v40 = vadd.f32 %v1131_v45, %v727_v37  ;;  %v216_v37 = vld [vmem:[%s13845_s18 + $0x1a0] sm:$0xff] }
 0x1db   :  { %9636 = vmatmul.msk.f32.gmra.mxu2 %vm54_vm1, %v1279_v36  ;;  %281 = vst.msk [vmem:[#allocation2 + $0x2b9] sm:$0xff] %vm54_vm1, %v216_v37 }
 0x1dc   :  { %v2129_v53 = vpop.f32.mrf.mxu3 }
 0x1dd   :  { %v11123_v60 = vadd.f32 %v2129_v53, %v1731_v51  ;;  %v1814_v51 = vld [vmem:[#allocation2 + $0x278] sm:$0xff] }
 0x1de   :  { %v1601_v55 = vpop.f32.mrf.mxu2  ;;  %v1134_v4 = vpop.f32.mrf.mxu1 }
 0x1df   :  { %v730_v62 = vpop.f32.mrf.mxu0  ;;  %v1733_v38 = vadd.f32 %v1601_v55, %v1132_v40 }
 0x1e0   :  { %v1135_v45 = vadd.f32 %v1134_v4, %v730_v62  ;;  %v1283_v62 = vld [vmem:[#allocation2 + $0x28a] sm:$0xff] }
 0x1e1   :  { %9701 = vmatmul.msk.f32.gmra.mxu3 %vm54_vm1, %v1812_v58  ;;  %9571 = vmatmul.msk.f32.gmra.mxu1 %vm54_vm1, %v1812_v58  ;;  %v407_v58 = vld [vmem:[#allocation2 + $0x279] sm:$0xff]  ;;  %v217_v4 = vld [vmem:[%s13845_s18 + $0x1a8] sm:$0xff] }
 0x1e2   :  { %9506 = vmatmul.msk.f32.gmra.mxu0 %vm54_vm1, %v405_v0  ;;  %282 = vst.msk [vmem:[#allocation2 + $0x2c1] sm:$0xff] %vm54_vm1, %v217_v4  ;;  %v410_v4 = vld [vmem:[#allocation2 + $0x2a1] sm:$0xff] }
 0x1e3   :  { %9637 = vmatmul.msk.f32.gmra.mxu2 %vm54_vm1, %v1280_v10  ;;  %v1282_v10 = vld [vmem:[#allocation2 + $0x27a] sm:$0xff] }
 0x1e4   :  { %v2132_v21 = vpop.f32.mrf.mxu3 }
 0x1e5   :  { %v11133_v24 = vadd.f32 %v2132_v21, %v1732_v7  ;;  %v1815_v21 = vld [vmem:[#allocation2 + $0x288] sm:$0xff] }
 0x1e6   :  { %v1604_v9 = vpop.f32.mrf.mxu2  ;;  %v1137_v44 = vpop.f32.mrf.mxu1 }
 0x1e7   :  { %v733_v27 = vpop.f32.mrf.mxu0  ;;  %v1734_v55 = vadd.f32 %v1604_v9, %v1135_v45  ;;  %v1284_v45 = vld [vmem:[#allocation2 + $0x292] sm:$0xff] }
 0x1e8   :  { %v1138_v23 = vadd.f32 %v1137_v44, %v733_v27  ;;  %v218_v27 = vld [vmem:[%s13845_s18 + $0x1b0] sm:$0xff] }
 0x1e9   :  { %9702 = vmatmul.msk.f32.gmra.mxu3 %vm54_vm1, %v1813_v16  ;;  %9572 = vmatmul.msk.f32.gmra.mxu1 %vm54_vm1, %v1813_v16  ;;  %283 = vst.msk [vmem:[#allocation2 + $0x2d1] sm:$0xff] %vm54_vm1, %v218_v27 }
 0x1ea   :  { %9507 = vmatmul.msk.f32.gmra.mxu0 %vm54_vm1, %v406_v30  ;;  %v408_v30 = vld [vmem:[#allocation2 + $0x289] sm:$0xff] }
 0x1eb   :  { %9638 = vmatmul.msk.f32.gmra.mxu2 %vm54_vm1, %v1281_v15 }
 0x1ec   :  { %v2135_v36 = vpop.f32.mrf.mxu3 }
 0x1ed   :  { %v11143_v43 = vadd.f32 %v2135_v36, %v1733_v38 }
 0x1ee   :  { %v1607_v46 = vpop.f32.mrf.mxu2  ;;  %v1140_v0 = vpop.f32.mrf.mxu1 }
 0x1ef   :  { %v736_v53 = vpop.f32.mrf.mxu0  ;;  %v1735_v9 = vadd.f32 %v1607_v46, %v1138_v23 }
 0x1f0   :  { %v1141_v44 = vadd.f32 %v1140_v0, %v736_v53  ;;  %v1285_v53 = vld [vmem:[#allocation2 + $0x2a2] sm:$0xff]  ;;  %v219_v0 = vld [vmem:[%s13845_s18 + $0x1b8] sm:$0xff] }
 0x1f1   :  { %9703 = vmatmul.msk.f32.gmra.mxu3 %vm54_vm1, %v1814_v51  ;;  %9573 = vmatmul.msk.f32.gmra.mxu1 %vm54_vm1, %v1814_v51  ;;  %v1816_v51 = vld [vmem:[#allocation2 + $0x290] sm:$0xff]  ;;  %284 = vst.msk [vmem:[#allocation2 + $0x2d9] sm:$0xff] %vm54_vm1, %v219_v0  ;;  %v1819_v0 = vld [vmem:[#allocation2 + $0x2b8] sm:$0xff] }
 0x1f2   :  { %9508 = vmatmul.msk.f32.gmra.mxu0 %vm54_vm1, %v407_v58 }
 0x1f3   :  { %9639 = vmatmul.msk.f32.gmra.mxu2 %vm54_vm1, %v1282_v10  ;;  %v409_v10 = vld [vmem:[#allocation2 + $0x291] sm:$0xff] }
 0x1f4   :  { %v2138_v57 = vpop.f32.mrf.mxu3 }
 0x1f5   :  { %v11153_v59 = vadd.f32 %v2138_v57, %v1734_v55 }
 0x1f6   :  { %v1610_v7 = vpop.f32.mrf.mxu2  ;;  %v1143_v15 = vpop.f32.mrf.mxu1 }
 0x1f7   :  { %v739_v16 = vpop.f32.mrf.mxu0  ;;  %v1736_v46 = vadd.f32 %v1610_v7, %v1141_v44  ;;  %v411_v44 = vld [vmem:[#allocation2 + $0x2a9] sm:$0xff] }
 0x1f9   :  { %9704 = vmatmul.msk.f32.gmra.mxu3 %vm54_vm1, %v1815_v21  ;;  %9574 = vmatmul.msk.f32.gmra.mxu1 %vm54_vm1, %v1815_v21 }
 0x1fa   :  { %9509 = vmatmul.msk.f32.gmra.mxu0 %vm54_vm1, %v408_v30  ;;  %v1817_v30 = vld [vmem:[#allocation2 + $0x2a0] sm:$0xff] }
 0x1fb   :  { %9640 = vmatmul.msk.f32.gmra.mxu2 %vm54_vm1, %v1283_v62 }
 0x1fc   :  { %v2141_v40 = vpop.f32.mrf.mxu3 }
 0x1fd   :  { %v11163_v38 = vadd.f32 %v2141_v40, %v1735_v9  ;;  %v1144_v9 = vadd.f32 %v1143_v15, %v739_v16  ;;  %v220_v16 = vld [vmem:[%s13845_s18 + $0x1c0] sm:$0xff] }
 0x1fe   :  { %v1613_v36 = vpop.f32.mrf.mxu2  ;;  %v1146_v37 = vpop.f32.mrf.mxu1  ;;  %285 = vst.msk [vmem:[#allocation2 + $0x2e9] sm:$0xff] %vm54_vm1, %v220_v16 }
 0x1ff   :  { %v742_v58 = vpop.f32.mrf.mxu0  ;;  %v1737_v7 = vadd.f32 %v1613_v36, %v1144_v9 }
 0x200   :  { %v1147_v15 = vadd.f32 %v1146_v37, %v742_v58  ;;  %v1287_v58 = vld [vmem:[#allocation2 + $0x2ba] sm:$0xff]  ;;  %v221_v37 = vld [vmem:[%s13845_s18 + $0x1c8] sm:$0xff] }
 0x201   :  { %9705 = vmatmul.msk.f32.gmra.mxu3 %vm54_vm1, %v1816_v51  ;;  %9575 = vmatmul.msk.f32.gmra.mxu1 %vm54_vm1, %v1816_v51  ;;  %286 = vst.msk [vmem:[#allocation2 + $0x2f1] sm:$0xff] %vm54_vm1, %v221_v37  ;;  %v1821_v37 = vld [vmem:[#allocation2 + $0x2d0] sm:$0xff] }
 0x202   :  { %9510 = vmatmul.msk.f32.gmra.mxu0 %vm54_vm1, %v409_v10 }
 0x203   :  { %9641 = vmatmul.msk.f32.gmra.mxu2 %vm54_vm1, %v1284_v45  ;;  %v1818_v45 = vld [vmem:[#allocation2 + $0x2a8] sm:$0xff] }
 0x204   :  { %v2144_v55 = vpop.f32.mrf.mxu3 }
 0x205   :  { %v11173_v57 = vadd.f32 %v2144_v55, %v1736_v46  ;;  %v1286_v55 = vld [vmem:[#allocation2 + $0x2aa] sm:$0xff] }
 0x206   :  { %v1616_v21 = vpop.f32.mrf.mxu2  ;;  %v1149_v23 = vpop.f32.mrf.mxu1 }
 0x207   :  { %v745_v62 = vpop.f32.mrf.mxu0  ;;  %v1738_v36 = vadd.f32 %v1616_v21, %v1147_v15  ;;  %v1820_v15 = vld [vmem:[#allocation2 + $0x2c0] sm:$0xff] }
 0x209   :  { %9706 = vmatmul.msk.f32.gmra.mxu3 %vm54_vm1, %v1817_v30  ;;  %9576 = vmatmul.msk.f32.gmra.mxu1 %vm54_vm1, %v1817_v30 }
 0x20a   :  { %9511 = vmatmul.msk.f32.gmra.mxu0 %vm54_vm1, %v410_v4 }
 0x20b   :  { %9642 = vmatmul.msk.f32.gmra.mxu2 %vm54_vm1, %v1285_v53 }
 0x20c   :  { %v2147_v40 = vpop.f32.mrf.mxu3 }
 0x20d   :  { %v11183_v51 = vadd.f32 %v2147_v40, %v1737_v7  ;;  %v412_v7 = vld [vmem:[#allocation2 + $0x2b9] sm:$0xff] }
 0x20e   :  { %v1619_v10 = vpop.f32.mrf.mxu2  ;;  %v1152_v46 = vpop.f32.mrf.mxu1 }
 0x20f   :  { %13846 = vst [vmem:[#allocation12_spill] sm:$0xff] %v11183_v51  ;;  %v748_v27 = vpop.f32.mrf.mxu0  ;;  %v3371_v51 = vld [vmem:[#allocation2 + $0x38] sm:$0xff] }
 0x211   :  { %9707 = vmatmul.msk.f32.gmra.mxu3 %vm54_vm1, %v1818_v45  ;;  %9577 = vmatmul.msk.f32.gmra.mxu1 %vm54_vm1, %v1818_v45 }
 0x212   :  { %9512 = vmatmul.msk.f32.gmra.mxu0 %vm54_vm1, %v411_v44  ;;  %v1150_v44 = vadd.f32 %v1149_v23, %v745_v62  ;;  %v222_v62 = vld [vmem:[%s13845_s18 + $0x1d0] sm:$0xff]  ;;  %v1153_v23 = vadd.f32 %v1152_v46, %v748_v27  ;;  %v223_v46 = vld [vmem:[%s13845_s18 + $0x1d8] sm:$0xff] }
 0x213   :  { %9643 = vmatmul.msk.f32.gmra.mxu2 %vm54_vm1, %v1286_v55  ;;  %287 = vst.msk [vmem:[#allocation2 + $0x301] sm:$0xff] %vm54_vm1, %v222_v62  ;;  %v1289_v27 = vld [vmem:[#allocation2 + $0x2d2] sm:$0xff] }
 0x214   :  { %v2150_v30 = vpop.f32.mrf.mxu3  ;;  %v1739_v21 = vadd.f32 %v1619_v10, %v1150_v44  ;;  %288 = vst.msk [vmem:[#allocation2 + $0x309] sm:$0xff] %vm54_vm1, %v223_v46  ;;  %v1823_v46 = vld [vmem:[#allocation2 + $0x2e8] sm:$0xff] }
 0x215   :  { %v11193_v4 = vadd.f32 %v2150_v30, %v1738_v36  ;;  %v413_v30 = vld [vmem:[#allocation2 + $0x2c1] sm:$0xff] }
 0x216   :  { %v1622_v53 = vpop.f32.mrf.mxu2  ;;  %v1155_v40 = vpop.f32.mrf.mxu1 }
 0x217   :  { %13847 = vst [vmem:[#allocation13_spill] sm:$0xff] %v11193_v4  ;;  %v751_v9 = vpop.f32.mrf.mxu0  ;;  %v1288_v4 = vld [vmem:[#allocation2 + $0x2c2] sm:$0xff]  ;;  %v1740_v10 = vadd.f32 %v1622_v53, %v1153_v23  ;;  %v1822_v23 = vld [vmem:[#allocation2 + $0x2d8] sm:$0xff] }
 0x219   :  { %9708 = vmatmul.msk.f32.gmra.mxu3 %vm54_vm1, %v1819_v0  ;;  %9578 = vmatmul.msk.f32.gmra.mxu1 %vm54_vm1, %v1819_v0 }
 0x21a   :  { %9513 = vmatmul.msk.f32.gmra.mxu0 %vm54_vm1, %v412_v7 }
 0x21b   :  { %9644 = vmatmul.msk.f32.gmra.mxu2 %vm54_vm1, %v1287_v58 }
 0x21c   :  { %v2153_v45 = vpop.f32.mrf.mxu3 }
 0x21d   :  { %v11203_v55 = vadd.f32 %v2153_v45, %v1739_v21  ;;  %v414_v21 = vld [vmem:[#allocation2 + $0x2d1] sm:$0xff] }
 0x21e   :  { %v1625_v16 = vpop.f32.mrf.mxu2  ;;  %v1158_v3 = vpop.f32.mrf.mxu1 }
 0x21f   :  { %13848 = vst [vmem:[#allocation14_spill] sm:$0xff] %v11203_v55  ;;  %v754_v36 = vpop.f32.mrf.mxu0  ;;  %v1290_v55 = vld [vmem:[#allocation2 + $0x2da] sm:$0xff] }
 0x221   :  { %9709 = vmatmul.msk.f32.gmra.mxu3 %vm54_vm1, %v1820_v15  ;;  %9579 = vmatmul.msk.f32.gmra.mxu1 %vm54_vm1, %v1820_v15 }
 0x222   :  { %9514 = vmatmul.msk.f32.gmra.mxu0 %vm54_vm1, %v413_v30  ;;  %v1156_v30 = vadd.f32 %v1155_v40, %v751_v9  ;;  %v224_v9 = vld [vmem:[%s13845_s18 + $0x1e0] sm:$0xff]  ;;  %v1159_v40 = vadd.f32 %v1158_v3, %v754_v36  ;;  %v1291_v3 = vld [vmem:[#allocation2 + $0x2ea] sm:$0xff] }
 0x223   :  { %9645 = vmatmul.msk.f32.gmra.mxu2 %vm54_vm1, %v1288_v4  ;;  %289 = vst.msk [vmem:[#allocation2 + $0x319] sm:$0xff] %vm54_vm1, %v224_v9  ;;  %v9852_v9 = vld [vmem:[%s13820_s1 + $0x18] sm:$0xf] }
 0x224   :  { %v2156_v0 = vpop.f32.mrf.mxu3  ;;  %v1741_v4 = vadd.f32 %v1625_v16, %v1156_v30  ;;  %9853 = vmatpush.msk.msrb.mxu2 %vm616_vm0, %v9852_v9  ;;  %v1825_v9 = vld [vmem:[#allocation2 + $0x300] sm:$0xff] }
 0x225   :  { %v11213_v7 = vadd.f32 %v2156_v0, %v1740_v10  ;;  %v415_v0 = vld [vmem:[#allocation2 + $0x2d9] sm:$0xff] }
 0x226   :  { %v1628_v58 = vpop.f32.mrf.mxu2  ;;  %v1161_v45 = vpop.f32.mrf.mxu1 }
 0x227   :  { %13849 = vst [vmem:[#allocation15_spill] sm:$0xff] %v11213_v7  ;;  %v757_v44 = vpop.f32.mrf.mxu0  ;;  %v1742_v16 = vadd.f32 %v1628_v58, %v1159_v40  ;;  %v1824_v40 = vld [vmem:[#allocation2 + $0x2f0] sm:$0xff] }
 0x228   :  { %v1162_v36 = vadd.f32 %v1161_v45, %v757_v44  ;;  %v417_v44 = vld [vmem:[#allocation2 + $0x2f1] sm:$0xff]  ;;  %v9918_v45 = vld [vmem:[%s13820_s1 + $0x1c] sm:$0xf] }
 0x229   :  { %9710 = vmatmul.msk.f32.gmra.mxu3 %vm54_vm1, %v1821_v37  ;;  %9580 = vmatmul.msk.f32.gmra.mxu1 %vm54_vm1, %v1821_v37 }
 0x22a   :  { %9515 = vmatmul.msk.f32.gmra.mxu0 %vm54_vm1, %v414_v21  ;;  %9919 = vmatpush.msk.msra.mxu3 %vm616_vm0, %v9918_v45  ;;  %v418_v45 = vld [vmem:[#allocation2 + $0x301] sm:$0xff] }
 0x22b   :  { %9646 = vmatmul.msk.f32.gmra.mxu2 %vm54_vm1, %v1289_v27 }
 0x22c   :  { %v2159_v53 = vpop.f32.mrf.mxu3 }
 0x22d   :  { %v11223_v15 = vadd.f32 %v2159_v53, %v1741_v4  ;;  %v416_v4 = vld [vmem:[#allocation2 + $0x2e9] sm:$0xff] }
 0x22e   :  { %v1631_v62 = vpop.f32.mrf.mxu2  ;;  %v1164_v7 = vpop.f32.mrf.mxu1 }
 0x22f   :  { %13850 = vst [vmem:[#allocation16_spill] sm:$0xff] %v11223_v15  ;;  %v760_v10 = vpop.f32.mrf.mxu0 }
 0x231   :  { %9711 = vmatmul.msk.f32.gmra.mxu3 %vm54_vm1, %v1822_v23  ;;  %9581 = vmatmul.msk.f32.gmra.mxu1 %vm54_vm1, %v1822_v23 }
 0x232   :  { %9516 = vmatmul.msk.f32.gmra.mxu0 %vm54_vm1, %v415_v0 }
 0x233   :  { %9647 = vmatmul.msk.f32.gmra.mxu2 %vm54_vm1, %v1290_v55  ;;  %v1743_v55 = vadd.f32 %v1631_v62, %v1162_v36  ;;  %v226_v62 = vld [vmem:[%s13845_s18 + $0x1f0] sm:$0xff] }
 0x234   :  { %v2162_v37 = vpop.f32.mrf.mxu3  ;;  %291 = vst.msk [vmem:[#allocation2 + $0x331] sm:$0xff] %vm54_vm1, %v226_v62 }
 0x235   :  { %v11233_v21 = vadd.f32 %v2162_v37, %v1742_v16 }
 0x236   :  { %v1634_v27 = vpop.f32.mrf.mxu2  ;;  %v1167_v53 = vpop.f32.mrf.mxu1 }
 0x237   :  { %13851 = vst [vmem:[#allocation17_spill] sm:$0xff] %v11233_v21  ;;  %v763_v30 = vpop.f32.mrf.mxu0 }
 0x239   :  { %9712 = vmatmul.msk.f32.gmra.mxu3 %vm54_vm1, %v1823_v46  ;;  %9582 = vmatmul.msk.f32.gmra.mxu1 %vm54_vm1, %v1823_v46  ;;  %v1292_v46 = vld [vmem:[#allocation2 + $0x2f2] sm:$0xff] }
 0x23a   :  { %9517 = vmatmul.msk.f32.gmra.mxu0 %vm54_vm1, %v416_v4  ;;  %v1165_v4 = vadd.f32 %v1164_v7, %v760_v10  ;;  %v9984_v10 = vld [vmem:[%s13820_s1 + $0x20] sm:$0xf] }
 0x23b   :  { %9648 = vmatmul.msk.f32.gmra.mxu2 %vm54_vm1, %v1291_v3  ;;  %v9786_v3 = vld [vmem:[%s13820_s1 + $0x14] sm:$0xf]  ;;  %9985 = vmatpush.msk.msra.mxu0 %vm616_vm0, %v9984_v10  ;;  %v1826_v10 = vld [vmem:[#allocation2 + $0x308] sm:$0xff] }
 0x23c   :  { %v2165_v58 = vpop.f32.mrf.mxu3  ;;  %v1744_v36 = vadd.f32 %v1634_v27, %v1165_v4  ;;  %9787 = vmatpush.msk.msrb.mxu1 %vm616_vm0, %v9786_v3  ;;  %v227_v27 = vld [vmem:[%s13845_s18 + $0x1f8] sm:$0xff] }
 0x23d   :  { %v11239_v23 = vadd.f32 %v2165_v58, %v1743_v55  ;;  %292 = vst.msk [vmem:[#allocation2 + $0x339] sm:$0xff] %vm54_vm1, %v227_v27  ;;  %v1827_v27 = vld [vmem:[#allocation2 + $0x318] sm:$0xff] }
 0x23e   :  { %v1637_v0 = vpop.f32.mrf.mxu2  ;;  %v1170_v37 = vpop.f32.mrf.mxu1 }
 0x23f   :  { %13852 = vst [vmem:[#allocation18_spill] sm:$0xff] %v11239_v23  ;;  %v766_v16 = vpop.f32.mrf.mxu0  ;;  %v419_v23 = vld [vmem:[#allocation2 + $0x309] sm:$0xff] }
 0x241   :  { %9713 = vmatmul.msk.f32.gmra.mxu3 %vm54_vm1, %v1824_v40  ;;  %9583 = vmatmul.msk.f32.gmra.mxu1 %vm54_vm1, %v1824_v40  ;;  %v1293_v40 = vld [vmem:[#allocation2 + $0x302] sm:$0xff] }
 0x242   :  { %9518 = vmatmul.msk.f32.gmra.mxu0 %vm54_vm1, %v417_v44 }
 0x243   :  { %9649 = vmatmul.msk.f32.gmra.mxu2 %vm54_vm1, %v1292_v46  ;;  %v1168_v46 = vadd.f32 %v1167_v53, %v763_v30  ;;  %v1294_v30 = vld [vmem:[#allocation2 + $0x30a] sm:$0xff]  ;;  %v1171_v53 = vadd.f32 %v1170_v37, %v766_v16 }
 0x244   :  { %v2168_v55 = vpop.f32.mrf.mxu3 }
 0x245   :  { %v11261_v58 = vadd.f32 %v2168_v55, %v1744_v36  ;;  %v1745_v4 = vadd.f32 %v1637_v0, %v1168_v46 }
 0x246   :  { %v1640_v7 = vpop.f32.mrf.mxu2  ;;  %v1173_v62 = vpop.f32.mrf.mxu1 }
 0x247   :  { %13853 = vst [vmem:[#allocation19_spill] sm:$0xff] %v11261_v58  ;;  %v769_v44 = vpop.f32.mrf.mxu0 }
 0x248   :  { %v1174_v15 = vadd.f32 %v1173_v62, %v769_v44 }
 0x249   :  { %9714 = vmatmul.msk.f32.gmra.mxu3 %vm54_vm1, %v1825_v9  ;;  %9584 = vmatmul.msk.f32.gmra.mxu1 %vm54_vm1, %v1825_v9  ;;  %v1746_v9 = vadd.f32 %v1640_v7, %v1171_v53  ;;  %v2301_v53 = vld [vmem:[#allocation2 + $0x19] sm:$0xff] }
 0x24a   :  { %9519 = vmatmul.msk.f32.gmra.mxu0 %vm54_vm1, %v418_v45 }
 0x24b   :  { %9650 = vmatmul.msk.f32.gmra.mxu2 %vm54_vm1, %v1293_v40 }
 0x24c   :  { %v2171_v3 = vpop.f32.mrf.mxu3 }
 0x24d   :  { %v11275_v36 = vadd.f32 %v2171_v3, %v1745_v4  ;;  %v420_v4 = vld [vmem:[#allocation2 + $0x319] sm:$0xff] }
 0x24e   :  { %v1643_v55 = vpop.f32.mrf.mxu2  ;;  %v1176_v21 = vpop.f32.mrf.mxu1 }
 0x24f   :  { %13854 = vst [vmem:[#allocation20_spill] sm:$0xff] %v11275_v36  ;;  %v772_v58 = vpop.f32.mrf.mxu0  ;;  %v1295_v36 = vld [vmem:[#allocation2 + $0x31a] sm:$0xff] }
 0x251   :  { %9715 = vmatmul.msk.f32.gmra.mxu3 %vm54_vm1, %v1826_v10  ;;  %9585 = vmatmul.msk.f32.gmra.mxu1 %vm54_vm1, %v1826_v10  ;;  %v1828_v10 = vld [vmem:[#allocation2 + $0x320] sm:$0xff] }
 0x252   :  { %9520 = vmatmul.msk.f32.gmra.mxu0 %vm54_vm1, %v419_v23  ;;  %v1747_v23 = vadd.f32 %v1643_v55, %v1174_v15  ;;  %v1829_v55 = vld [vmem:[#allocation2 + $0x330] sm:$0xff] }
 0x253   :  { %9651 = vmatmul.msk.f32.gmra.mxu2 %vm54_vm1, %v1294_v30 }
 0x254   :  { %v2174_v0 = vpop.f32.mrf.mxu3 }
 0x255   :  { %v11281_v45 = vadd.f32 %v2174_v0, %v1746_v9  ;;  %v1296_v0 = vld [vmem:[#allocation2 + $0x322] sm:$0xff] }
 0x256   :  { %v1646_v40 = vpop.f32.mrf.mxu2  ;;  %v1179_v3 = vpop.f32.mrf.mxu1 }
 0x257   :  { %13855 = vst [vmem:[#allocation21_spill] sm:$0xff] %v11281_v45  ;;  %v775_v46 = vpop.f32.mrf.mxu0  ;;  %v1177_v45 = vadd.f32 %v1176_v21, %v772_v58 }
 0x258   :  { %v1180_v21 = vadd.f32 %v1179_v3, %v775_v46 }
 0x259   :  { %9716 = vmatmul.msk.f32.gmra.mxu3 %vm54_vm1, %v1827_v27  ;;  %9586 = vmatmul.msk.f32.gmra.mxu1 %vm54_vm1, %v1827_v27  ;;  %v1748_v44 = vadd.f32 %v1646_v40, %v1177_v45 }
 0x25a   :  { %9521 = vmatmul.msk.f32.gmra.mxu0 %vm54_vm1, %v420_v4  ;;  %v2302_v4 = vld [vmem:[#allocation2 + $0x21] sm:$0xff] }
 0x25b   :  { %9652 = vmatmul.msk.f32.gmra.mxu2 %vm54_vm1, %v1295_v36 }
 0x25c   :  { %v2177_v16 = vpop.f32.mrf.mxu3 }
 0x25d   :  { %v11287_v37 = vadd.f32 %v2177_v16, %v1747_v23  ;;  %v2835_v16 = vld [vmem:[#allocation2 + $0x1a] sm:$0xff] }
 0x25e   :  { %v1649_v7 = vpop.f32.mrf.mxu2  ;;  %v1182_v9 = vpop.f32.mrf.mxu1 }
 0x25f   :  { %13856 = vst [vmem:[#allocation22_spill] sm:$0xff] %v11287_v37  ;;  %v778_v30 = vpop.f32.mrf.mxu0  ;;  %v3370_v37 = vld [vmem:[#allocation2 + $0x30] sm:$0xff]  ;;  %v1749_v58 = vadd.f32 %v1649_v7, %v1180_v21 }
 0x260   :  { %v1183_v46 = vadd.f32 %v1182_v9, %v778_v30 }
 0x261   :  { %9717 = vmatmul.msk.f32.gmra.mxu3 %vm54_vm1, %v1828_v10  ;;  %9587 = vmatmul.msk.f32.gmra.mxu1 %vm54_vm1, %v1828_v10 }
 0x262   :  { %9722 = vmatmul.msk.f32.vlgmr.msrb.gmra.mxu0 %vm54_vm1, %v2301_v53  ;;  %v1830_v53 = vld [vmem:[#allocation2 + $0x338] sm:$0xff] }
 0x263   :  { %9653 = vmatmul.msk.f32.gmra.mxu2 %vm54_vm1, %v1296_v0 }
 0x264   :  { %v2180_v15 = vpop.f32.mrf.mxu3 }
 0x265   :  { %v11293_v62 = vadd.f32 %v2180_v15, %v1748_v44  ;;  %v2303_v44 = vld [vmem:[#allocation2 + $0x31] sm:$0xff] }
 0x266   :  { %v1652_v36 = vpop.f32.mrf.mxu2  ;;  %v1185_v23 = vpop.f32.mrf.mxu1 }
 0x267   :  { %13857 = vst [vmem:[#allocation23_spill] sm:$0xff] %v11293_v62  ;;  %v781_v27 = vpop.f32.mrf.mxu0  ;;  %v2836_v62 = vld [vmem:[#allocation2 + $0x22] sm:$0xff]  ;;  %v1750_v3 = vadd.f32 %v1652_v36, %v1183_v46 }
 0x269   :  { %9718 = vmatmul.msk.f32.gmra.mxu3 %vm54_vm1, %v1829_v55  ;;  %9788 = vmatmul.msk.f32.vlgmr.msrb.gmra.mxu1 %vm54_vm1, %v2835_v16  ;;  %v2304_v16 = vld [vmem:[#allocation2 + $0x39] sm:$0xff] }
 0x26a   :  { %9723 = vmatmul.msk.f32.gmra.mxu0 %vm54_vm1, %v2302_v4 }
 0x26b   :  { %9854 = vmatmul.msk.f32.vlgmr.msrb.gmra.mxu2 %vm54_vm1, %v3370_v37 }
 0x26c   :  { %v2183_v45 = vpop.f32.mrf.mxu3 }
 0x26d   :  { %v11299_v40 = vadd.f32 %v2183_v45, %v1749_v58  ;;  %v2837_v58 = vld [vmem:[#allocation2 + $0x32] sm:$0xff]  ;;  %v3372_v45 = vld [vmem:[#allocation2 + $0x48] sm:$0xff] }
 0x26e   :  { %v1655_v10 = vpop.f32.mrf.mxu2  ;;  %v1188_v15 = vpop.f32.mrf.mxu1 }
 0x26f   :  { %13858 = vst [vmem:[#allocation24_spill] sm:$0xff] %v11299_v40  ;;  %v784_v0 = vpop.f32.mrf.mxu0  ;;  %v1186_v40 = vadd.f32 %v1185_v23, %v781_v27 }
 0x271   :  { %9719 = vmatmul.msk.f32.gmra.mxu3 %vm54_vm1, %v1830_v53  ;;  %9789 = vmatmul.msk.f32.gmra.mxu1 %vm54_vm1, %v2836_v62  ;;  %v2305_v53 = vld [vmem:[#allocation2 + $0x49] sm:$0xff] }
 0x272   :  { %9724 = vmatmul.msk.f32.gmra.mxu0 %vm54_vm1, %v2303_v44 }
 0x273   :  { %9855 = vmatmul.msk.f32.gmra.mxu2 %vm54_vm1, %v3371_v51  ;;  %v1751_v51 = vadd.f32 %v1655_v10, %v1186_v40 }
 0x274   :  { %v2186_v37 = vpop.f32.mrf.mxu3 }
 0x275   :  { %v11305_v7 = vadd.f32 %v2186_v37, %v1750_v3  ;;  %v2838_v3 = vld [vmem:[#allocation2 + $0x3a] sm:$0xff]  ;;  %v3373_v37 = vld [vmem:[#allocation2 + $0x50] sm:$0xff] }
 0x276   :  { %v1658_v55 = vpop.f32.mrf.mxu2  ;;  %v1191_v21 = vpop.f32.mrf.mxu1 }
 0x277   :  { %13859 = vst [vmem:[#allocation25_spill] sm:$0xff] %v11305_v7  ;;  %v787_v4 = vpop.f32.mrf.mxu0  ;;  %v1189_v7 = vadd.f32 %v1188_v15, %v784_v0 }
 0x279   :  { %9920 = vmatmul.msk.f32.vlgmr.msra.gmra.mxu3 %vm54_vm1, %v2303_v44  ;;  %9790 = vmatmul.msk.f32.gmra.mxu1 %vm54_vm1, %v2837_v58  ;;  %v1752_v27 = vadd.f32 %v1658_v55, %v1189_v7  ;;  %v2306_v58 = vld [vmem:[#allocation2 + $0x51] sm:$0xff] }
 0x27a   :  { %9725 = vmatmul.msk.f32.gmra.mxu0 %vm54_vm1, %v2304_v16 }
 0x27b   :  { %9856 = vmatmul.msk.f32.gmra.mxu2 %vm54_vm1, %v3372_v45 }
 0x27c   :  { %v2189_v30 = vpop.f32.mrf.mxu3 }
 0x27d   :  { %v11311_v9 = vadd.f32 %v2189_v30, %v1751_v51  ;;  %v2839_v51 = vld [vmem:[#allocation2 + $0x4a] sm:$0xff]  ;;  %v3374_v30 = vld [vmem:[#allocation2 + $0x60] sm:$0xff] }
 0x27e   :  { %v1661_v62 = vpop.f32.mrf.mxu2  ;;  %v1194_v46 = vpop.f32.mrf.mxu1 }
 0x27f   :  { %13860 = vst [vmem:[#allocation26_spill] sm:$0xff] %v11311_v9  ;;  %v790_v36 = vpop.f32.mrf.mxu0  ;;  %v1192_v9 = vadd.f32 %v1191_v21, %v787_v4 }
 0x281   :  { %9921 = vmatmul.msk.f32.gmra.mxu3 %vm54_vm1, %v2304_v16  ;;  %9791 = vmatmul.msk.f32.gmra.mxu1 %vm54_vm1, %v2838_v3  ;;  %v1753_v0 = vadd.f32 %v1661_v62, %v1192_v9  ;;  %v2307_v3 = vld [vmem:[#allocation2 + $0x61] sm:$0xff] }
 0x282   :  { %9726 = vmatmul.msk.f32.gmra.mxu0 %vm54_vm1, %v2305_v53 }
 0x283   :  { %9857 = vmatmul.msk.f32.gmra.mxu2 %vm54_vm1, %v3373_v37 }
 0x284   :  { %v2192_v23 = vpop.f32.mrf.mxu3 }
 0x285   :  { %v11317_v40 = vadd.f32 %v2192_v23, %v1752_v27  ;;  %v2840_v27 = vld [vmem:[#allocation2 + $0x52] sm:$0xff]  ;;  %v3375_v23 = vld [vmem:[#allocation2 + $0x68] sm:$0xff] }
 0x286   :  { %v1664_v10 = vpop.f32.mrf.mxu2  ;;  %v1197_v45 = vpop.f32.mrf.mxu1 }
 0x287   :  { %13861 = vst [vmem:[#allocation27_spill] sm:$0xff] %v11317_v40  ;;  %v793_v44 = vpop.f32.mrf.mxu0  ;;  %v1195_v40 = vadd.f32 %v1194_v46, %v790_v36 }
 0x289   :  { %9922 = vmatmul.msk.f32.gmra.mxu3 %vm54_vm1, %v2305_v53  ;;  %9792 = vmatmul.msk.f32.gmra.mxu1 %vm54_vm1, %v2839_v51  ;;  %v1754_v4 = vadd.f32 %v1664_v10, %v1195_v40  ;;  %v2308_v51 = vld [vmem:[#allocation2 + $0x69] sm:$0xff] }
 0x28a   :  { %9727 = vmatmul.msk.f32.gmra.mxu0 %vm54_vm1, %v2306_v58 }
 0x28b   :  { %9858 = vmatmul.msk.f32.gmra.mxu2 %vm54_vm1, %v3374_v30 }
 0x28c   :  { %v2195_v15 = vpop.f32.mrf.mxu3 }
 0x28d   :  { %v11323_v7 = vadd.f32 %v2195_v15, %v1753_v0  ;;  %v2841_v0 = vld [vmem:[#allocation2 + $0x62] sm:$0xff]  ;;  %v3376_v15 = vld [vmem:[#allocation2 + $0x78] sm:$0xff] }
 0x28e   :  { %v1667_v55 = vpop.f32.mrf.mxu2  ;;  %v1200_v37 = vpop.f32.mrf.mxu1 }
 0x28f   :  { %13862 = vst [vmem:[#allocation28_spill] sm:$0xff] %v11323_v7  ;;  %v796_v16 = vpop.f32.mrf.mxu0  ;;  %v1198_v7 = vadd.f32 %v1197_v45, %v793_v44 }
 0x291   :  { %9923 = vmatmul.msk.f32.gmra.mxu3 %vm54_vm1, %v2306_v58  ;;  %9793 = vmatmul.msk.f32.gmra.mxu1 %vm54_vm1, %v2840_v27  ;;  %v1755_v36 = vadd.f32 %v1667_v55, %v1198_v7  ;;  %v2309_v27 = vld [vmem:[#allocation2 + $0x79] sm:$0xff] }
 0x292   :  { %9728 = vmatmul.msk.f32.gmra.mxu0 %vm54_vm1, %v2307_v3 }
 0x293   :  { %9859 = vmatmul.msk.f32.gmra.mxu2 %vm54_vm1, %v3375_v23 }
 0x294   :  { %v2198_v21 = vpop.f32.mrf.mxu3 }
 0x295   :  { %v11329_v9 = vadd.f32 %v2198_v21, %v1754_v4  ;;  %v2842_v4 = vld [vmem:[#allocation2 + $0x6a] sm:$0xff]  ;;  %v3377_v21 = vld [vmem:[#allocation2 + $0x80] sm:$0xff] }
 0x296   :  { %v1670_v62 = vpop.f32.mrf.mxu2  ;;  %v1203_v30 = vpop.f32.mrf.mxu1 }
 0x297   :  { %13863 = vst [vmem:[#allocation29_spill] sm:$0xff] %v11329_v9  ;;  %v799_v53 = vpop.f32.mrf.mxu0  ;;  %v1201_v9 = vadd.f32 %v1200_v37, %v796_v16 }
 0x299   :  { %9924 = vmatmul.msk.f32.gmra.mxu3 %vm54_vm1, %v2307_v3  ;;  %9794 = vmatmul.msk.f32.gmra.mxu1 %vm54_vm1, %v2841_v0  ;;  %v1756_v44 = vadd.f32 %v1670_v62, %v1201_v9  ;;  %v2310_v0 = vld [vmem:[#allocation2 + $0x81] sm:$0xff] }
 0x29a   :  { %9729 = vmatmul.msk.f32.gmra.mxu0 %vm54_vm1, %v2308_v51 }
 0x29b   :  { %9860 = vmatmul.msk.f32.gmra.mxu2 %vm54_vm1, %v3376_v15 }
 0x29c   :  { %v2201_v46 = vpop.f32.mrf.mxu3 }
 0x29d   :  { %v11335_v40 = vadd.f32 %v2201_v46, %v1755_v36  ;;  %v2843_v36 = vld [vmem:[#allocation2 + $0x7a] sm:$0xff]  ;;  %v3378_v46 = vld [vmem:[#allocation2 + $0x90] sm:$0xff] }
 0x29e   :  { %v1673_v10 = vpop.f32.mrf.mxu2  ;;  %v1206_v23 = vpop.f32.mrf.mxu1 }
 0x29f   :  { %13864 = vst [vmem:[#allocation30_spill] sm:$0xff] %v11335_v40  ;;  %v802_v58 = vpop.f32.mrf.mxu0  ;;  %v1204_v40 = vadd.f32 %v1203_v30, %v799_v53 }
 0x2a1   :  { %9925 = vmatmul.msk.f32.gmra.mxu3 %vm54_vm1, %v2308_v51  ;;  %9795 = vmatmul.msk.f32.gmra.mxu1 %vm54_vm1, %v2842_v4  ;;  %v1757_v16 = vadd.f32 %v1673_v10, %v1204_v40  ;;  %v2311_v4 = vld [vmem:[#allocation2 + $0x91] sm:$0xff] }
 0x2a2   :  { %9730 = vmatmul.msk.f32.gmra.mxu0 %vm54_vm1, %v2309_v27 }
 0x2a3   :  { %9861 = vmatmul.msk.f32.gmra.mxu2 %vm54_vm1, %v3377_v21 }
 0x2a4   :  { %v2204_v45 = vpop.f32.mrf.mxu3 }
 0x2a5   :  { %v11341_v7 = vadd.f32 %v2204_v45, %v1756_v44  ;;  %v2844_v44 = vld [vmem:[#allocation2 + $0x82] sm:$0xff]  ;;  %v3379_v45 = vld [vmem:[#allocation2 + $0x98] sm:$0xff] }
 0x2a6   :  { %v1676_v55 = vpop.f32.mrf.mxu2  ;;  %v1209_v15 = vpop.f32.mrf.mxu1 }
 0x2a7   :  { %13865 = vst [vmem:[#allocation31_spill] sm:$0xff] %v11341_v7  ;;  %v805_v3 = vpop.f32.mrf.mxu0  ;;  %v1207_v7 = vadd.f32 %v1206_v23, %v802_v58 }
 0x2a9   :  { %9926 = vmatmul.msk.f32.gmra.mxu3 %vm54_vm1, %v2309_v27  ;;  %9796 = vmatmul.msk.f32.gmra.mxu1 %vm54_vm1, %v2843_v36  ;;  %v1758_v53 = vadd.f32 %v1676_v55, %v1207_v7  ;;  %v2312_v36 = vld [vmem:[#allocation2 + $0x99] sm:$0xff] }
 0x2aa   :  { %9731 = vmatmul.msk.f32.gmra.mxu0 %vm54_vm1, %v2310_v0 }
 0x2ab   :  { %9862 = vmatmul.msk.f32.gmra.mxu2 %vm54_vm1, %v3378_v46 }
 0x2ac   :  { %v2207_v37 = vpop.f32.mrf.mxu3 }
 0x2ad   :  { %v11347_v9 = vadd.f32 %v2207_v37, %v1757_v16  ;;  %v2845_v16 = vld [vmem:[#allocation2 + $0x92] sm:$0xff]  ;;  %v3380_v37 = vld [vmem:[#allocation2 + $0xa8] sm:$0xff] }
 0x2ae   :  { %v1679_v62 = vpop.f32.mrf.mxu2  ;;  %v1212_v21 = vpop.f32.mrf.mxu1 }
 0x2af   :  { %13866 = vst [vmem:[#allocation32_spill] sm:$0xff] %v11347_v9  ;;  %v808_v51 = vpop.f32.mrf.mxu0  ;;  %v1210_v9 = vadd.f32 %v1209_v15, %v805_v3 }
 0x2b1   :  { %9927 = vmatmul.msk.f32.gmra.mxu3 %vm54_vm1, %v2310_v0  ;;  %9797 = vmatmul.msk.f32.gmra.mxu1 %vm54_vm1, %v2844_v44  ;;  %v1759_v58 = vadd.f32 %v1679_v62, %v1210_v9  ;;  %v2313_v44 = vld [vmem:[#allocation2 + $0xa9] sm:$0xff] }
 0x2b2   :  { %9732 = vmatmul.msk.f32.gmra.mxu0 %vm54_vm1, %v2311_v4 }
 0x2b3   :  { %9863 = vmatmul.msk.f32.gmra.mxu2 %vm54_vm1, %v3379_v45 }
 0x2b4   :  { %v2210_v30 = vpop.f32.mrf.mxu3 }
 0x2b5   :  { %v11353_v40 = vadd.f32 %v2210_v30, %v1758_v53  ;;  %v2846_v53 = vld [vmem:[#allocation2 + $0x9a] sm:$0xff]  ;;  %v3381_v30 = vld [vmem:[#allocation2 + $0xb0] sm:$0xff] }
 0x2b6   :  { %v1682_v10 = vpop.f32.mrf.mxu2  ;;  %v1215_v46 = vpop.f32.mrf.mxu1 }
 0x2b7   :  { %13867 = vst [vmem:[#allocation33_spill] sm:$0xff] %v11353_v40  ;;  %v811_v27 = vpop.f32.mrf.mxu0  ;;  %v1213_v40 = vadd.f32 %v1212_v21, %v808_v51 }
 0x2b9   :  { %9928 = vmatmul.msk.f32.gmra.mxu3 %vm54_vm1, %v2311_v4  ;;  %9798 = vmatmul.msk.f32.gmra.mxu1 %vm54_vm1, %v2845_v16  ;;  %v1760_v3 = vadd.f32 %v1682_v10, %v1213_v40  ;;  %v2314_v16 = vld [vmem:[#allocation2 + $0xb1] sm:$0xff] }
 0x2ba   :  { %9733 = vmatmul.msk.f32.gmra.mxu0 %vm54_vm1, %v2312_v36 }
 0x2bb   :  { %9864 = vmatmul.msk.f32.gmra.mxu2 %vm54_vm1, %v3380_v37 }
 0x2bc   :  { %v2213_v23 = vpop.f32.mrf.mxu3 }
 0x2bd   :  { %v11359_v7 = vadd.f32 %v2213_v23, %v1759_v58  ;;  %v2847_v58 = vld [vmem:[#allocation2 + $0xaa] sm:$0xff]  ;;  %v3382_v23 = vld [vmem:[#allocation2 + $0xc0] sm:$0xff] }
 0x2be   :  { %v1685_v55 = vpop.f32.mrf.mxu2  ;;  %v1218_v45 = vpop.f32.mrf.mxu1 }
 0x2bf   :  { %13868 = vst [vmem:[#allocation34_spill] sm:$0xff] %v11359_v7  ;;  %v814_v0 = vpop.f32.mrf.mxu0  ;;  %v1216_v7 = vadd.f32 %v1215_v46, %v811_v27 }
 0x2c1   :  { %9929 = vmatmul.msk.f32.gmra.mxu3 %vm54_vm1, %v2312_v36  ;;  %9799 = vmatmul.msk.f32.gmra.mxu1 %vm54_vm1, %v2846_v53  ;;  %v1761_v51 = vadd.f32 %v1685_v55, %v1216_v7  ;;  %v2315_v53 = vld [vmem:[#allocation2 + $0xc1] sm:$0xff] }
 0x2c2   :  { %9734 = vmatmul.msk.f32.gmra.mxu0 %vm54_vm1, %v2313_v44 }
 0x2c3   :  { %9865 = vmatmul.msk.f32.gmra.mxu2 %vm54_vm1, %v3381_v30 }
 0x2c4   :  { %v2216_v15 = vpop.f32.mrf.mxu3 }
 0x2c5   :  { %v11365_v9 = vadd.f32 %v2216_v15, %v1760_v3  ;;  %v2848_v3 = vld [vmem:[#allocation2 + $0xb2] sm:$0xff]  ;;  %v3383_v15 = vld [vmem:[#allocation2 + $0xc8] sm:$0xff] }
 0x2c6   :  { %v1688_v62 = vpop.f32.mrf.mxu2  ;;  %v1221_v37 = vpop.f32.mrf.mxu1 }
 0x2c7   :  { %13869 = vst [vmem:[#allocation35_spill] sm:$0xff] %v11365_v9  ;;  %v817_v4 = vpop.f32.mrf.mxu0  ;;  %v1219_v9 = vadd.f32 %v1218_v45, %v814_v0 }
 0x2c9   :  { %9930 = vmatmul.msk.f32.gmra.mxu3 %vm54_vm1, %v2313_v44  ;;  %9800 = vmatmul.msk.f32.gmra.mxu1 %vm54_vm1, %v2847_v58  ;;  %v1762_v27 = vadd.f32 %v1688_v62, %v1219_v9  ;;  %v2316_v58 = vld [vmem:[#allocation2 + $0xc9] sm:$0xff] }
 0x2ca   :  { %9735 = vmatmul.msk.f32.gmra.mxu0 %vm54_vm1, %v2314_v16 }
 0x2cb   :  { %9866 = vmatmul.msk.f32.gmra.mxu2 %vm54_vm1, %v3382_v23 }
 0x2cc   :  { %v2219_v21 = vpop.f32.mrf.mxu3 }
 0x2cd   :  { %v11371_v40 = vadd.f32 %v2219_v21, %v1761_v51  ;;  %v2849_v51 = vld [vmem:[#allocation2 + $0xc2] sm:$0xff]  ;;  %v3384_v21 = vld [vmem:[#allocation2 + $0xd8] sm:$0xff] }
 0x2ce   :  { %v1691_v10 = vpop.f32.mrf.mxu2  ;;  %v1224_v30 = vpop.f32.mrf.mxu1 }
 0x2cf   :  { %13870 = vst [vmem:[#allocation36_spill] sm:$0xff] %v11371_v40  ;;  %v820_v36 = vpop.f32.mrf.mxu0  ;;  %v1222_v40 = vadd.f32 %v1221_v37, %v817_v4  ;;  %v1042_v37 = vadd.f32 %v10807_v13, %v10805_v12  ;;  %v1045_v13 = vadd.f32 %v10821_v20, %v10819_v19 }
 0x2d1   :  { %9931 = vmatmul.msk.f32.gmra.mxu3 %vm54_vm1, %v2314_v16  ;;  %9801 = vmatmul.msk.f32.gmra.mxu1 %vm54_vm1, %v2848_v3  ;;  %v1763_v0 = vadd.f32 %v1691_v10, %v1222_v40  ;;  %v2317_v3 = vld [vmem:[#allocation2 + $0xd9] sm:$0xff] }
 0x2d2   :  { %9736 = vmatmul.msk.f32.gmra.mxu0 %vm54_vm1, %v2315_v53 }
 0x2d3   :  { %9867 = vmatmul.msk.f32.gmra.mxu2 %vm54_vm1, %v3383_v15 }
 0x2d4   :  { %v2222_v46 = vpop.f32.mrf.mxu3 }
 0x2d5   :  { %v11377_v7 = vadd.f32 %v2222_v46, %v1762_v27  ;;  %v2850_v27 = vld [vmem:[#allocation2 + $0xca] sm:$0xff]  ;;  %v3385_v46 = vld [vmem:[#allocation2 + $0xe0] sm:$0xff] }
 0x2d6   :  { %v1694_v55 = vpop.f32.mrf.mxu2  ;;  %v1227_v23 = vpop.f32.mrf.mxu1 }
 0x2d7   :  { %13871 = vst [vmem:[#allocation37_spill] sm:$0xff] %v11377_v7  ;;  %v823_v44 = vpop.f32.mrf.mxu0  ;;  %v1225_v7 = vadd.f32 %v1224_v30, %v820_v36  ;;  %v2318_v36 = vld [vmem:[#allocation2 + $0xe1] sm:$0xff] }
 0x2d9   :  { %9932 = vmatmul.msk.f32.gmra.mxu3 %vm54_vm1, %v2315_v53  ;;  %9802 = vmatmul.msk.f32.gmra.mxu1 %vm54_vm1, %v2849_v51  ;;  %v1764_v4 = vadd.f32 %v1694_v55, %v1225_v7  ;;  %v1703_v51 = vadd.f32 %v10815_v18, %v1042_v37 }
 0x2da   :  { %9737 = vmatmul.msk.f32.gmra.mxu0 %vm54_vm1, %v2316_v58 }
 0x2db   :  { %9868 = vmatmul.msk.f32.gmra.mxu2 %vm54_vm1, %v3384_v21 }
 0x2dc   :  { %v2225_v45 = vpop.f32.mrf.mxu3 }
 0x2dd   :  { %v11383_v9 = vadd.f32 %v2225_v45, %v1763_v0  ;;  %v3386_v0 = vld [vmem:[#allocation2 + $0xf0] sm:$0xff]  ;;  %v2237_v45 = vadd.f32 %v10843_v33, %v1703_v51  ;;  %v1704_v33 = vadd.f32 %v10833_v26, %v1045_v13 }
 0x2de   :  { %v1697_v62 = vpop.f32.mrf.mxu2  ;;  %v1230_v15 = vpop.f32.mrf.mxu1 }
 0x2df   :  { %13872 = vst [vmem:[#allocation38_spill] sm:$0xff] %v11383_v9  ;;  %v2579_v16 = vpop.f32.mrf.mxu0  ;;  %v2238_v51 = vadd.f32 %v10853_v41, %v1704_v33  ;;  %v2320_v41 = vld [vmem:[#allocation2 + $0xf9] sm:$0xff]  ;;  %v4448_v9 = vld [vmem:[#allocation2 + $0xaa] sm:$0xff] }
 0x2e0   :  { %v2771_v7 = vadd.f32 %v2579_v16, %v2237_v45  ;;  %v2852_v16 = vld [vmem:[#allocation2 + $0xe2] sm:$0xff] }
 0x2e1   :  { %9933 = vmatmul.msk.f32.gmra.mxu3 %vm54_vm1, %v2316_v58  ;;  %9803 = vmatmul.msk.f32.gmra.mxu1 %vm54_vm1, %v2850_v27  ;;  %v2851_v58 = vld [vmem:[#allocation2 + $0xda] sm:$0xff]  ;;  %v1228_v27 = vadd.f32 %v1227_v23, %v823_v44 }
 0x2e2   :  { %9738 = vmatmul.msk.f32.gmra.mxu0 %vm54_vm1, %v2317_v3 }
 0x2e3   :  { %9869 = vmatmul.msk.f32.gmra.mxu2 %vm54_vm1, %v3385_v46  ;;  %v1765_v12 = vadd.f32 %v1697_v62, %v1228_v27  ;;  %v1231_v62 = vadd.f32 %v1230_v15, %v10829_v25  ;;  %v2853_v25 = vld [vmem:[#allocation2 + $0xf2] sm:$0xff]  ;;  %v3388_v15 = vld [vmem:[#allocation2 + $0x108] sm:$0xff] }
 0x2e4   :  { %v2228_v40 = vpop.f32.mrf.mxu3 }
 0x2e5   :  { %v11391_v10 = vadd.f32 %v2228_v40, %v1764_v4  ;;  %v3387_v40 = vld [vmem:[#allocation2 + $0xf8] sm:$0xff] }
 0x2e6   :  { %v1700_v53 = vpop.f32.mrf.mxu2  ;;  %v3113_v30 = vpop.f32.mrf.mxu1 }
 0x2e7   :  { %13873 = vst [vmem:[#allocation39_spill] sm:$0xff] %v11391_v10  ;;  %v2582_v21 = vpop.f32.mrf.mxu0  ;;  %v3305_v55 = vadd.f32 %v3113_v30, %v2771_v7  ;;  %v1766_v20 = vadd.f32 %v1700_v53, %v1231_v62  ;;  %v4447_v10 = vld [vmem:[#allocation2 + $0x9a] sm:$0xff] }
 0x2e8   :  { %v2772_v19 = vadd.f32 %v2582_v21, %v2238_v51 }
 0x2e9   :  { %9934 = vmatmul.msk.f32.gmra.mxu3 %vm54_vm1, %v2317_v3  ;;  %9804 = vmatmul.msk.f32.gmra.mxu1 %vm54_vm1, %v2851_v58  ;;  %v2319_v3 = vld [vmem:[#allocation2 + $0xf1] sm:$0xff] }
 0x2ea   :  { %9739 = vmatmul.msk.f32.gmra.mxu0 %vm54_vm1, %v2318_v36 }
 0x2eb   :  { %9870 = vmatmul.msk.f32.gmra.mxu2 %vm54_vm1, %v3386_v0 }
 0x2ec   :  { %v2231_v18 = vpop.f32.mrf.mxu3 }
 0x2ed   :  { %v11401_v46 = vadd.f32 %v2231_v18, %v1765_v12 }
 0x2ee   :  { %v3648_v4 = vpop.f32.mrf.mxu2  ;;  %v3116_v37 = vpop.f32.mrf.mxu1 }
 0x2ef   :  { %13874 = vst [vmem:[#allocation40_spill] sm:$0xff] %v11401_v46  ;;  %v3840_v44 = vadd.f32 %v3648_v4, %v3305_v55  ;;  %v2585_v23 = vpop.f32.mrf.mxu0  ;;  %v3306_v30 = vadd.f32 %v3116_v37, %v2772_v19  ;;  %v2321_v4 = vld [vmem:[#allocation2 + $0x109] sm:$0xff]  ;;  %v2854_v37 = vld [vmem:[#allocation2 + $0xfa] sm:$0xff]  ;;  %v2322_v19 = vld [vmem:[#allocation2 + $0x111] sm:$0xff] }
 0x2f0   :  { %v2773_v21 = vadd.f32 %v2585_v23, %v10863_v52  ;;  %v4446_v46 = vld [vmem:[#allocation2 + $0x92] sm:$0xff] }
 0x2f1   :  { %9935 = vmatmul.msk.f32.gmra.mxu3 %vm54_vm1, %v2318_v36  ;;  %9805 = vmatmul.msk.f32.gmra.mxu1 %vm54_vm1, %v2852_v16  ;;  %v3389_v16 = vld [vmem:[#allocation2 + $0x110] sm:$0xff] }
 0x2f2   :  { %9740 = vmatmul.msk.f32.gmra.mxu0 %vm54_vm1, %v2319_v3 }
 0x2f3   :  { %9871 = vmatmul.msk.f32.gmra.mxu2 %vm54_vm1, %v3387_v40 }
 0x2f4   :  { %v2234_v26 = vpop.f32.mrf.mxu3 }
 0x2f5   :  { %v11410_v58 = vadd.f32 %v2234_v26, %v1766_v20  ;;  %v2855_v26 = vld [vmem:[#allocation2 + $0x10a] sm:$0xff] }
 0x2f6   :  { %v3651_v0 = vpop.f32.mrf.mxu2  ;;  %v3119_v7 = vpop.f32.mrf.mxu1 }
 0x2f7   :  { %13875 = vst [vmem:[#allocation41_spill] sm:$0xff] %v11410_v58  ;;  %v3841_v45 = vadd.f32 %v3651_v0, %v3306_v30  ;;  %v2588_v27 = vpop.f32.mrf.mxu0  ;;  %v3307_v36 = vadd.f32 %v3119_v7, %v2773_v21  ;;  %v3390_v30 = vld [vmem:[#allocation2 + $0x120] sm:$0xff] }
 0x2f8   :  { %v2774_v52 = vadd.f32 %v2588_v27, %v10873_v63  ;;  %v4445_v58 = vld [vmem:[#allocation2 + $0x82] sm:$0xff] }
 0x2f9   :  { %9936 = vmatmul.msk.f32.gmra.mxu3 %vm54_vm1, %v2319_v3  ;;  %9806 = vmatmul.msk.f32.gmra.mxu1 %vm54_vm1, %v2853_v25 }
 0x2fa   :  { %9741 = vmatmul.msk.f32.gmra.mxu0 %vm54_vm1, %v2320_v41 }
 0x2fb   :  { %9872 = vmatmul.msk.f32.gmra.mxu2 %vm54_vm1, %v3388_v15  ;;  %v2323_v15 = vld [vmem:[#allocation2 + $0x121] sm:$0xff] }
 0x2fc   :  { %v4182_v53 = vpop.f32.mrf.mxu3 }
 0x2fd   :  { %v11417_v12 = vadd.f32 %v4182_v53, %v3840_v44  ;;  %v2856_v53 = vld [vmem:[#allocation2 + $0x112] sm:$0xff] }
 0x2fe   :  { %v3654_v13 = vpop.f32.mrf.mxu2  ;;  %v3122_v33 = vpop.f32.mrf.mxu1 }
 0x2ff   :  { %v3842_v18 = vadd.f32 %v3654_v13, %v3307_v36  ;;  %v2591_v55 = vpop.f32.mrf.mxu0  ;;  %v3308_v44 = vadd.f32 %v3122_v33, %v2774_v52  ;;  %v3391_v36 = vld [vmem:[#allocation2 + $0x128] sm:$0xff] }
 0x300   :  { %v2775_v63 = vadd.f32 %v2591_v55, %v10883_v11 }
 0x301   :  { %9937 = vmatmul.msk.f32.gmra.mxu3 %vm54_vm1, %v2320_v41  ;;  %9807 = vmatmul.msk.f32.gmra.mxu1 %vm54_vm1, %v2854_v37 }
 0x302   :  { %9742 = vmatmul.msk.f32.gmra.mxu0 %vm54_vm1, %v2321_v4 }
 0x303   :  { %9873 = vmatmul.msk.f32.gmra.mxu2 %vm54_vm1, %v3389_v16  ;;  %v2324_v16 = vld [vmem:[#allocation2 + $0x129] sm:$0xff] }
 0x304   :  { %v4185_v23 = vpop.f32.mrf.mxu3 }
 0x305   :  { %v11424_v3 = vadd.f32 %v4185_v23, %v3841_v45  ;;  %v2857_v23 = vld [vmem:[#allocation2 + $0x122] sm:$0xff] }
 0x306   :  { %v3657_v40 = vpop.f32.mrf.mxu2  ;;  %v3125_v20 = vpop.f32.mrf.mxu1 }
 0x307   :  { %v3843_v51 = vadd.f32 %v3657_v40, %v3308_v44  ;;  %v2594_v62 = vpop.f32.mrf.mxu0  ;;  %v3309_v45 = vadd.f32 %v3125_v20, %v2775_v63  ;;  %v3392_v44 = vld [vmem:[#allocation2 + $0x138] sm:$0xff] }
 0x308   :  { %v2776_v11 = vadd.f32 %v2594_v62, %v10893_v29 }
 0x309   :  { %9938 = vmatmul.msk.f32.gmra.mxu3 %vm54_vm1, %v2321_v4  ;;  %9808 = vmatmul.msk.f32.gmra.mxu1 %vm54_vm1, %v2855_v26 }
 0x30a   :  { %9743 = vmatmul.msk.f32.gmra.mxu0 %vm54_vm1, %v2322_v19 }
 0x30b   :  { %9874 = vmatmul.msk.f32.gmra.mxu2 %vm54_vm1, %v3390_v30  ;;  %v2325_v30 = vld [vmem:[#allocation2 + $0x139] sm:$0xff] }
 0x30c   :  { %v4188_v0 = vpop.f32.mrf.mxu3 }
 0x30d   :  { %v11431_v27 = vadd.f32 %v4188_v0, %v3842_v18  ;;  %v2858_v0 = vld [vmem:[#allocation2 + $0x12a] sm:$0xff] }
 0x30e   :  { %v3660_v41 = vpop.f32.mrf.mxu2  ;;  %v3128_v21 = vpop.f32.mrf.mxu1 }
 0x30f   :  { %v3844_v7 = vadd.f32 %v3660_v41, %v3309_v45  ;;  %v2597_v25 = vpop.f32.mrf.mxu0  ;;  %v3310_v18 = vadd.f32 %v3128_v21, %v2776_v11  ;;  %v3393_v45 = vld [vmem:[#allocation2 + $0x140] sm:$0xff] }
 0x310   :  { %v2777_v29 = vadd.f32 %v2597_v25, %v10903_v42 }
 0x311   :  { %9939 = vmatmul.msk.f32.gmra.mxu3 %vm54_vm1, %v2322_v19  ;;  %9809 = vmatmul.msk.f32.gmra.mxu1 %vm54_vm1, %v2856_v53 }
 0x312   :  { %9744 = vmatmul.msk.f32.gmra.mxu0 %vm54_vm1, %v2323_v15 }
 0x313   :  { %9875 = vmatmul.msk.f32.gmra.mxu2 %vm54_vm1, %v3391_v36  ;;  %v2326_v36 = vld [vmem:[#allocation2 + $0x141] sm:$0xff] }
 0x314   :  { %v4191_v13 = vpop.f32.mrf.mxu3 }
 0x315   :  { %v11438_v55 = vadd.f32 %v4191_v13, %v3843_v51  ;;  %v2859_v13 = vld [vmem:[#allocation2 + $0x13a] sm:$0xff] }
 0x316   :  { %v3663_v4 = vpop.f32.mrf.mxu2  ;;  %v3131_v52 = vpop.f32.mrf.mxu1 }
 0x317   :  { %v3845_v33 = vadd.f32 %v3663_v4, %v3310_v18  ;;  %v2600_v37 = vpop.f32.mrf.mxu0  ;;  %v3311_v51 = vadd.f32 %v3131_v52, %v2777_v29  ;;  %v3394_v18 = vld [vmem:[#allocation2 + $0x150] sm:$0xff] }
 0x318   :  { %v2778_v42 = vadd.f32 %v2600_v37, %v10913_v54 }
 0x319   :  { %9940 = vmatmul.msk.f32.gmra.mxu3 %vm54_vm1, %v2323_v15  ;;  %9810 = vmatmul.msk.f32.gmra.mxu1 %vm54_vm1, %v2857_v23 }
 0x31a   :  { %9745 = vmatmul.msk.f32.gmra.mxu0 %vm54_vm1, %v2324_v16 }
 0x31b   :  { %9876 = vmatmul.msk.f32.gmra.mxu2 %vm54_vm1, %v3392_v44  ;;  %v2327_v44 = vld [vmem:[#allocation2 + $0x151] sm:$0xff] }
 0x31c   :  { %v4194_v40 = vpop.f32.mrf.mxu3 }
 0x31d   :  { %v11445_v62 = vadd.f32 %v4194_v40, %v3844_v7  ;;  %v2860_v40 = vld [vmem:[#allocation2 + $0x142] sm:$0xff] }
 0x31e   :  { %v3666_v19 = vpop.f32.mrf.mxu2  ;;  %v3134_v63 = vpop.f32.mrf.mxu1 }
 0x31f   :  { %v3846_v20 = vadd.f32 %v3666_v19, %v3311_v51  ;;  %v2603_v26 = vpop.f32.mrf.mxu0  ;;  %v3312_v7 = vadd.f32 %v3134_v63, %v2778_v42  ;;  %v3395_v51 = vld [vmem:[#allocation2 + $0x158] sm:$0xff] }
 0x320   :  { %v2779_v54 = vadd.f32 %v2603_v26, %v10923_v2 }
 0x321   :  { %9941 = vmatmul.msk.f32.gmra.mxu3 %vm54_vm1, %v2324_v16  ;;  %9811 = vmatmul.msk.f32.gmra.mxu1 %vm54_vm1, %v2858_v0 }
 0x322   :  { %9746 = vmatmul.msk.f32.gmra.mxu0 %vm54_vm1, %v2325_v30 }
 0x323   :  { %9877 = vmatmul.msk.f32.gmra.mxu2 %vm54_vm1, %v3393_v45  ;;  %v2328_v45 = vld [vmem:[#allocation2 + $0x159] sm:$0xff] }
 0x324   :  { %v4197_v41 = vpop.f32.mrf.mxu3 }
 0x325   :  { %v11452_v25 = vadd.f32 %v4197_v41, %v3845_v33  ;;  %v2861_v41 = vld [vmem:[#allocation2 + $0x152] sm:$0xff] }
 0x326   :  { %v3669_v15 = vpop.f32.mrf.mxu2  ;;  %v3137_v11 = vpop.f32.mrf.mxu1 }
 0x327   :  { %v3847_v21 = vadd.f32 %v3669_v15, %v3312_v7  ;;  %v2606_v53 = vpop.f32.mrf.mxu0  ;;  %v3313_v33 = vadd.f32 %v3137_v11, %v2779_v54  ;;  %v3396_v7 = vld [vmem:[#allocation2 + $0x168] sm:$0xff] }
 0x328   :  { %v2780_v2 = vadd.f32 %v2606_v53, %v10933_v17 }
 0x329   :  { %9942 = vmatmul.msk.f32.gmra.mxu3 %vm54_vm1, %v2325_v30  ;;  %9812 = vmatmul.msk.f32.gmra.mxu1 %vm54_vm1, %v2859_v13 }
 0x32a   :  { %9747 = vmatmul.msk.f32.gmra.mxu0 %vm54_vm1, %v2326_v36 }
 0x32b   :  { %9878 = vmatmul.msk.f32.gmra.mxu2 %vm54_vm1, %v3394_v18  ;;  %v2329_v18 = vld [vmem:[#allocation2 + $0x169] sm:$0xff] }
 0x32c   :  { %v4200_v4 = vpop.f32.mrf.mxu3 }
 0x32d   :  { %v11459_v37 = vadd.f32 %v4200_v4, %v3846_v20  ;;  %v2862_v4 = vld [vmem:[#allocation2 + $0x15a] sm:$0xff] }
 0x32e   :  { %v3672_v16 = vpop.f32.mrf.mxu2  ;;  %v3140_v29 = vpop.f32.mrf.mxu1 }
 0x32f   :  { %v3848_v52 = vadd.f32 %v3672_v16, %v3313_v33  ;;  %v2609_v23 = vpop.f32.mrf.mxu0  ;;  %v3314_v20 = vadd.f32 %v3140_v29, %v2780_v2  ;;  %v3397_v33 = vld [vmem:[#allocation2 + $0x170] sm:$0xff] }
 0x330   :  { %v2781_v17 = vadd.f32 %v2609_v23, %v10943_v35 }
 0x331   :  { %9943 = vmatmul.msk.f32.gmra.mxu3 %vm54_vm1, %v2326_v36  ;;  %9813 = vmatmul.msk.f32.gmra.mxu1 %vm54_vm1, %v2860_v40 }
 0x332   :  { %9748 = vmatmul.msk.f32.gmra.mxu0 %vm54_vm1, %v2327_v44 }
 0x333   :  { %9879 = vmatmul.msk.f32.gmra.mxu2 %vm54_vm1, %v3395_v51  ;;  %v2330_v51 = vld [vmem:[#allocation2 + $0x171] sm:$0xff] }
 0x334   :  { %v4203_v19 = vpop.f32.mrf.mxu3 }
 0x335   :  { %v11466_v26 = vadd.f32 %v4203_v19, %v3847_v21  ;;  %v2863_v19 = vld [vmem:[#allocation2 + $0x16a] sm:$0xff] }
 0x336   :  { %v3675_v30 = vpop.f32.mrf.mxu2  ;;  %v3143_v42 = vpop.f32.mrf.mxu1 }
 0x337   :  { %v3849_v63 = vadd.f32 %v3675_v30, %v3314_v20  ;;  %v2612_v0 = vpop.f32.mrf.mxu0  ;;  %v3315_v21 = vadd.f32 %v3143_v42, %v2781_v17  ;;  %v3398_v20 = vld [vmem:[#allocation2 + $0x180] sm:$0xff] }
 0x338   :  { %v2782_v35 = vadd.f32 %v2612_v0, %v10953_v48 }
 0x339   :  { %9944 = vmatmul.msk.f32.gmra.mxu3 %vm54_vm1, %v2327_v44  ;;  %9814 = vmatmul.msk.f32.gmra.mxu1 %vm54_vm1, %v2861_v41 }
 0x33a   :  { %9749 = vmatmul.msk.f32.gmra.mxu0 %vm54_vm1, %v2328_v45 }
 0x33b   :  { %9880 = vmatmul.msk.f32.gmra.mxu2 %vm54_vm1, %v3396_v7  ;;  %v2331_v7 = vld [vmem:[#allocation2 + $0x181] sm:$0xff] }
 0x33c   :  { %v4206_v15 = vpop.f32.mrf.mxu3 }
 0x33d   :  { %v11473_v53 = vadd.f32 %v4206_v15, %v3848_v52  ;;  %v2864_v15 = vld [vmem:[#allocation2 + $0x172] sm:$0xff] }
 0x33e   :  { %v3678_v36 = vpop.f32.mrf.mxu2  ;;  %v3146_v54 = vpop.f32.mrf.mxu1 }
 0x33f   :  { %v3850_v11 = vadd.f32 %v3678_v36, %v3315_v21  ;;  %v2615_v13 = vpop.f32.mrf.mxu0  ;;  %v3316_v52 = vadd.f32 %v3146_v54, %v2782_v35  ;;  %v3399_v21 = vld [vmem:[#allocation2 + $0x188] sm:$0xff] }
 0x340   :  { %v2783_v48 = vadd.f32 %v2615_v13, %v10963_v61 }
 0x341   :  { %9945 = vmatmul.msk.f32.gmra.mxu3 %vm54_vm1, %v2328_v45  ;;  %9815 = vmatmul.msk.f32.gmra.mxu1 %vm54_vm1, %v2862_v4 }
 0x342   :  { %9750 = vmatmul.msk.f32.gmra.mxu0 %vm54_vm1, %v2329_v18 }
 0x343   :  { %9881 = vmatmul.msk.f32.gmra.mxu2 %vm54_vm1, %v3397_v33  ;;  %v2332_v33 = vld [vmem:[#allocation2 + $0x189] sm:$0xff] }
 0x344   :  { %v4209_v16 = vpop.f32.mrf.mxu3 }
 0x345   :  { %v11480_v23 = vadd.f32 %v4209_v16, %v3849_v63  ;;  %v2865_v16 = vld [vmem:[#allocation2 + $0x182] sm:$0xff] }
 0x346   :  { %v3681_v44 = vpop.f32.mrf.mxu2  ;;  %v3149_v2 = vpop.f32.mrf.mxu1 }
 0x347   :  { %v3851_v29 = vadd.f32 %v3681_v44, %v3316_v52  ;;  %v2618_v40 = vpop.f32.mrf.mxu0  ;;  %v3317_v63 = vadd.f32 %v3149_v2, %v2783_v48  ;;  %v3400_v52 = vld [vmem:[#allocation2 + $0x198] sm:$0xff] }
 0x348   :  { %v2784_v61 = vadd.f32 %v2618_v40, %v10973_v14 }
 0x349   :  { %9946 = vmatmul.msk.f32.gmra.mxu3 %vm54_vm1, %v2329_v18  ;;  %9816 = vmatmul.msk.f32.gmra.mxu1 %vm54_vm1, %v2863_v19 }
 0x34a   :  { %9751 = vmatmul.msk.f32.gmra.mxu0 %vm54_vm1, %v2330_v51 }
 0x34b   :  { %9882 = vmatmul.msk.f32.gmra.mxu2 %vm54_vm1, %v3398_v20  ;;  %v2333_v20 = vld [vmem:[#allocation2 + $0x1c9] sm:$0xff] }
 0x34c   :  { %v4212_v30 = vpop.f32.mrf.mxu3 }
 0x34d   :  { %v11487_v0 = vadd.f32 %v4212_v30, %v3850_v11  ;;  %v2866_v30 = vld [vmem:[#allocation2 + $0x18a] sm:$0xff] }
 0x34e   :  { %v3684_v45 = vpop.f32.mrf.mxu2  ;;  %v3152_v17 = vpop.f32.mrf.mxu1 }
 0x34f   :  { %v3852_v42 = vadd.f32 %v3684_v45, %v3317_v63  ;;  %v2621_v41 = vpop.f32.mrf.mxu0  ;;  %v3318_v11 = vadd.f32 %v3152_v17, %v2784_v61  ;;  %v3401_v63 = vld [vmem:[#allocation2 + $0x1a0] sm:$0xff]  ;;  %v2334_v61 = vld [vmem:[#allocation2 + $0x1d1] sm:$0xff] }
 0x350   :  { %v2785_v14 = vadd.f32 %v2621_v41, %v10983_v34  ;;  %v3934_v17 = vld [vmem:[#allocation2 + $0x199] sm:$0xff] }
 0x351   :  { %9947 = vmatmul.msk.f32.gmra.mxu3 %vm54_vm1, %v2330_v51  ;;  %9817 = vmatmul.msk.f32.gmra.mxu1 %vm54_vm1, %v2864_v15 }
 0x352   :  { %9752 = vmatmul.msk.f32.gmra.mxu0 %vm54_vm1, %v2331_v7 }
 0x353   :  { %9883 = vmatmul.msk.f32.gmra.mxu2 %vm54_vm1, %v3399_v21 }
 0x354   :  { %v4215_v36 = vpop.f32.mrf.mxu3 }
 0x355   :  { %v11494_v13 = vadd.f32 %v4215_v36, %v3851_v29 }
 0x356   :  { %v3687_v18 = vpop.f32.mrf.mxu2  ;;  %v3155_v35 = vpop.f32.mrf.mxu1 }
 0x357   :  { %v3853_v54 = vadd.f32 %v3687_v18, %v3318_v11  ;;  %v2624_v4 = vpop.f32.mrf.mxu0  ;;  %v3319_v29 = vadd.f32 %v3155_v35, %v2785_v14  ;;  %v2867_v11 = vld [vmem:[#allocation2 + $0x1ca] sm:$0xff]  ;;  %v3402_v18 = vld [vmem:[#allocation2 + $0x1e0] sm:$0xff] }
 0x358   :  { %v2786_v34 = vadd.f32 %v2624_v4, %v10993_v50 }
 0x359   :  { %9948 = vmatmul.msk.f32.gmra.mxu3 %vm54_vm1, %v2331_v7  ;;  %9818 = vmatmul.msk.f32.gmra.mxu1 %vm54_vm1, %v2865_v16  ;;  %v3935_v16 = vld [vmem:[#allocation2 + $0x1a1] sm:$0xff] }
 0x35a   :  { %9753 = vmatmul.msk.f32.gmra.mxu0 %vm54_vm1, %v2332_v33 }
 0x35b   :  { %9884 = vmatmul.msk.f32.gmra.mxu2 %vm54_vm1, %v3400_v52 }
 0x35c   :  { %v4218_v44 = vpop.f32.mrf.mxu3 }
 0x35d   :  { %v11501_v40 = vadd.f32 %v4218_v44, %v3852_v42  ;;  %v2335_v44 = vld [vmem:[#allocation2 + $0x1e1] sm:$0xff] }
 0x35e   :  { %v3690_v51 = vpop.f32.mrf.mxu2  ;;  %v3158_v48 = vpop.f32.mrf.mxu1 }
 0x35f   :  { %v3854_v2 = vadd.f32 %v3690_v51, %v3319_v29  ;;  %v2627_v19 = vpop.f32.mrf.mxu0  ;;  %v3320_v42 = vadd.f32 %v3158_v48, %v2786_v34  ;;  %v2868_v51 = vld [vmem:[#allocation2 + $0x1d2] sm:$0xff] }
 0x360   :  { %v2787_v50 = vadd.f32 %v2627_v19, %v11003_v1 }
 0x361   :  { %9949 = vmatmul.msk.f32.gmra.mxu3 %vm54_vm1, %v2332_v33  ;;  %9819 = vmatmul.msk.f32.gmra.mxu1 %vm54_vm1, %v2866_v30 }
 0x362   :  { %9754 = vmatmul.msk.f32.gmra.mxu0 %vm54_vm1, %v2333_v20  ;;  %v3403_v20 = vld [vmem:[#allocation2 + $0x1e8] sm:$0xff] }
 0x363   :  { %9885 = vmatmul.msk.f32.gmra.mxu2 %vm54_vm1, %v3401_v63 }
 0x364   :  { %v4221_v45 = vpop.f32.mrf.mxu3 }
 0x365   :  { %v11508_v41 = vadd.f32 %v4221_v45, %v3853_v54  ;;  %v2336_v45 = vld [vmem:[#allocation2 + $0x1e9] sm:$0xff] }
 0x366   :  { %v3693_v7 = vpop.f32.mrf.mxu2  ;;  %v3161_v36 = vpop.f32.mrf.mxu1 }
 0x367   :  { %v3855_v15 = vadd.f32 %v3693_v7, %v3320_v42  ;;  %v2630_v21 = vpop.f32.mrf.mxu0  ;;  %v3321_v4 = vadd.f32 %v3161_v36, %v2787_v50  ;;  %v2869_v7 = vld [vmem:[#allocation2 + $0x1e2] sm:$0xff]  ;;  %v2337_v50 = vld [vmem:[#allocation2 + $0x1f9] sm:$0xff] }
 0x368   :  { %v2788_v1 = vadd.f32 %v2630_v21, %v11013_v22 }
 0x369   :  { %9950 = vmatmul.msk.f32.gmra.mxu3 %vm54_vm1, %v3934_v17  ;;  %9820 = vmatmul.msk.f32.gmra.mxu1 %vm54_vm1, %v2867_v11  ;;  %v3404_v17 = vld [vmem:[#allocation2 + $0x1f8] sm:$0xff] }
 0x36a   :  { %9755 = vmatmul.msk.f32.gmra.mxu0 %vm54_vm1, %v2334_v61 }
 0x36b   :  { %9886 = vmatmul.msk.f32.gmra.mxu2 %vm54_vm1, %v3402_v18 }
 0x36c   :  { %v4224_v54 = vpop.f32.mrf.mxu3 }
 0x36d   :  { %v11515_v33 = vadd.f32 %v4224_v54, %v3854_v2 }
 0x36e   :  { %v3696_v35 = vpop.f32.mrf.mxu2  ;;  %v3164_v29 = vpop.f32.mrf.mxu1 }
 0x36f   :  { %v3856_v52 = vadd.f32 %v3696_v35, %v3321_v4  ;;  %v2633_v14 = vpop.f32.mrf.mxu0  ;;  %v3322_v19 = vadd.f32 %v3164_v29, %v2788_v1  ;;  %v2870_v4 = vld [vmem:[#allocation2 + $0x1ea] sm:$0xff]  ;;  %v3405_v35 = vld [vmem:[#allocation2 + $0x200] sm:$0xff] }
 0x370   :  { %v2789_v22 = vadd.f32 %v2633_v14, %v11023_v39 }
 0x371   :  { %9951 = vmatmul.msk.f32.gmra.mxu3 %vm54_vm1, %v3935_v16  ;;  %9821 = vmatmul.msk.f32.gmra.mxu1 %vm54_vm1, %v2868_v51 }
 0x372   :  { %9756 = vmatmul.msk.f32.gmra.mxu0 %vm54_vm1, %v2335_v44 }
 0x373   :  { %9887 = vmatmul.msk.f32.gmra.mxu2 %vm54_vm1, %v3403_v20  ;;  %v2338_v20 = vld [vmem:[#allocation2 + $0x201] sm:$0xff] }
 0x374   :  { %v4227_v2 = vpop.f32.mrf.mxu3 }
 0x375   :  { %v11522_v48 = vadd.f32 %v4227_v2, %v3855_v15  ;;  %v2871_v2 = vld [vmem:[#allocation2 + $0x1fa] sm:$0xff] }
 0x376   :  { %v3699_v30 = vpop.f32.mrf.mxu2  ;;  %v3167_v42 = vpop.f32.mrf.mxu1 }
 0x377   :  { %v3857_v63 = vadd.f32 %v3699_v30, %v3322_v19  ;;  %v2636_v34 = vpop.f32.mrf.mxu0  ;;  %v3323_v15 = vadd.f32 %v3167_v42, %v2789_v22  ;;  %v3406_v19 = vld [vmem:[#allocation2 + $0x210] sm:$0xff] }
 0x378   :  { %v2790_v39 = vadd.f32 %v2636_v34, %v11033_v56 }
 0x379   :  { %9952 = vmatmul.msk.f32.gmra.mxu3 %vm54_vm1, %v2335_v44  ;;  %9822 = vmatmul.msk.f32.gmra.mxu1 %vm54_vm1, %v2869_v7 }
 0x37a   :  { %9757 = vmatmul.msk.f32.gmra.mxu0 %vm54_vm1, %v2336_v45 }
 0x37b   :  { %9888 = vmatmul.msk.f32.gmra.mxu2 %vm54_vm1, %v3404_v17  ;;  %v2339_v17 = vld [vmem:[#allocation2 + $0x211] sm:$0xff] }
 0x37c   :  { %v4230_v21 = vpop.f32.mrf.mxu3 }
 0x37d   :  { %v11529_v61 = vadd.f32 %v4230_v21, %v3856_v52  ;;  %v2872_v21 = vld [vmem:[#allocation2 + $0x202] sm:$0xff] }
 0x37e   :  { %v3702_v36 = vpop.f32.mrf.mxu2  ;;  %v3170_v54 = vpop.f32.mrf.mxu1 }
 0x37f   :  { %v3858_v11 = vadd.f32 %v3702_v36, %v3323_v15  ;;  %v2639_v18 = vpop.f32.mrf.mxu0  ;;  %v3324_v52 = vadd.f32 %v3170_v54, %v2790_v39  ;;  %v3407_v15 = vld [vmem:[#allocation2 + $0x218] sm:$0xff] }
 0x380   :  { %v2791_v56 = vadd.f32 %v2639_v18, %v11043_v8 }
 0x381   :  { %9953 = vmatmul.msk.f32.gmra.mxu3 %vm54_vm1, %v2336_v45  ;;  %9823 = vmatmul.msk.f32.gmra.mxu1 %vm54_vm1, %v2870_v4 }
 0x382   :  { %9758 = vmatmul.msk.f32.gmra.mxu0 %vm54_vm1, %v2337_v50 }
 0x383   :  { %9889 = vmatmul.msk.f32.gmra.mxu2 %vm54_vm1, %v3405_v35  ;;  %v2340_v35 = vld [vmem:[#allocation2 + $0x219] sm:$0xff] }
 0x384   :  { %v4233_v16 = vpop.f32.mrf.mxu3 }
 0x385   :  { %v11536_v14 = vadd.f32 %v4233_v16, %v3857_v63  ;;  %v2873_v16 = vld [vmem:[#allocation2 + $0x212] sm:$0xff] }
 0x386   :  { %v3705_v44 = vpop.f32.mrf.mxu2  ;;  %v3173_v1 = vpop.f32.mrf.mxu1 }
 0x387   :  { %v3859_v29 = vadd.f32 %v3705_v44, %v3324_v52  ;;  %v2642_v51 = vpop.f32.mrf.mxu0  ;;  %v3325_v63 = vadd.f32 %v3173_v1, %v2791_v56  ;;  %v3408_v52 = vld [vmem:[#allocation2 + $0x228] sm:$0xff] }
 0x388   :  { %v2792_v8 = vadd.f32 %v2642_v51, %v11053_v31 }
 0x389   :  { %9954 = vmatmul.msk.f32.gmra.mxu3 %vm54_vm1, %v2337_v50  ;;  %9824 = vmatmul.msk.f32.gmra.mxu1 %vm54_vm1, %v2871_v2 }
 0x38a   :  { %9759 = vmatmul.msk.f32.gmra.mxu0 %vm54_vm1, %v2338_v20 }
 0x38b   :  { %9890 = vmatmul.msk.f32.gmra.mxu2 %vm54_vm1, %v3406_v19  ;;  %v2341_v19 = vld [vmem:[#allocation2 + $0x229] sm:$0xff] }
 0x38c   :  { %v4236_v30 = vpop.f32.mrf.mxu3 }
 0x38d   :  { %v11543_v34 = vadd.f32 %v4236_v30, %v3858_v11  ;;  %v2874_v30 = vld [vmem:[#allocation2 + $0x21a] sm:$0xff] }
 0x38e   :  { %v3708_v45 = vpop.f32.mrf.mxu2  ;;  %v3176_v22 = vpop.f32.mrf.mxu1 }
 0x38f   :  { %v3860_v42 = vadd.f32 %v3708_v45, %v3325_v63  ;;  %v2645_v7 = vpop.f32.mrf.mxu0  ;;  %v3326_v11 = vadd.f32 %v3176_v22, %v2792_v8  ;;  %v3409_v63 = vld [vmem:[#allocation2 + $0x230] sm:$0xff] }
 0x390   :  { %v2793_v31 = vadd.f32 %v2645_v7, %v11063_v49 }
 0x391   :  { %9955 = vmatmul.msk.f32.gmra.mxu3 %vm54_vm1, %v2338_v20  ;;  %9825 = vmatmul.msk.f32.gmra.mxu1 %vm54_vm1, %v2872_v21 }
 0x392   :  { %9760 = vmatmul.msk.f32.gmra.mxu0 %vm54_vm1, %v2339_v17 }
 0x393   :  { %9891 = vmatmul.msk.f32.gmra.mxu2 %vm54_vm1, %v3407_v15  ;;  %v2342_v15 = vld [vmem:[#allocation2 + $0x231] sm:$0xff] }
 0x394   :  { %v4239_v36 = vpop.f32.mrf.mxu3 }
 0x395   :  { %v11550_v18 = vadd.f32 %v4239_v36, %v3859_v29  ;;  %v2875_v36 = vld [vmem:[#allocation2 + $0x22a] sm:$0xff] }
 0x396   :  { %v3711_v50 = vpop.f32.mrf.mxu2  ;;  %v3179_v39 = vpop.f32.mrf.mxu1 }
 0x397   :  { %v3861_v54 = vadd.f32 %v3711_v50, %v3326_v11  ;;  %v2648_v4 = vpop.f32.mrf.mxu0  ;;  %v3327_v29 = vadd.f32 %v3179_v39, %v2793_v31  ;;  %v3410_v11 = vld [vmem:[#allocation2 + $0x240] sm:$0xff] }
 0x398   :  { %v2794_v49 = vadd.f32 %v2648_v4, %v11073_v5 }
 0x399   :  { %9956 = vmatmul.msk.f32.gmra.mxu3 %vm54_vm1, %v2339_v17  ;;  %9826 = vmatmul.msk.f32.gmra.mxu1 %vm54_vm1, %v2873_v16 }
 0x39a   :  { %9761 = vmatmul.msk.f32.gmra.mxu0 %vm54_vm1, %v2340_v35 }
 0x39b   :  { %9892 = vmatmul.msk.f32.gmra.mxu2 %vm54_vm1, %v3408_v52  ;;  %v2343_v52 = vld [vmem:[#allocation2 + $0x241] sm:$0xff] }
 0x39c   :  { %v4242_v44 = vpop.f32.mrf.mxu3 }
 0x39d   :  { %v11557_v51 = vadd.f32 %v4242_v44, %v3860_v42  ;;  %v2876_v44 = vld [vmem:[#allocation2 + $0x232] sm:$0xff] }
 0x39e   :  { %v3714_v20 = vpop.f32.mrf.mxu2  ;;  %v3182_v56 = vpop.f32.mrf.mxu1 }
 0x39f   :  { %v3862_v1 = vadd.f32 %v3714_v20, %v3327_v29  ;;  %v2651_v2 = vpop.f32.mrf.mxu0  ;;  %v3328_v42 = vadd.f32 %v3182_v56, %v2794_v49  ;;  %v3411_v29 = vld [vmem:[#allocation2 + $0x248] sm:$0xff] }
 0x3a0   :  { %v2795_v5 = vadd.f32 %v2651_v2, %v11083_v28 }
 0x3a1   :  { %9957 = vmatmul.msk.f32.gmra.mxu3 %vm54_vm1, %v2340_v35  ;;  %9827 = vmatmul.msk.f32.gmra.mxu1 %vm54_vm1, %v2874_v30 }
 0x3a2   :  { %9762 = vmatmul.msk.f32.gmra.mxu0 %vm54_vm1, %v2341_v19 }
 0x3a3   :  { %9893 = vmatmul.msk.f32.gmra.mxu2 %vm54_vm1, %v3409_v63  ;;  %v2344_v63 = vld [vmem:[#allocation2 + $0x249] sm:$0xff] }
 0x3a4   :  { %v4245_v45 = vpop.f32.mrf.mxu3 }
 0x3a5   :  { %v11564_v7 = vadd.f32 %v4245_v45, %v3861_v54  ;;  %v2877_v45 = vld [vmem:[#allocation2 + $0x242] sm:$0xff] }
 0x3a6   :  { %v3717_v17 = vpop.f32.mrf.mxu2  ;;  %v3185_v8 = vpop.f32.mrf.mxu1 }
 0x3a7   :  { %v3863_v22 = vadd.f32 %v3717_v17, %v3328_v42  ;;  %v2654_v21 = vpop.f32.mrf.mxu0  ;;  %v3329_v54 = vadd.f32 %v3185_v8, %v2795_v5  ;;  %v3412_v42 = vld [vmem:[#allocation2 + $0x258] sm:$0xff] }
 0x3a8   :  { %v2796_v28 = vadd.f32 %v2654_v21, %v11093_v47 }
 0x3a9   :  { %9958 = vmatmul.msk.f32.gmra.mxu3 %vm54_vm1, %v2341_v19  ;;  %9828 = vmatmul.msk.f32.gmra.mxu1 %vm54_vm1, %v2875_v36 }
 0x3aa   :  { %9763 = vmatmul.msk.f32.gmra.mxu0 %vm54_vm1, %v2342_v15 }
 0x3ab   :  { %9894 = vmatmul.msk.f32.gmra.mxu2 %vm54_vm1, %v3410_v11  ;;  %v2345_v11 = vld [vmem:[#allocation2 + $0x259] sm:$0xff] }
 0x3ac   :  { %v4248_v50 = vpop.f32.mrf.mxu3 }
 0x3ad   :  { %v11571_v4 = vadd.f32 %v4248_v50, %v3862_v1  ;;  %v2878_v50 = vld [vmem:[#allocation2 + $0x24a] sm:$0xff] }
 0x3ae   :  { %v3720_v35 = vpop.f32.mrf.mxu2  ;;  %v3188_v31 = vpop.f32.mrf.mxu1 }
 0x3af   :  { %v3864_v39 = vadd.f32 %v3720_v35, %v3329_v54  ;;  %v2657_v16 = vpop.f32.mrf.mxu0  ;;  %v3330_v1 = vadd.f32 %v3188_v31, %v2796_v28  ;;  %v3413_v54 = vld [vmem:[#allocation2 + $0x260] sm:$0xff] }
 0x3b0   :  { %v2797_v47 = vadd.f32 %v2657_v16, %v11103_v6 }
 0x3b1   :  { %9959 = vmatmul.msk.f32.gmra.mxu3 %vm54_vm1, %v2342_v15  ;;  %9829 = vmatmul.msk.f32.gmra.mxu1 %vm54_vm1, %v2876_v44 }
 0x3b2   :  { %9764 = vmatmul.msk.f32.gmra.mxu0 %vm54_vm1, %v2343_v52 }
 0x3b3   :  { %9895 = vmatmul.msk.f32.gmra.mxu2 %vm54_vm1, %v3411_v29  ;;  %v2346_v29 = vld [vmem:[#allocation2 + $0x261] sm:$0xff] }
 0x3b4   :  { %v4251_v20 = vpop.f32.mrf.mxu3 }
 0x3b5   :  { %v11578_v2 = vadd.f32 %v4251_v20, %v3863_v22  ;;  %v2879_v20 = vld [vmem:[#allocation2 + $0x25a] sm:$0xff] }
 0x3b6   :  { %v3723_v19 = vpop.f32.mrf.mxu2  ;;  %v3191_v49 = vpop.f32.mrf.mxu1 }
 0x3b7   :  { %v3865_v56 = vadd.f32 %v3723_v19, %v3330_v1  ;;  %v2660_v30 = vpop.f32.mrf.mxu0  ;;  %v3331_v22 = vadd.f32 %v3191_v49, %v2797_v47  ;;  %v3414_v1 = vld [vmem:[#allocation2 + $0x270] sm:$0xff] }
 0x3b8   :  { %v2798_v6 = vadd.f32 %v2660_v30, %v11113_v32 }
 0x3b9   :  { %9960 = vmatmul.msk.f32.gmra.mxu3 %vm54_vm1, %v2343_v52  ;;  %9830 = vmatmul.msk.f32.gmra.mxu1 %vm54_vm1, %v2877_v45 }
 0x3ba   :  { %9765 = vmatmul.msk.f32.gmra.mxu0 %vm54_vm1, %v2344_v63 }
 0x3bb   :  { %9896 = vmatmul.msk.f32.gmra.mxu2 %vm54_vm1, %v3412_v42  ;;  %v2347_v42 = vld [vmem:[#allocation2 + $0x271] sm:$0xff] }
 0x3bc   :  { %v4254_v17 = vpop.f32.mrf.mxu3 }
 0x3bd   :  { %v11585_v21 = vadd.f32 %v4254_v17, %v3864_v39  ;;  %v2880_v17 = vld [vmem:[#allocation2 + $0x262] sm:$0xff] }
 0x3be   :  { %v3726_v15 = vpop.f32.mrf.mxu2  ;;  %v3194_v5 = vpop.f32.mrf.mxu1 }
 0x3bf   :  { %v3866_v8 = vadd.f32 %v3726_v15, %v3331_v22  ;;  %v2663_v36 = vpop.f32.mrf.mxu0  ;;  %v3332_v39 = vadd.f32 %v3194_v5, %v2798_v6  ;;  %v3415_v22 = vld [vmem:[#allocation2 + $0x278] sm:$0xff] }
 0x3c0   :  { %v2799_v32 = vadd.f32 %v2663_v36, %v11123_v60 }
 0x3c1   :  { %9961 = vmatmul.msk.f32.gmra.mxu3 %vm54_vm1, %v2344_v63  ;;  %9831 = vmatmul.msk.f32.gmra.mxu1 %vm54_vm1, %v2878_v50 }
 0x3c2   :  { %9766 = vmatmul.msk.f32.gmra.mxu0 %vm54_vm1, %v2345_v11 }
 0x3c3   :  { %9897 = vmatmul.msk.f32.gmra.mxu2 %vm54_vm1, %v3413_v54  ;;  %v2348_v54 = vld [vmem:[#allocation2 + $0x279] sm:$0xff] }
 0x3c4   :  { %v4257_v35 = vpop.f32.mrf.mxu3 }
 0x3c5   :  { %v11592_v16 = vadd.f32 %v4257_v35, %v3865_v56  ;;  %v2881_v35 = vld [vmem:[#allocation2 + $0x272] sm:$0xff] }
 0x3c6   :  { %v3729_v52 = vpop.f32.mrf.mxu2  ;;  %v3197_v28 = vpop.f32.mrf.mxu1 }
 0x3c7   :  { %v3867_v31 = vadd.f32 %v3729_v52, %v3332_v39  ;;  %v2666_v44 = vpop.f32.mrf.mxu0  ;;  %v3333_v56 = vadd.f32 %v3197_v28, %v2799_v32  ;;  %v3416_v39 = vld [vmem:[#allocation2 + $0x288] sm:$0xff] }
 0x3c8   :  { %v2800_v60 = vadd.f32 %v2666_v44, %v11133_v24 }
 0x3c9   :  { %9962 = vmatmul.msk.f32.gmra.mxu3 %vm54_vm1, %v2345_v11  ;;  %9832 = vmatmul.msk.f32.gmra.mxu1 %vm54_vm1, %v2879_v20 }
 0x3ca   :  { %9767 = vmatmul.msk.f32.gmra.mxu0 %vm54_vm1, %v2346_v29 }
 0x3cb   :  { %9898 = vmatmul.msk.f32.gmra.mxu2 %vm54_vm1, %v3414_v1  ;;  %v2349_v1 = vld [vmem:[#allocation2 + $0x289] sm:$0xff] }
 0x3cc   :  { %v4260_v19 = vpop.f32.mrf.mxu3 }
 0x3cd   :  { %v11599_v30 = vadd.f32 %v4260_v19, %v3866_v8  ;;  %v2882_v19 = vld [vmem:[#allocation2 + $0x27a] sm:$0xff] }
 0x3ce   :  { %v3732_v63 = vpop.f32.mrf.mxu2  ;;  %v3200_v47 = vpop.f32.mrf.mxu1 }
 0x3cf   :  { %v3868_v49 = vadd.f32 %v3732_v63, %v3333_v56  ;;  %v2669_v45 = vpop.f32.mrf.mxu0  ;;  %v3334_v8 = vadd.f32 %v3200_v47, %v2800_v60  ;;  %v3417_v56 = vld [vmem:[#allocation2 + $0x290] sm:$0xff] }
 0x3d0   :  { %v2801_v24 = vadd.f32 %v2669_v45, %v11143_v43 }
 0x3d1   :  { %9963 = vmatmul.msk.f32.gmra.mxu3 %vm54_vm1, %v2346_v29  ;;  %9833 = vmatmul.msk.f32.gmra.mxu1 %vm54_vm1, %v2880_v17 }
 0x3d2   :  { %9768 = vmatmul.msk.f32.gmra.mxu0 %vm54_vm1, %v2347_v42 }
 0x3d3   :  { %9899 = vmatmul.msk.f32.gmra.mxu2 %vm54_vm1, %v3415_v22  ;;  %v2350_v22 = vld [vmem:[#allocation2 + $0x291] sm:$0xff] }
 0x3d4   :  { %v4263_v15 = vpop.f32.mrf.mxu3 }
 0x3d5   :  { %v11606_v36 = vadd.f32 %v4263_v15, %v3867_v31  ;;  %v2883_v15 = vld [vmem:[#allocation2 + $0x28a] sm:$0xff] }
 0x3d6   :  { %v3735_v11 = vpop.f32.mrf.mxu2  ;;  %v3203_v6 = vpop.f32.mrf.mxu1 }
 0x3d7   :  { %v3869_v5 = vadd.f32 %v3735_v11, %v3334_v8  ;;  %v2672_v50 = vpop.f32.mrf.mxu0  ;;  %v3335_v31 = vadd.f32 %v3203_v6, %v2801_v24  ;;  %v3418_v8 = vld [vmem:[#allocation2 + $0x2a0] sm:$0xff] }
 0x3d8   :  { %v2802_v43 = vadd.f32 %v2672_v50, %v11153_v59 }
 0x3d9   :  { %9964 = vmatmul.msk.f32.gmra.mxu3 %vm54_vm1, %v2347_v42  ;;  %9834 = vmatmul.msk.f32.gmra.mxu1 %vm54_vm1, %v2881_v35 }
 0x3da   :  { %9769 = vmatmul.msk.f32.gmra.mxu0 %vm54_vm1, %v2348_v54 }
 0x3db   :  { %9900 = vmatmul.msk.f32.gmra.mxu2 %vm54_vm1, %v3416_v39  ;;  %v2351_v39 = vld [vmem:[#allocation2 + $0x2a1] sm:$0xff] }
 0x3dc   :  { %v4266_v52 = vpop.f32.mrf.mxu3 }
 0x3dd   :  { %v11613_v44 = vadd.f32 %v4266_v52, %v3868_v49  ;;  %v2884_v52 = vld [vmem:[#allocation2 + $0x292] sm:$0xff] }
 0x3de   :  { %v3738_v29 = vpop.f32.mrf.mxu2  ;;  %v3206_v32 = vpop.f32.mrf.mxu1 }
 0x3df   :  { %v3870_v28 = vadd.f32 %v3738_v29, %v3335_v31  ;;  %v2675_v20 = vpop.f32.mrf.mxu0  ;;  %v3336_v49 = vadd.f32 %v3206_v32, %v2802_v43  ;;  %v3419_v31 = vld [vmem:[#allocation2 + $0x2a8] sm:$0xff] }
 0x3e0   :  { %v2803_v59 = vadd.f32 %v2675_v20, %v11163_v38 }
 0x3e1   :  { %9965 = vmatmul.msk.f32.gmra.mxu3 %vm54_vm1, %v2348_v54  ;;  %9835 = vmatmul.msk.f32.gmra.mxu1 %vm54_vm1, %v2882_v19 }
 0x3e2   :  { %9770 = vmatmul.msk.f32.gmra.mxu0 %vm54_vm1, %v2349_v1 }
 0x3e3   :  { %9901 = vmatmul.msk.f32.gmra.mxu2 %vm54_vm1, %v3417_v56  ;;  %v2352_v56 = vld [vmem:[#allocation2 + $0x2a9] sm:$0xff] }
 0x3e4   :  { %v4269_v63 = vpop.f32.mrf.mxu3 }
 0x3e5   :  { %v11620_v45 = vadd.f32 %v4269_v63, %v3869_v5  ;;  %v2885_v63 = vld [vmem:[#allocation2 + $0x2a2] sm:$0xff] }
 0x3e6   :  { %v3741_v42 = vpop.f32.mrf.mxu2  ;;  %v3209_v60 = vpop.f32.mrf.mxu1 }
 0x3e7   :  { %v3871_v47 = vadd.f32 %v3741_v42, %v3336_v49  ;;  %v2678_v17 = vpop.f32.mrf.mxu0  ;;  %v3337_v5 = vadd.f32 %v3209_v60, %v2803_v59  ;;  %v3420_v49 = vld [vmem:[#allocation2 + $0x2b8] sm:$0xff] }
 0x3e8   :  { %v2804_v38 = vadd.f32 %v2678_v17, %v11173_v57  ;;  %v13876_v57 = vld [vmem:[#allocation12_spill] sm:$0xff]  ;;  %v2353_v59 = vld [vmem:[#allocation2 + $0x2b9] sm:$0xff] }
 0x3e9   :  { %9966 = vmatmul.msk.f32.gmra.mxu3 %vm54_vm1, %v2349_v1  ;;  %9836 = vmatmul.msk.f32.gmra.mxu1 %vm54_vm1, %v2883_v15 }
 0x3ea   :  { %9771 = vmatmul.msk.f32.gmra.mxu0 %vm54_vm1, %v2350_v22 }
 0x3eb   :  { %9902 = vmatmul.msk.f32.gmra.mxu2 %vm54_vm1, %v3418_v8 }
 0x3ec   :  { %v4272_v11 = vpop.f32.mrf.mxu3 }
 0x3ed   :  { %v11627_v50 = vadd.f32 %v4272_v11, %v3870_v28 }
 0x3ee   :  { %v3744_v54 = vpop.f32.mrf.mxu2  ;;  %v3212_v24 = vpop.f32.mrf.mxu1 }
 0x3ef   :  { %v3872_v6 = vadd.f32 %v3744_v54, %v3337_v5  ;;  %v2681_v35 = vpop.f32.mrf.mxu0  ;;  %v3338_v28 = vadd.f32 %v3212_v24, %v2804_v38  ;;  %v2886_v5 = vld [vmem:[#allocation2 + $0x2aa] sm:$0xff]  ;;  %v3421_v54 = vld [vmem:[#allocation2 + $0x2c0] sm:$0xff] }
 0x3f0   :  { %v2805_v42 = vadd.f32 %v2681_v35, %v13876_v57  ;;  %v13877_v35 = vld [vmem:[#allocation13_spill] sm:$0xff] }
 0x3f1   :  { %9967 = vmatmul.msk.f32.gmra.mxu3 %vm54_vm1, %v2350_v22  ;;  %9837 = vmatmul.msk.f32.gmra.mxu1 %vm54_vm1, %v2884_v52 }
 0x3f2   :  { %9772 = vmatmul.msk.f32.gmra.mxu0 %vm54_vm1, %v2351_v39 }
 0x3f3   :  { %9903 = vmatmul.msk.f32.gmra.mxu2 %vm54_vm1, %v3419_v31 }
 0x3f4   :  { %v4275_v29 = vpop.f32.mrf.mxu3 }
 0x3f5   :  { %v11634_v20 = vadd.f32 %v4275_v29, %v3871_v47 }
 0x3f6   :  { %v3747_v1 = vpop.f32.mrf.mxu2  ;;  %v3215_v43 = vpop.f32.mrf.mxu1 }
 0x3f7   :  { %v3873_v32 = vadd.f32 %v3747_v1, %v3338_v28  ;;  %v2684_v19 = vpop.f32.mrf.mxu0  ;;  %v3339_v47 = vadd.f32 %v3215_v43, %v2805_v42  ;;  %v2354_v28 = vld [vmem:[#allocation2 + $0x2c1] sm:$0xff] }
 0x3f8   :  { %v2887_v43 = vld [vmem:[#allocation2 + $0x2ba] sm:$0xff] }
 0x3f9   :  { %9968 = vmatmul.msk.f32.gmra.mxu3 %vm54_vm1, %v2351_v39  ;;  %9838 = vmatmul.msk.f32.gmra.mxu1 %vm54_vm1, %v2885_v63  ;;  %v2806_v39 = vadd.f32 %v2684_v19, %v13877_v35  ;;  %v3422_v63 = vld [vmem:[#allocation2 + $0x2d0] sm:$0xff]  ;;  %v13878_v19 = vld [vmem:[#allocation14_spill] sm:$0xff] }
 0x3fa   :  { %9773 = vmatmul.msk.f32.gmra.mxu0 %vm54_vm1, %v2352_v56 }
 0x3fb   :  { %9904 = vmatmul.msk.f32.gmra.mxu2 %vm54_vm1, %v3420_v49 }
 0x3fc   :  { %v4278_v17 = vpop.f32.mrf.mxu3 }
 0x3fd   :  { %v11641_v22 = vadd.f32 %v4278_v17, %v3872_v6 }
 0x3fe   :  { %v3750_v60 = vpop.f32.mrf.mxu2  ;;  %v3218_v11 = vpop.f32.mrf.mxu1 }
 0x3ff   :  { %v3874_v15 = vadd.f32 %v3750_v60, %v3339_v47  ;;  %v2687_v8 = vpop.f32.mrf.mxu0  ;;  %v3340_v6 = vadd.f32 %v3218_v11, %v2806_v39  ;;  %v2355_v60 = vld [vmem:[#allocation2 + $0x2d1] sm:$0xff] }
 0x401   :  { %9969 = vmatmul.msk.f32.gmra.mxu3 %vm54_vm1, %v2352_v56  ;;  %9839 = vmatmul.msk.f32.gmra.mxu1 %vm54_vm1, %v2886_v5  ;;  %v2807_v56 = vadd.f32 %v2687_v8, %v13878_v19  ;;  %v2888_v5 = vld [vmem:[#allocation2 + $0x2c2] sm:$0xff] }
 0x402   :  { %9774 = vmatmul.msk.f32.gmra.mxu0 %vm54_vm1, %v2353_v59  ;;  %v13879_v8 = vld [vmem:[#allocation15_spill] sm:$0xff] }
 0x403   :  { %9905 = vmatmul.msk.f32.gmra.mxu2 %vm54_vm1, %v3421_v54  ;;  %v3423_v54 = vld [vmem:[#allocation2 + $0x2d8] sm:$0xff]  ;;  %v3424_v19 = vld [vmem:[#allocation2 + $0x2e8] sm:$0xff] }
 0x404   :  { %v4281_v24 = vpop.f32.mrf.mxu3 }
 0x405   :  { %v11648_v52 = vadd.f32 %v4281_v24, %v3873_v32 }
 0x406   :  { %v3753_v31 = vpop.f32.mrf.mxu2  ;;  %v3221_v1 = vpop.f32.mrf.mxu1 }
 0x407   :  { %v3875_v38 = vadd.f32 %v3753_v31, %v3340_v6  ;;  %v2690_v29 = vpop.f32.mrf.mxu0  ;;  %v3341_v32 = vadd.f32 %v3221_v1, %v2807_v56  ;;  %v2356_v1 = vld [vmem:[#allocation2 + $0x2d9] sm:$0xff] }
 0x409   :  { %9970 = vmatmul.msk.f32.gmra.mxu3 %vm54_vm1, %v2353_v59  ;;  %9840 = vmatmul.msk.f32.gmra.mxu1 %vm54_vm1, %v2887_v43  ;;  %v2808_v59 = vadd.f32 %v2690_v29, %v13879_v8  ;;  %v13880_v29 = vld [vmem:[#allocation16_spill] sm:$0xff] }
 0x40a   :  { %9775 = vmatmul.msk.f32.gmra.mxu0 %vm54_vm1, %v2354_v28  ;;  %v3425_v8 = vld [vmem:[#allocation2 + $0x2f0] sm:$0xff] }
 0x40b   :  { %9906 = vmatmul.msk.f32.gmra.mxu2 %vm54_vm1, %v3422_v63  ;;  %v2889_v63 = vld [vmem:[#allocation2 + $0x2d2] sm:$0xff] }
 0x40c   :  { %v4284_v49 = vpop.f32.mrf.mxu3 }
 0x40d   :  { %v11655_v57 = vadd.f32 %v4284_v49, %v3874_v15 }
 0x40e   :  { %v3756_v42 = vpop.f32.mrf.mxu2  ;;  %v3224_v11 = vpop.f32.mrf.mxu1 }
 0x40f   :  { %v3876_v17 = vadd.f32 %v3756_v42, %v3341_v32  ;;  %v2693_v47 = vpop.f32.mrf.mxu0  ;;  %v3342_v15 = vadd.f32 %v3224_v11, %v2808_v59 }
 0x411   :  { %9971 = vmatmul.msk.f32.gmra.mxu3 %vm54_vm1, %v2354_v28  ;;  %9841 = vmatmul.msk.f32.gmra.mxu1 %vm54_vm1, %v2888_v5  ;;  %v2809_v28 = vadd.f32 %v2693_v47, %v13880_v29  ;;  %v2357_v5 = vld [vmem:[#allocation2 + $0x2e9] sm:$0xff]  ;;  %v13881_v47 = vld [vmem:[#allocation17_spill] sm:$0xff] }
 0x412   :  { %9776 = vmatmul.msk.f32.gmra.mxu0 %vm54_vm1, %v2355_v60  ;;  %v2891_v29 = vld [vmem:[#allocation2 + $0x2ea] sm:$0xff] }
 0x413   :  { %9907 = vmatmul.msk.f32.gmra.mxu2 %vm54_vm1, %v3423_v54  ;;  %v2890_v54 = vld [vmem:[#allocation2 + $0x2da] sm:$0xff] }
 0x414   :  { %v4287_v35 = vpop.f32.mrf.mxu3 }
 0x415   :  { %v11662_v39 = vadd.f32 %v4287_v35, %v3875_v38 }
 0x416   :  { %v3759_v24 = vpop.f32.mrf.mxu2  ;;  %v3227_v43 = vpop.f32.mrf.mxu1 }
 0x417   :  { %v3877_v6 = vadd.f32 %v3759_v24, %v3342_v15  ;;  %v2696_v31 = vpop.f32.mrf.mxu0  ;;  %v3343_v38 = vadd.f32 %v3227_v43, %v2809_v28 }
 0x418   :  { %v2810_v59 = vadd.f32 %v2696_v31, %v13881_v47  ;;  %v3428_v47 = vld [vmem:[#allocation2 + $0x318] sm:$0xff] }
 0x419   :  { %9972 = vmatmul.msk.f32.gmra.mxu3 %vm54_vm1, %v2355_v60  ;;  %9842 = vmatmul.msk.f32.gmra.mxu1 %vm54_vm1, %v2889_v63 }
 0x41a   :  { %9777 = vmatmul.msk.f32.gmra.mxu0 %vm54_vm1, %v2356_v1 }
 0x41b   :  { %9908 = vmatmul.msk.f32.gmra.mxu2 %vm54_vm1, %v3424_v19  ;;  %v2358_v19 = vld [vmem:[#allocation2 + $0x2f1] sm:$0xff] }
 0x41c   :  { %v4290_v56 = vpop.f32.mrf.mxu3 }
 0x41d   :  { %v11669_v49 = vadd.f32 %v4290_v56, %v3876_v17  ;;  %v2359_v56 = vld [vmem:[#allocation2 + $0x301] sm:$0xff] }
 0x41e   :  { %v3762_v32 = vpop.f32.mrf.mxu2  ;;  %v3230_v60 = vpop.f32.mrf.mxu1 }
 0x41f   :  { %v3878_v42 = vadd.f32 %v3762_v32, %v3343_v38  ;;  %v11671_v11 = vpop.f32.mrf.mxu0  ;;  %v3344_v35 = vadd.f32 %v3230_v60, %v2810_v59  ;;  %v2892_v38 = vld [vmem:[#allocation2 + $0x2f2] sm:$0xff]  ;;  %v3427_v32 = vld [vmem:[#allocation2 + $0x308] sm:$0xff] }
 0x420   :  { %v2893_v60 = vld [vmem:[#allocation2 + $0x302] sm:$0xff] }
 0x421   :  { %9973 = vmatmul.msk.f32.gmra.mxu3 %vm54_vm1, %v2356_v1  ;;  %9843 = vmatmul.msk.f32.gmra.mxu1 %vm54_vm1, %v2890_v54  ;;  %v3426_v1 = vld [vmem:[#allocation2 + $0x300] sm:$0xff] }
 0x422   :  { %9778 = vmatmul.msk.f32.gmra.mxu0 %vm54_vm1, %v2357_v5 }
 0x423   :  { %9909 = vmatmul.msk.f32.gmra.mxu2 %vm54_vm1, %v3425_v8 }
 0x424   :  { %v4293_v17 = vpop.f32.mrf.mxu3 }
 0x425   :  { %v11678_v15 = vadd.f32 %v4293_v17, %v3877_v6  ;;  %v2361_v17 = vld [vmem:[#allocation2 + $0x319] sm:$0xff] }
 0x426   :  { %v3765_v24 = vpop.f32.mrf.mxu2 }
 0x427   :  { %v3879_v43 = vadd.f32 %v3765_v24, %v3344_v35  ;;  %v11680_v63 = vpop.f32.mrf.mxu0  ;;  %v2894_v35 = vld [vmem:[#allocation2 + $0x30a] sm:$0xff]  ;;  %v3429_v24 = vld [vmem:[#allocation2 + $0x320] sm:$0xff] }
 0x429   :  { %9974 = vmatmul.msk.f32.gmra.mxu3 %vm54_vm1, %v2357_v5  ;;  %9844 = vmatmul.msk.f32.gmra.mxu1 %vm54_vm1, %v2891_v29  ;;  %v2895_v29 = vld [vmem:[#allocation2 + $0x31a] sm:$0xff] }
 0x42a   :  { %9779 = vmatmul.msk.f32.gmra.mxu0 %vm54_vm1, %v2358_v19 }
 0x42b   :  { %9910 = vmatmul.msk.f32.gmra.mxu2 %vm54_vm1, %v3426_v1  ;;  %v3430_v1 = vld [vmem:[#allocation2 + $0x330] sm:$0xff] }
 0x42c   :  { %v4296_v31 = vpop.f32.mrf.mxu3 }
 0x42d   :  { %v11686_v28 = vadd.f32 %v4296_v31, %v3878_v42  ;;  %v2360_v42 = vld [vmem:[#allocation2 + $0x309] sm:$0xff]  ;;  %v6406_v31 = vld [vmem:[%s13823_s4] sm:$0xff] }
 0x42e   :  { %6601 = vmatpush.msra.mxu2 %v6406_v31  ;;  %v3433_v31 = vld [vmem:[#allocation2 + $0x350] sm:$0xff] }
 0x42f   :  { %v11688_v6 = vpop.f32.mrf.mxu0 }
 0x431   :  { %9975 = vmatmul.msk.f32.gmra.mxu3 %vm54_vm1, %v2358_v19  ;;  %9845 = vmatmul.msk.f32.gmra.mxu1 %vm54_vm1, %v2892_v38  ;;  %v2362_v19 = vld [vmem:[#allocation2 + $0x321] sm:$0xff] }
 0x432   :  { %9780 = vmatmul.msk.f32.gmra.mxu0 %vm54_vm1, %v2359_v56  ;;  %v10050_v38 = vld [vmem:[%s13823_s4 + $0x8] sm:$0xff] }
 0x433   :  { %9911 = vmatmul.msk.f32.gmra.mxu2 %vm54_vm1, %v3427_v32  ;;  %6488 = vmatpush.msra.mxu1 %v10050_v38 }
 0x434   :  { %v4299_v5 = vpop.f32.mrf.mxu3 }
 0x435   :  { %v11694_v54 = vadd.f32 %v4299_v5, %v3879_v43  ;;  %v2363_v5 = vld [vmem:[#allocation2 + $0x331] sm:$0xff] }
 0x437   :  { %v11696_v8 = vpop.f32.mrf.mxu0 }
 0x439   :  { %9976 = vmatmul.msk.f32.gmra.mxu3 %vm54_vm1, %v2359_v56  ;;  %9846 = vmatmul.msk.f32.gmra.mxu1 %vm54_vm1, %v2893_v60  ;;  %v10083_v56 = vld [vmem:[%s13823_s4 + $0x10] sm:$0xff]  ;;  %v3431_v60 = vld [vmem:[#allocation2 + $0x338] sm:$0xff] }
 0x43a   :  { %9781 = vmatmul.msk.f32.gmra.mxu0 %vm54_vm1, %v2360_v42  ;;  %6732 = vmatpush.msrb.mxu3 %v10083_v56  ;;  %v3966_v56 = vld [vmem:[#allocation2 + $0x349] sm:$0xff] }
 0x43b   :  { %9912 = vmatmul.msk.f32.gmra.mxu2 %vm54_vm1, %v3428_v47 }
 0x43f   :  { %v11702_v59 = vpop.f32.mrf.mxu0 }
 0x441   :  { %9977 = vmatmul.msk.f32.gmra.mxu3 %vm54_vm1, %v2360_v42  ;;  %9847 = vmatmul.msk.f32.gmra.mxu1 %vm54_vm1, %v2894_v35  ;;  %v2896_v42 = vld [vmem:[#allocation2 + $0x322] sm:$0xff]  ;;  %v2897_v35 = vld [vmem:[#allocation2 + $0x332] sm:$0xff] }
 0x442   :  { %9782 = vmatmul.msk.f32.gmra.mxu0 %vm54_vm1, %v2361_v17 }
 0x443   :  { %9913 = vmatmul.msk.f32.gmra.mxu2 %vm54_vm1, %v3429_v24  ;;  %v3432_v24 = vld [vmem:[#allocation2 + $0x348] sm:$0xff] }
 0x447   :  { %v11708_v43 = vpop.f32.mrf.mxu0 }
 0x448   :  { %13882 = vst [vmem:[#allocation12_spill] sm:$0xff] %v11708_v43 }
 0x449   :  { %9978 = vmatmul.msk.f32.gmra.mxu3 %vm54_vm1, %v2361_v17  ;;  %9848 = vmatmul.msk.f32.gmra.mxu1 %vm54_vm1, %v2895_v29  ;;  %v2364_v17 = vld [vmem:[#allocation2 + $0x339] sm:$0xff] }
 0x44a   :  { %9783 = vmatmul.msk.f32.gmra.mxu0 %vm54_vm1, %v2362_v19  ;;  %v4438_v29 = vld [vmem:[#allocation2 + $0x32] sm:$0xff] }
 0x44b   :  { %9914 = vmatmul.msk.f32.gmra.mxu2 %vm54_vm1, %v3430_v1  ;;  %v2898_v1 = vld [vmem:[#allocation2 + $0x33a] sm:$0xff] }
 0x44f   :  { %v11723_v32 = vpop.f32.mrf.mxu0 }
 0x450   :  { %13883 = vst [vmem:[#allocation13_spill] sm:$0xff] %v11723_v32 }
 0x451   :  { %9979 = vmatmul.msk.f32.gmra.mxu3 %vm54_vm1, %v2362_v19  ;;  %9849 = vmatmul.msk.f32.gmra.mxu1 %vm54_vm1, %v2896_v42  ;;  %v3967_v42 = vld [vmem:[#allocation2 + $0x351] sm:$0xff] }
 0x452   :  { %9784 = vmatmul.msk.f32.gmra.mxu0 %vm54_vm1, %v2363_v5 }
 0x453   :  { %9915 = vmatmul.msk.f32.gmra.mxu2 %vm54_vm1, %v3431_v60 }
 0x457   :  { %v11729_v47 = vpop.f32.mrf.mxu0 }
 0x458   :  { %13884 = vst [vmem:[#allocation14_spill] sm:$0xff] %v11729_v47 }
 0x459   :  { %9980 = vmatmul.msk.f32.gmra.mxu3 %vm54_vm1, %v2363_v5  ;;  %9850 = vmatmul.msk.f32.gmra.mxu1 %vm54_vm1, %v2897_v35  ;;  %v4439_v5 = vld [vmem:[#allocation2 + $0x3a] sm:$0xff]  ;;  %v4440_v35 = vld [vmem:[#allocation2 + $0x4a] sm:$0xff] }
 0x45a   :  { %9785 = vmatmul.msk.f32.gmra.mxu0 %vm54_vm1, %v2364_v17 }
 0x45b   :  { %9916 = vmatmul.msk.f32.gmra.mxu2 %vm54_vm1, %v3432_v24  ;;  %v4441_v24 = vld [vmem:[#allocation2 + $0x52] sm:$0xff] }
 0x45f   :  { %v11735_v19 = vpop.f32.mrf.mxu0 }
 0x460   :  { %13885 = vst [vmem:[#allocation15_spill] sm:$0xff] %v11735_v19 }
 0x461   :  { %9981 = vmatmul.msk.f32.gmra.mxu3 %vm54_vm1, %v2364_v17  ;;  %9851 = vmatmul.msk.f32.gmra.mxu1 %vm54_vm1, %v2898_v1  ;;  %v4442_v1 = vld [vmem:[#allocation2 + $0x62] sm:$0xff] }
 0x462   :  { %9986 = vmatmul.msk.f32.vlgmr.msra.gmra.mxu0 %vm54_vm1, %v4438_v29 }
 0x463   :  { %9917 = vmatmul.msk.f32.gmra.mxu2 %vm54_vm1, %v3433_v31 }
 0x467   :  { %v11741_v38 = vpop.f32.mrf.mxu0 }
 0x468   :  { %13886 = vst [vmem:[#allocation16_spill] sm:$0xff] %v11741_v38 }
 0x469   :  { %9982 = vmatmul.msk.f32.gmra.mxu3 %vm54_vm1, %v3966_v56  ;;  %v4443_v56 = vld [vmem:[#allocation2 + $0x6a] sm:$0xff] }
 0x46a   :  { %9987 = vmatmul.msk.f32.gmra.mxu0 %vm54_vm1, %v4439_v5 }
 0x46f   :  { %v11745_v60 = vpop.f32.mrf.mxu0 }
 0x470   :  { %13887 = vst [vmem:[#allocation17_spill] sm:$0xff] %v11745_v60 }
 0x471   :  { %9983 = vmatmul.msk.f32.gmra.mxu3 %vm54_vm1, %v3967_v42  ;;  %v4444_v42 = vld [vmem:[#allocation2 + $0x7a] sm:$0xff] }
 0x472   :  { %9988 = vmatmul.msk.f32.gmra.mxu0 %vm54_vm1, %v4440_v35 }
 0x477   :  { %v11749_v17 = vpop.f32.mrf.mxu0 }
 0x478   :  { %13888 = vst [vmem:[#allocation42_spill] sm:$0xff] %v11749_v17 }
 0x47a   :  { %9989 = vmatmul.msk.f32.gmra.mxu0 %vm54_vm1, %v4441_v24 }
 0x47f   :  { %v11752_v29 = vpop.f32.mrf.mxu0 }
 0x480   :  { %13889 = vst [vmem:[#allocation43_spill] sm:$0xff] %v11752_v29 }
 0x482   :  { %9990 = vmatmul.msk.f32.gmra.mxu0 %vm54_vm1, %v4442_v1 }
 0x487   :  { %v11755_v31 = vpop.f32.mrf.mxu0 }
 0x488   :  { %13890 = vst [vmem:[#allocation44_spill] sm:$0xff] %v11755_v31  ;;  %v4455_v31 = vld [vmem:[#allocation2 + $0xfa] sm:$0xff] }
 0x48a   :  { %9991 = vmatmul.msk.f32.gmra.mxu0 %vm54_vm1, %v4443_v56 }
 0x48f   :  { %v11758_v5 = vpop.f32.mrf.mxu0 }
 0x490   :  { %13891 = vst [vmem:[#allocation45_spill] sm:$0xff] %v11758_v5 }
 0x492   :  { %9992 = vmatmul.msk.f32.gmra.mxu0 %vm54_vm1, %v4444_v42 }
 0x497   :  { %v11761_v35 = vpop.f32.mrf.mxu0 }
 0x498   :  { %13892 = vst [vmem:[#allocation46_spill] sm:$0xff] %v11761_v35  ;;  %v4449_v35 = vld [vmem:[#allocation2 + $0xb2] sm:$0xff] }
 0x49a   :  { %9993 = vmatmul.msk.f32.gmra.mxu0 %vm54_vm1, %v4445_v58 }
 0x49f   :  { %v11764_v24 = vpop.f32.mrf.mxu0 }
 0x4a0   :  { %13893 = vst [vmem:[#allocation47_spill] sm:$0xff] %v11764_v24  ;;  %v4450_v24 = vld [vmem:[#allocation2 + $0xc2] sm:$0xff] }
 0x4a2   :  { %9994 = vmatmul.msk.f32.gmra.mxu0 %vm54_vm1, %v4446_v46 }
 0x4a7   :  { %v11767_v1 = vpop.f32.mrf.mxu0 }
 0x4a8   :  { %13894 = vst [vmem:[#allocation48_spill] sm:$0xff] %v11767_v1  ;;  %v4451_v1 = vld [vmem:[#allocation2 + $0xca] sm:$0xff] }
 0x4aa   :  { %9995 = vmatmul.msk.f32.gmra.mxu0 %vm54_vm1, %v4447_v10  ;;  %v13899_v10 = vmov 0.0  }
 0x4ab   :  { %6262 = vst.msk [vmem:[#allocation5] sm:$0xff] %vm5172_vm3, %v13899_v10 }
 0x4ac   :  { %6265 = vst.msk [vmem:[#allocation5 + $0x10] sm:$0xff] %vm5172_vm3, %v13899_v10 }
 0x4ad   :  { %6267 = vst.msk [vmem:[#allocation5 + $0x20] sm:$0xff] %vm5172_vm3, %v13899_v10 }
 0x4ae   :  { %6269 = vst.msk [vmem:[#allocation5 + $0x30] sm:$0xff] %vm5172_vm3, %v13899_v10 }
 0x4af   :  { %v11770_v56 = vpop.f32.mrf.mxu0  ;;  %6271 = vst.msk [vmem:[#allocation5 + $0x40] sm:$0xff] %vm5172_vm3, %v13899_v10 }
 0x4b0   :  { %13895 = vst [vmem:[#allocation49_spill] sm:$0xff] %v11770_v56 }
 0x4b1   :  { %6273 = vst.msk [vmem:[#allocation5 + $0x50] sm:$0xff] %vm5172_vm3, %v13899_v10 }
 0x4b2   :  { %9996 = vmatmul.msk.f32.gmra.mxu0 %vm54_vm1, %v4448_v9  ;;  %6275 = vst.msk [vmem:[#allocation5 + $0x60] sm:$0xff] %vm5172_vm3, %v13899_v10 }
 0x4b3   :  { %6277 = vst.msk [vmem:[#allocation5 + $0x70] sm:$0xff] %vm5172_vm3, %v13899_v10 }
 0x4b4   :  { %6279 = vst.msk [vmem:[#allocation5 + $0x80] sm:$0xff] %vm5172_vm3, %v13899_v10 }
 0x4b5   :  { %6281 = vst.msk [vmem:[#allocation5 + $0x90] sm:$0xff] %vm5172_vm3, %v13899_v10 }
 0x4b6   :  { %6283 = vst.msk [vmem:[#allocation5 + $0xa0] sm:$0xff] %vm5172_vm3, %v13899_v10 }
 0x4b7   :  { %v11773_v42 = vpop.f32.mrf.mxu0  ;;  %6285 = vst.msk [vmem:[#allocation5 + $0xb0] sm:$0xff] %vm5172_vm3, %v13899_v10 }
 0x4b8   :  { %13896 = vst [vmem:[#allocation50_spill] sm:$0xff] %v11773_v42 }
 0x4b9   :  { %6287 = vst.msk [vmem:[#allocation5 + $0xc0] sm:$0xff] %vm5172_vm3, %v13899_v10 }
 0x4ba   :  { %9997 = vmatmul.msk.f32.gmra.mxu0 %vm54_vm1, %v4449_v35  ;;  %v4452_v35 = vld [vmem:[#allocation2 + $0xda] sm:$0xff]  ;;  %6289 = vst.msk [vmem:[#allocation5 + $0xd0] sm:$0xff] %vm5172_vm3, %v13899_v10 }
 0x4bb   :  { %6291 = vst.msk [vmem:[#allocation5 + $0xe0] sm:$0xff] %vm5172_vm3, %v13899_v10 }
 0x4bc   :  { %6293 = vst.msk [vmem:[#allocation5 + $0xf0] sm:$0xff] %vm5172_vm3, %v13899_v10 }
 0x4bd   :  { %6295 = vst.msk [vmem:[#allocation5 + $0x100] sm:$0xff] %vm5172_vm3, %v13899_v10 }
 0x4be   :  { %6297 = vst.msk [vmem:[#allocation5 + $0x110] sm:$0xff] %vm5172_vm3, %v13899_v10 }
 0x4bf   :  { %v11776_v58 = vpop.f32.mrf.mxu0  ;;  %6299 = vst.msk [vmem:[#allocation5 + $0x120] sm:$0xff] %vm5172_vm3, %v13899_v10 }
 0x4c0   :  { %13897 = vst [vmem:[#allocation51_spill] sm:$0xff] %v11776_v58  ;;  %v11837_v58 = vld [vmem:[%s13822_s3] ss:$0 sm:$0xff] }
 0x4c1   :  { %6301 = vst.msk [vmem:[#allocation5 + $0x130] sm:$0xff] %vm5172_vm3, %v13899_v10 }
 0x4c2   :  { %9998 = vmatmul.msk.f32.gmra.mxu0 %vm54_vm1, %v4450_v24  ;;  %6264 = vst.msk [vmem:[#allocation5 + $0x8] sm:$0x3] %vm6263_vm5, %v13899_v10 }
 0x4c3   :  { %6266 = vst.msk [vmem:[#allocation5 + $0x18] sm:$0x3] %vm6263_vm5, %v13899_v10 }
 0x4c4   :  { %6268 = vst.msk [vmem:[#allocation5 + $0x28] sm:$0x3] %vm6263_vm5, %v13899_v10 }
 0x4c5   :  { %6270 = vst.msk [vmem:[#allocation5 + $0x38] sm:$0x3] %vm6263_vm5, %v13899_v10 }
 0x4c6   :  { %6272 = vst.msk [vmem:[#allocation5 + $0x48] sm:$0x3] %vm6263_vm5, %v13899_v10 }
 0x4c7   :  { %v11779_v46 = vpop.f32.mrf.mxu0  ;;  %6274 = vst.msk [vmem:[#allocation5 + $0x58] sm:$0x3] %vm6263_vm5, %v13899_v10 }
 0x4c8   :  { %13898 = vst [vmem:[#allocation52_spill] sm:$0xff] %v11779_v46 }
 0x4c9   :  { %6276 = vst.msk [vmem:[#allocation5 + $0x68] sm:$0x3] %vm6263_vm5, %v13899_v10 }
 0x4ca   :  { %9999 = vmatmul.msk.f32.gmra.mxu0 %vm54_vm1, %v4451_v1  ;;  %v4453_v1 = vld [vmem:[#allocation2 + $0xe2] sm:$0xff]  ;;  %6278 = vst.msk [vmem:[#allocation5 + $0x78] sm:$0x3] %vm6263_vm5, %v13899_v10 }
 0x4cb   :  { %6280 = vst.msk [vmem:[#allocation5 + $0x88] sm:$0x3] %vm6263_vm5, %v13899_v10 }
 0x4cc   :  { %6282 = vst.msk [vmem:[#allocation5 + $0x98] sm:$0x3] %vm6263_vm5, %v13899_v10 }
 0x4cd   :  { %6284 = vst.msk [vmem:[#allocation5 + $0xa8] sm:$0x3] %vm6263_vm5, %v13899_v10 }
 0x4ce   :  { %6286 = vst.msk [vmem:[#allocation5 + $0xb8] sm:$0x3] %vm6263_vm5, %v13899_v10 }
 0x4cf   :  { %v11798_v9 = vpop.f32.mrf.mxu0  ;;  %6288 = vst.msk [vmem:[#allocation5 + $0xc8] sm:$0x3] %vm6263_vm5, %v13899_v10 }
 0x4d0   :  { %13900 = vst [vmem:[#allocation53_spill] sm:$0xff] %v11798_v9  ;;  %v4454_v9 = vld [vmem:[#allocation2 + $0xf2] sm:$0xff] }
 0x4d1   :  { %6290 = vst.msk [vmem:[#allocation5 + $0xd8] sm:$0x3] %vm6263_vm5, %v13899_v10 }
 0x4d2   :  { %10000 = vmatmul.msk.f32.gmra.mxu0 %vm54_vm1, %v4452_v35  ;;  %v11831_v35 = vld [vmem:[%s13821_s2] ss:$0 sm:$0xff]  ;;  %6292 = vst.msk [vmem:[#allocation5 + $0xe8] sm:$0x3] %vm6263_vm5, %v13899_v10 }
 0x4d3   :  { %6294 = vst.msk [vmem:[#allocation5 + $0xf8] sm:$0x3] %vm6263_vm5, %v13899_v10 }
 0x4d4   :  { %6296 = vst.msk [vmem:[#allocation5 + $0x108] sm:$0x3] %vm6263_vm5, %v13899_v10 }
 0x4d5   :  { %6298 = vst.msk [vmem:[#allocation5 + $0x118] sm:$0x3] %vm6263_vm5, %v13899_v10 }
 0x4d6   :  { %6300 = vst.msk [vmem:[#allocation5 + $0x128] sm:$0x3] %vm6263_vm5, %v13899_v10 }
 0x4d7   :  { %v11817_v24 = vpop.f32.mrf.mxu0  ;;  %6302 = vst.msk [vmem:[#allocation5 + $0x138] sm:$0x3] %vm6263_vm5, %v13899_v10 }
 0x4d8   :  { %13901 = vst [vmem:[#allocation54_spill] sm:$0xff] %v11817_v24 }
 0x4da   :  { %10001 = vmatmul.msk.f32.gmra.mxu0 %vm54_vm1, %v4453_v1 }
 0x4df   :  { %v4716_v24 = vpop.f32.mrf.mxu0 }
 0x4e0   :  { %v4908_v46 = vadd.f32 %v4716_v24, %v11417_v12 }
 0x4e2   :  { %v4976_v42 = vmul.f32 %v11831_v35, %v4908_v46  ;;  %10002 = vmatmul.msk.f32.gmra.mxu0 %vm54_vm1, %v4454_v9  ;;  %v4456_v46 = vld [vmem:[#allocation2 + $0x10a] sm:$0xff] }
 0x4e4   :  { %v5044_v1 = vadd.f32 %v11837_v58, %v4976_v42 }
 0x4e6   :  { %v5108_v56 = vmax.f32 %v5044_v1, 0.0 }
 0x4e7   :  { %v4719_v5 = vpop.f32.mrf.mxu0 }
 0x4e8   :  { %5173 = vst.msk [vmem:[#allocation3] sm:$0xff] %vm5172_vm3, %v5108_v56  ;;  %v4909_v29 = vadd.f32 %v4719_v5, %v11424_v3 }
 0x4ea   :  { %v4977_v12 = vmul.f32 %v11831_v35, %v4909_v29  ;;  %10003 = vmatmul.msk.f32.gmra.mxu0 %vm54_vm1, %v4455_v31 }
 0x4ec   :  { %v5045_v24 = vadd.f32 %v11837_v58, %v4977_v12 }
 0x4ee   :  { %v5109_v17 = vmax.f32 %v5045_v24, 0.0 }
 0x4ef   :  { %v5237_v60 = vld [vmem:[#allocation3] sm:$0x1]  ;;  %v5269_v9 = vld [vmem:[#allocation3 + $0x1] sm:$0x1]  ;;  %v5366_v38 = vld [vmem:[#allocation3 + $0x2] sm:$0x1]  ;;  %v4722_v42 = vpop.f32.mrf.mxu0 }
 0x4f0   :  { %v5301_v1 = vmax.f32 %v5237_v60, %v5269_v9  ;;  %v5398_v19 = vld [vmem:[#allocation3 + $0x3] sm:$0x1]  ;;  %v5494_v47 = vld [vmem:[#allocation3 + $0x4] sm:$0x1]  ;;  %v5526_v32 = vld [vmem:[#allocation3 + $0x5] sm:$0x1]  ;;  %v4910_v56 = vadd.f32 %v4722_v42, %v11431_v27 }
 0x4f1   :  { %v5430_v3 = vmax.f32 %v5366_v38, %v5398_v19  ;;  %v5558_v5 = vmax.f32 %v5494_v47, %v5526_v32  ;;  %v5622_v29 = vld [vmem:[#allocation3 + $0x6] sm:$0x1]  ;;  %v5654_v43 = vld [vmem:[#allocation3 + $0x7] sm:$0x1]  ;;  %5174 = vst.msk [vmem:[#allocation3 + $0x8] sm:$0xff] %vm5172_vm3, %v5109_v17  ;;  %v4457_v47 = vld [vmem:[#allocation2 + $0x112] sm:$0xff] }
 0x4f2   :  { %5334 = vst.msk [vmem:[#allocation4] sm:$0x1] %vm5333_vm4, %v5301_v1  ;;  %v5686_v31 = vmax.f32 %v5622_v29, %v5654_v43  ;;  %v4978_v12 = vmul.f32 %v11831_v35, %v4910_v56  ;;  %10004 = vmatmul.msk.f32.gmra.mxu0 %vm54_vm1, %v4456_v46 }
 0x4f3   :  { %5462 = vst.msk [vmem:[#allocation4 + $0x1] sm:$0x1] %vm5333_vm4, %v5430_v3 }
 0x4f4   :  { %5590 = vst.msk [vmem:[#allocation4 + $0x2] sm:$0x1] %vm5333_vm4, %v5558_v5  ;;  %v5046_v60 = vadd.f32 %v11837_v58, %v4978_v12  ;;  %v11866_v12 = vpop.f32.mrf.mxu1 }
 0x4f5   :  { %5718 = vst.msk [vmem:[#allocation4 + $0x3] sm:$0x1] %vm5333_vm4, %v5686_v31 }
 0x4f6   :  { %v5110_v27 = vmax.f32 %v5046_v60, 0.0 }
 0x4f7   :  { %v4725_v32 = vpop.f32.mrf.mxu0 }
 0x4f8   :  { %v5750_v43 = vld [vmem:[#allocation3 + $0x8] sm:$0x1]  ;;  %v5782_v19 = vld [vmem:[#allocation3 + $0x9] sm:$0x1]  ;;  %v5878_v38 = vld [vmem:[#allocation3 + $0xa] sm:$0x1]  ;;  %v4911_v17 = vadd.f32 %v4725_v32, %v11438_v55 }
 0x4f9   :  { %v5814_v24 = vmax.f32 %v5750_v43, %v5782_v19  ;;  %v5910_v46 = vld [vmem:[#allocation3 + $0xb] sm:$0x1]  ;;  %v6006_v9 = vld [vmem:[#allocation3 + $0xc] sm:$0x1]  ;;  %v6038_v42 = vld [vmem:[#allocation3 + $0xd] sm:$0x1]  ;;  %v11869_v19 = vpop.f32.mrf.mxu2 }
 0x4fa   :  { %v5942_v1 = vmax.f32 %v5878_v38, %v5910_v46  ;;  %v6070_v56 = vmax.f32 %v6006_v9, %v6038_v42  ;;  %v6134_v3 = vld [vmem:[#allocation3 + $0xe] sm:$0x1]  ;;  %v6166_v5 = vld [vmem:[#allocation3 + $0xf] sm:$0x1]  ;;  %5175 = vst.msk [vmem:[#allocation3 + $0x10] sm:$0xff] %vm5172_vm3, %v5110_v27  ;;  %v4979_v29 = vmul.f32 %v11831_v35, %v4911_v17  ;;  %10005 = vmatmul.msk.f32.gmra.mxu0 %vm54_vm1, %v4457_v47  ;;  %v6407_v32 = vld [vmem:[#allocation5 + $0x1] sm:$0xff]  ;;  %v11875_v17 = vpop.f32.mrf.mxu3 }
 0x4fb   :  { %5846 = vst.msk [vmem:[#allocation4 + $0x4] sm:$0x1] %vm5333_vm4, %v5814_v24  ;;  %v6198_v31 = vmax.f32 %v6134_v3, %v6166_v5  ;;  %v6390_v27 = vld [vmem:[#allocation5] sm:$0xff]  ;;  %10051 = vmatmul.msk.f32.vlgmr.msra.gmra.mxu1 %vm5172_vm3, %v6407_v32 }
 0x4fc   :  { %5974 = vst.msk [vmem:[#allocation4 + $0x5] sm:$0x1] %vm5333_vm4, %v5942_v1  ;;  %v5047_v55 = vadd.f32 %v11837_v58, %v4979_v29  ;;  %v6651_v43 = vld [vmem:[#allocation5 + $0x2] sm:$0xff]  ;;  %10067 = vmatmul.msk.f32.vlgmr.msra.gmra.mxu2 %vm5172_vm3, %v6390_v27 }
 0x4fd   :  { %6102 = vst.msk [vmem:[#allocation4 + $0x6] sm:$0x1] %vm5333_vm4, %v6070_v56  ;;  %v4458_v38 = vld [vmem:[#allocation2 + $0x122] sm:$0xff]  ;;  %10084 = vmatmul.msk.f32.vlgmr.msrb.gmra.mxu3 %vm5172_vm3, %v6651_v43  ;;  %v4459_v43 = vld [vmem:[#allocation2 + $0x12a] sm:$0xff] }
 0x4fe   :  { %6230 = vst.msk [vmem:[#allocation4 + $0x7] sm:$0x1] %vm5333_vm4, %v6198_v31  ;;  %v5111_v60 = vmax.f32 %v5047_v55, 0.0 }
 0x4ff   :  { %v4728_v47 = vpop.f32.mrf.mxu0 }
 0x500   :  { %5176 = vst.msk [vmem:[#allocation3 + $0x18] sm:$0xff] %vm5172_vm3, %v5111_v60  ;;  %v4912_v24 = vadd.f32 %v4728_v47, %v11445_v62 }
 0x501   :  { %v5238_v46 = vld [vmem:[#allocation3 + $0x10] sm:$0x1]  ;;  %v5270_v9 = vld [vmem:[#allocation3 + $0x11] sm:$0x1]  ;;  %v5367_v42 = vld [vmem:[#allocation3 + $0x12] sm:$0x1] }
 0x502   :  { %v5302_v1 = vmax.f32 %v5238_v46, %v5270_v9  ;;  %v5399_v56 = vld [vmem:[#allocation3 + $0x13] sm:$0x1]  ;;  %v5495_v3 = vld [vmem:[#allocation3 + $0x14] sm:$0x1]  ;;  %v5527_v5 = vld [vmem:[#allocation3 + $0x15] sm:$0x1]  ;;  %v4980_v29 = vmul.f32 %v11831_v35, %v4912_v24  ;;  %10006 = vmatmul.msk.f32.gmra.mxu0 %vm54_vm1, %v4458_v38 }
 0x503   :  { %v5431_v31 = vmax.f32 %v5367_v42, %v5399_v56  ;;  %v5559_v55 = vmax.f32 %v5495_v3, %v5527_v5  ;;  %v5623_v32 = vld [vmem:[#allocation3 + $0x16] sm:$0x1]  ;;  %v5655_v27 = vld [vmem:[#allocation3 + $0x17] sm:$0x1] }
 0x504   :  { %5335 = vst.msk [vmem:[#allocation4 + $0x8] sm:$0x1] %vm5333_vm4, %v5302_v1  ;;  %v5687_v62 = vmax.f32 %v5623_v32, %v5655_v27  ;;  %v5048_v60 = vadd.f32 %v11837_v58, %v4980_v29 }
 0x505   :  { %5463 = vst.msk [vmem:[#allocation4 + $0x9] sm:$0x1] %vm5333_vm4, %v5431_v31 }
 0x506   :  { %5591 = vst.msk [vmem:[#allocation4 + $0xa] sm:$0x1] %vm5333_vm4, %v5559_v55  ;;  %v5112_v27 = vmax.f32 %v5048_v60, 0.0 }
 0x507   :  { %5719 = vst.msk [vmem:[#allocation4 + $0xb] sm:$0x1] %vm5333_vm4, %v5687_v62  ;;  %v5751_v47 = vld [vmem:[#allocation3 + $0x18] sm:$0x1]  ;;  %v5783_v38 = vld [vmem:[#allocation3 + $0x19] sm:$0x1]  ;;  %v4731_v24 = vpop.f32.mrf.mxu0 }
 0x508   :  { %v5815_v46 = vmax.f32 %v5751_v47, %v5783_v38  ;;  %v5879_v9 = vld [vmem:[#allocation3 + $0x1a] sm:$0x1]  ;;  %v5911_v42 = vld [vmem:[#allocation3 + $0x1b] sm:$0x1]  ;;  %v6007_v56 = vld [vmem:[#allocation3 + $0x1c] sm:$0x1]  ;;  %v4913_v3 = vadd.f32 %v4731_v24, %v11452_v25 }
 0x509   :  { %v5943_v1 = vmax.f32 %v5879_v9, %v5911_v42  ;;  %v6039_v5 = vld [vmem:[#allocation3 + $0x1d] sm:$0x1]  ;;  %v6135_v32 = vld [vmem:[#allocation3 + $0x1e] sm:$0x1]  ;;  %v6167_v31 = vld [vmem:[#allocation3 + $0x1f] sm:$0x1] }
 0x50a   :  { %5847 = vst.msk [vmem:[#allocation4 + $0xc] sm:$0x1] %vm5333_vm4, %v5815_v46  ;;  %v6071_v55 = vmax.f32 %v6007_v56, %v6039_v5  ;;  %v6199_v29 = vmax.f32 %v6135_v32, %v6167_v31  ;;  %v4981_v62 = vmul.f32 %v11831_v35, %v4913_v3  ;;  %10007 = vmatmul.msk.f32.gmra.mxu0 %vm54_vm1, %v4459_v43  ;;  %v4460_v24 = vld [vmem:[#allocation2 + $0x13a] sm:$0xff] }
 0x50b   :  { %5975 = vst.msk [vmem:[#allocation4 + $0xd] sm:$0x1] %vm5333_vm4, %v5943_v1 }
 0x50c   :  { %6103 = vst.msk [vmem:[#allocation4 + $0xe] sm:$0x1] %vm5333_vm4, %v6071_v55  ;;  %v5049_v47 = vadd.f32 %v11837_v58, %v4981_v62 }
 0x50d   :  { %6231 = vst.msk [vmem:[#allocation4 + $0xf] sm:$0x1] %vm5333_vm4, %v6199_v29 }
 0x50e   :  { %5177 = vst.msk [vmem:[#allocation3 + $0x20] sm:$0xff] %vm5172_vm3, %v5112_v27  ;;  %v5113_v25 = vmax.f32 %v5049_v47, 0.0 }
 0x50f   :  { %v4734_v38 = vpop.f32.mrf.mxu0 }
 0x510   :  { %5178 = vst.msk [vmem:[#allocation3 + $0x28] sm:$0xff] %vm5172_vm3, %v5113_v25  ;;  %v4914_v60 = vadd.f32 %v4734_v38, %v11459_v37  ;;  %v4461_v37 = vld [vmem:[#allocation2 + $0x142] sm:$0xff] }
 0x512   :  { %10008 = vmatmul.msk.f32.gmra.mxu0 %vm54_vm1, %v4460_v24  ;;  %v4982_v43 = vmul.f32 %v11831_v35, %v4914_v60 }
 0x514   :  { %v5050_v24 = vadd.f32 %v11837_v58, %v4982_v43 }
 0x515   :  { %v5239_v46 = vld [vmem:[#allocation3 + $0x20] sm:$0x1]  ;;  %v5271_v9 = vld [vmem:[#allocation3 + $0x21] sm:$0x1]  ;;  %v5368_v42 = vld [vmem:[#allocation3 + $0x22] sm:$0x1] }
 0x516   :  { %v5303_v56 = vmax.f32 %v5239_v46, %v5271_v9  ;;  %v5400_v3 = vld [vmem:[#allocation3 + $0x23] sm:$0x1]  ;;  %v5496_v1 = vld [vmem:[#allocation3 + $0x24] sm:$0x1]  ;;  %v5528_v5 = vld [vmem:[#allocation3 + $0x25] sm:$0x1] }
 0x517   :  { %v5432_v32 = vmax.f32 %v5368_v42, %v5400_v3  ;;  %v5560_v31 = vmax.f32 %v5496_v1, %v5528_v5  ;;  %v5624_v55 = vld [vmem:[#allocation3 + $0x26] sm:$0x1]  ;;  %v5656_v29 = vld [vmem:[#allocation3 + $0x27] sm:$0x1]  ;;  %v5752_v27 = vld [vmem:[#allocation3 + $0x28] sm:$0x1]  ;;  %v4737_v62 = vpop.f32.mrf.mxu0 }
 0x518   :  { %5336 = vst.msk [vmem:[#allocation4 + $0x10] sm:$0x1] %vm5333_vm4, %v5303_v56  ;;  %v5688_v47 = vmax.f32 %v5624_v55, %v5656_v29  ;;  %v5784_v25 = vld [vmem:[#allocation3 + $0x29] sm:$0x1]  ;;  %v5880_v38 = vld [vmem:[#allocation3 + $0x2a] sm:$0x1] }
 0x519   :  { %5464 = vst.msk [vmem:[#allocation4 + $0x11] sm:$0x1] %vm5333_vm4, %v5432_v32  ;;  %v5816_v60 = vmax.f32 %v5752_v27, %v5784_v25  ;;  %v5912_v46 = vld [vmem:[#allocation3 + $0x2b] sm:$0x1]  ;;  %v6008_v9 = vld [vmem:[#allocation3 + $0x2c] sm:$0x1] }
 0x51a   :  { %5592 = vst.msk [vmem:[#allocation4 + $0x12] sm:$0x1] %vm5333_vm4, %v5560_v31  ;;  %v5944_v42 = vmax.f32 %v5880_v38, %v5912_v46  ;;  %v6040_v3 = vld [vmem:[#allocation3 + $0x2d] sm:$0x1]  ;;  %v6136_v1 = vld [vmem:[#allocation3 + $0x2e] sm:$0x1]  ;;  %10009 = vmatmul.msk.f32.gmra.mxu0 %vm54_vm1, %v4461_v37  ;;  %v4915_v37 = vadd.f32 %v4737_v62, %v11466_v26 }
 0x51b   :  { %5720 = vst.msk [vmem:[#allocation4 + $0x13] sm:$0x1] %vm5333_vm4, %v5688_v47  ;;  %v6072_v56 = vmax.f32 %v6008_v9, %v6040_v3  ;;  %v6168_v5 = vld [vmem:[#allocation3 + $0x2f] sm:$0x1]  ;;  %v5114_v43 = vmax.f32 %v5050_v24, 0.0  ;;  %v4462_v31 = vld [vmem:[#allocation2 + $0x152] sm:$0xff] }
 0x51c   :  { %5848 = vst.msk [vmem:[#allocation4 + $0x14] sm:$0x1] %vm5333_vm4, %v5816_v60  ;;  %v6200_v55 = vmax.f32 %v6136_v1, %v6168_v5  ;;  %v4983_v38 = vmul.f32 %v11831_v35, %v4915_v37  ;;  %v6306_v37 = vld [vmem:[#allocation4 + $0x8] sm:$0xff] }
 0x51d   :  { %5976 = vst.msk [vmem:[#allocation4 + $0x15] sm:$0x1] %vm5333_vm4, %v5944_v42 }
 0x51e   :  { %6104 = vst.msk [vmem:[#allocation4 + $0x16] sm:$0x1] %vm5333_vm4, %v6072_v56 }
 0x51f   :  { %6232 = vst.msk [vmem:[#allocation4 + $0x17] sm:$0x1] %vm5333_vm4, %v6200_v55  ;;  %v4740_v32 = vpop.f32.mrf.mxu0  ;;  %v4463_v55 = vld [vmem:[#allocation2 + $0x15a] sm:$0xff] }
 0x520   :  { %5179 = vst.msk [vmem:[#allocation3 + $0x30] sm:$0xff] %vm5172_vm3, %v5114_v43  ;;  %v4916_v29 = vadd.f32 %v4740_v32, %v11473_v53  ;;  %v5051_v43 = vadd.f32 %v11837_v58, %v4983_v38 }
 0x522   :  { %10010 = vmatmul.msk.f32.gmra.mxu0 %vm54_vm1, %v4462_v31  ;;  %v4984_v53 = vmul.f32 %v11831_v35, %v4916_v29  ;;  %v5115_v29 = vmax.f32 %v5051_v43, 0.0 }
 0x524   :  { %v5052_v31 = vadd.f32 %v11837_v58, %v4984_v53  ;;  %5180 = vst.msk [vmem:[#allocation3 + $0x38] sm:$0xff] %vm5172_vm3, %v5115_v29  ;;  %v11971_v29 = vpop.f32.mrf.mxu1 }
 0x526   :  { %v5116_v38 = vmax.f32 %v5052_v31, 0.0 }
 0x527   :  { %v5240_v27 = vld [vmem:[#allocation3 + $0x30] sm:$0x1]  ;;  %v5272_v47 = vld [vmem:[#allocation3 + $0x31] sm:$0x1]  ;;  %v5369_v25 = vld [vmem:[#allocation3 + $0x32] sm:$0x1]  ;;  %v4743_v46 = vpop.f32.mrf.mxu0 }
 0x528   :  { %v5304_v26 = vmax.f32 %v5240_v27, %v5272_v47  ;;  %v5401_v62 = vld [vmem:[#allocation3 + $0x33] sm:$0x1]  ;;  %v5497_v24 = vld [vmem:[#allocation3 + $0x34] sm:$0x1]  ;;  %v5529_v60 = vld [vmem:[#allocation3 + $0x35] sm:$0x1]  ;;  %v4917_v56 = vadd.f32 %v4743_v46, %v11480_v23 }
 0x529   :  { %v5433_v9 = vmax.f32 %v5369_v25, %v5401_v62  ;;  %v5561_v42 = vmax.f32 %v5497_v24, %v5529_v60  ;;  %v5625_v3 = vld [vmem:[#allocation3 + $0x36] sm:$0x1]  ;;  %v5657_v1 = vld [vmem:[#allocation3 + $0x37] sm:$0x1]  ;;  %v6303_v27 = vld [vmem:[#allocation4] sm:$0xff]  ;;  %5181 = vst.msk [vmem:[#allocation3 + $0x40] sm:$0xff] %vm5172_vm3, %v5116_v38 }
 0x52a   :  { %5337 = vst.msk [vmem:[#allocation4 + $0x18] sm:$0x1] %vm5333_vm4, %v5304_v26  ;;  %v5689_v5 = vmax.f32 %v5625_v3, %v5657_v1  ;;  %v4985_v32 = vmul.f32 %v11831_v35, %v4917_v56  ;;  %10011 = vmatmul.msk.f32.gmra.mxu0 %vm54_vm1, %v4463_v55  ;;  %v6308_v47 = vmax.f32 %v6303_v27, %v6306_v37  ;;  %v4464_v62 = vld [vmem:[#allocation2 + $0x16a] sm:$0xff] }
 0x52b   :  { %5465 = vst.msk [vmem:[#allocation4 + $0x19] sm:$0x1] %vm5333_vm4, %v5433_v9  ;;  %v5785_v3 = vld [vmem:[#allocation3 + $0x39] sm:$0x1]  ;;  %v5881_v1 = vld [vmem:[#allocation3 + $0x3a] sm:$0x1] }
 0x52c   :  { %5593 = vst.msk [vmem:[#allocation4 + $0x1a] sm:$0x1] %vm5333_vm4, %v5561_v42  ;;  %v5053_v23 = vadd.f32 %v11837_v58, %v4985_v32  ;;  %v5753_v42 = vld [vmem:[#allocation3 + $0x38] sm:$0x1]  ;;  %v5913_v56 = vld [vmem:[#allocation3 + $0x3b] sm:$0x1] }
 0x52d   :  { %5721 = vst.msk [vmem:[#allocation4 + $0x1b] sm:$0x1] %vm5333_vm4, %v5689_v5  ;;  %v5817_v53 = vmax.f32 %v5753_v42, %v5785_v3  ;;  %v6009_v5 = vld [vmem:[#allocation3 + $0x3c] sm:$0x1]  ;;  %v6041_v55 = vld [vmem:[#allocation3 + $0x3d] sm:$0x1]  ;;  %v5945_v43 = vmax.f32 %v5881_v1, %v5913_v56 }
 0x52e   :  { %v5117_v24 = vmax.f32 %v5053_v23, 0.0  ;;  %6311 = vst.msk [vmem:[#allocation5 + $0x11] sm:$0xff] %vm5172_vm3, %v6308_v47  ;;  %v6073_v32 = vmax.f32 %v6009_v5, %v6041_v55  ;;  %v6137_v37 = vld [vmem:[#allocation3 + $0x3e] sm:$0x1]  ;;  %v6169_v31 = vld [vmem:[#allocation3 + $0x3f] sm:$0x1] }
 0x52f   :  { %v4746_v25 = vpop.f32.mrf.mxu0  ;;  %5849 = vst.msk [vmem:[#allocation4 + $0x1c] sm:$0x1] %vm5333_vm4, %v5817_v53  ;;  %v6201_v27 = vmax.f32 %v6137_v37, %v6169_v31 }
 0x530   :  { %v4918_v26 = vadd.f32 %v4746_v25, %v11487_v0  ;;  %5182 = vst.msk [vmem:[#allocation3 + $0x48] sm:$0xff] %vm5172_vm3, %v5117_v24  ;;  %v5241_v38 = vld [vmem:[#allocation3 + $0x40] sm:$0x1]  ;;  %v11978_v24 = vpop.f32.mrf.mxu3  ;;  %v5402_v42 = vld [vmem:[#allocation3 + $0x43] sm:$0x1] }
 0x531   :  { %5977 = vst.msk [vmem:[#allocation4 + $0x1d] sm:$0x1] %vm5333_vm4, %v5945_v43  ;;  %v5498_v3 = vld [vmem:[#allocation3 + $0x44] sm:$0x1]  ;;  %v5626_v1 = vld [vmem:[#allocation3 + $0x46] sm:$0x1] }
 0x532   :  { %v4986_v60 = vmul.f32 %v11831_v35, %v4918_v26  ;;  %10012 = vmatmul.msk.f32.gmra.mxu0 %vm54_vm1, %v4464_v62  ;;  %v11976_v62 = vpop.f32.mrf.mxu2  ;;  %6105 = vst.msk [vmem:[#allocation4 + $0x1e] sm:$0x1] %vm5333_vm4, %v6073_v32  ;;  %v5658_v5 = vld [vmem:[#allocation3 + $0x47] sm:$0x1] }
 0x533   :  { %6233 = vst.msk [vmem:[#allocation4 + $0x1f] sm:$0x1] %vm5333_vm4, %v6201_v27  ;;  %v5690_v32 = vmax.f32 %v5626_v1, %v5658_v5 }
 0x534   :  { %v5054_v46 = vadd.f32 %v11837_v58, %v4986_v60  ;;  %v5273_v60 = vld [vmem:[#allocation3 + $0x41] sm:$0x1] }
 0x535   :  { %v6408_v23 = vld [vmem:[#allocation5 + $0x11] sm:$0xff]  ;;  %5722 = vst.msk [vmem:[#allocation4 + $0x23] sm:$0x1] %vm5333_vm4, %v5690_v32 }
 0x536   :  { %v5118_v0 = vmax.f32 %v5054_v46, 0.0  ;;  %10052 = vmatmul.msk.f32.gmra.mxu1 %vm5172_vm3, %v6408_v23  ;;  %v6391_v47 = vld [vmem:[#allocation5 + $0x10] sm:$0xff]  ;;  %v5370_v46 = vld [vmem:[#allocation3 + $0x42] sm:$0x1] }
 0x537   :  { %v4749_v9 = vpop.f32.mrf.mxu0  ;;  %v6652_v25 = vld [vmem:[#allocation5 + $0x12] sm:$0xff]  ;;  %10068 = vmatmul.msk.f32.gmra.mxu2 %vm5172_vm3, %v6391_v47  ;;  %v5754_v55 = vld [vmem:[#allocation3 + $0x48] sm:$0x1]  ;;  %v5786_v31 = vld [vmem:[#allocation3 + $0x49] sm:$0x1] }
 0x538   :  { %5183 = vst.msk [vmem:[#allocation3 + $0x50] sm:$0xff] %vm5172_vm3, %v5118_v0  ;;  %v4919_v26 = vadd.f32 %v4749_v9, %v11494_v13  ;;  %10085 = vmatmul.msk.f32.gmra.mxu3 %vm5172_vm3, %v6652_v25  ;;  %v5305_v0 = vmax.f32 %v5241_v38, %v5273_v60  ;;  %v5434_v13 = vmax.f32 %v5370_v46, %v5402_v42  ;;  %v5530_v9 = vld [vmem:[#allocation3 + $0x45] sm:$0x1]  ;;  %v5882_v23 = vld [vmem:[#allocation3 + $0x4a] sm:$0x1] }
 0x539   :  { %v5562_v56 = vmax.f32 %v5498_v3, %v5530_v9  ;;  %v5818_v27 = vmax.f32 %v5754_v55, %v5786_v31  ;;  %v5914_v47 = vld [vmem:[#allocation3 + $0x4b] sm:$0x1]  ;;  %v6010_v25 = vld [vmem:[#allocation3 + $0x4c] sm:$0x1]  ;;  %v6042_v46 = vld [vmem:[#allocation3 + $0x4d] sm:$0x1] }
 0x53a   :  { %5338 = vst.msk [vmem:[#allocation4 + $0x20] sm:$0x1] %vm5333_vm4, %v5305_v0  ;;  %v4987_v43 = vmul.f32 %v11831_v35, %v4919_v26  ;;  %v5946_v60 = vmax.f32 %v5882_v23, %v5914_v47  ;;  %v6138_v0 = vld [vmem:[#allocation3 + $0x4e] sm:$0x1]  ;;  %v6170_v26 = vld [vmem:[#allocation3 + $0x4f] sm:$0x1] }
 0x53b   :  { %5466 = vst.msk [vmem:[#allocation4 + $0x21] sm:$0x1] %vm5333_vm4, %v5434_v13  ;;  %v6202_v13 = vmax.f32 %v6138_v0, %v6170_v26  ;;  %v6317_v0 = vld [vmem:[#allocation4 + $0x18] sm:$0xff] }
 0x53c   :  { %5594 = vst.msk [vmem:[#allocation4 + $0x22] sm:$0x1] %vm5333_vm4, %v5562_v56  ;;  %v5055_v3 = vadd.f32 %v11837_v58, %v4987_v43 }
 0x53d   :  { %5850 = vst.msk [vmem:[#allocation4 + $0x24] sm:$0x1] %vm5333_vm4, %v5818_v27 }
 0x53e   :  { %5978 = vst.msk [vmem:[#allocation4 + $0x25] sm:$0x1] %vm5333_vm4, %v5946_v60  ;;  %v5119_v47 = vmax.f32 %v5055_v3, 0.0 }
 0x53f   :  { %v4752_v53 = vpop.f32.mrf.mxu0  ;;  %v5242_v42 = vld [vmem:[#allocation3 + $0x50] sm:$0x1]  ;;  %v5274_v9 = vld [vmem:[#allocation3 + $0x51] sm:$0x1]  ;;  %v5371_v1 = vld [vmem:[#allocation3 + $0x52] sm:$0x1] }
 0x540   :  { %v4920_v37 = vadd.f32 %v4752_v53, %v11501_v40  ;;  %v6074_v40 = vmax.f32 %v6010_v25, %v6042_v46  ;;  %v5306_v53 = vmax.f32 %v5242_v42, %v5274_v9  ;;  %v5403_v56 = vld [vmem:[#allocation3 + $0x53] sm:$0x1]  ;;  %v5499_v5 = vld [vmem:[#allocation3 + $0x54] sm:$0x1]  ;;  %6234 = vst.msk [vmem:[#allocation4 + $0x27] sm:$0x1] %vm5333_vm4, %v6202_v13 }
 0x541   :  { %v5531_v32 = vld [vmem:[#allocation3 + $0x55] sm:$0x1]  ;;  %v5627_v31 = vld [vmem:[#allocation3 + $0x56] sm:$0x1]  ;;  %v5659_v27 = vld [vmem:[#allocation3 + $0x57] sm:$0x1] }
 0x542   :  { %v4988_v38 = vmul.f32 %v11831_v35, %v4920_v37  ;;  %6106 = vst.msk [vmem:[#allocation4 + $0x26] sm:$0x1] %vm5333_vm4, %v6074_v40  ;;  %v5435_v37 = vmax.f32 %v5371_v1, %v5403_v56  ;;  %v5563_v43 = vmax.f32 %v5499_v5, %v5531_v32  ;;  %v4465_v25 = vld [vmem:[#allocation2 + $0x172] sm:$0xff]  ;;  %v5691_v46 = vmax.f32 %v5627_v31, %v5659_v27 }
 0x543   :  { %5339 = vst.msk [vmem:[#allocation4 + $0x28] sm:$0x1] %vm5333_vm4, %v5306_v53  ;;  %10013 = vmatmul.msk.f32.gmra.mxu0 %vm54_vm1, %v4465_v25 }
 0x544   :  { %v5056_v55 = vadd.f32 %v11837_v58, %v4988_v38  ;;  %5467 = vst.msk [vmem:[#allocation4 + $0x29] sm:$0x1] %vm5333_vm4, %v5435_v37  ;;  %v6314_v38 = vld [vmem:[#allocation4 + $0x10] sm:$0xff] }
 0x545   :  { %5595 = vst.msk [vmem:[#allocation4 + $0x2a] sm:$0x1] %vm5333_vm4, %v5563_v43  ;;  %v6319_v40 = vmax.f32 %v6314_v38, %v6317_v0  ;;  %v12014_v38 = vpop.f32.mrf.mxu2 }
 0x546   :  { %v5120_v26 = vmax.f32 %v5056_v55, 0.0  ;;  %5723 = vst.msk [vmem:[#allocation4 + $0x2b] sm:$0x1] %vm5333_vm4, %v5691_v46  ;;  %v12012_v46 = vpop.f32.mrf.mxu1 }
 0x547   :  { %v4755_v23 = vpop.f32.mrf.mxu0  ;;  %5184 = vst.msk [vmem:[#allocation3 + $0x58] sm:$0xff] %vm5172_vm3, %v5119_v47 }
 0x548   :  { %v4921_v60 = vadd.f32 %v4755_v23, %v11508_v41  ;;  %6322 = vst.msk [vmem:[#allocation5 + $0x21] sm:$0xff] %vm5172_vm3, %v6319_v40  ;;  %v4466_v41 = vld [vmem:[#allocation2 + $0x182] sm:$0xff]  ;;  %v4467_v23 = vld [vmem:[#allocation2 + $0x18a] sm:$0xff] }
 0x549   :  { %5185 = vst.msk [vmem:[#allocation3 + $0x60] sm:$0xff] %vm5172_vm3, %v5120_v26 }
 0x54a   :  { %v4989_v42 = vmul.f32 %v11831_v35, %v4921_v60 }
 0x54b   :  { %10014 = vmatmul.msk.f32.gmra.mxu0 %vm54_vm1, %v4466_v41 }
 0x54c   :  { %v5057_v3 = vadd.f32 %v11837_v58, %v4989_v42 }
 0x54e   :  { %v5121_v13 = vmax.f32 %v5057_v3, 0.0  ;;  %v5755_v53 = vld [vmem:[#allocation3 + $0x58] sm:$0x1]  ;;  %v5787_v56 = vld [vmem:[#allocation3 + $0x59] sm:$0x1]  ;;  %v12019_v3 = vpop.f32.mrf.mxu3 }
 0x54f   :  { %v4758_v9 = vpop.f32.mrf.mxu0  ;;  %v5883_v5 = vld [vmem:[#allocation3 + $0x5a] sm:$0x1]  ;;  %v5819_v55 = vmax.f32 %v5755_v53, %v5787_v56  ;;  %v5915_v37 = vld [vmem:[#allocation3 + $0x5b] sm:$0x1]  ;;  %v6011_v32 = vld [vmem:[#allocation3 + $0x5c] sm:$0x1] }
 0x550   :  { %5186 = vst.msk [vmem:[#allocation3 + $0x68] sm:$0xff] %vm5172_vm3, %v5121_v13  ;;  %v4922_v1 = vadd.f32 %v4758_v9, %v11515_v33  ;;  %v6043_v31 = vld [vmem:[#allocation3 + $0x5d] sm:$0x1]  ;;  %v5947_v43 = vmax.f32 %v5883_v5, %v5915_v37  ;;  %v6139_v47 = vld [vmem:[#allocation3 + $0x5e] sm:$0x1]  ;;  %v6409_v60 = vld [vmem:[#allocation5 + $0x21] sm:$0xff] }
 0x551   :  { %v6075_v27 = vmax.f32 %v6011_v32, %v6043_v31  ;;  %v6171_v25 = vld [vmem:[#allocation3 + $0x5f] sm:$0x1]  ;;  %5851 = vst.msk [vmem:[#allocation4 + $0x2c] sm:$0x1] %vm5333_vm4, %v5819_v55  ;;  %10053 = vmatmul.msk.f32.gmra.mxu1 %vm5172_vm3, %v6409_v60  ;;  %v6392_v0 = vld [vmem:[#allocation5 + $0x20] sm:$0xff] }
 0x552   :  { %v6203_v33 = vmax.f32 %v6139_v47, %v6171_v25  ;;  %v6653_v40 = vld [vmem:[#allocation5 + $0x22] sm:$0xff]  ;;  %v5243_v26 = vld [vmem:[#allocation3 + $0x60] sm:$0x1]  ;;  %v4990_v42 = vmul.f32 %v11831_v35, %v4922_v1  ;;  %5979 = vst.msk [vmem:[#allocation4 + $0x2d] sm:$0x1] %vm5333_vm4, %v5947_v43  ;;  %10069 = vmatmul.msk.f32.gmra.mxu2 %vm5172_vm3, %v6392_v0 }
 0x553   :  { %10086 = vmatmul.msk.f32.gmra.mxu3 %vm5172_vm3, %v6653_v40  ;;  %v5275_v41 = vld [vmem:[#allocation3 + $0x61] sm:$0x1]  ;;  %v5372_v13 = vld [vmem:[#allocation3 + $0x62] sm:$0x1]  ;;  %6107 = vst.msk [vmem:[#allocation4 + $0x2e] sm:$0x1] %vm5333_vm4, %v6075_v27  ;;  %10015 = vmatmul.msk.f32.gmra.mxu0 %vm54_vm1, %v4467_v23 }
 0x554   :  { %v5307_v53 = vmax.f32 %v5243_v26, %v5275_v41  ;;  %v5404_v56 = vld [vmem:[#allocation3 + $0x63] sm:$0x1]  ;;  %v5500_v5 = vld [vmem:[#allocation3 + $0x64] sm:$0x1]  ;;  %6235 = vst.msk [vmem:[#allocation4 + $0x2f] sm:$0x1] %vm5333_vm4, %v6203_v33  ;;  %v5058_v25 = vadd.f32 %v11837_v58, %v4990_v42 }
 0x555   :  { %v5436_v1 = vmax.f32 %v5372_v13, %v5404_v56  ;;  %v5532_v37 = vld [vmem:[#allocation3 + $0x65] sm:$0x1]  ;;  %v5628_v32 = vld [vmem:[#allocation3 + $0x66] sm:$0x1]  ;;  %v5660_v43 = vld [vmem:[#allocation3 + $0x67] sm:$0x1] }
 0x556   :  { %5340 = vst.msk [vmem:[#allocation4 + $0x30] sm:$0x1] %vm5333_vm4, %v5307_v53  ;;  %v5564_v31 = vmax.f32 %v5500_v5, %v5532_v37  ;;  %v5692_v60 = vmax.f32 %v5628_v32, %v5660_v43  ;;  %v5122_v56 = vmax.f32 %v5058_v25, 0.0  ;;  %v4468_v5 = vld [vmem:[#allocation2 + $0x19a] sm:$0xff] }
 0x557   :  { %v4761_v9 = vpop.f32.mrf.mxu0  ;;  %v5756_v47 = vld [vmem:[#allocation3 + $0x68] sm:$0x1]  ;;  %5468 = vst.msk [vmem:[#allocation4 + $0x31] sm:$0x1] %vm5333_vm4, %v5436_v1  ;;  %v5884_v0 = vld [vmem:[#allocation3 + $0x6a] sm:$0x1] }
 0x558   :  { %v4923_v55 = vadd.f32 %v4761_v9, %v11522_v48  ;;  %v5788_v48 = vld [vmem:[#allocation3 + $0x69] sm:$0x1]  ;;  %5596 = vst.msk [vmem:[#allocation4 + $0x32] sm:$0x1] %vm5333_vm4, %v5564_v31  ;;  %v5916_v40 = vld [vmem:[#allocation3 + $0x6b] sm:$0x1] }
 0x559   :  { %v5820_v33 = vmax.f32 %v5756_v47, %v5788_v48  ;;  %v6012_v26 = vld [vmem:[#allocation3 + $0x6c] sm:$0x1]  ;;  %5724 = vst.msk [vmem:[#allocation4 + $0x33] sm:$0x1] %vm5333_vm4, %v5692_v60  ;;  %v5948_v41 = vmax.f32 %v5884_v0, %v5916_v40  ;;  %v6044_v13 = vld [vmem:[#allocation3 + $0x6d] sm:$0x1] }
 0x55a   :  { %v4991_v27 = vmul.f32 %v11831_v35, %v4923_v55  ;;  %v6140_v9 = vld [vmem:[#allocation3 + $0x6e] sm:$0x1]  ;;  %v6076_v42 = vmax.f32 %v6012_v26, %v6044_v13  ;;  %v6172_v53 = vld [vmem:[#allocation3 + $0x6f] sm:$0x1]  ;;  %v6325_v32 = vld [vmem:[#allocation4 + $0x20] sm:$0xff]  ;;  %5187 = vst.msk [vmem:[#allocation3 + $0x70] sm:$0xff] %vm5172_vm3, %v5122_v56 }
 0x55b   :  { %5852 = vst.msk [vmem:[#allocation4 + $0x34] sm:$0x1] %vm5333_vm4, %v5820_v33  ;;  %v6204_v55 = vmax.f32 %v6140_v9, %v6172_v53  ;;  %v6328_v31 = vld [vmem:[#allocation4 + $0x28] sm:$0xff]  ;;  %10016 = vmatmul.msk.f32.gmra.mxu0 %vm54_vm1, %v4468_v5 }
 0x55c   :  { %v5059_v23 = vadd.f32 %v11837_v58, %v4991_v27  ;;  %5980 = vst.msk [vmem:[#allocation4 + $0x35] sm:$0x1] %vm5333_vm4, %v5948_v41  ;;  %v6330_v47 = vmax.f32 %v6325_v32, %v6328_v31  ;;  %v4469_v60 = vld [vmem:[#allocation2 + $0x1a2] sm:$0xff] }
 0x55d   :  { %6108 = vst.msk [vmem:[#allocation4 + $0x36] sm:$0x1] %vm5333_vm4, %v6076_v42 }
 0x55e   :  { %v5123_v1 = vmax.f32 %v5059_v23, 0.0  ;;  %6236 = vst.msk [vmem:[#allocation4 + $0x37] sm:$0x1] %vm5333_vm4, %v6204_v55 }
 0x55f   :  { %v4764_v37 = vpop.f32.mrf.mxu0  ;;  %6333 = vst.msk [vmem:[#allocation5 + $0x31] sm:$0xff] %vm5172_vm3, %v6330_v47 }
 0x560   :  { %v4924_v43 = vadd.f32 %v4764_v37, %v11529_v61  ;;  %5188 = vst.msk [vmem:[#allocation3 + $0x78] sm:$0xff] %vm5172_vm3, %v5123_v1 }
 0x561   :  { %v5244_v33 = vld [vmem:[#allocation3 + $0x70] sm:$0x1]  ;;  %v5276_v40 = vld [vmem:[#allocation3 + $0x71] sm:$0x1]  ;;  %v5373_v26 = vld [vmem:[#allocation3 + $0x72] sm:$0x1] }
 0x562   :  { %v4992_v25 = vmul.f32 %v11831_v35, %v4924_v43  ;;  %v5308_v23 = vmax.f32 %v5244_v33, %v5276_v40  ;;  %v5405_v41 = vld [vmem:[#allocation3 + $0x73] sm:$0x1]  ;;  %v5501_v13 = vld [vmem:[#allocation3 + $0x74] sm:$0x1]  ;;  %v5533_v9 = vld [vmem:[#allocation3 + $0x75] sm:$0x1] }
 0x563   :  { %10017 = vmatmul.msk.f32.gmra.mxu0 %vm54_vm1, %v4469_v60  ;;  %v5437_v42 = vmax.f32 %v5373_v26, %v5405_v41  ;;  %v5565_v53 = vmax.f32 %v5501_v13, %v5533_v9  ;;  %v5629_v56 = vld [vmem:[#allocation3 + $0x76] sm:$0x1]  ;;  %v5661_v5 = vld [vmem:[#allocation3 + $0x77] sm:$0x1]  ;;  %v12054_v41 = vpop.f32.mrf.mxu1 }
 0x564   :  { %v5060_v27 = vadd.f32 %v11837_v58, %v4992_v25  ;;  %5341 = vst.msk [vmem:[#allocation4 + $0x38] sm:$0x1] %vm5333_vm4, %v5308_v23  ;;  %v5693_v1 = vmax.f32 %v5629_v56, %v5661_v5  ;;  %v12063_v5 = vpop.f32.mrf.mxu3 }
 0x565   :  { %5469 = vst.msk [vmem:[#allocation4 + $0x39] sm:$0x1] %vm5333_vm4, %v5437_v42 }
 0x566   :  { %v5124_v48 = vmax.f32 %v5060_v27, 0.0  ;;  %5597 = vst.msk [vmem:[#allocation4 + $0x3a] sm:$0x1] %vm5333_vm4, %v5565_v53  ;;  %v6410_v40 = vld [vmem:[#allocation5 + $0x31] sm:$0xff] }
 0x567   :  { %v4767_v0 = vpop.f32.mrf.mxu0  ;;  %v5757_v55 = vld [vmem:[#allocation3 + $0x78] sm:$0x1]  ;;  %v5789_v37 = vld [vmem:[#allocation3 + $0x79] sm:$0x1]  ;;  %v5885_v32 = vld [vmem:[#allocation3 + $0x7a] sm:$0x1]  ;;  %10054 = vmatmul.msk.f32.gmra.mxu1 %vm5172_vm3, %v6410_v40 }
 0x568   :  { %5189 = vst.msk [vmem:[#allocation3 + $0x80] sm:$0xff] %vm5172_vm3, %v5124_v48  ;;  %v4925_v61 = vadd.f32 %v4767_v0, %v11536_v14  ;;  %v4470_v14 = vld [vmem:[#allocation2 + $0x1e2] sm:$0xff]  ;;  %v5821_v43 = vmax.f32 %v5757_v55, %v5789_v37  ;;  %v5917_v47 = vld [vmem:[#allocation3 + $0x7b] sm:$0x1]  ;;  %v6013_v25 = vld [vmem:[#allocation3 + $0x7c] sm:$0x1] }
 0x569   :  { %v5949_v27 = vmax.f32 %v5885_v32, %v5917_v47  ;;  %v6045_v60 = vld [vmem:[#allocation3 + $0x7d] sm:$0x1]  ;;  %v6141_v48 = vld [vmem:[#allocation3 + $0x7e] sm:$0x1]  ;;  %5725 = vst.msk [vmem:[#allocation4 + $0x3b] sm:$0x1] %vm5333_vm4, %v5693_v1 }
 0x56a   :  { %v4993_v31 = vmul.f32 %v11831_v35, %v4925_v61  ;;  %v6077_v0 = vmax.f32 %v6013_v25, %v6045_v60  ;;  %v6173_v33 = vld [vmem:[#allocation3 + $0x7f] sm:$0x1]  ;;  %v6393_v26 = vld [vmem:[#allocation5 + $0x30] sm:$0xff]  ;;  %v12056_v61 = vpop.f32.mrf.mxu2  ;;  %5853 = vst.msk [vmem:[#allocation4 + $0x3c] sm:$0x1] %vm5333_vm4, %v5821_v43 }
 0x56b   :  { %v6205_v13 = vmax.f32 %v6141_v48, %v6173_v33  ;;  %10070 = vmatmul.msk.f32.gmra.mxu2 %vm5172_vm3, %v6393_v26  ;;  %v6654_v9 = vld [vmem:[#allocation5 + $0x32] sm:$0xff]  ;;  %5981 = vst.msk [vmem:[#allocation4 + $0x3d] sm:$0x1] %vm5333_vm4, %v5949_v27  ;;  %10018 = vmatmul.msk.f32.gmra.mxu0 %vm54_vm1, %v4470_v14 }
 0x56c   :  { %v5061_v53 = vadd.f32 %v11837_v58, %v4993_v31  ;;  %10087 = vmatmul.msk.f32.gmra.mxu3 %vm5172_vm3, %v6654_v9  ;;  %6109 = vst.msk [vmem:[#allocation4 + $0x3e] sm:$0x1] %vm5333_vm4, %v6077_v0  ;;  %v4471_v0 = vld [vmem:[#allocation2 + $0x1ea] sm:$0xff] }
 0x56d   :  { %6237 = vst.msk [vmem:[#allocation4 + $0x3f] sm:$0x1] %vm5333_vm4, %v6205_v13  ;;  %v6336_v13 = vld [vmem:[#allocation4 + $0x30] sm:$0xff] }
 0x56e   :  { %v5125_v48 = vmax.f32 %v5061_v53, 0.0 }
 0x56f   :  { %v4770_v23 = vpop.f32.mrf.mxu0  ;;  %v5245_v42 = vld [vmem:[#allocation3 + $0x80] sm:$0x1]  ;;  %v5277_v55 = vld [vmem:[#allocation3 + $0x81] sm:$0x1]  ;;  %v5374_v1 = vld [vmem:[#allocation3 + $0x82] sm:$0x1] }
 0x570   :  { %v4926_v56 = vadd.f32 %v4770_v23, %v11543_v34  ;;  %v5309_v37 = vmax.f32 %v5245_v42, %v5277_v55  ;;  %v5406_v32 = vld [vmem:[#allocation3 + $0x83] sm:$0x1]  ;;  %v5502_v43 = vld [vmem:[#allocation3 + $0x84] sm:$0x1]  ;;  %v5534_v31 = vld [vmem:[#allocation3 + $0x85] sm:$0x1] }
 0x571   :  { %v5438_v34 = vmax.f32 %v5374_v1, %v5406_v32  ;;  %v5630_v25 = vld [vmem:[#allocation3 + $0x86] sm:$0x1]  ;;  %v5566_v27 = vmax.f32 %v5502_v43, %v5534_v31  ;;  %v5662_v60 = vld [vmem:[#allocation3 + $0x87] sm:$0x1]  ;;  %5190 = vst.msk [vmem:[#allocation3 + $0x88] sm:$0xff] %vm5172_vm3, %v5125_v48  ;;  %v4472_v42 = vld [vmem:[#allocation2 + $0x1fa] sm:$0xff] }
 0x572   :  { %v4994_v47 = vmul.f32 %v11831_v35, %v4926_v56  ;;  %5342 = vst.msk [vmem:[#allocation4 + $0x40] sm:$0x1] %vm5333_vm4, %v5309_v37  ;;  %v5694_v14 = vmax.f32 %v5630_v25, %v5662_v60 }
 0x573   :  { %5470 = vst.msk [vmem:[#allocation4 + $0x41] sm:$0x1] %vm5333_vm4, %v5438_v34  ;;  %10019 = vmatmul.msk.f32.gmra.mxu0 %vm54_vm1, %v4471_v0  ;;  %v12088_v0 = vld [vmem:[%s13822_s3] ss:$0 sm:$0xff] }
 0x574   :  { %v5062_v33 = vadd.f32 %v11837_v58, %v4994_v47  ;;  %5598 = vst.msk [vmem:[#allocation4 + $0x42] sm:$0x1] %vm5333_vm4, %v5566_v27  ;;  %v6339_v58 = vld [vmem:[#allocation4 + $0x38] sm:$0xff] }
 0x575   :  { %5726 = vst.msk [vmem:[#allocation4 + $0x43] sm:$0x1] %vm5333_vm4, %v5694_v14  ;;  %v6341_v9 = vmax.f32 %v6336_v13, %v6339_v58 }
 0x576   :  { %v5126_v40 = vmax.f32 %v5062_v33, 0.0 }
 0x577   :  { %v4773_v26 = vpop.f32.mrf.mxu0  ;;  %6344 = vst.msk [vmem:[#allocation5 + $0x41] sm:$0xff] %vm5172_vm3, %v6341_v9 }
 0x578   :  { %5191 = vst.msk [vmem:[#allocation3 + $0x90] sm:$0xff] %vm5172_vm3, %v5126_v40  ;;  %v4927_v23 = vadd.f32 %v4773_v26, %v11550_v18  ;;  %v5758_v56 = vld [vmem:[#allocation3 + $0x88] sm:$0x1]  ;;  %v5790_v55 = vld [vmem:[#allocation3 + $0x89] sm:$0x1] }
 0x579   :  { %v5886_v1 = vld [vmem:[#allocation3 + $0x8a] sm:$0x1]  ;;  %v5822_v32 = vmax.f32 %v5758_v56, %v5790_v55  ;;  %v5918_v43 = vld [vmem:[#allocation3 + $0x8b] sm:$0x1]  ;;  %v6014_v47 = vld [vmem:[#allocation3 + $0x8c] sm:$0x1] }
 0x57a   :  { %v4995_v53 = vmul.f32 %v11831_v35, %v4927_v23  ;;  %v6046_v34 = vld [vmem:[#allocation3 + $0x8d] sm:$0x1]  ;;  %v5950_v25 = vmax.f32 %v5886_v1, %v5918_v43  ;;  %v6142_v27 = vld [vmem:[#allocation3 + $0x8e] sm:$0x1]  ;;  %v6174_v60 = vld [vmem:[#allocation3 + $0x8f] sm:$0x1]  ;;  %v12101_v43 = vpop.f32.mrf.mxu1 }
 0x57b   :  { %v6078_v18 = vmax.f32 %v6014_v47, %v6046_v34  ;;  %10020 = vmatmul.msk.f32.gmra.mxu0 %vm54_vm1, %v4472_v42  ;;  %5854 = vst.msk [vmem:[#allocation4 + $0x44] sm:$0x1] %vm5333_vm4, %v5822_v32  ;;  %v6206_v35 = vmax.f32 %v6142_v27, %v6174_v60  ;;  %v12103_v47 = vpop.f32.mrf.mxu2  ;;  %v12108_v27 = vpop.f32.mrf.mxu3 }
 0x57c   :  { %v5063_v40 = vadd.f32 %v12088_v0, %v4995_v53  ;;  %5982 = vst.msk [vmem:[#allocation4 + $0x45] sm:$0x1] %vm5333_vm4, %v5950_v25  ;;  %v4473_v25 = vld [vmem:[#allocation2 + $0x202] sm:$0xff] }
 0x57d   :  { %6110 = vst.msk [vmem:[#allocation4 + $0x46] sm:$0x1] %vm5333_vm4, %v6078_v18 }
 0x57e   :  { %6238 = vst.msk [vmem:[#allocation4 + $0x47] sm:$0x1] %vm5333_vm4, %v6206_v35  ;;  %v6394_v32 = vld [vmem:[#allocation5 + $0x40] sm:$0xff] }
 0x57f   :  { %v4776_v37 = vpop.f32.mrf.mxu0  ;;  %v5246_v48 = vld [vmem:[#allocation3 + $0x90] sm:$0x1]  ;;  %v5278_v33 = vld [vmem:[#allocation3 + $0x91] sm:$0x1]  ;;  %v5375_v14 = vld [vmem:[#allocation3 + $0x92] sm:$0x1]  ;;  %10071 = vmatmul.msk.f32.gmra.mxu2 %vm5172_vm3, %v6394_v32 }
 0x580   :  { %v4928_v31 = vadd.f32 %v4776_v37, %v11557_v51  ;;  %v12094_v51 = vld [vmem:[%s13821_s2] ss:$0 sm:$0xff]  ;;  %v5310_v23 = vmax.f32 %v5246_v48, %v5278_v33  ;;  %v5407_v13 = vld [vmem:[#allocation3 + $0x93] sm:$0x1]  ;;  %v5503_v58 = vld [vmem:[#allocation3 + $0x94] sm:$0x1] }
 0x581   :  { %v5439_v9 = vmax.f32 %v5375_v14, %v5407_v13  ;;  %v5535_v42 = vld [vmem:[#allocation3 + $0x95] sm:$0x1]  ;;  %v5631_v56 = vld [vmem:[#allocation3 + $0x96] sm:$0x1]  ;;  %v5663_v1 = vld [vmem:[#allocation3 + $0x97] sm:$0x1] }
 0x582   :  { %v4996_v26 = vmul.f32 %v12094_v51, %v4928_v31  ;;  %v5567_v53 = vmax.f32 %v5503_v58, %v5535_v42  ;;  %v6411_v37 = vld [vmem:[#allocation5 + $0x41] sm:$0xff]  ;;  %5343 = vst.msk [vmem:[#allocation4 + $0x48] sm:$0x1] %vm5333_vm4, %v5310_v23  ;;  %v5695_v34 = vmax.f32 %v5631_v56, %v5663_v1  ;;  %v5127_v31 = vmax.f32 %v5063_v40, 0.0  ;;  %v4474_v40 = vld [vmem:[#allocation2 + $0x212] sm:$0xff] }
 0x583   :  { %10055 = vmatmul.msk.f32.gmra.mxu1 %vm5172_vm3, %v6411_v37  ;;  %v6655_v18 = vld [vmem:[#allocation5 + $0x42] sm:$0xff]  ;;  %5471 = vst.msk [vmem:[#allocation4 + $0x49] sm:$0x1] %vm5333_vm4, %v5439_v9  ;;  %10021 = vmatmul.msk.f32.gmra.mxu0 %vm54_vm1, %v4473_v25 }
 0x584   :  { %v5064_v55 = vadd.f32 %v12088_v0, %v4996_v26  ;;  %10088 = vmatmul.msk.f32.gmra.mxu3 %vm5172_vm3, %v6655_v18  ;;  %5599 = vst.msk [vmem:[#allocation4 + $0x4a] sm:$0x1] %vm5333_vm4, %v5567_v53 }
 0x585   :  { %5727 = vst.msk [vmem:[#allocation4 + $0x4b] sm:$0x1] %vm5333_vm4, %v5695_v34 }
 0x586   :  { %v5128_v60 = vmax.f32 %v5064_v55, 0.0  ;;  %5192 = vst.msk [vmem:[#allocation3 + $0x98] sm:$0xff] %vm5172_vm3, %v5127_v31 }
 0x587   :  { %v4779_v48 = vpop.f32.mrf.mxu0 }
 0x588   :  { %v4929_v35 = vadd.f32 %v4779_v48, %v11564_v7  ;;  %5193 = vst.msk [vmem:[#allocation3 + $0xa0] sm:$0xff] %vm5172_vm3, %v5128_v60 }
 0x58a   :  { %v4997_v33 = vmul.f32 %v12094_v51, %v4929_v35 }
 0x58b   :  { %10022 = vmatmul.msk.f32.gmra.mxu0 %vm54_vm1, %v4474_v40 }
 0x58c   :  { %v5065_v14 = vadd.f32 %v12088_v0, %v4997_v33 }
 0x58d   :  { %v5759_v7 = vld [vmem:[#allocation3 + $0x98] sm:$0x1]  ;;  %v5791_v58 = vld [vmem:[#allocation3 + $0x99] sm:$0x1]  ;;  %v5887_v9 = vld [vmem:[#allocation3 + $0x9a] sm:$0x1] }
 0x58e   :  { %v5129_v26 = vmax.f32 %v5065_v14, 0.0  ;;  %v5823_v42 = vmax.f32 %v5759_v7, %v5791_v58  ;;  %v5919_v56 = vld [vmem:[#allocation3 + $0x9b] sm:$0x1]  ;;  %v6015_v55 = vld [vmem:[#allocation3 + $0x9c] sm:$0x1] }
 0x58f   :  { %v4782_v23 = vpop.f32.mrf.mxu0  ;;  %v6047_v53 = vld [vmem:[#allocation3 + $0x9d] sm:$0x1]  ;;  %v5951_v1 = vmax.f32 %v5887_v9, %v5919_v56  ;;  %v6143_v32 = vld [vmem:[#allocation3 + $0x9e] sm:$0x1]  ;;  %v6175_v34 = vld [vmem:[#allocation3 + $0x9f] sm:$0x1] }
 0x590   :  { %5194 = vst.msk [vmem:[#allocation3 + $0xa8] sm:$0xff] %vm5172_vm3, %v5129_v26  ;;  %v4930_v13 = vadd.f32 %v4782_v23, %v11571_v4  ;;  %v6079_v37 = vmax.f32 %v6015_v55, %v6047_v53  ;;  %v5247_v31 = vld [vmem:[#allocation3 + $0xa0] sm:$0x1]  ;;  %v6207_v25 = vmax.f32 %v6143_v32, %v6175_v34  ;;  %v5279_v18 = vld [vmem:[#allocation3 + $0xa1] sm:$0x1] }
 0x591   :  { %5855 = vst.msk [vmem:[#allocation4 + $0x4c] sm:$0x1] %vm5333_vm4, %v5823_v42  ;;  %v5376_v60 = vld [vmem:[#allocation3 + $0xa2] sm:$0x1]  ;;  %v4475_v4 = vld [vmem:[#allocation2 + $0x21a] sm:$0xff]  ;;  %v5311_v35 = vmax.f32 %v5247_v31, %v5279_v18 }
 0x592   :  { %v4998_v48 = vmul.f32 %v12094_v51, %v4930_v13  ;;  %5983 = vst.msk [vmem:[#allocation4 + $0x4d] sm:$0x1] %vm5333_vm4, %v5951_v1  ;;  %v5408_v33 = vld [vmem:[#allocation3 + $0xa3] sm:$0x1]  ;;  %v5504_v14 = vld [vmem:[#allocation3 + $0xa4] sm:$0x1] }
 0x593   :  { %6111 = vst.msk [vmem:[#allocation4 + $0x4e] sm:$0x1] %vm5333_vm4, %v6079_v37  ;;  %v5440_v40 = vmax.f32 %v5376_v60, %v5408_v33  ;;  %v5536_v26 = vld [vmem:[#allocation3 + $0xa5] sm:$0x1]  ;;  %v5632_v23 = vld [vmem:[#allocation3 + $0xa6] sm:$0x1]  ;;  %10023 = vmatmul.msk.f32.gmra.mxu0 %vm54_vm1, %v4475_v4 }
 0x594   :  { %6239 = vst.msk [vmem:[#allocation4 + $0x4f] sm:$0x1] %vm5333_vm4, %v6207_v25  ;;  %v5568_v7 = vmax.f32 %v5504_v14, %v5536_v26  ;;  %v5664_v58 = vld [vmem:[#allocation3 + $0xa7] sm:$0x1]  ;;  %v5066_v53 = vadd.f32 %v12088_v0, %v4998_v48  ;;  %v4476_v4 = vld [vmem:[#allocation2 + $0x22a] sm:$0xff] }
 0x595   :  { %5344 = vst.msk [vmem:[#allocation4 + $0x50] sm:$0x1] %vm5333_vm4, %v5311_v35  ;;  %v5696_v56 = vmax.f32 %v5632_v23, %v5664_v58  ;;  %v6347_v26 = vld [vmem:[#allocation4 + $0x40] sm:$0xff] }
 0x596   :  { %5472 = vst.msk [vmem:[#allocation4 + $0x51] sm:$0x1] %vm5333_vm4, %v5440_v40  ;;  %v5130_v33 = vmax.f32 %v5066_v53, 0.0 }
 0x597   :  { %v5760_v9 = vld [vmem:[#allocation3 + $0xa8] sm:$0x1]  ;;  %v4785_v42 = vpop.f32.mrf.mxu0  ;;  %v5792_v13 = vld [vmem:[#allocation3 + $0xa9] sm:$0x1]  ;;  %v5888_v55 = vld [vmem:[#allocation3 + $0xaa] sm:$0x1] }
 0x598   :  { %v4931_v1 = vadd.f32 %v4785_v42, %v11578_v2  ;;  %v5824_v37 = vmax.f32 %v5760_v9, %v5792_v13  ;;  %v5920_v32 = vld [vmem:[#allocation3 + $0xab] sm:$0x1]  ;;  %v6016_v34 = vld [vmem:[#allocation3 + $0xac] sm:$0x1]  ;;  %5600 = vst.msk [vmem:[#allocation4 + $0x52] sm:$0x1] %vm5333_vm4, %v5568_v7 }
 0x599   :  { %v5952_v31 = vmax.f32 %v5888_v55, %v5920_v32  ;;  %v6048_v25 = vld [vmem:[#allocation3 + $0xad] sm:$0x1]  ;;  %v6144_v18 = vld [vmem:[#allocation3 + $0xae] sm:$0x1]  ;;  %5728 = vst.msk [vmem:[#allocation4 + $0x53] sm:$0x1] %vm5333_vm4, %v5696_v56 }
 0x59a   :  { %v4999_v60 = vmul.f32 %v12094_v51, %v4931_v1  ;;  %v6080_v35 = vmax.f32 %v6016_v34, %v6048_v25  ;;  %v6176_v48 = vld [vmem:[#allocation3 + $0xaf] sm:$0x1]  ;;  %5856 = vst.msk [vmem:[#allocation4 + $0x54] sm:$0x1] %vm5333_vm4, %v5824_v37  ;;  %v4477_v42 = vld [vmem:[#allocation2 + $0x232] sm:$0xff] }
 0x59b   :  { %v6208_v2 = vmax.f32 %v6144_v18, %v6176_v48  ;;  %5984 = vst.msk [vmem:[#allocation4 + $0x55] sm:$0x1] %vm5333_vm4, %v5952_v31  ;;  %v6350_v23 = vld [vmem:[#allocation4 + $0x48] sm:$0xff]  ;;  %10024 = vmatmul.msk.f32.gmra.mxu0 %vm54_vm1, %v4476_v4 }
 0x59c   :  { %v5067_v14 = vadd.f32 %v12088_v0, %v4999_v60  ;;  %6112 = vst.msk [vmem:[#allocation4 + $0x56] sm:$0x1] %vm5333_vm4, %v6080_v35  ;;  %v6352_v7 = vmax.f32 %v6347_v26, %v6350_v23 }
 0x59d   :  { %6240 = vst.msk [vmem:[#allocation4 + $0x57] sm:$0x1] %vm5333_vm4, %v6208_v2 }
 0x59e   :  { %v5131_v40 = vmax.f32 %v5067_v14, 0.0  ;;  %5195 = vst.msk [vmem:[#allocation3 + $0xb0] sm:$0xff] %vm5172_vm3, %v5130_v33 }
 0x59f   :  { %v4788_v58 = vpop.f32.mrf.mxu0  ;;  %6355 = vst.msk [vmem:[#allocation5 + $0x51] sm:$0xff] %vm5172_vm3, %v6352_v7 }
 0x5a0   :  { %5196 = vst.msk [vmem:[#allocation3 + $0xb8] sm:$0xff] %vm5172_vm3, %v5131_v40  ;;  %v4932_v9 = vadd.f32 %v4788_v58, %v11585_v21 }
 0x5a2   :  { %v5000_v56 = vmul.f32 %v12094_v51, %v4932_v9 }
 0x5a3   :  { %10025 = vmatmul.msk.f32.gmra.mxu0 %vm54_vm1, %v4477_v42 }
 0x5a4   :  { %v5068_v4 = vadd.f32 %v12088_v0, %v5000_v56 }
 0x5a5   :  { %v5248_v13 = vld [vmem:[#allocation3 + $0xb0] sm:$0x1]  ;;  %v5280_v55 = vld [vmem:[#allocation3 + $0xb1] sm:$0x1]  ;;  %v5377_v53 = vld [vmem:[#allocation3 + $0xb2] sm:$0x1] }
 0x5a6   :  { %v5312_v1 = vmax.f32 %v5248_v13, %v5280_v55  ;;  %v5409_v37 = vld [vmem:[#allocation3 + $0xb3] sm:$0x1]  ;;  %v5505_v32 = vld [vmem:[#allocation3 + $0xb4] sm:$0x1]  ;;  %v5537_v34 = vld [vmem:[#allocation3 + $0xb5] sm:$0x1] }
 0x5a7   :  { %v4791_v31 = vpop.f32.mrf.mxu0  ;;  %v5441_v25 = vmax.f32 %v5377_v53, %v5409_v37  ;;  %v5569_v18 = vmax.f32 %v5505_v32, %v5537_v34  ;;  %v5633_v60 = vld [vmem:[#allocation3 + $0xb6] sm:$0x1]  ;;  %v5665_v35 = vld [vmem:[#allocation3 + $0xb7] sm:$0x1]  ;;  %v5761_v48 = vld [vmem:[#allocation3 + $0xb8] sm:$0x1]  ;;  %v12158_v37 = vpop.f32.mrf.mxu2 }
 0x5a8   :  { %v4933_v21 = vadd.f32 %v4791_v31, %v11592_v16  ;;  %5345 = vst.msk [vmem:[#allocation4 + $0x58] sm:$0x1] %vm5333_vm4, %v5312_v1  ;;  %v5697_v2 = vmax.f32 %v5633_v60, %v5665_v35  ;;  %v5793_v33 = vld [vmem:[#allocation3 + $0xb9] sm:$0x1]  ;;  %v5889_v14 = vld [vmem:[#allocation3 + $0xba] sm:$0x1]  ;;  %v12156_v1 = vpop.f32.mrf.mxu1 }
 0x5a9   :  { %5473 = vst.msk [vmem:[#allocation4 + $0x59] sm:$0x1] %vm5333_vm4, %v5441_v25  ;;  %v5825_v40 = vmax.f32 %v5761_v48, %v5793_v33  ;;  %v5921_v26 = vld [vmem:[#allocation3 + $0xbb] sm:$0x1]  ;;  %v6017_v23 = vld [vmem:[#allocation3 + $0xbc] sm:$0x1] }
 0x5aa   :  { %v5001_v7 = vmul.f32 %v12094_v51, %v4933_v21  ;;  %5601 = vst.msk [vmem:[#allocation4 + $0x5a] sm:$0x1] %vm5333_vm4, %v5569_v18  ;;  %v5953_v58 = vmax.f32 %v5889_v14, %v5921_v26  ;;  %v6049_v9 = vld [vmem:[#allocation3 + $0xbd] sm:$0x1]  ;;  %v6145_v42 = vld [vmem:[#allocation3 + $0xbe] sm:$0x1]  ;;  %v12163_v18 = vpop.f32.mrf.mxu3 }
 0x5ab   :  { %5729 = vst.msk [vmem:[#allocation4 + $0x5b] sm:$0x1] %vm5333_vm4, %v5697_v2  ;;  %v6081_v16 = vmax.f32 %v6017_v23, %v6049_v9  ;;  %v6177_v13 = vld [vmem:[#allocation3 + $0xbf] sm:$0x1]  ;;  %v6412_v55 = vld [vmem:[#allocation5 + $0x51] sm:$0xff]  ;;  %v5132_v31 = vmax.f32 %v5068_v4, 0.0 }
 0x5ac   :  { %v6395_v53 = vld [vmem:[#allocation5 + $0x50] sm:$0xff]  ;;  %v5069_v56 = vadd.f32 %v12088_v0, %v5001_v7  ;;  %5857 = vst.msk [vmem:[#allocation4 + $0x5c] sm:$0x1] %vm5333_vm4, %v5825_v40  ;;  %v6209_v32 = vmax.f32 %v6145_v42, %v6177_v13  ;;  %10056 = vmatmul.msk.f32.gmra.mxu1 %vm5172_vm3, %v6412_v55  ;;  %v4478_v25 = vld [vmem:[#allocation2 + $0x242] sm:$0xff] }
 0x5ad   :  { %10072 = vmatmul.msk.f32.gmra.mxu2 %vm5172_vm3, %v6395_v53  ;;  %v6656_v34 = vld [vmem:[#allocation5 + $0x52] sm:$0xff]  ;;  %5985 = vst.msk [vmem:[#allocation4 + $0x5d] sm:$0x1] %vm5333_vm4, %v5953_v58  ;;  %10026 = vmatmul.msk.f32.gmra.mxu0 %vm54_vm1, %v4478_v25  ;;  %v4479_v21 = vld [vmem:[#allocation2 + $0x24a] sm:$0xff] }
 0x5ae   :  { %10089 = vmatmul.msk.f32.gmra.mxu3 %vm5172_vm3, %v6656_v34  ;;  %v5133_v60 = vmax.f32 %v5069_v56, 0.0  ;;  %6113 = vst.msk [vmem:[#allocation4 + $0x5e] sm:$0x1] %vm5333_vm4, %v6081_v16 }
 0x5af   :  { %6241 = vst.msk [vmem:[#allocation4 + $0x5f] sm:$0x1] %vm5333_vm4, %v6209_v32  ;;  %v4794_v35 = vpop.f32.mrf.mxu0  ;;  %v4480_v32 = vld [vmem:[#allocation2 + $0x25a] sm:$0xff] }
 0x5b0   :  { %5197 = vst.msk [vmem:[#allocation3 + $0xc0] sm:$0xff] %vm5172_vm3, %v5132_v31  ;;  %v4934_v48 = vadd.f32 %v4794_v35, %v11599_v30 }
 0x5b1   :  { %5198 = vst.msk [vmem:[#allocation3 + $0xc8] sm:$0xff] %vm5172_vm3, %v5133_v60 }
 0x5b2   :  { %v5002_v2 = vmul.f32 %v12094_v51, %v4934_v48 }
 0x5b4   :  { %v5070_v56 = vadd.f32 %v12088_v0, %v5002_v2 }
 0x5b5   :  { %10027 = vmatmul.msk.f32.gmra.mxu0 %vm54_vm1, %v4479_v21 }
 0x5b6   :  { %v6361_v34 = vld [vmem:[#allocation4 + $0x58] sm:$0xff]  ;;  %v5134_v2 = vmax.f32 %v5070_v56, 0.0 }
 0x5b7   :  { %v5249_v33 = vld [vmem:[#allocation3 + $0xc0] sm:$0x1]  ;;  %v5281_v14 = vld [vmem:[#allocation3 + $0xc1] sm:$0x1]  ;;  %v5378_v4 = vld [vmem:[#allocation3 + $0xc2] sm:$0x1] }
 0x5b8   :  { %v5313_v40 = vmax.f32 %v5249_v33, %v5281_v14  ;;  %v5410_v26 = vld [vmem:[#allocation3 + $0xc3] sm:$0x1]  ;;  %v5506_v23 = vld [vmem:[#allocation3 + $0xc4] sm:$0x1]  ;;  %v5538_v7 = vld [vmem:[#allocation3 + $0xc5] sm:$0x1] }
 0x5b9   :  { %v5442_v58 = vmax.f32 %v5378_v4, %v5410_v26  ;;  %v5570_v9 = vmax.f32 %v5506_v23, %v5538_v7  ;;  %v5634_v42 = vld [vmem:[#allocation3 + $0xc6] sm:$0x1]  ;;  %v5666_v16 = vld [vmem:[#allocation3 + $0xc7] sm:$0x1]  ;;  %v5762_v13 = vld [vmem:[#allocation3 + $0xc8] sm:$0x1] }
 0x5ba   :  { %5346 = vst.msk [vmem:[#allocation4 + $0x60] sm:$0x1] %vm5333_vm4, %v5313_v40  ;;  %v5698_v30 = vmax.f32 %v5634_v42, %v5666_v16  ;;  %v5794_v55 = vld [vmem:[#allocation3 + $0xc9] sm:$0x1]  ;;  %v5890_v53 = vld [vmem:[#allocation3 + $0xca] sm:$0x1] }
 0x5bb   :  { %5474 = vst.msk [vmem:[#allocation4 + $0x61] sm:$0x1] %vm5333_vm4, %v5442_v58  ;;  %v5826_v31 = vmax.f32 %v5762_v13, %v5794_v55  ;;  %v5922_v25 = vld [vmem:[#allocation3 + $0xcb] sm:$0x1]  ;;  %v6018_v60 = vld [vmem:[#allocation3 + $0xcc] sm:$0x1] }
 0x5bc   :  { %5602 = vst.msk [vmem:[#allocation4 + $0x62] sm:$0x1] %vm5333_vm4, %v5570_v9  ;;  %v5954_v35 = vmax.f32 %v5890_v53, %v5922_v25  ;;  %v6050_v48 = vld [vmem:[#allocation3 + $0xcd] sm:$0x1]  ;;  %v6146_v21 = vld [vmem:[#allocation3 + $0xce] sm:$0x1] }
 0x5bd   :  { %5730 = vst.msk [vmem:[#allocation4 + $0x63] sm:$0x1] %vm5333_vm4, %v5698_v30  ;;  %v6082_v33 = vmax.f32 %v6018_v60, %v6050_v48  ;;  %v6178_v14 = vld [vmem:[#allocation3 + $0xcf] sm:$0x1]  ;;  %v6358_v40 = vld [vmem:[#allocation4 + $0x50] sm:$0xff]  ;;  %10028 = vmatmul.msk.f32.gmra.mxu0 %vm54_vm1, %v4480_v32  ;;  %v4481_v7 = vld [vmem:[#allocation2 + $0x262] sm:$0xff]  ;;  %v12191_v48 = vpop.f32.mrf.mxu1 }
 0x5be   :  { %5858 = vst.msk [vmem:[#allocation4 + $0x64] sm:$0x1] %vm5333_vm4, %v5826_v31  ;;  %v6210_v4 = vmax.f32 %v6146_v21, %v6178_v14  ;;  %v6363_v26 = vmax.f32 %v6358_v40, %v6361_v34  ;;  %v12195_v40 = vpop.f32.mrf.mxu2 }
 0x5bf   :  { %5986 = vst.msk [vmem:[#allocation4 + $0x65] sm:$0x1] %vm5333_vm4, %v5954_v35 }
 0x5c0   :  { %6114 = vst.msk [vmem:[#allocation4 + $0x66] sm:$0x1] %vm5333_vm4, %v6082_v33  ;;  %v4797_v23 = vpop.f32.mrf.mxu0 }
 0x5c1   :  { %6242 = vst.msk [vmem:[#allocation4 + $0x67] sm:$0x1] %vm5333_vm4, %v6210_v4  ;;  %v4935_v58 = vadd.f32 %v4797_v23, %v11606_v36 }
 0x5c2   :  { %5199 = vst.msk [vmem:[#allocation3 + $0xd0] sm:$0xff] %vm5172_vm3, %v5134_v2  ;;  %v4482_v2 = vld [vmem:[#allocation2 + $0x272] sm:$0xff] }
 0x5c3   :  { %6366 = vst.msk [vmem:[#allocation5 + $0x61] sm:$0xff] %vm5172_vm3, %v6363_v26  ;;  %v5003_v9 = vmul.f32 %v12094_v51, %v4935_v58  ;;  %v12197_v26 = vpop.f32.mrf.mxu3 }
 0x5c5   :  { %10029 = vmatmul.msk.f32.gmra.mxu0 %vm54_vm1, %v4481_v7  ;;  %v5071_v30 = vadd.f32 %v12088_v0, %v5003_v9 }
 0x5c7   :  { %v5135_v21 = vmax.f32 %v5071_v30, 0.0 }
 0x5c8   :  { %v4800_v4 = vpop.f32.mrf.mxu0 }
 0x5c9   :  { %v5250_v42 = vld [vmem:[#allocation3 + $0xd0] sm:$0x1]  ;;  %v5282_v16 = vld [vmem:[#allocation3 + $0xd1] sm:$0x1]  ;;  %v5379_v13 = vld [vmem:[#allocation3 + $0xd2] sm:$0x1]  ;;  %v4936_v23 = vadd.f32 %v4800_v4, %v11613_v44 }
 0x5ca   :  { %v5314_v55 = vmax.f32 %v5250_v42, %v5282_v16  ;;  %v5411_v53 = vld [vmem:[#allocation3 + $0xd3] sm:$0x1]  ;;  %v5507_v56 = vld [vmem:[#allocation3 + $0xd4] sm:$0x1]  ;;  %v5539_v32 = vld [vmem:[#allocation3 + $0xd5] sm:$0x1] }
 0x5cb   :  { %v5443_v34 = vmax.f32 %v5379_v13, %v5411_v53  ;;  %v5571_v31 = vmax.f32 %v5507_v56, %v5539_v32  ;;  %v5635_v25 = vld [vmem:[#allocation3 + $0xd6] sm:$0x1]  ;;  %v5667_v60 = vld [vmem:[#allocation3 + $0xd7] sm:$0x1]  ;;  %v6413_v35 = vld [vmem:[#allocation5 + $0x61] sm:$0xff]  ;;  %v5004_v7 = vmul.f32 %v12094_v51, %v4936_v23  ;;  %5200 = vst.msk [vmem:[#allocation3 + $0xd8] sm:$0xff] %vm5172_vm3, %v5135_v21 }
 0x5cc   :  { %5347 = vst.msk [vmem:[#allocation4 + $0x68] sm:$0x1] %vm5333_vm4, %v5314_v55  ;;  %v5699_v36 = vmax.f32 %v5635_v25, %v5667_v60  ;;  %10057 = vmatmul.msk.f32.gmra.mxu1 %vm5172_vm3, %v6413_v35  ;;  %v6396_v33 = vld [vmem:[#allocation5 + $0x60] sm:$0xff] }
 0x5cd   :  { %v6657_v14 = vld [vmem:[#allocation5 + $0x62] sm:$0xff]  ;;  %5475 = vst.msk [vmem:[#allocation4 + $0x69] sm:$0x1] %vm5333_vm4, %v5443_v34  ;;  %10073 = vmatmul.msk.f32.gmra.mxu2 %vm5172_vm3, %v6396_v33  ;;  %10030 = vmatmul.msk.f32.gmra.mxu0 %vm54_vm1, %v4482_v2  ;;  %v5072_v58 = vadd.f32 %v12088_v0, %v5004_v7  ;;  %v4483_v16 = vld [vmem:[#allocation2 + $0x27a] sm:$0xff]  ;;  %v4484_v33 = vld [vmem:[#allocation2 + $0x28a] sm:$0xff] }
 0x5ce   :  { %10090 = vmatmul.msk.f32.gmra.mxu3 %vm5172_vm3, %v6657_v14  ;;  %5603 = vst.msk [vmem:[#allocation4 + $0x6a] sm:$0x1] %vm5333_vm4, %v5571_v31 }
 0x5cf   :  { %5731 = vst.msk [vmem:[#allocation4 + $0x6b] sm:$0x1] %vm5333_vm4, %v5699_v36  ;;  %v5136_v9 = vmax.f32 %v5072_v58, 0.0 }
 0x5d0   :  { %v4803_v42 = vpop.f32.mrf.mxu0 }
 0x5d1   :  { %5201 = vst.msk [vmem:[#allocation3 + $0xe0] sm:$0xff] %vm5172_vm3, %v5136_v9  ;;  %v4937_v13 = vadd.f32 %v4803_v42, %v11620_v45 }
 0x5d2   :  { %v5763_v44 = vld [vmem:[#allocation3 + $0xd8] sm:$0x1]  ;;  %v5795_v30 = vld [vmem:[#allocation3 + $0xd9] sm:$0x1]  ;;  %v5891_v55 = vld [vmem:[#allocation3 + $0xda] sm:$0x1] }
 0x5d3   :  { %v5005_v53 = vmul.f32 %v12094_v51, %v4937_v13  ;;  %v5827_v56 = vmax.f32 %v5763_v44, %v5795_v30  ;;  %v5923_v32 = vld [vmem:[#allocation3 + $0xdb] sm:$0x1]  ;;  %v6019_v34 = vld [vmem:[#allocation3 + $0xdc] sm:$0x1]  ;;  %v6051_v31 = vld [vmem:[#allocation3 + $0xdd] sm:$0x1] }
 0x5d4   :  { %v5955_v25 = vmax.f32 %v5891_v55, %v5923_v32  ;;  %v6083_v60 = vmax.f32 %v6019_v34, %v6051_v31  ;;  %v6147_v35 = vld [vmem:[#allocation3 + $0xde] sm:$0x1]  ;;  %v6179_v36 = vld [vmem:[#allocation3 + $0xdf] sm:$0x1] }
 0x5d5   :  { %10031 = vmatmul.msk.f32.gmra.mxu0 %vm54_vm1, %v4483_v16  ;;  %5859 = vst.msk [vmem:[#allocation4 + $0x6c] sm:$0x1] %vm5333_vm4, %v5827_v56  ;;  %v6211_v21 = vmax.f32 %v6147_v35, %v6179_v36  ;;  %v5073_v45 = vadd.f32 %v12088_v0, %v5005_v53 }
 0x5d6   :  { %5987 = vst.msk [vmem:[#allocation4 + $0x6d] sm:$0x1] %vm5333_vm4, %v5955_v25  ;;  %v4485_v25 = vld [vmem:[#allocation2 + $0x292] sm:$0xff] }
 0x5d7   :  { %6115 = vst.msk [vmem:[#allocation4 + $0x6e] sm:$0x1] %vm5333_vm4, %v6083_v60  ;;  %v5137_v53 = vmax.f32 %v5073_v45, 0.0  ;;  %v6369_v60 = vld [vmem:[#allocation4 + $0x60] sm:$0xff] }
 0x5d8   :  { %v5251_v14 = vld [vmem:[#allocation3 + $0xe0] sm:$0x1]  ;;  %v5283_v4 = vld [vmem:[#allocation3 + $0xe1] sm:$0x1]  ;;  %v4806_v2 = vpop.f32.mrf.mxu0  ;;  %6243 = vst.msk [vmem:[#allocation4 + $0x6f] sm:$0x1] %vm5333_vm4, %v6211_v21 }
 0x5d9   :  { %v5315_v23 = vmax.f32 %v5251_v14, %v5283_v4  ;;  %v5380_v7 = vld [vmem:[#allocation3 + $0xe2] sm:$0x1]  ;;  %v5412_v58 = vld [vmem:[#allocation3 + $0xe3] sm:$0x1]  ;;  %v4938_v9 = vadd.f32 %v4806_v2, %v11627_v50  ;;  %v5508_v16 = vld [vmem:[#allocation3 + $0xe4] sm:$0x1] }
 0x5da   :  { %v5444_v42 = vmax.f32 %v5380_v7, %v5412_v58  ;;  %v5540_v13 = vld [vmem:[#allocation3 + $0xe5] sm:$0x1]  ;;  %v5636_v44 = vld [vmem:[#allocation3 + $0xe6] sm:$0x1]  ;;  %v5668_v55 = vld [vmem:[#allocation3 + $0xe7] sm:$0x1] }
 0x5db   :  { %5348 = vst.msk [vmem:[#allocation4 + $0x70] sm:$0x1] %vm5333_vm4, %v5315_v23  ;;  %v5572_v30 = vmax.f32 %v5508_v16, %v5540_v13  ;;  %v5006_v56 = vmul.f32 %v12094_v51, %v4938_v9  ;;  %v5700_v32 = vmax.f32 %v5636_v44, %v5668_v55  ;;  %v4486_v2 = vld [vmem:[#allocation2 + $0x2a2] sm:$0xff] }
 0x5dc   :  { %5476 = vst.msk [vmem:[#allocation4 + $0x71] sm:$0x1] %vm5333_vm4, %v5444_v42 }
 0x5dd   :  { %10032 = vmatmul.msk.f32.gmra.mxu0 %vm54_vm1, %v4484_v33  ;;  %5604 = vst.msk [vmem:[#allocation4 + $0x72] sm:$0x1] %vm5333_vm4, %v5572_v30  ;;  %v5074_v50 = vadd.f32 %v12088_v0, %v5006_v56 }
 0x5de   :  { %5732 = vst.msk [vmem:[#allocation4 + $0x73] sm:$0x1] %vm5333_vm4, %v5700_v32 }
 0x5df   :  { %5202 = vst.msk [vmem:[#allocation3 + $0xe8] sm:$0xff] %vm5172_vm3, %v5137_v53  ;;  %v5138_v34 = vmax.f32 %v5074_v50, 0.0  ;;  %v6372_v35 = vld [vmem:[#allocation4 + $0x68] sm:$0xff] }
 0x5e0   :  { %v4809_v31 = vpop.f32.mrf.mxu0  ;;  %v6374_v21 = vmax.f32 %v6369_v60, %v6372_v35 }
 0x5e1   :  { %5203 = vst.msk [vmem:[#allocation3 + $0xf0] sm:$0xff] %vm5172_vm3, %v5138_v34  ;;  %v4939_v36 = vadd.f32 %v4809_v31, %v11634_v20 }
 0x5e2   :  { %6377 = vst.msk [vmem:[#allocation5 + $0x71] sm:$0xff] %vm5172_vm3, %v6374_v21 }
 0x5e3   :  { %v5007_v45 = vmul.f32 %v12094_v51, %v4939_v36 }
 0x5e5   :  { %10033 = vmatmul.msk.f32.gmra.mxu0 %vm54_vm1, %v4485_v25  ;;  %v5075_v32 = vadd.f32 %v12088_v0, %v5007_v45 }
 0x5e6   :  { %v5764_v33 = vld [vmem:[#allocation3 + $0xe8] sm:$0x1]  ;;  %v5796_v14 = vld [vmem:[#allocation3 + $0xe9] sm:$0x1]  ;;  %v5892_v4 = vld [vmem:[#allocation3 + $0xea] sm:$0x1] }
 0x5e7   :  { %v5828_v23 = vmax.f32 %v5764_v33, %v5796_v14  ;;  %v5924_v7 = vld [vmem:[#allocation3 + $0xeb] sm:$0x1]  ;;  %v6020_v58 = vld [vmem:[#allocation3 + $0xec] sm:$0x1]  ;;  %v6052_v9 = vld [vmem:[#allocation3 + $0xed] sm:$0x1] }
 0x5e8   :  { %v5956_v42 = vmax.f32 %v5892_v4, %v5924_v7  ;;  %v6084_v16 = vmax.f32 %v6020_v58, %v6052_v9  ;;  %v6148_v13 = vld [vmem:[#allocation3 + $0xee] sm:$0x1]  ;;  %v6180_v44 = vld [vmem:[#allocation3 + $0xef] sm:$0x1]  ;;  %v5252_v20 = vld [vmem:[#allocation3 + $0xf0] sm:$0x1]  ;;  %v4812_v30 = vpop.f32.mrf.mxu0 }
 0x5e9   :  { %5860 = vst.msk [vmem:[#allocation4 + $0x74] sm:$0x1] %vm5333_vm4, %v5828_v23  ;;  %v6212_v55 = vmax.f32 %v6148_v13, %v6180_v44  ;;  %v5284_v53 = vld [vmem:[#allocation3 + $0xf1] sm:$0x1]  ;;  %v5381_v56 = vld [vmem:[#allocation3 + $0xf2] sm:$0x1]  ;;  %v4940_v50 = vadd.f32 %v4812_v30, %v11641_v22  ;;  %v12240_v22 = vpop.f32.mrf.mxu1 }
 0x5ea   :  { %5988 = vst.msk [vmem:[#allocation4 + $0x75] sm:$0x1] %vm5333_vm4, %v5956_v42  ;;  %v5316_v34 = vmax.f32 %v5252_v20, %v5284_v53  ;;  %v5413_v31 = vld [vmem:[#allocation3 + $0xf3] sm:$0x1]  ;;  %v5509_v25 = vld [vmem:[#allocation3 + $0xf4] sm:$0x1]  ;;  %v12245_v42 = vpop.f32.mrf.mxu2 }
 0x5eb   :  { %6116 = vst.msk [vmem:[#allocation4 + $0x76] sm:$0x1] %vm5333_vm4, %v6084_v16  ;;  %v5445_v60 = vmax.f32 %v5381_v56, %v5413_v31  ;;  %v5541_v35 = vld [vmem:[#allocation3 + $0xf5] sm:$0x1]  ;;  %v5637_v36 = vld [vmem:[#allocation3 + $0xf6] sm:$0x1]  ;;  %v5008_v21 = vmul.f32 %v12094_v51, %v4940_v50 }
 0x5ec   :  { %6244 = vst.msk [vmem:[#allocation4 + $0x77] sm:$0x1] %vm5333_vm4, %v6212_v55  ;;  %v5573_v33 = vmax.f32 %v5509_v25, %v5541_v35  ;;  %v5669_v45 = vld [vmem:[#allocation3 + $0xf7] sm:$0x1]  ;;  %v5139_v23 = vmax.f32 %v5075_v32, 0.0  ;;  %v4487_v44 = vld [vmem:[#allocation2 + $0x2aa] sm:$0xff] }
 0x5ed   :  { %10034 = vmatmul.msk.f32.gmra.mxu0 %vm54_vm1, %v4486_v2  ;;  %v6414_v14 = vld [vmem:[#allocation5 + $0x71] sm:$0xff]  ;;  %5349 = vst.msk [vmem:[#allocation4 + $0x78] sm:$0x1] %vm5333_vm4, %v5316_v34  ;;  %v5701_v4 = vmax.f32 %v5637_v36, %v5669_v45  ;;  %v5076_v9 = vadd.f32 %v12088_v0, %v5008_v21  ;;  %v12247_v2 = vpop.f32.mrf.mxu3  ;;  %v4488_v55 = vld [vmem:[#allocation2 + $0x2ba] sm:$0xff] }
 0x5ee   :  { %10058 = vmatmul.msk.f32.gmra.mxu1 %vm5172_vm3, %v6414_v14  ;;  %v6397_v7 = vld [vmem:[#allocation5 + $0x70] sm:$0xff]  ;;  %5477 = vst.msk [vmem:[#allocation4 + $0x79] sm:$0x1] %vm5333_vm4, %v5445_v60 }
 0x5ef   :  { %v6658_v58 = vld [vmem:[#allocation5 + $0x72] sm:$0xff]  ;;  %10074 = vmatmul.msk.f32.gmra.mxu2 %vm5172_vm3, %v6397_v7  ;;  %5605 = vst.msk [vmem:[#allocation4 + $0x7a] sm:$0x1] %vm5333_vm4, %v5573_v33  ;;  %v5140_v16 = vmax.f32 %v5076_v9, 0.0 }
 0x5f0   :  { %10091 = vmatmul.msk.f32.gmra.mxu3 %vm5172_vm3, %v6658_v58  ;;  %5733 = vst.msk [vmem:[#allocation4 + $0x7b] sm:$0x1] %vm5333_vm4, %v5701_v4  ;;  %v4815_v13 = vpop.f32.mrf.mxu0 }
 0x5f1   :  { %5204 = vst.msk [vmem:[#allocation3 + $0xf8] sm:$0xff] %vm5172_vm3, %v5139_v23  ;;  %v4941_v20 = vadd.f32 %v4815_v13, %v11648_v52 }
 0x5f2   :  { %5205 = vst.msk [vmem:[#allocation3 + $0x100] sm:$0xff] %vm5172_vm3, %v5140_v16 }
 0x5f3   :  { %v5009_v30 = vmul.f32 %v12094_v51, %v4941_v20 }
 0x5f5   :  { %10035 = vmatmul.msk.f32.gmra.mxu0 %vm54_vm1, %v4487_v44  ;;  %v5077_v7 = vadd.f32 %v12088_v0, %v5009_v30 }
 0x5f8   :  { %v5765_v53 = vld [vmem:[#allocation3 + $0xf8] sm:$0x1]  ;;  %v5797_v56 = vld [vmem:[#allocation3 + $0xf9] sm:$0x1]  ;;  %v5893_v32 = vld [vmem:[#allocation3 + $0xfa] sm:$0x1]  ;;  %v4818_v50 = vpop.f32.mrf.mxu0 }
 0x5f9   :  { %v5829_v34 = vmax.f32 %v5765_v53, %v5797_v56  ;;  %v5925_v31 = vld [vmem:[#allocation3 + $0xfb] sm:$0x1]  ;;  %v6021_v25 = vld [vmem:[#allocation3 + $0xfc] sm:$0x1]  ;;  %v6053_v60 = vld [vmem:[#allocation3 + $0xfd] sm:$0x1]  ;;  %v4942_v35 = vadd.f32 %v4818_v50, %v11655_v57 }
 0x5fa   :  { %v5957_v36 = vmax.f32 %v5893_v32, %v5925_v31  ;;  %v6085_v21 = vmax.f32 %v6021_v25, %v6053_v60  ;;  %v6149_v33 = vld [vmem:[#allocation3 + $0xfe] sm:$0x1]  ;;  %v6181_v45 = vld [vmem:[#allocation3 + $0xff] sm:$0x1]  ;;  %v5253_v52 = vld [vmem:[#allocation3 + $0x100] sm:$0x1] }
 0x5fb   :  { %5861 = vst.msk [vmem:[#allocation4 + $0x7c] sm:$0x1] %vm5333_vm4, %v5829_v34  ;;  %v6213_v14 = vmax.f32 %v6149_v33, %v6181_v45  ;;  %v5285_v4 = vld [vmem:[#allocation3 + $0x101] sm:$0x1]  ;;  %v5382_v23 = vld [vmem:[#allocation3 + $0x102] sm:$0x1]  ;;  %v5010_v58 = vmul.f32 %v12094_v51, %v4942_v35 }
 0x5fc   :  { %5989 = vst.msk [vmem:[#allocation4 + $0x7d] sm:$0x1] %vm5333_vm4, %v5957_v36  ;;  %v5317_v9 = vmax.f32 %v5253_v52, %v5285_v4  ;;  %v5414_v57 = vld [vmem:[#allocation3 + $0x103] sm:$0x1]  ;;  %v5510_v16 = vld [vmem:[#allocation3 + $0x104] sm:$0x1] }
 0x5fd   :  { %10036 = vmatmul.msk.f32.gmra.mxu0 %vm54_vm1, %v4488_v55  ;;  %6117 = vst.msk [vmem:[#allocation4 + $0x7e] sm:$0x1] %vm5333_vm4, %v6085_v21  ;;  %v5446_v13 = vmax.f32 %v5382_v23, %v5414_v57  ;;  %v5542_v44 = vld [vmem:[#allocation3 + $0x105] sm:$0x1]  ;;  %v5638_v20 = vld [vmem:[#allocation3 + $0x106] sm:$0x1]  ;;  %v5078_v53 = vadd.f32 %v12088_v0, %v5010_v58 }
 0x5fe   :  { %6245 = vst.msk [vmem:[#allocation4 + $0x7f] sm:$0x1] %vm5333_vm4, %v6213_v14  ;;  %v5574_v56 = vmax.f32 %v5510_v16, %v5542_v44  ;;  %v5670_v30 = vld [vmem:[#allocation3 + $0x107] sm:$0x1]  ;;  %v5141_v55 = vmax.f32 %v5077_v7, 0.0  ;;  %v6380_v36 = vld [vmem:[#allocation4 + $0x70] sm:$0xff] }
 0x5ff   :  { %5350 = vst.msk [vmem:[#allocation4 + $0x80] sm:$0x1] %vm5333_vm4, %v5317_v9  ;;  %v5702_v32 = vmax.f32 %v5638_v20, %v5670_v30  ;;  %v5142_v50 = vmax.f32 %v5078_v53, 0.0  ;;  %v4489_v31 = vld [vmem:[#allocation2 + $0x2c2] sm:$0xff]  ;;  %v4490_v14 = vld [vmem:[#allocation2 + $0x2d2] sm:$0xff] }
 0x600   :  { %5478 = vst.msk [vmem:[#allocation4 + $0x81] sm:$0x1] %vm5333_vm4, %v5446_v13  ;;  %v4821_v34 = vpop.f32.mrf.mxu0 }
 0x601   :  { %5606 = vst.msk [vmem:[#allocation4 + $0x82] sm:$0x1] %vm5333_vm4, %v5574_v56  ;;  %v4943_v25 = vadd.f32 %v4821_v34, %v11662_v39 }
 0x602   :  { %5734 = vst.msk [vmem:[#allocation4 + $0x83] sm:$0x1] %vm5333_vm4, %v5702_v32 }
 0x603   :  { %5206 = vst.msk [vmem:[#allocation3 + $0x108] sm:$0xff] %vm5172_vm3, %v5141_v55  ;;  %v5011_v60 = vmul.f32 %v12094_v51, %v4943_v25  ;;  %v4491_v25 = vld [vmem:[#allocation2 + $0x2da] sm:$0xff] }
 0x604   :  { %5207 = vst.msk [vmem:[#allocation3 + $0x110] sm:$0xff] %vm5172_vm3, %v5142_v50 }
 0x605   :  { %10037 = vmatmul.msk.f32.gmra.mxu0 %vm54_vm1, %v4489_v31  ;;  %v5079_v35 = vadd.f32 %v12088_v0, %v5011_v60  ;;  %v6383_v21 = vld [vmem:[#allocation4 + $0x78] sm:$0xff] }
 0x606   :  { %v6385_v33 = vmax.f32 %v6380_v36, %v6383_v21 }
 0x607   :  { %v5143_v45 = vmax.f32 %v5079_v35, 0.0 }
 0x608   :  { %v4824_v52 = vpop.f32.mrf.mxu0  ;;  %6388 = vst.msk [vmem:[#allocation5 + $0x81] sm:$0xff] %vm5172_vm3, %v6385_v33 }
 0x609   :  { %5208 = vst.msk [vmem:[#allocation3 + $0x118] sm:$0xff] %vm5172_vm3, %v5143_v45  ;;  %v4944_v39 = vadd.f32 %v4824_v52, %v11669_v49 }
 0x60a   :  { %v5766_v4 = vld [vmem:[#allocation3 + $0x108] sm:$0x1]  ;;  %v5798_v23 = vld [vmem:[#allocation3 + $0x109] sm:$0x1]  ;;  %v5894_v7 = vld [vmem:[#allocation3 + $0x10a] sm:$0x1] }
 0x60b   :  { %v5830_v58 = vmax.f32 %v5766_v4, %v5798_v23  ;;  %v5926_v9 = vld [vmem:[#allocation3 + $0x10b] sm:$0x1]  ;;  %v6022_v57 = vld [vmem:[#allocation3 + $0x10c] sm:$0x1]  ;;  %v6054_v16 = vld [vmem:[#allocation3 + $0x10d] sm:$0x1]  ;;  %v5012_v49 = vmul.f32 %v12094_v51, %v4944_v39 }
 0x60c   :  { %v5958_v13 = vmax.f32 %v5894_v7, %v5926_v9  ;;  %v6086_v44 = vmax.f32 %v6022_v57, %v6054_v16  ;;  %v6150_v20 = vld [vmem:[#allocation3 + $0x10e] sm:$0x1]  ;;  %v6182_v53 = vld [vmem:[#allocation3 + $0x10f] sm:$0x1]  ;;  %v5254_v56 = vld [vmem:[#allocation3 + $0x110] sm:$0x1] }
 0x60d   :  { %10038 = vmatmul.msk.f32.gmra.mxu0 %vm54_vm1, %v4490_v14  ;;  %5862 = vst.msk [vmem:[#allocation4 + $0x84] sm:$0x1] %vm5333_vm4, %v5830_v58  ;;  %v6214_v30 = vmax.f32 %v6150_v20, %v6182_v53  ;;  %v5286_v32 = vld [vmem:[#allocation3 + $0x111] sm:$0x1]  ;;  %v5383_v55 = vld [vmem:[#allocation3 + $0x112] sm:$0x1]  ;;  %v5080_v23 = vadd.f32 %v12088_v0, %v5012_v49 }
 0x60e   :  { %5990 = vst.msk [vmem:[#allocation4 + $0x85] sm:$0x1] %vm5333_vm4, %v5958_v13  ;;  %v5318_v50 = vmax.f32 %v5254_v56, %v5286_v32  ;;  %v5415_v34 = vld [vmem:[#allocation3 + $0x113] sm:$0x1]  ;;  %v5511_v31 = vld [vmem:[#allocation3 + $0x114] sm:$0x1] }
 0x60f   :  { %6118 = vst.msk [vmem:[#allocation4 + $0x86] sm:$0x1] %vm5333_vm4, %v6086_v44  ;;  %v5447_v60 = vmax.f32 %v5383_v55, %v5415_v34  ;;  %v5543_v35 = vld [vmem:[#allocation3 + $0x115] sm:$0x1]  ;;  %v5639_v36 = vld [vmem:[#allocation3 + $0x116] sm:$0x1]  ;;  %v12297_v34 = vpop.f32.mrf.mxu1 }
 0x610   :  { %6246 = vst.msk [vmem:[#allocation4 + $0x87] sm:$0x1] %vm5333_vm4, %v6214_v30  ;;  %v5575_v21 = vmax.f32 %v5511_v31, %v5543_v35  ;;  %v5671_v33 = vld [vmem:[#allocation3 + $0x117] sm:$0x1]  ;;  %v5767_v45 = vld [vmem:[#allocation3 + $0x118] sm:$0x1]  ;;  %v4827_v52 = vpop.f32.mrf.mxu0  ;;  %v12299_v31 = vpop.f32.mrf.mxu2 }
 0x611   :  { %5351 = vst.msk [vmem:[#allocation4 + $0x88] sm:$0x1] %vm5333_vm4, %v5318_v50  ;;  %v5703_v14 = vmax.f32 %v5639_v36, %v5671_v33  ;;  %v5799_v39 = vld [vmem:[#allocation3 + $0x119] sm:$0x1]  ;;  %v5895_v4 = vld [vmem:[#allocation3 + $0x11a] sm:$0x1]  ;;  %v4945_v7 = vadd.f32 %v4827_v52, %v11678_v15 }
 0x612   :  { %5479 = vst.msk [vmem:[#allocation4 + $0x89] sm:$0x1] %vm5333_vm4, %v5447_v60  ;;  %v5831_v58 = vmax.f32 %v5767_v45, %v5799_v39  ;;  %v5927_v9 = vld [vmem:[#allocation3 + $0x11b] sm:$0x1]  ;;  %v6023_v57 = vld [vmem:[#allocation3 + $0x11c] sm:$0x1] }
 0x613   :  { %5607 = vst.msk [vmem:[#allocation4 + $0x8a] sm:$0x1] %vm5333_vm4, %v5575_v21  ;;  %v5959_v16 = vmax.f32 %v5895_v4, %v5927_v9  ;;  %v6055_v13 = vld [vmem:[#allocation3 + $0x11d] sm:$0x1]  ;;  %v6151_v44 = vld [vmem:[#allocation3 + $0x11e] sm:$0x1]  ;;  %v5013_v20 = vmul.f32 %v12094_v51, %v4945_v7 }
 0x614   :  { %5735 = vst.msk [vmem:[#allocation4 + $0x8b] sm:$0x1] %vm5333_vm4, %v5703_v14  ;;  %v6087_v53 = vmax.f32 %v6023_v57, %v6055_v13  ;;  %v6183_v56 = vld [vmem:[#allocation3 + $0x11f] sm:$0x1]  ;;  %v5144_v30 = vmax.f32 %v5080_v23, 0.0  ;;  %v6415_v55 = vld [vmem:[#allocation5 + $0xa1] sm:$0xff] }
 0x615   :  { %10039 = vmatmul.msk.f32.gmra.mxu0 %vm54_vm1, %v4491_v25  ;;  %5863 = vst.msk [vmem:[#allocation4 + $0x8c] sm:$0x1] %vm5333_vm4, %v5831_v58  ;;  %v6215_v15 = vmax.f32 %v6151_v44, %v6183_v56  ;;  %v5081_v32 = vadd.f32 %v12088_v0, %v5013_v20  ;;  %v6398_v49 = vld [vmem:[#allocation5 + $0xa0] sm:$0xff]  ;;  %10059 = vmatmul.msk.f32.gmra.mxu1 %vm5172_vm3, %v6415_v55  ;;  %v12304_v25 = vpop.f32.mrf.mxu3  ;;  %v4492_v35 = vld [vmem:[#allocation2 + $0x2ea] sm:$0xff]  ;;  %v4493_v33 = vld [vmem:[#allocation2 + $0x2f2] sm:$0xff] }
 0x616   :  { %v6659_v50 = vld [vmem:[#allocation5 + $0xa2] sm:$0xff]  ;;  %5991 = vst.msk [vmem:[#allocation4 + $0x8d] sm:$0x1] %vm5333_vm4, %v5959_v16  ;;  %10075 = vmatmul.msk.f32.gmra.mxu2 %vm5172_vm3, %v6398_v49 }
 0x617   :  { %6119 = vst.msk [vmem:[#allocation4 + $0x8e] sm:$0x1] %vm5333_vm4, %v6087_v53  ;;  %v5145_v60 = vmax.f32 %v5081_v32, 0.0  ;;  %10092 = vmatmul.msk.f32.gmra.mxu3 %vm5172_vm3, %v6659_v50  ;;  %v13902_v45 = vld [vmem:[#allocation18_spill] sm:$0xff] }
 0x618   :  { %6247 = vst.msk [vmem:[#allocation4 + $0x8f] sm:$0x1] %vm5333_vm4, %v6215_v15  ;;  %v4830_v0 = vpop.f32.mrf.mxu0  ;;  %v2811_v52 = vadd.f32 %v11671_v11, %v13902_v45 }
 0x619   :  { %5209 = vst.msk [vmem:[#allocation3 + $0x120] sm:$0xff] %vm5172_vm3, %v5144_v30  ;;  %v4946_v36 = vadd.f32 %v4830_v0, %v11686_v28  ;;  %v12322_v30 = vld [vmem:[%s13822_s3] ss:$0 sm:$0xff] }
 0x61a   :  { %5210 = vst.msk [vmem:[#allocation3 + $0x128] sm:$0xff] %vm5172_vm3, %v5145_v60  ;;  %v3345_v28 = vadd.f32 %v11866_v12, %v2811_v52 }
 0x61b   :  { %v5014_v21 = vmul.f32 %v12094_v51, %v4946_v36 }
 0x61c   :  { %v3880_v60 = vadd.f32 %v11869_v19, %v3345_v28 }
 0x61d   :  { %10040 = vmatmul.msk.f32.gmra.mxu0 %vm54_vm1, %v4492_v35  ;;  %v5082_v32 = vadd.f32 %v12322_v30, %v5014_v21 }
 0x620   :  { %v5255_v14 = vld [vmem:[#allocation3 + $0x120] sm:$0x1]  ;;  %v5287_v39 = vld [vmem:[#allocation3 + $0x121] sm:$0x1]  ;;  %v5384_v4 = vld [vmem:[#allocation3 + $0x122] sm:$0x1]  ;;  %v4833_v23 = vpop.f32.mrf.mxu0 }
 0x621   :  { %v5319_v7 = vmax.f32 %v5255_v14, %v5287_v39  ;;  %v5416_v58 = vld [vmem:[#allocation3 + $0x123] sm:$0x1]  ;;  %v5512_v9 = vld [vmem:[#allocation3 + $0x124] sm:$0x1]  ;;  %v5544_v57 = vld [vmem:[#allocation3 + $0x125] sm:$0x1]  ;;  %v4947_v16 = vadd.f32 %v4833_v23, %v11694_v54 }
 0x622   :  { %v5448_v13 = vmax.f32 %v5384_v4, %v5416_v58  ;;  %v5576_v44 = vmax.f32 %v5512_v9, %v5544_v57  ;;  %v5640_v20 = vld [vmem:[#allocation3 + $0x126] sm:$0x1]  ;;  %v5672_v51 = vld [vmem:[#allocation3 + $0x127] sm:$0x1]  ;;  %v5768_v53 = vld [vmem:[#allocation3 + $0x128] sm:$0x1] }
 0x623   :  { %5352 = vst.msk [vmem:[#allocation4 + $0x90] sm:$0x1] %vm5333_vm4, %v5319_v7  ;;  %v5704_v11 = vmax.f32 %v5640_v20, %v5672_v51  ;;  %v5800_v56 = vld [vmem:[#allocation3 + $0x129] sm:$0x1]  ;;  %v5896_v15 = vld [vmem:[#allocation3 + $0x12a] sm:$0x1] }
 0x624   :  { %v12328_v54 = vld [vmem:[%s13821_s2] ss:$0 sm:$0xff]  ;;  %5480 = vst.msk [vmem:[#allocation4 + $0x91] sm:$0x1] %vm5333_vm4, %v5448_v13  ;;  %v5832_v55 = vmax.f32 %v5768_v53, %v5800_v56  ;;  %v5928_v49 = vld [vmem:[#allocation3 + $0x12b] sm:$0x1] }
 0x625   :  { %v5015_v12 = vmul.f32 %v12328_v54, %v4947_v16  ;;  %10041 = vmatmul.msk.f32.gmra.mxu0 %vm54_vm1, %v4493_v33  ;;  %v6024_v50 = vld [vmem:[#allocation3 + $0x12c] sm:$0x1]  ;;  %5608 = vst.msk [vmem:[#allocation4 + $0x92] sm:$0x1] %vm5333_vm4, %v5576_v44  ;;  %v5960_v0 = vmax.f32 %v5896_v15, %v5928_v49  ;;  %v6056_v35 = vld [vmem:[#allocation3 + $0x12d] sm:$0x1]  ;;  %v4414_v33 = vadd.f32 %v11875_v17, %v3880_v60 }
 0x626   :  { %v6152_v36 = vld [vmem:[#allocation3 + $0x12e] sm:$0x1]  ;;  %5736 = vst.msk [vmem:[#allocation4 + $0x93] sm:$0x1] %vm5333_vm4, %v5704_v11  ;;  %v6088_v45 = vmax.f32 %v6024_v50, %v6056_v35  ;;  %v6184_v52 = vld [vmem:[#allocation3 + $0x12f] sm:$0x1] }
 0x627   :  { %v5083_v21 = vadd.f32 %v12322_v30, %v5015_v12  ;;  %v6307_v14 = vld [vmem:[#allocation4 + $0x88] sm:$0xff]  ;;  %5864 = vst.msk [vmem:[#allocation4 + $0x94] sm:$0x1] %vm5333_vm4, %v5832_v55  ;;  %v6216_v39 = vmax.f32 %v6152_v36, %v6184_v52  ;;  %v5146_v4 = vmax.f32 %v5082_v32, 0.0  ;;  %v6304_v23 = vld [vmem:[#allocation4 + $0x80] sm:$0xff] }
 0x628   :  { %5992 = vst.msk [vmem:[#allocation4 + $0x95] sm:$0x1] %vm5333_vm4, %v5960_v0  ;;  %v4494_v58 = vld [vmem:[#allocation2 + $0x302] sm:$0xff]  ;;  %v6309_v16 = vmax.f32 %v6304_v23, %v6307_v14  ;;  %v4495_v11 = vld [vmem:[#allocation2 + $0x30a] sm:$0xff]  ;;  %v4496_v23 = vld [vmem:[#allocation2 + $0x31a] sm:$0xff] }
 0x629   :  { %v5147_v19 = vmax.f32 %v5083_v21, 0.0  ;;  %v13903_v9 = vld [vmem:[#allocation19_spill] sm:$0xff]  ;;  %6120 = vst.msk [vmem:[#allocation4 + $0x96] sm:$0x1] %vm5333_vm4, %v6088_v45 }
 0x62a   :  { %v4836_v7 = vpop.f32.mrf.mxu0  ;;  %v2812_v57 = vadd.f32 %v11680_v63, %v13903_v9  ;;  %6248 = vst.msk [vmem:[#allocation4 + $0x97] sm:$0x1] %vm5333_vm4, %v6216_v39 }
 0x62b   :  { %v4948_v28 = vadd.f32 %v4836_v7, %v4414_v33  ;;  %5211 = vst.msk [vmem:[#allocation3 + $0x130] sm:$0xff] %vm5172_vm3, %v5146_v4 }
 0x62c   :  { %v3346_v17 = vadd.f32 %v11971_v29, %v2812_v57  ;;  %5212 = vst.msk [vmem:[#allocation3 + $0x138] sm:$0xff] %vm5172_vm3, %v5147_v19  ;;  %v13904_v29 = vld [vmem:[#allocation20_spill] sm:$0xff] }
 0x62d   :  { %v5016_v13 = vmul.f32 %v12328_v54, %v4948_v28  ;;  %10042 = vmatmul.msk.f32.gmra.mxu0 %vm54_vm1, %v4494_v58  ;;  %6312 = vst.msk [vmem:[#allocation5 + $0xb1] sm:$0xff] %vm5172_vm3, %v6309_v16  ;;  %v2813_v56 = vadd.f32 %v11688_v6, %v13904_v29  ;;  %v12373_v29 = vpop.f32.mrf.mxu3 }
 0x62e   :  { %v3881_v44 = vadd.f32 %v11976_v62, %v3346_v17 }
 0x62f   :  { %v5084_v63 = vadd.f32 %v12322_v30, %v5016_v13  ;;  %v3347_v62 = vadd.f32 %v12012_v46, %v2813_v56 }
 0x630   :  { %v4415_v20 = vadd.f32 %v11978_v24, %v3881_v44  ;;  %v12365_v44 = vpop.f32.mrf.mxu1 }
 0x631   :  { %v5148_v51 = vmax.f32 %v5084_v63, 0.0  ;;  %v3882_v6 = vadd.f32 %v12014_v38, %v3347_v62  ;;  %v12367_v63 = vpop.f32.mrf.mxu2 }
 0x632   :  { %v4839_v53 = vpop.f32.mrf.mxu0  ;;  %v5256_v32 = vld [vmem:[#allocation3 + $0x130] sm:$0x1]  ;;  %v5288_v12 = vld [vmem:[#allocation3 + $0x131] sm:$0x1]  ;;  %v5385_v55 = vld [vmem:[#allocation3 + $0x132] sm:$0x1] }
 0x633   :  { %5213 = vst.msk [vmem:[#allocation3 + $0x140] sm:$0xff] %vm5172_vm3, %v5148_v51  ;;  %v4949_v15 = vadd.f32 %v4839_v53, %v4415_v20  ;;  %v5320_v49 = vmax.f32 %v5256_v32, %v5288_v12  ;;  %v5417_v50 = vld [vmem:[#allocation3 + $0x133] sm:$0x1]  ;;  %v5513_v60 = vld [vmem:[#allocation3 + $0x134] sm:$0x1]  ;;  %v4416_v7 = vadd.f32 %v12019_v3, %v3882_v6  ;;  %v13905_v32 = vld [vmem:[#allocation21_spill] sm:$0xff] }
 0x634   :  { %v5545_v0 = vld [vmem:[#allocation3 + $0x135] sm:$0x1]  ;;  %v5449_v24 = vmax.f32 %v5385_v55, %v5417_v50  ;;  %v5641_v36 = vld [vmem:[#allocation3 + $0x136] sm:$0x1]  ;;  %v5673_v21 = vld [vmem:[#allocation3 + $0x137] sm:$0x1]  ;;  %v2814_v12 = vadd.f32 %v11696_v8, %v13905_v32 }
 0x635   :  { %10043 = vmatmul.msk.f32.gmra.mxu0 %vm54_vm1, %v4495_v11  ;;  %v5577_v35 = vmax.f32 %v5513_v60, %v5545_v0  ;;  %v5769_v45 = vld [vmem:[#allocation3 + $0x138] sm:$0x1]  ;;  %5353 = vst.msk [vmem:[#allocation4 + $0x98] sm:$0x1] %vm5333_vm4, %v5320_v49  ;;  %v5705_v52 = vmax.f32 %v5641_v36, %v5673_v21  ;;  %v5801_v14 = vld [vmem:[#allocation3 + $0x139] sm:$0x1]  ;;  %v5017_v46 = vmul.f32 %v12328_v54, %v4949_v15 }
 0x636   :  { %v5897_v33 = vld [vmem:[#allocation3 + $0x13a] sm:$0x1]  ;;  %5481 = vst.msk [vmem:[#allocation4 + $0x99] sm:$0x1] %vm5333_vm4, %v5449_v24  ;;  %v5833_v39 = vmax.f32 %v5769_v45, %v5801_v14  ;;  %v5929_v4 = vld [vmem:[#allocation3 + $0x13b] sm:$0x1] }
 0x637   :  { %v6025_v19 = vld [vmem:[#allocation3 + $0x13c] sm:$0x1]  ;;  %5609 = vst.msk [vmem:[#allocation4 + $0x9a] sm:$0x1] %vm5333_vm4, %v5577_v35  ;;  %v5961_v58 = vmax.f32 %v5897_v33, %v5929_v4  ;;  %v6057_v9 = vld [vmem:[#allocation3 + $0x13d] sm:$0x1]  ;;  %v5085_v53 = vadd.f32 %v12322_v30, %v5017_v46  ;;  %v3348_v35 = vadd.f32 %v12054_v41, %v2814_v12 }
 0x638   :  { %v6153_v38 = vld [vmem:[#allocation3 + $0x13e] sm:$0x1]  ;;  %5737 = vst.msk [vmem:[#allocation4 + $0x9b] sm:$0x1] %vm5333_vm4, %v5705_v52  ;;  %v6089_v57 = vmax.f32 %v6025_v19, %v6057_v9  ;;  %v6185_v16 = vld [vmem:[#allocation3 + $0x13f] sm:$0x1] }
 0x639   :  { %v6416_v28 = vld [vmem:[#allocation5 + $0xb1] sm:$0xff]  ;;  %5865 = vst.msk [vmem:[#allocation4 + $0x9c] sm:$0x1] %vm5333_vm4, %v5833_v39  ;;  %v6217_v20 = vmax.f32 %v6153_v38, %v6185_v16  ;;  %v5149_v21 = vmax.f32 %v5085_v53, 0.0  ;;  %v3883_v52 = vadd.f32 %v12056_v61, %v3348_v35  ;;  %v4497_v46 = vld [vmem:[#allocation2 + $0x322] sm:$0xff] }
 0x63a   :  { %v6399_v17 = vld [vmem:[#allocation5 + $0xb0] sm:$0xff]  ;;  %v4842_v13 = vpop.f32.mrf.mxu0  ;;  %10060 = vmatmul.msk.f32.gmra.mxu1 %vm5172_vm3, %v6416_v28  ;;  %v5257_v51 = vld [vmem:[#allocation3 + $0x140] sm:$0x1]  ;;  %5993 = vst.msk [vmem:[#allocation4 + $0x9d] sm:$0x1] %vm5333_vm4, %v5961_v58 }
 0x63b   :  { %10076 = vmatmul.msk.f32.gmra.mxu2 %vm5172_vm3, %v6399_v17  ;;  %v6660_v3 = vld [vmem:[#allocation5 + $0xb2] sm:$0xff]  ;;  %v4950_v11 = vadd.f32 %v4842_v13, %v4416_v7  ;;  %v5289_v56 = vld [vmem:[#allocation3 + $0x141] sm:$0x1]  ;;  %v5386_v15 = vld [vmem:[#allocation3 + $0x142] sm:$0x1]  ;;  %v4417_v4 = vadd.f32 %v12063_v5, %v3883_v52  ;;  %5214 = vst.msk [vmem:[#allocation3 + $0x148] sm:$0xff] %vm5172_vm3, %v5149_v21 }
 0x63c   :  { %10093 = vmatmul.msk.f32.gmra.mxu3 %vm5172_vm3, %v6660_v3  ;;  %6121 = vst.msk [vmem:[#allocation4 + $0x9e] sm:$0x1] %vm5333_vm4, %v6089_v57  ;;  %v5321_v55 = vmax.f32 %v5257_v51, %v5289_v56  ;;  %v5418_v62 = vld [vmem:[#allocation3 + $0x143] sm:$0x1]  ;;  %v5514_v49 = vld [vmem:[#allocation3 + $0x144] sm:$0x1] }
 0x63d   :  { %v5018_v50 = vmul.f32 %v12328_v54, %v4950_v11  ;;  %10044 = vmatmul.msk.f32.gmra.mxu0 %vm54_vm1, %v4496_v23  ;;  %6249 = vst.msk [vmem:[#allocation4 + $0x9f] sm:$0x1] %vm5333_vm4, %v6217_v20  ;;  %v5450_v60 = vmax.f32 %v5386_v15, %v5418_v62  ;;  %v5546_v0 = vld [vmem:[#allocation3 + $0x145] sm:$0x1]  ;;  %v5642_v24 = vld [vmem:[#allocation3 + $0x146] sm:$0x1] }
 0x63e   :  { %5354 = vst.msk [vmem:[#allocation4 + $0xa0] sm:$0x1] %vm5333_vm4, %v5321_v55  ;;  %v5578_v36 = vmax.f32 %v5514_v49, %v5546_v0  ;;  %v5674_v8 = vld [vmem:[#allocation3 + $0x147] sm:$0x1]  ;;  %v6315_v61 = vld [vmem:[#allocation4 + $0x90] sm:$0xff]  ;;  %v13907_v57 = vld [vmem:[#allocation23_spill] sm:$0xff] }
 0x63f   :  { %v5086_v45 = vadd.f32 %v12322_v30, %v5018_v50  ;;  %5482 = vst.msk [vmem:[#allocation4 + $0xa1] sm:$0x1] %vm5333_vm4, %v5450_v60  ;;  %v5706_v6 = vmax.f32 %v5642_v24, %v5674_v8  ;;  %v13906_v41 = vld [vmem:[#allocation22_spill] sm:$0xff]  ;;  %v4498_v38 = vld [vmem:[#allocation2 + $0x332] sm:$0xff] }
 0x640   :  { %5610 = vst.msk [vmem:[#allocation4 + $0xa2] sm:$0x1] %vm5333_vm4, %v5578_v36  ;;  %v2815_v39 = vadd.f32 %v11702_v59, %v13906_v41  ;;  %v13908_v16 = vld [vmem:[#allocation12_spill] sm:$0xff] }
 0x641   :  { %v5150_v14 = vmax.f32 %v5086_v45, 0.0  ;;  %5738 = vst.msk [vmem:[#allocation4 + $0xa3] sm:$0x1] %vm5333_vm4, %v5706_v6  ;;  %v2816_v28 = vadd.f32 %v13908_v16, %v13907_v57 }
 0x642   :  { %v4845_v33 = vpop.f32.mrf.mxu0  ;;  %v3349_v19 = vadd.f32 %v12101_v43, %v2815_v39  ;;  %v5770_v17 = vld [vmem:[#allocation3 + $0x148] sm:$0x1]  ;;  %v5802_v43 = vld [vmem:[#allocation3 + $0x149] sm:$0x1]  ;;  %v5898_v13 = vld [vmem:[#allocation3 + $0x14a] sm:$0x1]  ;;  %v12414_v39 = vpop.f32.mrf.mxu1 }
 0x643   :  { %5215 = vst.msk [vmem:[#allocation3 + $0x150] sm:$0xff] %vm5172_vm3, %v5150_v14  ;;  %v4951_v23 = vadd.f32 %v4845_v33, %v4417_v4  ;;  %v5834_v3 = vmax.f32 %v5770_v17, %v5802_v43  ;;  %v5930_v51 = vld [vmem:[#allocation3 + $0x14b] sm:$0x1]  ;;  %v6026_v53 = vld [vmem:[#allocation3 + $0x14c] sm:$0x1]  ;;  %v12416_v4 = vpop.f32.mrf.mxu2 }
 0x644   :  { %v6318_v7 = vld [vmem:[#allocation4 + $0x98] sm:$0xff]  ;;  %v3884_v9 = vadd.f32 %v12103_v47, %v3349_v19  ;;  %v6058_v11 = vld [vmem:[#allocation3 + $0x14d] sm:$0x1]  ;;  %v3350_v47 = vadd.f32 %v12156_v1, %v2816_v28  ;;  %v5962_v15 = vmax.f32 %v5898_v13, %v5930_v51  ;;  %v6186_v12 = vld [vmem:[#allocation3 + $0x14f] sm:$0x1] }
 0x645   :  { %10045 = vmatmul.msk.f32.gmra.mxu0 %vm54_vm1, %v4497_v46  ;;  %v6320_v58 = vmax.f32 %v6315_v61, %v6318_v7  ;;  %v5019_v5 = vmul.f32 %v12328_v54, %v4951_v23  ;;  %v6090_v32 = vmax.f32 %v6026_v53, %v6058_v11  ;;  %5866 = vst.msk [vmem:[#allocation4 + $0xa4] sm:$0x1] %vm5333_vm4, %v5834_v3  ;;  %v12421_v61 = vpop.f32.mrf.mxu3  ;;  %v4500_v3 = vld [vmem:[#allocation2 + $0x34a] sm:$0xff]  ;;  %v13911_v51 = vld [vmem:[#allocation25_spill] sm:$0xff]  ;;  %v13912_v53 = vld [vmem:[#allocation14_spill] sm:$0xff] }
 0x646   :  { %v4418_v59 = vadd.f32 %v12108_v27, %v3884_v9  ;;  %v6154_v27 = vld [vmem:[#allocation3 + $0x14e] sm:$0x1]  ;;  %5994 = vst.msk [vmem:[#allocation4 + $0xa5] sm:$0x1] %vm5333_vm4, %v5962_v15  ;;  %v3885_v36 = vadd.f32 %v12158_v37, %v3350_v47  ;;  %v13909_v9 = vld [vmem:[#allocation24_spill] sm:$0xff] }
 0x647   :  { %6323 = vst.msk [vmem:[#allocation5 + $0xc1] sm:$0xff] %vm5172_vm3, %v6320_v58  ;;  %v6218_v62 = vmax.f32 %v6154_v27, %v6186_v12  ;;  %v5087_v60 = vadd.f32 %v12322_v30, %v5019_v5  ;;  %v4499_v58 = vld [vmem:[#allocation2 + $0x33a] sm:$0xff] }
 0x648   :  { %6122 = vst.msk [vmem:[#allocation4 + $0xa6] sm:$0x1] %vm5333_vm4, %v6090_v32  ;;  %v4419_v41 = vadd.f32 %v12163_v18, %v3885_v36 }
 0x649   :  { %6250 = vst.msk [vmem:[#allocation4 + $0xa7] sm:$0x1] %vm5333_vm4, %v6218_v62  ;;  %v5151_v19 = vmax.f32 %v5087_v60, 0.0 }
 0x64a   :  { %v4848_v20 = vpop.f32.mrf.mxu0  ;;  %v5258_v55 = vld [vmem:[#allocation3 + $0x150] sm:$0x1]  ;;  %v5290_v49 = vld [vmem:[#allocation3 + $0x151] sm:$0x1]  ;;  %v5387_v50 = vld [vmem:[#allocation3 + $0x152] sm:$0x1] }
 0x64b   :  { %v4952_v56 = vadd.f32 %v4848_v20, %v4418_v59  ;;  %v5322_v24 = vmax.f32 %v5258_v55, %v5290_v49  ;;  %v5419_v1 = vld [vmem:[#allocation3 + $0x153] sm:$0x1]  ;;  %v5515_v35 = vld [vmem:[#allocation3 + $0x154] sm:$0x1]  ;;  %v5547_v21 = vld [vmem:[#allocation3 + $0x155] sm:$0x1] }
 0x64c   :  { %v5451_v8 = vmax.f32 %v5387_v50, %v5419_v1  ;;  %v5643_v45 = vld [vmem:[#allocation3 + $0x156] sm:$0x1]  ;;  %v5579_v52 = vmax.f32 %v5515_v35, %v5547_v21  ;;  %v5675_v14 = vld [vmem:[#allocation3 + $0x157] sm:$0x1]  ;;  %v13910_v59 = vld [vmem:[#allocation13_spill] sm:$0xff]  ;;  %5216 = vst.msk [vmem:[#allocation3 + $0x158] sm:$0xff] %vm5172_vm3, %v5151_v19 }
 0x64d   :  { %v5020_v0 = vmul.f32 %v12328_v54, %v4952_v56  ;;  %10046 = vmatmul.msk.f32.gmra.mxu0 %vm54_vm1, %v4498_v38  ;;  %5355 = vst.msk [vmem:[#allocation4 + $0xa8] sm:$0x1] %vm5333_vm4, %v5322_v24  ;;  %v5707_v37 = vmax.f32 %v5643_v45, %v5675_v14  ;;  %v2817_v5 = vadd.f32 %v13910_v59, %v13909_v9  ;;  %v4501_v45 = vld [vmem:[#allocation2 + $0x352] sm:$0xff] }
 0x64e   :  { %v6417_v33 = vld [vmem:[#allocation5 + $0xc1] sm:$0xff]  ;;  %5483 = vst.msk [vmem:[#allocation4 + $0xa9] sm:$0x1] %vm5333_vm4, %v5451_v8 }
 0x64f   :  { %v5088_v6 = vadd.f32 %v12322_v30, %v5020_v0  ;;  %v6400_v46 = vld [vmem:[#allocation5 + $0xc0] sm:$0xff]  ;;  %10061 = vmatmul.msk.f32.gmra.mxu1 %vm5172_vm3, %v6417_v33  ;;  %5611 = vst.msk [vmem:[#allocation4 + $0xaa] sm:$0x1] %vm5333_vm4, %v5579_v52  ;;  %v3351_v57 = vadd.f32 %v12191_v48, %v2817_v5  ;;  %v2818_v48 = vadd.f32 %v13912_v53, %v13911_v51 }
 0x650   :  { %10077 = vmatmul.msk.f32.gmra.mxu2 %vm5172_vm3, %v6400_v46  ;;  %v6661_v23 = vld [vmem:[#allocation5 + $0xc2] sm:$0xff]  ;;  %5739 = vst.msk [vmem:[#allocation4 + $0xab] sm:$0x1] %vm5333_vm4, %v5707_v37 }
 0x651   :  { %10094 = vmatmul.msk.f32.gmra.mxu3 %vm5172_vm3, %v6661_v23  ;;  %v5152_v18 = vmax.f32 %v5088_v6, 0.0  ;;  %v3886_v28 = vadd.f32 %v12195_v40, %v3351_v57  ;;  %v3352_v32 = vadd.f32 %v12240_v22, %v2818_v48  ;;  %v13914_v57 = vld [vmem:[#allocation15_spill] sm:$0xff] }
 0x652   :  { %v4851_v7 = vpop.f32.mrf.mxu0 }
 0x653   :  { %v4953_v38 = vadd.f32 %v4851_v7, %v4419_v41  ;;  %5217 = vst.msk [vmem:[#allocation3 + $0x160] sm:$0xff] %vm5172_vm3, %v5152_v18  ;;  %v4420_v43 = vadd.f32 %v12197_v26, %v3886_v28  ;;  %v5771_v56 = vld [vmem:[#allocation3 + $0x158] sm:$0x1]  ;;  %v5803_v47 = vld [vmem:[#allocation3 + $0x159] sm:$0x1]  ;;  %v3887_v0 = vadd.f32 %v12245_v42, %v3352_v32 }
 0x654   :  { %v5899_v15 = vld [vmem:[#allocation3 + $0x15a] sm:$0x1]  ;;  %v5835_v27 = vmax.f32 %v5771_v56, %v5803_v47  ;;  %v5931_v40 = vld [vmem:[#allocation3 + $0x15b] sm:$0x1]  ;;  %v6027_v12 = vld [vmem:[#allocation3 + $0x15c] sm:$0x1]  ;;  %v12465_v47 = vpop.f32.mrf.mxu3 }
 0x655   :  { %v5021_v16 = vmul.f32 %v12328_v54, %v4953_v38  ;;  %10047 = vmatmul.msk.f32.gmra.mxu0 %vm54_vm1, %v4499_v58  ;;  %v6059_v55 = vld [vmem:[#allocation3 + $0x15d] sm:$0x1]  ;;  %v5963_v26 = vmax.f32 %v5899_v15, %v5931_v40  ;;  %v6155_v49 = vld [vmem:[#allocation3 + $0x15e] sm:$0x1]  ;;  %v6187_v50 = vld [vmem:[#allocation3 + $0x15f] sm:$0x1]  ;;  %v4421_v6 = vadd.f32 %v12247_v2, %v3887_v0  ;;  %v12451_v2 = vpop.f32.mrf.mxu1 }
 0x656   :  { %v6091_v62 = vmax.f32 %v6027_v12, %v6059_v55  ;;  %5867 = vst.msk [vmem:[#allocation4 + $0xac] sm:$0x1] %vm5333_vm4, %v5835_v27  ;;  %v6219_v24 = vmax.f32 %v6155_v49, %v6187_v50  ;;  %v13913_v38 = vld [vmem:[#allocation26_spill] sm:$0xff]  ;;  %v13916_v49 = vld [vmem:[#allocation16_spill] sm:$0xff] }
 0x657   :  { %v5089_v17 = vadd.f32 %v12322_v30, %v5021_v16  ;;  %5995 = vst.msk [vmem:[#allocation4 + $0xad] sm:$0x1] %vm5333_vm4, %v5963_v26  ;;  %v2819_v16 = vadd.f32 %v13914_v57, %v13913_v38  ;;  %v6326_v27 = vld [vmem:[#allocation4 + $0xa0] sm:$0xff]  ;;  %v10134_v26 = vld [vmem:[%s13823_s4 + $0x28] sm:$0xff] }
 0x658   :  { %6123 = vst.msk [vmem:[#allocation4 + $0xae] sm:$0x1] %vm5333_vm4, %v6091_v62  ;;  %v10117_v55 = vld [vmem:[%s13823_s4 + $0x20] sm:$0xff]  ;;  %v13915_v62 = vld [vmem:[#allocation27_spill] sm:$0xff]  ;;  %7173 = vmatpush.msra.mxu3 %v10134_v26  ;;  %v13919_v26 = vld [vmem:[#allocation29_spill] sm:$0xff] }
 0x659   :  { %v5153_v13 = vmax.f32 %v5089_v17, 0.0  ;;  %6251 = vst.msk [vmem:[#allocation4 + $0xaf] sm:$0x1] %vm5333_vm4, %v6219_v24  ;;  %v3353_v53 = vadd.f32 %v12297_v34, %v2819_v16  ;;  %7026 = vmatpush.msrb.mxu2 %v10117_v55 }
 0x65a   :  { %v4854_v20 = vpop.f32.mrf.mxu0  ;;  %v5259_v60 = vld [vmem:[#allocation3 + $0x160] sm:$0x1]  ;;  %v5291_v1 = vld [vmem:[#allocation3 + $0x161] sm:$0x1]  ;;  %v5388_v35 = vld [vmem:[#allocation3 + $0x162] sm:$0x1] }
 0x65b   :  { %5218 = vst.msk [vmem:[#allocation3 + $0x168] sm:$0xff] %vm5172_vm3, %v5153_v13  ;;  %v4954_v11 = vadd.f32 %v4854_v20, %v4420_v43  ;;  %v5323_v36 = vmax.f32 %v5259_v60, %v5291_v1  ;;  %v5420_v8 = vld [vmem:[#allocation3 + $0x163] sm:$0x1]  ;;  %v5516_v21 = vld [vmem:[#allocation3 + $0x164] sm:$0x1]  ;;  %v12459_v20 = vpop.f32.mrf.mxu2  ;;  %v3888_v15 = vadd.f32 %v12299_v31, %v3353_v53  ;;  %v2820_v31 = vadd.f32 %v13916_v49, %v13915_v62  ;;  %v10100_v1 = vld [vmem:[%s13823_s4 + $0x18] sm:$0xff] }
 0x65c   :  { %v5452_v52 = vmax.f32 %v5388_v35, %v5420_v8  ;;  %v5548_v14 = vld [vmem:[#allocation3 + $0x165] sm:$0x1]  ;;  %v5644_v42 = vld [vmem:[#allocation3 + $0x166] sm:$0x1]  ;;  %v5676_v46 = vld [vmem:[#allocation3 + $0x167] sm:$0x1]  ;;  %6879 = vmatpush.msrb.mxu1 %v10100_v1  ;;  %v12494_v8 = vpop.f32.mrf.mxu3 }
 0x65d   :  { %10048 = vmatmul.msk.f32.gmra.mxu0 %vm54_vm1, %v4500_v3  ;;  %v5022_v22 = vmul.f32 %v12328_v54, %v4954_v11  ;;  %v5580_v33 = vmax.f32 %v5516_v21, %v5548_v14  ;;  %5356 = vst.msk [vmem:[#allocation4 + $0xb0] sm:$0x1] %vm5333_vm4, %v5323_v36  ;;  %v5708_v19 = vmax.f32 %v5644_v42, %v5676_v46  ;;  %v12484_v24 = vpop.f32.mrf.mxu1  ;;  %v13918_v14 = vld [vmem:[#allocation17_spill] sm:$0xff]  ;;  %v13920_v62 = vld [vmem:[#allocation42_spill] sm:$0xff] }
 0x65e   :  { %5484 = vst.msk [vmem:[#allocation4 + $0xb1] sm:$0x1] %vm5333_vm4, %v5452_v52  ;;  %v4422_v50 = vadd.f32 %v12304_v25, %v3888_v15  ;;  %v3354_v60 = vadd.f32 %v12365_v44, %v2820_v31  ;;  %v13917_v52 = vld [vmem:[#allocation28_spill] sm:$0xff] }
 0x65f   :  { %v5090_v7 = vadd.f32 %v12322_v30, %v5022_v22  ;;  %5612 = vst.msk [vmem:[#allocation4 + $0xb2] sm:$0x1] %vm5333_vm4, %v5580_v33  ;;  %v2821_v42 = vadd.f32 %v13918_v14, %v13917_v52 }
 0x660   :  { %5740 = vst.msk [vmem:[#allocation4 + $0xb3] sm:$0x1] %vm5333_vm4, %v5708_v19  ;;  %v6329_v40 = vld [vmem:[#allocation4 + $0xa8] sm:$0xff]  ;;  %v3889_v35 = vadd.f32 %v12367_v63, %v3354_v60 }
 0x661   :  { %v5154_v11 = vmax.f32 %v5090_v7, 0.0  ;;  %v6331_v34 = vmax.f32 %v6326_v27, %v6329_v40 }
 0x662   :  { %v5772_v41 = vld [vmem:[#allocation3 + $0x168] sm:$0x1]  ;;  %v4857_v37 = vpop.f32.mrf.mxu0  ;;  %v5804_v23 = vld [vmem:[#allocation3 + $0x169] sm:$0x1]  ;;  %v5900_v18 = vld [vmem:[#allocation3 + $0x16a] sm:$0x1]  ;;  %v4423_v22 = vadd.f32 %v12373_v29, %v3889_v35 }
 0x663   :  { %v4955_v58 = vadd.f32 %v4857_v37, %v4421_v6  ;;  %v5836_v9 = vmax.f32 %v5772_v41, %v5804_v23  ;;  %v5932_v59 = vld [vmem:[#allocation3 + $0x16b] sm:$0x1]  ;;  %v6028_v5 = vld [vmem:[#allocation3 + $0x16c] sm:$0x1]  ;;  %v6060_v17 = vld [vmem:[#allocation3 + $0x16d] sm:$0x1]  ;;  %v12490_v25 = vpop.f32.mrf.mxu2 }
 0x664   :  { %v5964_v28 = vmax.f32 %v5900_v18, %v5932_v59  ;;  %v6156_v43 = vld [vmem:[#allocation3 + $0x16e] sm:$0x1]  ;;  %v6092_v3 = vmax.f32 %v6028_v5, %v6060_v17  ;;  %v6188_v51 = vld [vmem:[#allocation3 + $0x16f] sm:$0x1]  ;;  %5219 = vst.msk [vmem:[#allocation3 + $0x170] sm:$0xff] %vm5172_vm3, %v5154_v11  ;;  %v12520_v31 = vpop.f32.mrf.mxu3 }
 0x665   :  { %v5023_v13 = vmul.f32 %v12328_v54, %v4955_v58  ;;  %10049 = vmatmul.msk.f32.gmra.mxu0 %vm54_vm1, %v4501_v45  ;;  %5868 = vst.msk [vmem:[#allocation4 + $0xb4] sm:$0x1] %vm5333_vm4, %v5836_v9  ;;  %v6220_v48 = vmax.f32 %v6156_v43, %v6188_v51  ;;  %v3355_v58 = vadd.f32 %v12414_v39, %v2821_v42  ;;  %v12506_v53 = vpop.f32.mrf.mxu1 }
 0x666   :  { %5996 = vst.msk [vmem:[#allocation4 + $0xb5] sm:$0x1] %vm5333_vm4, %v5964_v28 }
 0x667   :  { %v5091_v56 = vadd.f32 %v12322_v30, %v5023_v13  ;;  %6124 = vst.msk [vmem:[#allocation4 + $0xb6] sm:$0x1] %vm5333_vm4, %v6092_v3  ;;  %v3890_v43 = vadd.f32 %v12416_v4, %v3355_v58 }
 0x668   :  { %6252 = vst.msk [vmem:[#allocation4 + $0xb7] sm:$0x1] %vm5333_vm4, %v6220_v48 }
 0x669   :  { %v5155_v32 = vmax.f32 %v5091_v56, 0.0  ;;  %6334 = vst.msk [vmem:[#allocation5 + $0xd1] sm:$0xff] %vm5172_vm3, %v6331_v34 }
 0x66a   :  { %v4860_v12 = vpop.f32.mrf.mxu0 }
 0x66b   :  { %5220 = vst.msk [vmem:[#allocation3 + $0x178] sm:$0xff] %vm5172_vm3, %v5155_v32  ;;  %v4956_v0 = vadd.f32 %v4860_v12, %v4422_v50  ;;  %v5260_v44 = vld [vmem:[#allocation3 + $0x170] sm:$0x1]  ;;  %v5292_v21 = vld [vmem:[#allocation3 + $0x171] sm:$0x1]  ;;  %v4424_v32 = vadd.f32 %v12421_v61, %v3890_v43  ;;  %v12513_v34 = vpop.f32.mrf.mxu2  ;;  %v2822_v61 = vadd.f32 %v13920_v62, %v13919_v26 }
 0x66c   :  { %v5389_v45 = vld [vmem:[#allocation3 + $0x172] sm:$0x1]  ;;  %v5324_v33 = vmax.f32 %v5260_v44, %v5292_v21  ;;  %v5421_v46 = vld [vmem:[#allocation3 + $0x173] sm:$0x1]  ;;  %v5517_v41 = vld [vmem:[#allocation3 + $0x174] sm:$0x1] }
 0x66d   :  { %v5024_v36 = vmul.f32 %v12328_v54, %v4956_v0  ;;  %v5549_v63 = vld [vmem:[#allocation3 + $0x175] sm:$0x1]  ;;  %v5453_v19 = vmax.f32 %v5389_v45, %v5421_v46  ;;  %v5645_v18 = vld [vmem:[#allocation3 + $0x176] sm:$0x1]  ;;  %v5677_v29 = vld [vmem:[#allocation3 + $0x177] sm:$0x1]  ;;  %v3356_v50 = vadd.f32 %v12451_v2, %v2822_v61 }
 0x66e   :  { %v5581_v23 = vmax.f32 %v5517_v41, %v5549_v63  ;;  %5357 = vst.msk [vmem:[#allocation4 + $0xb8] sm:$0x1] %vm5333_vm4, %v5324_v33  ;;  %v5709_v9 = vmax.f32 %v5645_v18, %v5677_v29  ;;  %v13921_v21 = vld [vmem:[#allocation30_spill] sm:$0xff]  ;;  %v13922_v45 = vld [vmem:[#allocation43_spill] sm:$0xff] }
 0x66f   :  { %v5092_v38 = vadd.f32 %v12322_v30, %v5024_v36  ;;  %5485 = vst.msk [vmem:[#allocation4 + $0xb9] sm:$0x1] %vm5333_vm4, %v5453_v19  ;;  %v3891_v0 = vadd.f32 %v12459_v20, %v3356_v50  ;;  %v12530_v36 = vpop.f32.mrf.mxu1 }
 0x670   :  { %5613 = vst.msk [vmem:[#allocation4 + $0xba] sm:$0x1] %vm5333_vm4, %v5581_v23  ;;  %v6418_v56 = vld [vmem:[#allocation5 + $0xd1] sm:$0xff] }
 0x671   :  { %5741 = vst.msk [vmem:[#allocation4 + $0xbb] sm:$0x1] %vm5333_vm4, %v5709_v9  ;;  %v6401_v15 = vld [vmem:[#allocation5 + $0xd0] sm:$0xff]  ;;  %10062 = vmatmul.msk.f32.gmra.mxu1 %vm5172_vm3, %v6418_v56  ;;  %v5156_v40 = vmax.f32 %v5092_v38, 0.0  ;;  %v4425_v35 = vadd.f32 %v12465_v47, %v3891_v0 }
 0x672   :  { %v4863_v6 = vpop.f32.mrf.mxu0  ;;  %v5773_v7 = vld [vmem:[#allocation3 + $0x178] sm:$0x1]  ;;  %v5805_v59 = vld [vmem:[#allocation3 + $0x179] sm:$0x1]  ;;  %v5901_v5 = vld [vmem:[#allocation3 + $0x17a] sm:$0x1]  ;;  %10078 = vmatmul.msk.f32.gmra.mxu2 %vm5172_vm3, %v6401_v15 }
 0x673   :  { %v4957_v37 = vadd.f32 %v4863_v6, %v4423_v22  ;;  %v5837_v16 = vmax.f32 %v5773_v7, %v5805_v59  ;;  %v5933_v28 = vld [vmem:[#allocation3 + $0x17b] sm:$0x1]  ;;  %v6029_v17 = vld [vmem:[#allocation3 + $0x17c] sm:$0x1]  ;;  %v6061_v39 = vld [vmem:[#allocation3 + $0x17d] sm:$0x1]  ;;  %v2823_v6 = vadd.f32 %v13922_v45, %v13921_v21  ;;  %v12535_v52 = vpop.f32.mrf.mxu2 }
 0x674   :  { %v5965_v13 = vmax.f32 %v5901_v5, %v5933_v28  ;;  %v6157_v3 = vld [vmem:[#allocation3 + $0x17e] sm:$0x1]  ;;  %v6093_v48 = vmax.f32 %v6029_v17, %v6061_v39  ;;  %v6189_v11 = vld [vmem:[#allocation3 + $0x17f] sm:$0x1]  ;;  %v6662_v27 = vld [vmem:[#allocation5 + $0xd2] sm:$0xff]  ;;  %5221 = vst.msk [vmem:[#allocation3 + $0x180] sm:$0xff] %vm5172_vm3, %v5156_v40 }
 0x675   :  { %v5025_v57 = vmul.f32 %v12328_v54, %v4957_v37  ;;  %5869 = vst.msk [vmem:[#allocation4 + $0xbc] sm:$0x1] %vm5333_vm4, %v5837_v16  ;;  %v6221_v4 = vmax.f32 %v6157_v3, %v6189_v11  ;;  %10095 = vmatmul.msk.f32.gmra.mxu3 %vm5172_vm3, %v6662_v27  ;;  %v3357_v20 = vadd.f32 %v12484_v24, %v2823_v6  ;;  %v12538_v37 = vpop.f32.mrf.mxu3  ;;  %v13924_v11 = vld [vmem:[#allocation44_spill] sm:$0xff] }
 0x676   :  { %5997 = vst.msk [vmem:[#allocation4 + $0xbd] sm:$0x1] %vm5333_vm4, %v5965_v13  ;;  %v6337_v6 = vld [vmem:[#allocation4 + $0xb0] sm:$0xff] }
 0x677   :  { %v5093_v51 = vadd.f32 %v12322_v30, %v5025_v57  ;;  %6125 = vst.msk [vmem:[#allocation4 + $0xbe] sm:$0x1] %vm5333_vm4, %v6093_v48  ;;  %v3892_v58 = vadd.f32 %v12490_v25, %v3357_v20  ;;  %v13923_v48 = vld [vmem:[#allocation31_spill] sm:$0xff] }
 0x678   :  { %6253 = vst.msk [vmem:[#allocation4 + $0xbf] sm:$0x1] %vm5333_vm4, %v6221_v4  ;;  %v2824_v56 = vadd.f32 %v13924_v11, %v13923_v48 }
 0x679   :  { %v5157_v12 = vmax.f32 %v5093_v51, 0.0  ;;  %v4426_v28 = vadd.f32 %v12494_v8, %v3892_v58 }
 0x67a   :  { %v4866_v55 = vpop.f32.mrf.mxu0  ;;  %v3358_v61 = vadd.f32 %v12506_v53, %v2824_v56 }
 0x67b   :  { %v4958_v49 = vadd.f32 %v4866_v55, %v4424_v32  ;;  %5222 = vst.msk [vmem:[#allocation3 + $0x188] sm:$0xff] %vm5172_vm3, %v5157_v12  ;;  %v5261_v14 = vld [vmem:[#allocation3 + $0x180] sm:$0x1]  ;;  %v5293_v42 = vld [vmem:[#allocation3 + $0x181] sm:$0x1]  ;;  %v3278_v12 = vpop.f32.mrf.mxu1 }
 0x67c   :  { %v5390_v33 = vld [vmem:[#allocation3 + $0x182] sm:$0x1]  ;;  %v5325_v46 = vmax.f32 %v5261_v14, %v5293_v42  ;;  %v5422_v41 = vld [vmem:[#allocation3 + $0x183] sm:$0x1]  ;;  %v5518_v47 = vld [vmem:[#allocation3 + $0x184] sm:$0x1] }
 0x67d   :  { %v5026_v60 = vmul.f32 %v12328_v54, %v4958_v49  ;;  %v5550_v63 = vld [vmem:[#allocation3 + $0x185] sm:$0x1]  ;;  %v5454_v19 = vmax.f32 %v5390_v33, %v5422_v41  ;;  %v5646_v18 = vld [vmem:[#allocation3 + $0x186] sm:$0x1]  ;;  %v5678_v29 = vld [vmem:[#allocation3 + $0x187] sm:$0x1] }
 0x67e   :  { %v5582_v23 = vmax.f32 %v5518_v47, %v5550_v63  ;;  %5358 = vst.msk [vmem:[#allocation4 + $0xc0] sm:$0x1] %vm5333_vm4, %v5325_v46  ;;  %v5710_v9 = vmax.f32 %v5646_v18, %v5678_v29  ;;  %v13926_v46 = vld [vmem:[#allocation45_spill] sm:$0xff] }
 0x67f   :  { %v5094_v1 = vadd.f32 %v12322_v30, %v5026_v60  ;;  %5486 = vst.msk [vmem:[#allocation4 + $0xc1] sm:$0x1] %vm5333_vm4, %v5454_v19  ;;  %v6340_v27 = vld [vmem:[#allocation4 + $0xb8] sm:$0xff] }
 0x680   :  { %5614 = vst.msk [vmem:[#allocation4 + $0xc2] sm:$0x1] %vm5333_vm4, %v5582_v23  ;;  %v6342_v14 = vmax.f32 %v6337_v6, %v6340_v27 }
 0x681   :  { %v5158_v22 = vmax.f32 %v5094_v1, 0.0  ;;  %5742 = vst.msk [vmem:[#allocation4 + $0xc3] sm:$0x1] %vm5333_vm4, %v5710_v9  ;;  %v3813_v1 = vpop.f32.mrf.mxu2 }
 0x682   :  { %v4869_v44 = vpop.f32.mrf.mxu0  ;;  %v5774_v7 = vld [vmem:[#allocation3 + $0x188] sm:$0x1]  ;;  %v5806_v59 = vld [vmem:[#allocation3 + $0x189] sm:$0x1]  ;;  %v5902_v5 = vld [vmem:[#allocation3 + $0x18a] sm:$0x1] }
 0x683   :  { %5223 = vst.msk [vmem:[#allocation3 + $0x190] sm:$0xff] %vm5172_vm3, %v5158_v22  ;;  %v4959_v2 = vadd.f32 %v4869_v44, %v4425_v35  ;;  %v5838_v38 = vmax.f32 %v5774_v7, %v5806_v59  ;;  %v5934_v57 = vld [vmem:[#allocation3 + $0x18b] sm:$0x1]  ;;  %v6030_v16 = vld [vmem:[#allocation3 + $0x18c] sm:$0x1]  ;;  %v3893_v44 = vadd.f32 %v12513_v34, %v3358_v61  ;;  %v13925_v34 = vld [vmem:[#allocation32_spill] sm:$0xff]  ;;  %v12570_v19 = vpop.f32.mrf.mxu1 }
 0x684   :  { %v5966_v17 = vmax.f32 %v5902_v5, %v5934_v57  ;;  %v6062_v43 = vld [vmem:[#allocation3 + $0x18d] sm:$0x1]  ;;  %v6158_v13 = vld [vmem:[#allocation3 + $0x18e] sm:$0x1]  ;;  %v6190_v39 = vld [vmem:[#allocation3 + $0x18f] sm:$0x1]  ;;  %v2825_v41 = vadd.f32 %v13926_v46, %v13925_v34 }
 0x685   :  { %v5027_v24 = vmul.f32 %v12328_v54, %v4959_v2  ;;  %v6094_v25 = vmax.f32 %v6030_v16, %v6062_v43  ;;  %5870 = vst.msk [vmem:[#allocation4 + $0xc4] sm:$0x1] %vm5333_vm4, %v5838_v38  ;;  %v6222_v15 = vmax.f32 %v6158_v13, %v6190_v39  ;;  %v4347_v2 = vpop.f32.mrf.mxu3  ;;  %v4427_v42 = vadd.f32 %v12520_v31, %v3893_v44  ;;  %v13927_v38 = vld [vmem:[#allocation33_spill] sm:$0xff]  ;;  %v13928_v57 = vld [vmem:[#allocation46_spill] sm:$0xff] }
 0x686   :  { %5998 = vst.msk [vmem:[#allocation4 + $0xc5] sm:$0x1] %vm5333_vm4, %v5966_v17  ;;  %v3359_v63 = vadd.f32 %v12530_v36, %v2825_v41  ;;  %v2826_v16 = vadd.f32 %v13928_v57, %v13927_v38 }
 0x687   :  { %v5095_v8 = vadd.f32 %v12322_v30, %v5027_v24  ;;  %6126 = vst.msk [vmem:[#allocation4 + $0xc6] sm:$0x1] %vm5333_vm4, %v6094_v25 }
 0x688   :  { %6254 = vst.msk [vmem:[#allocation4 + $0xc7] sm:$0x1] %vm5333_vm4, %v6222_v15  ;;  %v3894_v23 = vadd.f32 %v12535_v52, %v3359_v63  ;;  %v3360_v48 = vadd.f32 %v3278_v12, %v2826_v16 }
 0x689   :  { %v5159_v45 = vmax.f32 %v5095_v8, 0.0  ;;  %6345 = vst.msk [vmem:[#allocation5 + $0xe1] sm:$0xff] %vm5172_vm3, %v6342_v14  ;;  %v12574_v29 = vpop.f32.mrf.mxu2  ;;  %v13930_v14 = vld [vmem:[#allocation47_spill] sm:$0xff] }
 0x68a   :  { %v5262_v3 = vld [vmem:[#allocation3 + $0x190] sm:$0x1]  ;;  %v4872_v51 = vpop.f32.mrf.mxu0  ;;  %v5294_v32 = vld [vmem:[#allocation3 + $0x191] sm:$0x1]  ;;  %v5391_v4 = vld [vmem:[#allocation3 + $0x192] sm:$0x1]  ;;  %v4428_v7 = vadd.f32 %v12538_v37, %v3894_v23 }
 0x68b   :  { %v4960_v40 = vadd.f32 %v4872_v51, %v4426_v28  ;;  %v5326_v55 = vmax.f32 %v5262_v3, %v5294_v32  ;;  %v5423_v26 = vld [vmem:[#allocation3 + $0x193] sm:$0x1]  ;;  %v5519_v62 = vld [vmem:[#allocation3 + $0x194] sm:$0x1]  ;;  %v5551_v50 = vld [vmem:[#allocation3 + $0x195] sm:$0x1] }
 0x68c   :  { %v5455_v49 = vmax.f32 %v5391_v4, %v5423_v26  ;;  %v5647_v60 = vld [vmem:[#allocation3 + $0x196] sm:$0x1]  ;;  %v5583_v35 = vmax.f32 %v5519_v62, %v5551_v50  ;;  %v5679_v22 = vld [vmem:[#allocation3 + $0x197] sm:$0x1]  ;;  %5224 = vst.msk [vmem:[#allocation3 + $0x198] sm:$0xff] %vm5172_vm3, %v5159_v45  ;;  %v3284_v62 = vpop.f32.mrf.mxu1 }
 0x68d   :  { %v5028_v0 = vmul.f32 %v12328_v54, %v4960_v40  ;;  %5359 = vst.msk [vmem:[#allocation4 + $0xc8] sm:$0x1] %vm5333_vm4, %v5326_v55  ;;  %v5711_v21 = vmax.f32 %v5647_v60, %v5679_v22  ;;  %v12577_v9 = vpop.f32.mrf.mxu3  ;;  %v3895_v40 = vadd.f32 %v3813_v1, %v3360_v48 }
 0x68e   :  { %5487 = vst.msk [vmem:[#allocation4 + $0xc9] sm:$0x1] %vm5333_vm4, %v5455_v49 }
 0x68f   :  { %v5096_v53 = vadd.f32 %v12322_v30, %v5028_v0  ;;  %5615 = vst.msk [vmem:[#allocation4 + $0xca] sm:$0x1] %vm5333_vm4, %v5583_v35  ;;  %v4429_v60 = vadd.f32 %v4347_v2, %v3895_v40 }
 0x690   :  { %5743 = vst.msk [vmem:[#allocation4 + $0xcb] sm:$0x1] %vm5333_vm4, %v5711_v21  ;;  %v12581_v37 = vld [vmem:[#allocation5 + $0xe1] sm:$0xff] }
 0x691   :  { %v5160_v33 = vmax.f32 %v5096_v53, 0.0  ;;  %10063 = vmatmul.msk.f32.gmra.mxu1 %vm5172_vm3, %v12581_v37  ;;  %v12587_v56 = vld [vmem:[#allocation5 + $0xe0] sm:$0xff]  ;;  %v3819_v22 = vpop.f32.mrf.mxu2 }
 0x692   :  { %v4875_v20 = vpop.f32.mrf.mxu0  ;;  %v12589_v15 = vld [vmem:[#allocation5 + $0xe2] sm:$0xff]  ;;  %10079 = vmatmul.msk.f32.gmra.mxu2 %vm5172_vm3, %v12587_v56 }
 0x693   :  { %v4961_v47 = vadd.f32 %v4875_v20, %v4427_v42  ;;  %5225 = vst.msk [vmem:[#allocation3 + $0x1a0] sm:$0xff] %vm5172_vm3, %v5160_v33  ;;  %v5775_v59 = vld [vmem:[#allocation3 + $0x198] sm:$0x1]  ;;  %v5807_v5 = vld [vmem:[#allocation3 + $0x199] sm:$0x1]  ;;  %10096 = vmatmul.msk.f32.gmra.mxu3 %vm5172_vm3, %v12589_v15  ;;  %v13929_v53 = vld [vmem:[#allocation34_spill] sm:$0xff] }
 0x694   :  { %v5903_v36 = vld [vmem:[#allocation3 + $0x19a] sm:$0x1]  ;;  %v5839_v28 = vmax.f32 %v5775_v59, %v5807_v5  ;;  %v5935_v17 = vld [vmem:[#allocation3 + $0x19b] sm:$0x1]  ;;  %v6031_v43 = vld [vmem:[#allocation3 + $0x19c] sm:$0x1]  ;;  %v2827_v42 = vadd.f32 %v13930_v14, %v13929_v53 }
 0x695   :  { %v5029_v31 = vmul.f32 %v12328_v54, %v4961_v47  ;;  %v6063_v52 = vld [vmem:[#allocation3 + $0x19d] sm:$0x1]  ;;  %v5967_v25 = vmax.f32 %v5903_v36, %v5935_v17  ;;  %v6159_v3 = vld [vmem:[#allocation3 + $0x19e] sm:$0x1]  ;;  %v6191_v51 = vld [vmem:[#allocation3 + $0x19f] sm:$0x1]  ;;  %v4353_v2 = vpop.f32.mrf.mxu3  ;;  %v3287_v17 = vpop.f32.mrf.mxu1 }
 0x696   :  { %v6095_v39 = vmax.f32 %v6031_v43, %v6063_v52  ;;  %5871 = vst.msk [vmem:[#allocation4 + $0xcc] sm:$0x1] %vm5333_vm4, %v5839_v28  ;;  %v6223_v11 = vmax.f32 %v6159_v3, %v6191_v51  ;;  %v3361_v23 = vadd.f32 %v12570_v19, %v2827_v42  ;;  %v12618_v5 = vld [vmem:[%s13822_s3] ss:$0 sm:$0xff]  ;;  %v13931_v52 = vld [vmem:[#allocation35_spill] sm:$0xff]  ;;  %v13933_v14 = vld [vmem:[#allocation36_spill] sm:$0xff] }
 0x697   :  { %v5097_v18 = vadd.f32 %v12322_v30, %v5029_v31  ;;  %5999 = vst.msk [vmem:[#allocation4 + $0xcd] sm:$0x1] %vm5333_vm4, %v5967_v25  ;;  %v13934_v42 = vld [vmem:[#allocation49_spill] sm:$0xff] }
 0x698   :  { %6127 = vst.msk [vmem:[#allocation4 + $0xce] sm:$0x1] %vm5333_vm4, %v6095_v39  ;;  %v3896_v57 = vadd.f32 %v12574_v29, %v3361_v23 }
 0x699   :  { %v5161_v58 = vmax.f32 %v5097_v18, 0.0  ;;  %6255 = vst.msk [vmem:[#allocation4 + $0xcf] sm:$0x1] %vm5333_vm4, %v6223_v11  ;;  %v3822_v39 = vpop.f32.mrf.mxu2 }
 0x69a   :  { %v4878_v24 = vpop.f32.mrf.mxu0  ;;  %v5263_v32 = vld [vmem:[#allocation3 + $0x1a0] sm:$0x1]  ;;  %v5295_v4 = vld [vmem:[#allocation3 + $0x1a1] sm:$0x1]  ;;  %v5392_v8 = vld [vmem:[#allocation3 + $0x1a2] sm:$0x1]  ;;  %v4430_v28 = vadd.f32 %v12577_v9, %v3896_v57 }
 0x69b   :  { %v4962_v13 = vadd.f32 %v4878_v24, %v4428_v7  ;;  %5226 = vst.msk [vmem:[#allocation3 + $0x1a8] sm:$0xff] %vm5172_vm3, %v5161_v58  ;;  %v5327_v12 = vmax.f32 %v5263_v32, %v5295_v4  ;;  %v5424_v55 = vld [vmem:[#allocation3 + $0x1a3] sm:$0x1]  ;;  %v5520_v26 = vld [vmem:[#allocation3 + $0x1a4] sm:$0x1] }
 0x69c   :  { %v5456_v61 = vmax.f32 %v5392_v8, %v5424_v55  ;;  %v5552_v49 = vld [vmem:[#allocation3 + $0x1a5] sm:$0x1]  ;;  %v5648_v50 = vld [vmem:[#allocation3 + $0x1a6] sm:$0x1]  ;;  %v5680_v35 = vld [vmem:[#allocation3 + $0x1a7] sm:$0x1] }
 0x69d   :  { %v5030_v27 = vmul.f32 %v12328_v54, %v4962_v13  ;;  %5360 = vst.msk [vmem:[#allocation4 + $0xd0] sm:$0x1] %vm5333_vm4, %v5327_v12  ;;  %v5584_v0 = vmax.f32 %v5520_v26, %v5552_v49  ;;  %v5712_v54 = vmax.f32 %v5648_v50, %v5680_v35  ;;  %v6348_v24 = vld [vmem:[#allocation4 + $0xc0] sm:$0xff]  ;;  %v13932_v13 = vld [vmem:[#allocation48_spill] sm:$0xff]  ;;  %v4356_v51 = vpop.f32.mrf.mxu3 }
 0x69e   :  { %5488 = vst.msk [vmem:[#allocation4 + $0xd1] sm:$0x1] %vm5333_vm4, %v5456_v61  ;;  %v2828_v25 = vadd.f32 %v13932_v13, %v13931_v52 }
 0x69f   :  { %v5098_v1 = vadd.f32 %v12322_v30, %v5030_v27  ;;  %5616 = vst.msk [vmem:[#allocation4 + $0xd2] sm:$0x1] %vm5333_vm4, %v5584_v0  ;;  %v12609_v30 = vld [vmem:[%s13821_s2] ss:$0 sm:$0xff] }
 0x6a0   :  { %5744 = vst.msk [vmem:[#allocation4 + $0xd3] sm:$0x1] %vm5333_vm4, %v5712_v54  ;;  %v6351_v38 = vld [vmem:[#allocation4 + $0xc8] sm:$0xff]  ;;  %v3362_v3 = vadd.f32 %v3284_v62, %v2828_v25  ;;  %v3290_v62 = vpop.f32.mrf.mxu1 }
 0x6a1   :  { %v5162_v58 = vmax.f32 %v5098_v1, 0.0  ;;  %v6353_v19 = vmax.f32 %v6348_v24, %v6351_v38 }
 0x6a2   :  { %v4881_v44 = vpop.f32.mrf.mxu0  ;;  %v5776_v21 = vld [vmem:[#allocation3 + $0x1a8] sm:$0x1]  ;;  %v5808_v45 = vld [vmem:[#allocation3 + $0x1a9] sm:$0x1]  ;;  %v5904_v20 = vld [vmem:[#allocation3 + $0x1aa] sm:$0x1]  ;;  %v3897_v48 = vadd.f32 %v3819_v22, %v3362_v3 }
 0x6a3   :  { %v4963_v6 = vadd.f32 %v4881_v44, %v4429_v60  ;;  %v5840_v33 = vmax.f32 %v5776_v21, %v5808_v45  ;;  %v5936_v34 = vld [vmem:[#allocation3 + $0x1ab] sm:$0x1]  ;;  %v6032_v41 = vld [vmem:[#allocation3 + $0x1ac] sm:$0x1]  ;;  %v6064_v47 = vld [vmem:[#allocation3 + $0x1ad] sm:$0x1] }
 0x6a4   :  { %v5968_v46 = vmax.f32 %v5904_v20, %v5936_v34  ;;  %v6160_v63 = vld [vmem:[#allocation3 + $0x1ae] sm:$0x1]  ;;  %v6096_v18 = vmax.f32 %v6032_v41, %v6064_v47  ;;  %v6192_v7 = vld [vmem:[#allocation3 + $0x1af] sm:$0x1]  ;;  %5227 = vst.msk [vmem:[#allocation3 + $0x1b0] sm:$0xff] %vm5172_vm3, %v5162_v58  ;;  %v4431_v32 = vadd.f32 %v4353_v2, %v3897_v48  ;;  %v2829_v2 = vadd.f32 %v13934_v42, %v13933_v14 }
 0x6a5   :  { %v5031_v31 = vmul.f32 %v12609_v30, %v4963_v6  ;;  %5872 = vst.msk [vmem:[#allocation4 + $0xd4] sm:$0x1] %vm5333_vm4, %v5840_v33  ;;  %v6224_v59 = vmax.f32 %v6160_v63, %v6192_v7  ;;  %v3825_v33 = vpop.f32.mrf.mxu2  ;;  %v4359_v7 = vpop.f32.mrf.mxu3 }
 0x6a6   :  { %6000 = vst.msk [vmem:[#allocation4 + $0xd5] sm:$0x1] %vm5333_vm4, %v5968_v46 }
 0x6a7   :  { %v5099_v36 = vadd.f32 %v12618_v5, %v5031_v31  ;;  %6128 = vst.msk [vmem:[#allocation4 + $0xd6] sm:$0x1] %vm5333_vm4, %v6096_v18  ;;  %v3363_v18 = vadd.f32 %v3287_v17, %v2829_v2 }
 0x6a8   :  { %6256 = vst.msk [vmem:[#allocation4 + $0xd7] sm:$0x1] %vm5333_vm4, %v6224_v59  ;;  %v3293_v52 = vpop.f32.mrf.mxu1 }
 0x6a9   :  { %v5163_v16 = vmax.f32 %v5099_v36, 0.0  ;;  %6356 = vst.msk [vmem:[#allocation5 + $0xf1] sm:$0xff] %vm5172_vm3, %v6353_v19  ;;  %v3898_v38 = vadd.f32 %v3822_v39, %v3363_v18  ;;  %v13935_v19 = vld [vmem:[#allocation37_spill] sm:$0xff] }
 0x6aa   :  { %v4884_v43 = vpop.f32.mrf.mxu0 }
 0x6ab   :  { %5228 = vst.msk [vmem:[#allocation3 + $0x1b8] sm:$0xff] %vm5172_vm3, %v5163_v16  ;;  %v4964_v29 = vadd.f32 %v4884_v43, %v4430_v28  ;;  %v5264_v9 = vld [vmem:[#allocation3 + $0x1b0] sm:$0x1]  ;;  %v5296_v4 = vld [vmem:[#allocation3 + $0x1b1] sm:$0x1]  ;;  %v13936_v16 = vld [vmem:[#allocation50_spill] sm:$0xff]  ;;  %v4432_v17 = vadd.f32 %v4356_v51, %v3898_v38 }
 0x6ac   :  { %v5393_v8 = vld [vmem:[#allocation3 + $0x1b2] sm:$0x1]  ;;  %v5328_v27 = vmax.f32 %v5264_v9, %v5296_v4  ;;  %v5425_v40 = vld [vmem:[#allocation3 + $0x1b3] sm:$0x1]  ;;  %v5521_v12 = vld [vmem:[#allocation3 + $0x1b4] sm:$0x1]  ;;  %v2830_v28 = vadd.f32 %v13936_v16, %v13935_v19 }
 0x6ad   :  { %v5032_v11 = vmul.f32 %v12609_v30, %v4964_v29  ;;  %v5553_v55 = vld [vmem:[#allocation3 + $0x1b5] sm:$0x1]  ;;  %v5457_v61 = vmax.f32 %v5393_v8, %v5425_v40  ;;  %v5649_v50 = vld [vmem:[#allocation3 + $0x1b6] sm:$0x1]  ;;  %v5681_v60 = vld [vmem:[#allocation3 + $0x1b7] sm:$0x1]  ;;  %v3828_v29 = vpop.f32.mrf.mxu2  ;;  %v4362_v39 = vpop.f32.mrf.mxu3 }
 0x6ae   :  { %v5585_v49 = vmax.f32 %v5521_v12, %v5553_v55  ;;  %5361 = vst.msk [vmem:[#allocation4 + $0xd8] sm:$0x1] %vm5333_vm4, %v5328_v27  ;;  %v5713_v22 = vmax.f32 %v5649_v50, %v5681_v60  ;;  %v3364_v43 = vadd.f32 %v3290_v62, %v2830_v28  ;;  %v13938_v9 = vld [vmem:[#allocation51_spill] sm:$0xff]  ;;  %v13940_v16 = vld [vmem:[#allocation52_spill] sm:$0xff] }
 0x6af   :  { %v5100_v44 = vadd.f32 %v12618_v5, %v5032_v11  ;;  %5489 = vst.msk [vmem:[#allocation4 + $0xd9] sm:$0x1] %vm5333_vm4, %v5457_v61  ;;  %v6359_v38 = vld [vmem:[#allocation4 + $0xd0] sm:$0xff]  ;;  %v13939_v19 = vld [vmem:[#allocation39_spill] sm:$0xff] }
 0x6b0   :  { %5617 = vst.msk [vmem:[#allocation4 + $0xda] sm:$0x1] %vm5333_vm4, %v5585_v49  ;;  %v12639_v63 = vld [vmem:[#allocation5 + $0xf1] sm:$0xff]  ;;  %v3899_v25 = vadd.f32 %v3825_v33, %v3364_v43  ;;  %v3296_v2 = vpop.f32.mrf.mxu1  ;;  %v2832_v28 = vadd.f32 %v13940_v16, %v13939_v19 }
 0x6b1   :  { %5745 = vst.msk [vmem:[#allocation4 + $0xdb] sm:$0x1] %vm5333_vm4, %v5713_v22  ;;  %v12641_v31 = vld [vmem:[#allocation5 + $0xf0] sm:$0xff]  ;;  %10064 = vmatmul.msk.f32.gmra.mxu1 %vm5172_vm3, %v12639_v63  ;;  %v5164_v36 = vmax.f32 %v5100_v44, 0.0 }
 0x6b2   :  { %v4887_v26 = vpop.f32.mrf.mxu0  ;;  %v5777_v0 = vld [vmem:[#allocation3 + $0x1b8] sm:$0x1]  ;;  %v5809_v54 = vld [vmem:[#allocation3 + $0x1b9] sm:$0x1]  ;;  %v5905_v1 = vld [vmem:[#allocation3 + $0x1ba] sm:$0x1]  ;;  %10080 = vmatmul.msk.f32.gmra.mxu2 %vm5172_vm3, %v12641_v31  ;;  %v4433_v3 = vadd.f32 %v4359_v7, %v3899_v25 }
 0x6b3   :  { %v4965_v35 = vadd.f32 %v4887_v26, %v4431_v32  ;;  %v5841_v21 = vmax.f32 %v5777_v0, %v5809_v54  ;;  %v5937_v45 = vld [vmem:[#allocation3 + $0x1bb] sm:$0x1]  ;;  %v6033_v6 = vld [vmem:[#allocation3 + $0x1bc] sm:$0x1]  ;;  %v6065_v34 = vld [vmem:[#allocation3 + $0x1bd] sm:$0x1] }
 0x6b4   :  { %v5969_v20 = vmax.f32 %v5905_v1, %v5937_v45  ;;  %v6161_v46 = vld [vmem:[#allocation3 + $0x1be] sm:$0x1]  ;;  %v6097_v41 = vmax.f32 %v6033_v6, %v6065_v34  ;;  %v6193_v47 = vld [vmem:[#allocation3 + $0x1bf] sm:$0x1]  ;;  %v12649_v59 = vld [vmem:[#allocation5 + $0xf2] sm:$0xff]  ;;  %5229 = vst.msk [vmem:[#allocation3 + $0x1c0] sm:$0xff] %vm5172_vm3, %v5164_v36 }
 0x6b5   :  { %v5033_v53 = vmul.f32 %v12609_v30, %v4965_v35  ;;  %5873 = vst.msk [vmem:[#allocation4 + $0xdc] sm:$0x1] %vm5333_vm4, %v5841_v21  ;;  %v6225_v58 = vmax.f32 %v6161_v46, %v6193_v47  ;;  %10097 = vmatmul.msk.f32.gmra.mxu3 %vm5172_vm3, %v12649_v59  ;;  %v13937_v32 = vld [vmem:[#allocation38_spill] sm:$0xff]  ;;  %v3831_v18 = vpop.f32.mrf.mxu2 }
 0x6b6   :  { %6001 = vst.msk [vmem:[#allocation4 + $0xdd] sm:$0x1] %vm5333_vm4, %v5969_v20  ;;  %v2831_v4 = vadd.f32 %v13938_v9, %v13937_v32  ;;  %v13941_v32 = vld [vmem:[#allocation40_spill] sm:$0xff]  ;;  %v13942_v9 = vld [vmem:[#allocation53_spill] sm:$0xff] }
 0x6b7   :  { %v5101_v23 = vadd.f32 %v12618_v5, %v5033_v53  ;;  %6129 = vst.msk [vmem:[#allocation4 + $0xde] sm:$0x1] %vm5333_vm4, %v6097_v41 }
 0x6b8   :  { %6257 = vst.msk [vmem:[#allocation4 + $0xdf] sm:$0x1] %vm5333_vm4, %v6225_v58  ;;  %v3365_v49 = vadd.f32 %v3293_v52, %v2831_v4  ;;  %v2833_v4 = vadd.f32 %v13942_v9, %v13941_v32 }
 0x6b9   :  { %v5165_v24 = vmax.f32 %v5101_v23, 0.0 }
 0x6ba   :  { %v4890_v57 = vpop.f32.mrf.mxu0  ;;  %v3900_v45 = vadd.f32 %v3828_v29, %v3365_v49 }
 0x6bb   :  { %5230 = vst.msk [vmem:[#allocation3 + $0x1c8] sm:$0xff] %vm5172_vm3, %v5165_v24  ;;  %v4966_v13 = vadd.f32 %v4890_v57, %v4432_v17  ;;  %v5265_v8 = vld [vmem:[#allocation3 + $0x1c0] sm:$0x1]  ;;  %v5297_v27 = vld [vmem:[#allocation3 + $0x1c1] sm:$0x1]  ;;  %v4365_v17 = vpop.f32.mrf.mxu3 }
 0x6bc   :  { %v5394_v51 = vld [vmem:[#allocation3 + $0x1c2] sm:$0x1]  ;;  %v5329_v12 = vmax.f32 %v5265_v8, %v5297_v27  ;;  %v5426_v55 = vld [vmem:[#allocation3 + $0x1c3] sm:$0x1]  ;;  %v5522_v26 = vld [vmem:[#allocation3 + $0x1c4] sm:$0x1]  ;;  %v4434_v46 = vadd.f32 %v4362_v39, %v3900_v45  ;;  %v3299_v39 = vpop.f32.mrf.mxu1 }
 0x6bd   :  { %v5034_v48 = vmul.f32 %v12609_v30, %v4966_v13  ;;  %v5554_v61 = vld [vmem:[#allocation3 + $0x1c5] sm:$0x1]  ;;  %v5458_v50 = vmax.f32 %v5394_v51, %v5426_v55  ;;  %v5650_v0 = vld [vmem:[#allocation3 + $0x1c6] sm:$0x1]  ;;  %v5682_v35 = vld [vmem:[#allocation3 + $0x1c7] sm:$0x1]  ;;  %v3366_v13 = vadd.f32 %v3296_v2, %v2832_v28  ;;  %v3834_v8 = vpop.f32.mrf.mxu2  ;;  %v3367_v51 = vadd.f32 %v3299_v39, %v2833_v4 }
 0x6be   :  { %v5586_v60 = vmax.f32 %v5522_v26, %v5554_v61  ;;  %5362 = vst.msk [vmem:[#allocation4 + $0xe0] sm:$0x1] %vm5333_vm4, %v5329_v12  ;;  %v5714_v54 = vmax.f32 %v5650_v0, %v5682_v35 }
 0x6bf   :  { %v5102_v21 = vadd.f32 %v12618_v5, %v5034_v48  ;;  %5490 = vst.msk [vmem:[#allocation4 + $0xe1] sm:$0x1] %vm5333_vm4, %v5458_v50  ;;  %v6362_v23 = vld [vmem:[#allocation4 + $0xd8] sm:$0xff]  ;;  %v3901_v29 = vadd.f32 %v3831_v18, %v3366_v13  ;;  %v3902_v0 = vadd.f32 %v3834_v8, %v3367_v51 }
 0x6c0   :  { %5618 = vst.msk [vmem:[#allocation4 + $0xe2] sm:$0x1] %vm5333_vm4, %v5586_v60  ;;  %v6364_v43 = vmax.f32 %v6359_v38, %v6362_v23 }
 0x6c1   :  { %5746 = vst.msk [vmem:[#allocation4 + $0xe3] sm:$0x1] %vm5333_vm4, %v5714_v54  ;;  %v5166_v58 = vmax.f32 %v5102_v21, 0.0  ;;  %v4435_v48 = vadd.f32 %v4365_v17, %v3901_v29  ;;  %v13943_v17 = vld [vmem:[#allocation41_spill] sm:$0xff] }
 0x6c2   :  { %v4893_v11 = vpop.f32.mrf.mxu0  ;;  %v5778_v62 = vld [vmem:[#allocation3 + $0x1c8] sm:$0x1]  ;;  %v5810_v1 = vld [vmem:[#allocation3 + $0x1c9] sm:$0x1]  ;;  %v5906_v44 = vld [vmem:[#allocation3 + $0x1ca] sm:$0x1] }
 0x6c3   :  { %v4967_v40 = vadd.f32 %v4893_v11, %v4433_v3  ;;  %v5842_v6 = vmax.f32 %v5778_v62, %v5810_v1  ;;  %v5938_v53 = vld [vmem:[#allocation3 + $0x1cb] sm:$0x1]  ;;  %v6034_v14 = vld [vmem:[#allocation3 + $0x1cc] sm:$0x1]  ;;  %v6066_v20 = vld [vmem:[#allocation3 + $0x1cd] sm:$0x1]  ;;  %v4368_v26 = vpop.f32.mrf.mxu3 }
 0x6c4   :  { %v5970_v33 = vmax.f32 %v5906_v44, %v5938_v53  ;;  %v6162_v34 = vld [vmem:[#allocation3 + $0x1ce] sm:$0x1]  ;;  %v6098_v41 = vmax.f32 %v6034_v14, %v6066_v20  ;;  %v6194_v47 = vld [vmem:[#allocation3 + $0x1cf] sm:$0x1]  ;;  %5231 = vst.msk [vmem:[#allocation3 + $0x1d0] sm:$0xff] %vm5172_vm3, %v5166_v58  ;;  %v4436_v53 = vadd.f32 %v4368_v26, %v3902_v0 }
 0x6c5   :  { %v5035_v22 = vmul.f32 %v12609_v30, %v4967_v40  ;;  %5874 = vst.msk [vmem:[#allocation4 + $0xe4] sm:$0x1] %vm5333_vm4, %v5842_v6  ;;  %v6226_v7 = vmax.f32 %v6162_v34, %v6194_v47 }
 0x6c6   :  { %6002 = vst.msk [vmem:[#allocation4 + $0xe5] sm:$0x1] %vm5333_vm4, %v5970_v33 }
 0x6c7   :  { %v5103_v42 = vadd.f32 %v12618_v5, %v5035_v22  ;;  %6130 = vst.msk [vmem:[#allocation4 + $0xe6] sm:$0x1] %vm5333_vm4, %v6098_v41 }
 0x6c8   :  { %6258 = vst.msk [vmem:[#allocation4 + $0xe7] sm:$0x1] %vm5333_vm4, %v6226_v7 }
 0x6c9   :  { %v5167_v24 = vmax.f32 %v5103_v42, 0.0  ;;  %6367 = vst.msk [vmem:[#allocation5 + $0x101] sm:$0xff] %vm5172_vm3, %v6364_v43  ;;  %v13944_v43 = vld [vmem:[#allocation54_spill] sm:$0xff] }
 0x6ca   :  { %v4896_v36 = vpop.f32.mrf.mxu0 }
 0x6cb   :  { %v4968_v57 = vadd.f32 %v4896_v36, %v4434_v46  ;;  %5232 = vst.msk [vmem:[#allocation3 + $0x1d8] sm:$0xff] %vm5172_vm3, %v5167_v24  ;;  %v5266_v40 = vld [vmem:[#allocation3 + $0x1d0] sm:$0x1]  ;;  %v5298_v12 = vld [vmem:[#allocation3 + $0x1d1] sm:$0x1]  ;;  %v4371_v51 = vpop.f32.mrf.mxu3 }
 0x6cc   :  { %v5395_v55 = vld [vmem:[#allocation3 + $0x1d2] sm:$0x1]  ;;  %v5330_v61 = vmax.f32 %v5266_v40, %v5298_v12  ;;  %v5427_v49 = vld [vmem:[#allocation3 + $0x1d3] sm:$0x1]  ;;  %v5523_v50 = vld [vmem:[#allocation3 + $0x1d4] sm:$0x1] }
 0x6cd   :  { %v5036_v52 = vmul.f32 %v12609_v30, %v4968_v57  ;;  %v5555_v60 = vld [vmem:[#allocation3 + $0x1d5] sm:$0x1]  ;;  %v5459_v35 = vmax.f32 %v5395_v55, %v5427_v49  ;;  %v5651_v22 = vld [vmem:[#allocation3 + $0x1d6] sm:$0x1]  ;;  %v5683_v54 = vld [vmem:[#allocation3 + $0x1d7] sm:$0x1]  ;;  %v3302_v57 = vpop.f32.mrf.mxu1 }
 0x6ce   :  { %v5587_v62 = vmax.f32 %v5523_v50, %v5555_v60  ;;  %5363 = vst.msk [vmem:[#allocation4 + $0xe8] sm:$0x1] %vm5333_vm4, %v5330_v61  ;;  %v5715_v44 = vmax.f32 %v5651_v22, %v5683_v54  ;;  %v10168_v61 = vld [vmem:[%s13823_s4 + $0x38] sm:$0xff]  ;;  %v10185_v49 = vld [vmem:[%s13823_s4 + $0x40] sm:$0xff]  ;;  %v10151_v50 = vld [vmem:[%s13823_s4 + $0x30] sm:$0xff] }
 0x6cf   :  { %v5104_v25 = vadd.f32 %v12618_v5, %v5036_v52  ;;  %5491 = vst.msk [vmem:[#allocation4 + $0xe9] sm:$0x1] %vm5333_vm4, %v5459_v35  ;;  %v2834_v52 = vadd.f32 %v13944_v43, %v13943_v17  ;;  %7467 = vmatpush.msra.mxu2 %v10168_v61  ;;  %7614 = vmatpush.msrb.mxu3 %v10185_v49  ;;  %v6370_v35 = vld [vmem:[#allocation4 + $0xe0] sm:$0xff] }
 0x6d0   :  { %5619 = vst.msk [vmem:[#allocation4 + $0xea] sm:$0x1] %vm5333_vm4, %v5587_v62  ;;  %v12689_v23 = vld [vmem:[#allocation5 + $0x101] sm:$0xff]  ;;  %7320 = vmatpush.msra.mxu1 %v10151_v50 }
 0x6d1   :  { %v5168_v3 = vmax.f32 %v5104_v25, 0.0  ;;  %5747 = vst.msk [vmem:[#allocation4 + $0xeb] sm:$0x1] %vm5333_vm4, %v5715_v44  ;;  %v12691_v18 = vld [vmem:[#allocation5 + $0x100] sm:$0xff]  ;;  %10065 = vmatmul.msk.f32.gmra.mxu1 %vm5172_vm3, %v12689_v23  ;;  %v3368_v9 = vadd.f32 %v3302_v57, %v2834_v52 }
 0x6d2   :  { %v4899_v11 = vpop.f32.mrf.mxu0  ;;  %v5779_v1 = vld [vmem:[#allocation3 + $0x1d8] sm:$0x1]  ;;  %v5811_v21 = vld [vmem:[#allocation3 + $0x1d9] sm:$0x1]  ;;  %v5907_v45 = vld [vmem:[#allocation3 + $0x1da] sm:$0x1]  ;;  %10081 = vmatmul.msk.f32.gmra.mxu2 %vm5172_vm3, %v12691_v18 }
 0x6d3   :  { %5233 = vst.msk [vmem:[#allocation3 + $0x1e0] sm:$0xff] %vm5172_vm3, %v5168_v3  ;;  %v4969_v27 = vadd.f32 %v4899_v11, %v4435_v48  ;;  %v5843_v14 = vmax.f32 %v5779_v1, %v5811_v21  ;;  %v5939_v42 = vld [vmem:[#allocation3 + $0x1db] sm:$0x1]  ;;  %v6035_v2 = vld [vmem:[#allocation3 + $0x1dc] sm:$0x1]  ;;  %v12698_v36 = vld [vmem:[#allocation5 + $0x102] sm:$0xff]  ;;  %v3837_v3 = vpop.f32.mrf.mxu2 }
 0x6d4   :  { %v5971_v33 = vmax.f32 %v5907_v45, %v5939_v42  ;;  %v6067_v20 = vld [vmem:[#allocation3 + $0x1dd] sm:$0x1]  ;;  %v6163_v34 = vld [vmem:[#allocation3 + $0x1de] sm:$0x1]  ;;  %v6195_v47 = vld [vmem:[#allocation3 + $0x1df] sm:$0x1]  ;;  %10098 = vmatmul.msk.f32.gmra.mxu3 %vm5172_vm3, %v12698_v36  ;;  %v3903_v55 = vadd.f32 %v3837_v3, %v3368_v9 }
 0x6d5   :  { %v5037_v6 = vmul.f32 %v12609_v30, %v4969_v27  ;;  %v6099_v41 = vmax.f32 %v6035_v2, %v6067_v20  ;;  %5875 = vst.msk [vmem:[#allocation4 + $0xec] sm:$0x1] %vm5333_vm4, %v5843_v14  ;;  %v6227_v58 = vmax.f32 %v6163_v34, %v6195_v47  ;;  %v6798_v3 = vld [vmem:[#allocation5 + $0x10] sm:$0xff] }
 0x6d6   :  { %6003 = vst.msk [vmem:[#allocation4 + $0xed] sm:$0x1] %vm5333_vm4, %v5971_v33  ;;  %v4437_v60 = vadd.f32 %v4371_v51, %v3903_v55 }
 0x6d7   :  { %v5105_v38 = vadd.f32 %v12618_v5, %v5037_v6  ;;  %6131 = vst.msk [vmem:[#allocation4 + $0xee] sm:$0x1] %vm5333_vm4, %v6099_v41 }
 0x6d8   :  { %6259 = vst.msk [vmem:[#allocation4 + $0xef] sm:$0x1] %vm5333_vm4, %v6227_v58 }
 0x6d9   :  { %v5169_v27 = vmax.f32 %v5105_v38, 0.0 }
 0x6da   :  { %v4902_v46 = vpop.f32.mrf.mxu0  ;;  %v5267_v24 = vld [vmem:[#allocation3 + $0x1e0] sm:$0x1]  ;;  %v5299_v19 = vld [vmem:[#allocation3 + $0x1e1] sm:$0x1]  ;;  %v5396_v16 = vld [vmem:[#allocation3 + $0x1e2] sm:$0x1] }
 0x6db   :  { %v4970_v7 = vadd.f32 %v4902_v46, %v4436_v53  ;;  %v5331_v13 = vmax.f32 %v5267_v24, %v5299_v19  ;;  %v5428_v25 = vld [vmem:[#allocation3 + $0x1e3] sm:$0x1]  ;;  %v5524_v29 = vld [vmem:[#allocation3 + $0x1e4] sm:$0x1]  ;;  %v5556_v48 = vld [vmem:[#allocation3 + $0x1e5] sm:$0x1] }
 0x6dc   :  { %v5460_v39 = vmax.f32 %v5396_v16, %v5428_v25  ;;  %v5652_v11 = vld [vmem:[#allocation3 + $0x1e6] sm:$0x1]  ;;  %v5588_v4 = vmax.f32 %v5524_v29, %v5556_v48  ;;  %v5684_v8 = vld [vmem:[#allocation3 + $0x1e7] sm:$0x1]  ;;  %5234 = vst.msk [vmem:[#allocation3 + $0x1e8] sm:$0xff] %vm5172_vm3, %v5169_v27  ;;  %v12743_v25 = vpop.f32.mrf.mxu1  ;;  %v12751_v29 = vpop.f32.mrf.mxu2 }
 0x6dd   :  { %v5038_v28 = vmul.f32 %v12609_v30, %v4970_v7  ;;  %5364 = vst.msk [vmem:[#allocation4 + $0xf0] sm:$0x1] %vm5333_vm4, %v5331_v13  ;;  %v5716_v40 = vmax.f32 %v5652_v11, %v5684_v8  ;;  %v12753_v48 = vpop.f32.mrf.mxu3  ;;  %v7092_v11 = vld [vmem:[#allocation5 + $0x12] sm:$0xff] }
 0x6de   :  { %5492 = vst.msk [vmem:[#allocation4 + $0xf1] sm:$0x1] %vm5333_vm4, %v5460_v39  ;;  %v6945_v39 = vld [vmem:[#allocation5 + $0x11] sm:$0xff] }
 0x6df   :  { %v5106_v32 = vadd.f32 %v12618_v5, %v5038_v28  ;;  %5620 = vst.msk [vmem:[#allocation4 + $0xf2] sm:$0x1] %vm5333_vm4, %v5588_v4  ;;  %v6373_v62 = vld [vmem:[#allocation4 + $0xe8] sm:$0xff] }
 0x6e0   :  { %5748 = vst.msk [vmem:[#allocation4 + $0xf3] sm:$0x1] %vm5333_vm4, %v5716_v40  ;;  %v6375_v22 = vmax.f32 %v6370_v35, %v6373_v62  ;;  %v12771_v35 = vld [vmem:[#allocation5 + $0x22] sm:$0xff] }
 0x6e1   :  { %v5170_v12 = vmax.f32 %v5106_v32, 0.0 }
 0x6e2   :  { %v4905_v26 = vpop.f32.mrf.mxu0  ;;  %6378 = vst.msk [vmem:[#allocation5 + $0x111] sm:$0xff] %vm5172_vm3, %v6375_v22 }
 0x6e3   :  { %5235 = vst.msk [vmem:[#allocation3 + $0x1f0] sm:$0xff] %vm5172_vm3, %v5170_v12  ;;  %v4971_v0 = vadd.f32 %v4905_v26, %v4437_v60  ;;  %v5780_v1 = vld [vmem:[#allocation3 + $0x1e8] sm:$0x1]  ;;  %v5812_v44 = vld [vmem:[#allocation3 + $0x1e9] sm:$0x1]  ;;  %v12762_v60 = vld [vmem:[#allocation5 + $0x20] sm:$0xff] }
 0x6e4   :  { %v5908_v21 = vld [vmem:[#allocation3 + $0x1ea] sm:$0x1]  ;;  %v5844_v45 = vmax.f32 %v5780_v1, %v5812_v44  ;;  %v5940_v6 = vld [vmem:[#allocation3 + $0x1eb] sm:$0x1]  ;;  %v6036_v53 = vld [vmem:[#allocation3 + $0x1ec] sm:$0x1]  ;;  %v12758_v32 = vpop.f32.mrf.mxu1  ;;  %v12773_v62 = vpop.f32.mrf.mxu2 }
 0x6e5   :  { %v5039_v54 = vmul.f32 %v12609_v30, %v4971_v0  ;;  %v6068_v14 = vld [vmem:[#allocation3 + $0x1ed] sm:$0x1]  ;;  %v5972_v42 = vmax.f32 %v5908_v21, %v5940_v6  ;;  %v6164_v33 = vld [vmem:[#allocation3 + $0x1ee] sm:$0x1]  ;;  %v6196_v20 = vld [vmem:[#allocation3 + $0x1ef] sm:$0x1]  ;;  %v12778_v22 = vpop.f32.mrf.mxu3 }
 0x6e6   :  { %v6100_v2 = vmax.f32 %v6036_v53, %v6068_v14  ;;  %5876 = vst.msk [vmem:[#allocation4 + $0xf4] sm:$0x1] %vm5333_vm4, %v5844_v45  ;;  %v6228_v46 = vmax.f32 %v6164_v33, %v6196_v20  ;;  %v12764_v0 = vld [vmem:[#allocation5 + $0x21] sm:$0xff]  ;;  %v12782_v1 = vld [vmem:[#allocation5 + $0x30] sm:$0xff] }
 0x6e7   :  { %v5107_v7 = vadd.f32 %v12618_v5, %v5039_v54  ;;  %6004 = vst.msk [vmem:[#allocation4 + $0xf5] sm:$0x1] %vm5333_vm4, %v5972_v42  ;;  %v12784_v44 = vld [vmem:[#allocation5 + $0x31] sm:$0xff]  ;;  %v12801_v33 = vld [vmem:[#allocation5 + $0x40] sm:$0xff] }
 0x6e8   :  { %6132 = vst.msk [vmem:[#allocation4 + $0xf6] sm:$0x1] %vm5333_vm4, %v6100_v2  ;;  %v12790_v21 = vld [vmem:[#allocation5 + $0x32] sm:$0xff]  ;;  %v12803_v20 = vld [vmem:[#allocation5 + $0x41] sm:$0xff] }
 0x6e9   :  { %6260 = vst.msk [vmem:[#allocation4 + $0xf7] sm:$0x1] %vm5333_vm4, %v6228_v46  ;;  %v12732_v17 = vld [vmem:[#allocation5 + $0x111] sm:$0xff]  ;;  %v5171_v52 = vmax.f32 %v5107_v7, 0.0 }
 0x6ea   :  { %v5268_v34 = vld [vmem:[#allocation3 + $0x1f0] sm:$0x1]  ;;  %v5300_v41 = vld [vmem:[#allocation3 + $0x1f1] sm:$0x1]  ;;  %v5397_v47 = vld [vmem:[#allocation3 + $0x1f2] sm:$0x1]  ;;  %10066 = vmatmul.msk.f32.gmra.mxu1 %vm5172_vm3, %v12732_v17 }
 0x6eb   :  { %v5332_v30 = vmax.f32 %v5268_v34, %v5300_v41  ;;  %v5429_v58 = vld [vmem:[#allocation3 + $0x1f3] sm:$0x1]  ;;  %v5525_v24 = vld [vmem:[#allocation3 + $0x1f4] sm:$0x1]  ;;  %v5557_v57 = vld [vmem:[#allocation3 + $0x1f5] sm:$0x1] }
 0x6ec   :  { %v5461_v38 = vmax.f32 %v5397_v47, %v5429_v58  ;;  %v5653_v19 = vld [vmem:[#allocation3 + $0x1f6] sm:$0x1]  ;;  %v5589_v16 = vmax.f32 %v5525_v24, %v5557_v57  ;;  %v5685_v28 = vld [vmem:[#allocation3 + $0x1f7] sm:$0x1]  ;;  %5236 = vst.msk [vmem:[#allocation3 + $0x1f8] sm:$0xff] %vm5172_vm3, %v5171_v52  ;;  %v12780_v54 = vpop.f32.mrf.mxu1  ;;  %v12792_v53 = vpop.f32.mrf.mxu2  ;;  %v12809_v34 = vld [vmem:[#allocation5 + $0x42] sm:$0xff] }
 0x6ed   :  { %v12734_v43 = vld [vmem:[#allocation5 + $0x110] sm:$0xff]  ;;  %5365 = vst.msk [vmem:[#allocation4 + $0xf8] sm:$0x1] %vm5333_vm4, %v5332_v30  ;;  %v5717_v5 = vmax.f32 %v5653_v19, %v5685_v28  ;;  %v12796_v42 = vpop.f32.mrf.mxu3  ;;  %v12837_v19 = vld [vmem:[#allocation5 + $0x60] sm:$0xff] }
 0x6ee   :  { %10082 = vmatmul.msk.f32.gmra.mxu2 %vm5172_vm3, %v12734_v43  ;;  %v12741_v13 = vld [vmem:[#allocation5 + $0x112] sm:$0xff]  ;;  %5493 = vst.msk [vmem:[#allocation4 + $0xf9] sm:$0x1] %vm5333_vm4, %v5461_v38  ;;  %v12845_v28 = vld [vmem:[#allocation5 + $0x62] sm:$0xff] }
 0x6ef   :  { %10099 = vmatmul.msk.f32.gmra.mxu3 %vm5172_vm3, %v12741_v13  ;;  %5621 = vst.msk [vmem:[#allocation4 + $0xfa] sm:$0x1] %vm5333_vm4, %v5589_v16  ;;  %v12819_v7 = vld [vmem:[#allocation5 + $0x50] sm:$0xff]  ;;  %v12839_v16 = vld [vmem:[#allocation5 + $0x61] sm:$0xff] }
 0x6f0   :  { %5749 = vst.msk [vmem:[#allocation4 + $0xfb] sm:$0x1] %vm5333_vm4, %v5717_v5  ;;  %v6381_v45 = vld [vmem:[#allocation4 + $0xf0] sm:$0xff] }
 0x6f1   :  { %v12821_v30 = vld [vmem:[#allocation5 + $0x51] sm:$0xff] }
 0x6f2   :  { %10101 = vmatmul.msk.f32.vlgmr.msrb.gmra.mxu1 %vm5172_vm3, %v6798_v3  ;;  %v12827_v58 = vld [vmem:[#allocation5 + $0x52] sm:$0xff] }
 0x6f3   :  { %v5781_v9 = vld [vmem:[#allocation3 + $0x1f8] sm:$0x1]  ;;  %v5813_v4 = vld [vmem:[#allocation3 + $0x1f9] sm:$0x1]  ;;  %v5909_v8 = vld [vmem:[#allocation3 + $0x1fa] sm:$0x1] }
 0x6f4   :  { %v5845_v27 = vmax.f32 %v5781_v9, %v5813_v4  ;;  %v5941_v51 = vld [vmem:[#allocation3 + $0x1fb] sm:$0x1]  ;;  %v6037_v40 = vld [vmem:[#allocation3 + $0x1fc] sm:$0x1]  ;;  %v6069_v12 = vld [vmem:[#allocation3 + $0x1fd] sm:$0x1]  ;;  %v12798_v2 = vpop.f32.mrf.mxu1  ;;  %v12811_v46 = vpop.f32.mrf.mxu2 }
 0x6f5   :  { %v5973_v55 = vmax.f32 %v5909_v8, %v5941_v51  ;;  %v6101_v26 = vmax.f32 %v6037_v40, %v6069_v12  ;;  %v6165_v61 = vld [vmem:[#allocation3 + $0x1fe] sm:$0x1]  ;;  %v6197_v49 = vld [vmem:[#allocation3 + $0x1ff] sm:$0x1]  ;;  %v12815_v41 = vpop.f32.mrf.mxu3  ;;  %v12863_v9 = vld [vmem:[#allocation5 + $0x72] sm:$0xff] }
 0x6f6   :  { %10118 = vmatmul.msk.f32.vlgmr.msrb.gmra.mxu2 %vm5172_vm3, %v6945_v39  ;;  %5877 = vst.msk [vmem:[#allocation4 + $0xfc] sm:$0x1] %vm5333_vm4, %v5845_v27  ;;  %v6229_v50 = vmax.f32 %v6165_v61, %v6197_v49  ;;  %v12855_v39 = vld [vmem:[#allocation5 + $0x70] sm:$0xff]  ;;  %v12873_v51 = vld [vmem:[#allocation5 + $0x80] sm:$0xff] }
 0x6f7   :  { %10135 = vmatmul.msk.f32.vlgmr.msra.gmra.mxu3 %vm5172_vm3, %v7092_v11  ;;  %6005 = vst.msk [vmem:[#allocation4 + $0xfd] sm:$0x1] %vm5333_vm4, %v5973_v55  ;;  %v12857_v11 = vld [vmem:[#allocation5 + $0x71] sm:$0xff]  ;;  %v12875_v40 = vld [vmem:[#allocation5 + $0x81] sm:$0xff] }
 0x6f8   :  { %6133 = vst.msk [vmem:[#allocation4 + $0xfe] sm:$0x1] %vm5333_vm4, %v6101_v26  ;;  %v12881_v12 = vld [vmem:[#allocation5 + $0x82] sm:$0xff]  ;;  %v6806_v49 = vld [vmem:[#allocation5 + $0xb0] sm:$0xff] }
 0x6f9   :  { %6261 = vst.msk [vmem:[#allocation4 + $0xff] sm:$0x1] %vm5333_vm4, %v6229_v50  ;;  %v6953_v50 = vld [vmem:[#allocation5 + $0xb1] sm:$0xff] }
 0x6fa   :  { %10102 = vmatmul.msk.f32.gmra.mxu1 %vm5172_vm3, %v12762_v60 }
 0x6fc   :  { %v12817_v47 = vpop.f32.mrf.mxu1  ;;  %v12829_v24 = vpop.f32.mrf.mxu2 }
 0x6fd   :  { %v12833_v38 = vpop.f32.mrf.mxu3 }
 0x6fe   :  { %10119 = vmatmul.msk.f32.gmra.mxu2 %vm5172_vm3, %v12764_v0 }
 0x6ff   :  { %10136 = vmatmul.msk.f32.gmra.mxu3 %vm5172_vm3, %v12771_v35 }
 0x700   :  { %v6384_v6 = vld [vmem:[#allocation4 + $0xf8] sm:$0xff] }
 0x701   :  { %v6386_v14 = vmax.f32 %v6381_v45, %v6384_v6  ;;  %v7100_v45 = vld [vmem:[#allocation5 + $0xb2] sm:$0xff] }
 0x702   :  { %10103 = vmatmul.msk.f32.gmra.mxu1 %vm5172_vm3, %v12782_v1 }
 0x703   :  { %6389 = vst.msk [vmem:[#allocation5 + $0x121] sm:$0xff] %vm5172_vm3, %v6386_v14 }
 0x704   :  { %v12835_v57 = vpop.f32.mrf.mxu1  ;;  %v12847_v5 = vpop.f32.mrf.mxu2 }
 0x705   :  { %v12851_v52 = vpop.f32.mrf.mxu3 }
 0x706   :  { %10120 = vmatmul.msk.f32.gmra.mxu2 %vm5172_vm3, %v12784_v44 }
 0x707   :  { %10137 = vmatmul.msk.f32.gmra.mxu3 %vm5172_vm3, %v12790_v21 }
 0x70a   :  { %10104 = vmatmul.msk.f32.gmra.mxu1 %vm5172_vm3, %v12801_v33 }
 0x70c   :  { %v12853_v3 = vpop.f32.mrf.mxu1  ;;  %v12865_v4 = vpop.f32.mrf.mxu2 }
 0x70d   :  { %v12869_v8 = vpop.f32.mrf.mxu3 }
 0x70e   :  { %10121 = vmatmul.msk.f32.gmra.mxu2 %vm5172_vm3, %v12803_v20 }
 0x70f   :  { %10138 = vmatmul.msk.f32.gmra.mxu3 %vm5172_vm3, %v12809_v34 }
 0x712   :  { %10105 = vmatmul.msk.f32.gmra.mxu1 %vm5172_vm3, %v12819_v7 }
 0x714   :  { %v12871_v27 = vpop.f32.mrf.mxu1  ;;  %v12883_v55 = vpop.f32.mrf.mxu2 }
 0x715   :  { %13945 = vst [vmem:[#allocation18_spill] sm:$0xff] %v12883_v55  ;;  %v12887_v26 = vpop.f32.mrf.mxu3  ;;  %v12900_v55 = vld [vmem:[#allocation5 + $0xc0] sm:$0xff] }
 0x716   :  { %10122 = vmatmul.msk.f32.gmra.mxu2 %vm5172_vm3, %v12821_v30  ;;  %13946 = vst [vmem:[#allocation19_spill] sm:$0xff] %v12887_v26  ;;  %v12902_v26 = vld [vmem:[#allocation5 + $0xc1] sm:$0xff] }
 0x717   :  { %10139 = vmatmul.msk.f32.gmra.mxu3 %vm5172_vm3, %v12827_v58  ;;  %13951 = vst [vmem:[#allocation12_spill] sm:$0xff] %v12900_v55 }
 0x718   :  { %13952 = vst [vmem:[#allocation24_spill] sm:$0xff] %v12902_v26 }
 0x71a   :  { %10106 = vmatmul.msk.f32.gmra.mxu1 %vm5172_vm3, %v12837_v19 }
 0x71c   :  { %v12889_v61 = vpop.f32.mrf.mxu1  ;;  %v12893_v6 = vpop.f32.mrf.mxu2 }
 0x71d   :  { %13947 = vst [vmem:[#allocation20_spill] sm:$0xff] %v12889_v61  ;;  %v12896_v14 = vpop.f32.mrf.mxu3  ;;  %v10308_v61 = vld [vmem:[#allocation5 + $0xd2] sm:$0xff] }
 0x71e   :  { %10123 = vmatmul.msk.f32.gmra.mxu2 %vm5172_vm3, %v12839_v16  ;;  %13948 = vst [vmem:[#allocation21_spill] sm:$0xff] %v12893_v6  ;;  %v10307_v6 = vld [vmem:[#allocation5 + $0xd1] sm:$0xff] }
 0x71f   :  { %10140 = vmatmul.msk.f32.gmra.mxu3 %vm5172_vm3, %v12845_v28  ;;  %13949 = vst [vmem:[#allocation22_spill] sm:$0xff] %v12896_v14  ;;  %v10306_v14 = vld [vmem:[#allocation5 + $0xd0] sm:$0xff] }
 0x722   :  { %10107 = vmatmul.msk.f32.gmra.mxu1 %vm5172_vm3, %v12855_v39 }
 0x724   :  { %v12898_v10 = vpop.f32.mrf.mxu1 }
 0x725   :  { %13950 = vst [vmem:[#allocation23_spill] sm:$0xff] %v12898_v10 }
 0x726   :  { %10124 = vmatmul.msk.f32.gmra.mxu2 %vm5172_vm3, %v12857_v11 }
 0x727   :  { %10141 = vmatmul.msk.f32.gmra.mxu3 %vm5172_vm3, %v12863_v9 }
 0x72a   :  { %10108 = vmatmul.msk.f32.gmra.mxu1 %vm5172_vm3, %v12873_v51 }
 0x72c   :  { %v12916_v10 = vpop.f32.mrf.mxu1 }
 0x72d   :  { %13956 = vst [vmem:[#allocation26_spill] sm:$0xff] %v12916_v10 }
 0x72e   :  { %10125 = vmatmul.msk.f32.gmra.mxu2 %vm5172_vm3, %v12875_v40 }
 0x72f   :  { %10142 = vmatmul.msk.f32.gmra.mxu3 %vm5172_vm3, %v12881_v12 }
 0x732   :  { %10109 = vmatmul.msk.f32.gmra.mxu1 %vm5172_vm3, %v6806_v49  ;;  %v12908_v49 = vld [vmem:[#allocation5 + $0xc2] sm:$0xff] }
 0x733   :  { %13953 = vst [vmem:[#allocation13_spill] sm:$0xff] %v12908_v49 }
 0x736   :  { %10126 = vmatmul.msk.f32.gmra.mxu2 %vm5172_vm3, %v6953_v50  ;;  %v12912_v50 = vpop.f32.mrf.mxu2 }
 0x737   :  { %10143 = vmatmul.msk.f32.gmra.mxu3 %vm5172_vm3, %v7100_v45  ;;  %13954 = vst [vmem:[#allocation25_spill] sm:$0xff] %v12912_v50  ;;  %v12914_v45 = vpop.f32.mrf.mxu3 }
 0x738   :  { %13955 = vst [vmem:[#allocation14_spill] sm:$0xff] %v12914_v45 }
 0x73a   :  { %10110 = vmatmul.msk.f32.gmra.mxu1 %vm5172_vm3, %v12900_v55 }
 0x73e   :  { %10127 = vmatmul.msk.f32.gmra.mxu2 %vm5172_vm3, %v12902_v26  ;;  %v12921_v26 = vpop.f32.mrf.mxu2 }
 0x73f   :  { %10144 = vmatmul.msk.f32.gmra.mxu3 %vm5172_vm3, %v12908_v49  ;;  %13957 = vst [vmem:[#allocation15_spill] sm:$0xff] %v12921_v26  ;;  %v12923_v55 = vpop.f32.mrf.mxu3  ;;  %v12925_v49 = vpop.f32.mrf.mxu1 }
 0x740   :  { %13958 = vst [vmem:[#allocation27_spill] sm:$0xff] %v12923_v55 }
 0x741   :  { %13959 = vst [vmem:[#allocation16_spill] sm:$0xff] %v12925_v49  ;;  %v12973_v49 = vld [vmem:[#allocation5 + $0x120] sm:$0xff] }
 0x742   :  { %10111 = vmatmul.msk.f32.gmra.mxu1 %vm5172_vm3, %v10306_v14 }
 0x746   :  { %10128 = vmatmul.msk.f32.gmra.mxu2 %vm5172_vm3, %v10307_v6  ;;  %v12933_v14 = vpop.f32.mrf.mxu2 }
 0x747   :  { %10145 = vmatmul.msk.f32.gmra.mxu3 %vm5172_vm3, %v10308_v61  ;;  %13960 = vst [vmem:[#allocation28_spill] sm:$0xff] %v12933_v14  ;;  %v12935_v6 = vpop.f32.mrf.mxu3  ;;  %v12937_v61 = vpop.f32.mrf.mxu1 }
 0x748   :  { %13961 = vst [vmem:[#allocation17_spill] sm:$0xff] %v12935_v6 }
 0x749   :  { %13962 = vst [vmem:[#allocation29_spill] sm:$0xff] %v12937_v61 }
 0x74a   :  { %10112 = vmatmul.msk.f32.gmra.mxu1 %vm5172_vm3, %v12587_v56 }
 0x74e   :  { %10129 = vmatmul.msk.f32.gmra.mxu2 %vm5172_vm3, %v12581_v37  ;;  %v12945_v56 = vpop.f32.mrf.mxu2 }
 0x74f   :  { %10146 = vmatmul.msk.f32.gmra.mxu3 %vm5172_vm3, %v12589_v15  ;;  %13963 = vst [vmem:[#allocation42_spill] sm:$0xff] %v12945_v56  ;;  %v12947_v37 = vpop.f32.mrf.mxu3  ;;  %v12949_v15 = vpop.f32.mrf.mxu1 }
 0x750   :  { %13964 = vst [vmem:[#allocation30_spill] sm:$0xff] %v12947_v37 }
 0x751   :  { %13965 = vst [vmem:[#allocation43_spill] sm:$0xff] %v12949_v15 }
 0x752   :  { %10113 = vmatmul.msk.f32.gmra.mxu1 %vm5172_vm3, %v12641_v31 }
 0x756   :  { %10130 = vmatmul.msk.f32.gmra.mxu2 %vm5172_vm3, %v12639_v63  ;;  %v12957_v61 = vpop.f32.mrf.mxu2 }
 0x757   :  { %10147 = vmatmul.msk.f32.gmra.mxu3 %vm5172_vm3, %v12649_v59  ;;  %13966 = vst [vmem:[#allocation31_spill] sm:$0xff] %v12957_v61  ;;  %v12959_v6 = vpop.f32.mrf.mxu3  ;;  %v12961_v14 = vpop.f32.mrf.mxu1  ;;  %v12975_v61 = vld [vmem:[#allocation5 + $0x121] sm:$0xff] }
 0x758   :  { %13967 = vst [vmem:[#allocation44_spill] sm:$0xff] %v12959_v6 }
 0x759   :  { %13968 = vst [vmem:[#allocation32_spill] sm:$0xff] %v12961_v14  ;;  %v12981_v14 = vld [vmem:[#allocation5 + $0x122] sm:$0xff] }
 0x75a   :  { %10114 = vmatmul.msk.f32.gmra.mxu1 %vm5172_vm3, %v12691_v18  ;;  %13971 = vst [vmem:[#allocation46_spill] sm:$0xff] %v12981_v14 }
 0x75e   :  { %10131 = vmatmul.msk.f32.gmra.mxu2 %vm5172_vm3, %v12689_v23  ;;  %v12969_v15 = vpop.f32.mrf.mxu2 }
 0x75f   :  { %10148 = vmatmul.msk.f32.gmra.mxu3 %vm5172_vm3, %v12698_v36  ;;  %13969 = vst [vmem:[#allocation45_spill] sm:$0xff] %v12969_v15  ;;  %v12971_v37 = vpop.f32.mrf.mxu3 }
 0x760   :  { %13970 = vst [vmem:[#allocation33_spill] sm:$0xff] %v12971_v37  ;;  %v6604_v37 = vadd.f32 %v12751_v29, %v12743_v25  ;;  %v6607_v25 = vadd.f32 %v12773_v62, %v12758_v32  ;;  %v6610_v32 = vadd.f32 %v12792_v53, %v12780_v54  ;;  %v6613_v54 = vadd.f32 %v12811_v46, %v12798_v2 }
 0x761   :  { %v6616_v2 = vadd.f32 %v12829_v24, %v12817_v47  ;;  %v6619_v47 = vadd.f32 %v12847_v5, %v12835_v57  ;;  %v6622_v57 = vadd.f32 %v12865_v4, %v12853_v3  ;;  %v13972_v3 = vld [vmem:[#allocation18_spill] sm:$0xff] }
 0x762   :  { %10115 = vmatmul.msk.f32.gmra.mxu1 %vm5172_vm3, %v12734_v43  ;;  %v6782_v45 = vadd.f32 %v12753_v48, %v6604_v37  ;;  %v6783_v48 = vadd.f32 %v12778_v22, %v6607_v25  ;;  %v6784_v22 = vadd.f32 %v12796_v42, %v6610_v32  ;;  %v6785_v42 = vadd.f32 %v12815_v41, %v6613_v54  ;;  %v7393_v32 = vld [vmem:[#allocation5 + $0x91] sm:$0xff] }
 0x763   :  { %v6786_v41 = vadd.f32 %v12833_v38, %v6616_v2  ;;  %v6787_v38 = vadd.f32 %v12851_v52, %v6619_v47  ;;  %v6788_v52 = vadd.f32 %v12869_v8, %v6622_v57  ;;  %v13975_v54 = vld [vmem:[#allocation24_spill] sm:$0xff] }
 0x764   :  { %v7542_v2 = vld [vmem:[#allocation5 + $0xd2] sm:$0xff] }
 0x765   :  { %v7254_v57 = vld [vmem:[#allocation5 + $0x130] sm:$0xff] }
 0x766   :  { %10132 = vmatmul.msk.f32.gmra.mxu2 %vm5172_vm3, %v12732_v17 }
 0x767   :  { %10149 = vmatmul.msk.f32.gmra.mxu3 %vm5172_vm3, %v12741_v13  ;;  %v6535_v56 = vpop.f32.mrf.mxu1 }
 0x76a   :  { %10116 = vmatmul.msk.f32.gmra.mxu1 %vm5172_vm3, %v12973_v49 }
 0x76e   :  { %10133 = vmatmul.msk.f32.gmra.mxu2 %vm5172_vm3, %v12975_v61 }
 0x76f   :  { %10150 = vmatmul.msk.f32.gmra.mxu3 %vm5172_vm3, %v12981_v14  ;;  %v6881_v26 = vpop.f32.mrf.mxu1 }
 0x770   :  { %v6929_v50 = vadd.f32 %v6881_v26, %v6782_v45 }
 0x771   :  { %v6648_v6 = vpop.f32.mrf.mxu2 }
 0x772   :  { %v6649_v15 = vadd.f32 %v6648_v6, %v6535_v56  ;;  %v6779_v55 = vpop.f32.mrf.mxu3  ;;  %10152 = vmatmul.msk.f32.vlgmr.msra.gmra.mxu1 %vm5172_vm3, %v12762_v60 }
 0x774   :  { %v12987_v10 = vadd.f32 %v6779_v55, %v6649_v15 }
 0x776   :  { %10169 = vmatmul.msk.f32.vlgmr.msra.gmra.mxu2 %vm5172_vm3, %v12764_v0 }
 0x777   :  { %10186 = vmatmul.msk.f32.vlgmr.msrb.gmra.mxu3 %vm5172_vm3, %v12771_v35  ;;  %v6884_v55 = vpop.f32.mrf.mxu1 }
 0x778   :  { %v6930_v60 = vadd.f32 %v6884_v55, %v6783_v48 }
 0x779   :  { %v7028_v14 = vpop.f32.mrf.mxu2 }
 0x77a   :  { %v7076_v29 = vadd.f32 %v7028_v14, %v6929_v50  ;;  %v7175_v6 = vpop.f32.mrf.mxu3  ;;  %10153 = vmatmul.msk.f32.gmra.mxu1 %vm5172_vm3, %v12782_v1 }
 0x77c   :  { %v12998_v56 = vadd.f32 %v7175_v6, %v7076_v29 }
 0x77e   :  { %10170 = vmatmul.msk.f32.gmra.mxu2 %vm5172_vm3, %v12784_v44 }
 0x77f   :  { %10187 = vmatmul.msk.f32.gmra.mxu3 %vm5172_vm3, %v12790_v21  ;;  %v6887_v26 = vpop.f32.mrf.mxu1 }
 0x780   :  { %v6931_v1 = vadd.f32 %v6887_v26, %v6784_v22 }
 0x781   :  { %v7031_v0 = vpop.f32.mrf.mxu2 }
 0x782   :  { %v7077_v35 = vadd.f32 %v7031_v0, %v6930_v60  ;;  %v7178_v62 = vpop.f32.mrf.mxu3  ;;  %10154 = vmatmul.msk.f32.gmra.mxu1 %vm5172_vm3, %v12801_v33  ;;  %v7246_v0 = vld [vmem:[#allocation5 + $0x90] sm:$0xff] }
 0x784   :  { %v13009_v50 = vadd.f32 %v7178_v62, %v7077_v35  ;;  %v7540_v35 = vld [vmem:[#allocation5 + $0x92] sm:$0xff] }
 0x786   :  { %10171 = vmatmul.msk.f32.gmra.mxu2 %vm5172_vm3, %v12803_v20 }
 0x787   :  { %10188 = vmatmul.msk.f32.gmra.mxu3 %vm5172_vm3, %v12809_v34  ;;  %v6890_v45 = vpop.f32.mrf.mxu1 }
 0x788   :  { %v6932_v33 = vadd.f32 %v6890_v45, %v6785_v42 }
 0x789   :  { %v7034_v44 = vpop.f32.mrf.mxu2 }
 0x78a   :  { %v7078_v21 = vadd.f32 %v7034_v44, %v6931_v1  ;;  %v7181_v53 = vpop.f32.mrf.mxu3  ;;  %10155 = vmatmul.msk.f32.gmra.mxu1 %vm5172_vm3, %v12819_v7  ;;  %v13974_v44 = vld [vmem:[#allocation12_spill] sm:$0xff] }
 0x78c   :  { %v13020_v14 = vadd.f32 %v7181_v53, %v7078_v21  ;;  %v13976_v21 = vld [vmem:[#allocation13_spill] sm:$0xff] }
 0x78e   :  { %10172 = vmatmul.msk.f32.gmra.mxu2 %vm5172_vm3, %v12821_v30 }
 0x78f   :  { %10189 = vmatmul.msk.f32.gmra.mxu3 %vm5172_vm3, %v12827_v58  ;;  %v6893_v37 = vpop.f32.mrf.mxu1 }
 0x790   :  { %v6933_v7 = vadd.f32 %v6893_v37, %v6786_v41  ;;  %v7249_v41 = vld [vmem:[#allocation5 + $0xe0] sm:$0xff] }
 0x791   :  { %v7037_v20 = vpop.f32.mrf.mxu2 }
 0x792   :  { %v7079_v34 = vadd.f32 %v7037_v20, %v6932_v33  ;;  %v7184_v46 = vpop.f32.mrf.mxu3  ;;  %10156 = vmatmul.msk.f32.gmra.mxu1 %vm5172_vm3, %v12837_v19  ;;  %v7248_v33 = vld [vmem:[#allocation5 + $0xd0] sm:$0xff] }
 0x793   :  { %v7395_v20 = vld [vmem:[#allocation5 + $0xd1] sm:$0xff] }
 0x794   :  { %v13031_v15 = vadd.f32 %v7184_v46, %v7079_v34 }
 0x796   :  { %10173 = vmatmul.msk.f32.gmra.mxu2 %vm5172_vm3, %v12839_v16 }
 0x797   :  { %10190 = vmatmul.msk.f32.gmra.mxu3 %vm5172_vm3, %v12845_v28  ;;  %v6896_v25 = vpop.f32.mrf.mxu1 }
 0x798   :  { %v6934_v19 = vadd.f32 %v6896_v25, %v6787_v38 }
 0x799   :  { %v7040_v30 = vpop.f32.mrf.mxu2 }
 0x79a   :  { %v7080_v58 = vadd.f32 %v7040_v30, %v6933_v7  ;;  %v7187_v24 = vpop.f32.mrf.mxu3  ;;  %10157 = vmatmul.msk.f32.gmra.mxu1 %vm5172_vm3, %v12855_v39  ;;  %v7396_v7 = vld [vmem:[#allocation5 + $0xe1] sm:$0xff] }
 0x79b   :  { %v7543_v30 = vld [vmem:[#allocation5 + $0xe2] sm:$0xff] }
 0x79c   :  { %v13042_v29 = vadd.f32 %v7187_v24, %v7080_v58 }
 0x79e   :  { %10174 = vmatmul.msk.f32.gmra.mxu2 %vm5172_vm3, %v12857_v11 }
 0x79f   :  { %10191 = vmatmul.msk.f32.gmra.mxu3 %vm5172_vm3, %v12863_v9  ;;  %v6899_v6 = vpop.f32.mrf.mxu1  ;;  %v6625_v9 = vadd.f32 %v13972_v3, %v12871_v27 }
 0x7a0   :  { %v6935_v39 = vadd.f32 %v6899_v6, %v6788_v52  ;;  %v10203_v6 = vld [vmem:[%s13826_s7 + $0x18] sm:$0xff]  ;;  %v10207_v52 = vld [vmem:[%s13826_s7 + $0x28] sm:$0xff] }
 0x7a1   :  { %v7043_v16 = vpop.f32.mrf.mxu2  ;;  %8083 = vmatpush.msrb.mxu1 %v10203_v6  ;;  %8140 = vmatpush.msra.mxu3 %v10207_v52 }
 0x7a2   :  { %v7081_v28 = vadd.f32 %v7043_v16, %v6934_v19  ;;  %v7190_v5 = vpop.f32.mrf.mxu3  ;;  %10158 = vmatmul.msk.f32.gmra.mxu1 %vm5172_vm3, %v12873_v51  ;;  %v13973_v51 = vld [vmem:[#allocation19_spill] sm:$0xff]  ;;  %v13977_v16 = vld [vmem:[#allocation46_spill] sm:$0xff] }
 0x7a3   :  { %v6789_v62 = vadd.f32 %v13973_v51, %v6625_v9 }
 0x7a4   :  { %v13053_v55 = vadd.f32 %v7190_v5, %v7081_v28  ;;  %v7401_v28 = vld [vmem:[#allocation5 + $0x131] sm:$0xff] }
 0x7a5   :  { %v7548_v5 = vld [vmem:[#allocation5 + $0x132] sm:$0xff] }
 0x7a6   :  { %10175 = vmatmul.msk.f32.gmra.mxu2 %vm5172_vm3, %v12875_v40 }
 0x7a7   :  { %10192 = vmatmul.msk.f32.gmra.mxu3 %vm5172_vm3, %v12881_v12  ;;  %v6902_v60 = vpop.f32.mrf.mxu1 }
 0x7a8   :  { %v6936_v40 = vadd.f32 %v6902_v60, %v6789_v62  ;;  %v13172_v60 = vld [vmem:[%s13824_s5] ss:$0 sm:$0xff] }
 0x7a9   :  { %v7046_v11 = vpop.f32.mrf.mxu2 }
 0x7aa   :  { %v7082_v4 = vadd.f32 %v7046_v11, %v6935_v39  ;;  %v7193_v48 = vpop.f32.mrf.mxu3  ;;  %10159 = vmatmul.msk.f32.gmra.mxu1 %vm5172_vm3, %v7246_v0 }
 0x7ac   :  { %v13064_v8 = vadd.f32 %v7193_v48, %v7082_v4 }
 0x7ae   :  { %10176 = vmatmul.msk.f32.gmra.mxu2 %vm5172_vm3, %v7393_v32 }
 0x7af   :  { %10193 = vmatmul.msk.f32.gmra.mxu3 %vm5172_vm3, %v7540_v35  ;;  %v13070_v22 = vpop.f32.mrf.mxu1  ;;  %v13177_v35 = vld [vmem:[%s13825_s6] ss:$0 sm:$0xff] }
 0x7b1   :  { %v7049_v12 = vpop.f32.mrf.mxu2 }
 0x7b2   :  { %v7083_v26 = vadd.f32 %v7049_v12, %v6936_v40  ;;  %v7196_v27 = vpop.f32.mrf.mxu3  ;;  %10160 = vmatmul.msk.f32.gmra.mxu1 %vm5172_vm3, %v13974_v44 }
 0x7b4   :  { %v13072_v1 = vadd.f32 %v7196_v27, %v7083_v26 }
 0x7b6   :  { %10177 = vmatmul.msk.f32.gmra.mxu2 %vm5172_vm3, %v13975_v54 }
 0x7b7   :  { %10194 = vmatmul.msk.f32.gmra.mxu3 %vm5172_vm3, %v13976_v21  ;;  %v13084_v42 = vpop.f32.mrf.mxu1 }
 0x7b9   :  { %v13080_v53 = vpop.f32.mrf.mxu2 }
 0x7ba   :  { %v13082_v45 = vpop.f32.mrf.mxu3  ;;  %10161 = vmatmul.msk.f32.gmra.mxu1 %vm5172_vm3, %v7248_v33 }
 0x7be   :  { %10178 = vmatmul.msk.f32.gmra.mxu2 %vm5172_vm3, %v7395_v20 }
 0x7bf   :  { %10195 = vmatmul.msk.f32.gmra.mxu3 %vm5172_vm3, %v7542_v2  ;;  %v13093_v37 = vpop.f32.mrf.mxu1 }
 0x7c1   :  { %v13089_v34 = vpop.f32.mrf.mxu2 }
 0x7c2   :  { %v13091_v46 = vpop.f32.mrf.mxu3  ;;  %10162 = vmatmul.msk.f32.gmra.mxu1 %vm5172_vm3, %v7249_v41 }
 0x7c6   :  { %10179 = vmatmul.msk.f32.gmra.mxu2 %vm5172_vm3, %v7396_v7 }
 0x7c7   :  { %10196 = vmatmul.msk.f32.gmra.mxu3 %vm5172_vm3, %v7543_v30  ;;  %v13102_v24 = vpop.f32.mrf.mxu1 }
 0x7c9   :  { %v13098_v47 = vpop.f32.mrf.mxu2 }
 0x7ca   :  { %v13100_v58 = vpop.f32.mrf.mxu3  ;;  %10163 = vmatmul.msk.f32.gmra.mxu1 %vm5172_vm3, %v12641_v31 }
 0x7ce   :  { %10180 = vmatmul.msk.f32.gmra.mxu2 %vm5172_vm3, %v12639_v63 }
 0x7cf   :  { %10197 = vmatmul.msk.f32.gmra.mxu3 %vm5172_vm3, %v12649_v59  ;;  %v13114_v19 = vpop.f32.mrf.mxu1 }
 0x7d1   :  { %v13110_v25 = vpop.f32.mrf.mxu2 }
 0x7d2   :  { %v13112_v38 = vpop.f32.mrf.mxu3  ;;  %10164 = vmatmul.msk.f32.gmra.mxu1 %vm5172_vm3, %v12691_v18 }
 0x7d6   :  { %10181 = vmatmul.msk.f32.gmra.mxu2 %vm5172_vm3, %v12689_v23 }
 0x7d7   :  { %10198 = vmatmul.msk.f32.gmra.mxu3 %vm5172_vm3, %v12698_v36  ;;  %v13126_v59 = vpop.f32.mrf.mxu1 }
 0x7d9   :  { %v13122_v31 = vpop.f32.mrf.mxu2 }
 0x7da   :  { %v13124_v63 = vpop.f32.mrf.mxu3  ;;  %10165 = vmatmul.msk.f32.gmra.mxu1 %vm5172_vm3, %v12734_v43 }
 0x7de   :  { %10182 = vmatmul.msk.f32.gmra.mxu2 %vm5172_vm3, %v12732_v17 }
 0x7df   :  { %10199 = vmatmul.msk.f32.gmra.mxu3 %vm5172_vm3, %v12741_v13  ;;  %v13138_v36 = vpop.f32.mrf.mxu1 }
 0x7e1   :  { %v13134_v18 = vpop.f32.mrf.mxu2 }
 0x7e2   :  { %v13136_v23 = vpop.f32.mrf.mxu3  ;;  %10166 = vmatmul.msk.f32.gmra.mxu1 %vm5172_vm3, %v12973_v49 }
 0x7e6   :  { %10183 = vmatmul.msk.f32.gmra.mxu2 %vm5172_vm3, %v12975_v61  ;;  %v8056_v61 = vld [vmem:[%s13826_s7 + $0x8] sm:$0xff] }
 0x7e7   :  { %10200 = vmatmul.msk.f32.gmra.mxu3 %vm5172_vm3, %v13977_v16  ;;  %v13150_v13 = vpop.f32.mrf.mxu1  ;;  %8109 = vmatpush.msrb.mxu2 %v8056_v61 }
 0x7e9   :  { %v13146_v43 = vpop.f32.mrf.mxu2 }
 0x7ea   :  { %v13148_v17 = vpop.f32.mrf.mxu3  ;;  %10167 = vmatmul.msk.f32.gmra.mxu1 %vm5172_vm3, %v7254_v57 }
 0x7ee   :  { %10184 = vmatmul.msk.f32.gmra.mxu2 %vm5172_vm3, %v7401_v28 }
 0x7ef   :  { %10201 = vmatmul.msk.f32.gmra.mxu3 %vm5172_vm3, %v7548_v5  ;;  %v7322_v11 = vpop.f32.mrf.mxu1 }
 0x7f0   :  { %v7370_v3 = vadd.f32 %v7322_v11, %v12998_v56 }
 0x7f1   :  { %v13155_v49 = vpop.f32.mrf.mxu2 }
 0x7f2   :  { %v13166_v39 = vpop.f32.mrf.mxu3 }
 0x7f7   :  { %v7325_v0 = vpop.f32.mrf.mxu1 }
 0x7f8   :  { %v7371_v56 = vadd.f32 %v7325_v0, %v13009_v50 }
 0x7f9   :  { %v7469_v9 = vpop.f32.mrf.mxu2 }
 0x7fa   :  { %v7517_v4 = vadd.f32 %v7469_v9, %v7370_v3  ;;  %v7616_v48 = vpop.f32.mrf.mxu3 }
 0x7fc   :  { %v7664_v32 = vadd.f32 %v7616_v48, %v7517_v4 }
 0x7fe   :  { %v7684_v51 = vmul.f32 %v13172_v60, %v7664_v32 }
 0x7ff   :  { %v7328_v44 = vpop.f32.mrf.mxu1 }
 0x800   :  { %v7704_v62 = vadd.f32 %v13177_v35, %v7684_v51  ;;  %v7372_v20 = vadd.f32 %v7328_v44, %v13020_v14 }
 0x801   :  { %v7472_v40 = vpop.f32.mrf.mxu2 }
 0x802   :  { %v7720_v12 = vmax.f32 %v7704_v62, 0.0  ;;  %v7518_v26 = vadd.f32 %v7472_v40, %v7371_v56  ;;  %v7619_v27 = vpop.f32.mrf.mxu3 }
 0x804   :  { %7737 = vst.msk [vmem:[#allocation6] sm:$0xff] %vm7736_vm6, %v7720_v12  ;;  %v7665_v54 = vadd.f32 %v7619_v27, %v7518_v26 }
 0x806   :  { %v7685_v21 = vmul.f32 %v13172_v60, %v7665_v54 }
 0x807   :  { %v7331_v28 = vpop.f32.mrf.mxu1 }
 0x808   :  { %v7705_v33 = vadd.f32 %v13177_v35, %v7685_v21  ;;  %v7373_v51 = vadd.f32 %v7331_v28, %v13031_v15 }
 0x809   :  { %v7475_v2 = vpop.f32.mrf.mxu2 }
 0x80a   :  { %v7721_v41 = vmax.f32 %v7705_v33, 0.0  ;;  %v7519_v7 = vadd.f32 %v7475_v2, %v7372_v20  ;;  %v7622_v50 = vpop.f32.mrf.mxu3 }
 0x80b   :  { %v7753_v30 = vld [vmem:[#allocation6] sm:$0x1]  ;;  %v7769_v16 = vld [vmem:[#allocation6 + $0x1] sm:$0x1]  ;;  %v7818_v57 = vld [vmem:[#allocation6 + $0x2] sm:$0x1] }
 0x80c   :  { %v7785_v5 = vmax.f32 %v7753_v30, %v7769_v16  ;;  %v7834_v61 = vld [vmem:[#allocation6 + $0x3] sm:$0x1]  ;;  %v7882_v6 = vld [vmem:[#allocation6 + $0x4] sm:$0x1]  ;;  %v7898_v52 = vld [vmem:[#allocation6 + $0x5] sm:$0x1]  ;;  %v7666_v11 = vadd.f32 %v7622_v50, %v7519_v7 }
 0x80d   :  { %v7850_v3 = vmax.f32 %v7818_v57, %v7834_v61  ;;  %v7914_v9 = vmax.f32 %v7882_v6, %v7898_v52  ;;  %v7946_v4 = vld [vmem:[#allocation6 + $0x6] sm:$0x1]  ;;  %v7962_v48 = vld [vmem:[#allocation6 + $0x7] sm:$0x1]  ;;  %7738 = vst.msk [vmem:[#allocation6 + $0x8] sm:$0xff] %vm7736_vm6, %v7721_v41 }
 0x80e   :  { %7802 = vst.msk [vmem:[#allocation7] sm:$0x1] %vm7801_vm7, %v7785_v5  ;;  %v7978_v14 = vmax.f32 %v7946_v4, %v7962_v48  ;;  %v7686_v0 = vmul.f32 %v13172_v60, %v7666_v11 }
 0x80f   :  { %7866 = vst.msk [vmem:[#allocation7 + $0x1] sm:$0x1] %vm7801_vm7, %v7850_v3  ;;  %v7334_v26 = vpop.f32.mrf.mxu1 }
 0x810   :  { %7930 = vst.msk [vmem:[#allocation7 + $0x2] sm:$0x1] %vm7801_vm7, %v7914_v9  ;;  %v7706_v32 = vadd.f32 %v13177_v35, %v7686_v0  ;;  %v7374_v5 = vadd.f32 %v7334_v26, %v13042_v29 }
 0x811   :  { %7994 = vst.msk [vmem:[#allocation7 + $0x3] sm:$0x1] %vm7801_vm7, %v7978_v14  ;;  %v7478_v62 = vpop.f32.mrf.mxu2 }
 0x812   :  { %v7722_v56 = vmax.f32 %v7706_v32, 0.0  ;;  %v7520_v40 = vadd.f32 %v7478_v62, %v7373_v51  ;;  %v7625_v12 = vpop.f32.mrf.mxu3 }
 0x814   :  { %v7754_v27 = vld [vmem:[#allocation6 + $0x8] sm:$0x1]  ;;  %v7770_v44 = vld [vmem:[#allocation6 + $0x9] sm:$0x1]  ;;  %v7819_v54 = vld [vmem:[#allocation6 + $0xa] sm:$0x1]  ;;  %v7667_v21 = vadd.f32 %v7625_v12, %v7520_v40 }
 0x815   :  { %v7786_v33 = vmax.f32 %v7754_v27, %v7770_v44  ;;  %v7835_v20 = vld [vmem:[#allocation6 + $0xb] sm:$0x1]  ;;  %v7883_v2 = vld [vmem:[#allocation6 + $0xc] sm:$0x1]  ;;  %v7899_v41 = vld [vmem:[#allocation6 + $0xd] sm:$0x1] }
 0x816   :  { %v7851_v7 = vmax.f32 %v7819_v54, %v7835_v20  ;;  %v7915_v50 = vmax.f32 %v7883_v2, %v7899_v41  ;;  %v7947_v30 = vld [vmem:[#allocation6 + $0xe] sm:$0x1]  ;;  %v7963_v16 = vld [vmem:[#allocation6 + $0xf] sm:$0x1]  ;;  %7739 = vst.msk [vmem:[#allocation6 + $0x10] sm:$0xff] %vm7736_vm6, %v7722_v56  ;;  %v7687_v15 = vmul.f32 %v13172_v60, %v7667_v21 }
 0x817   :  { %7803 = vst.msk [vmem:[#allocation7 + $0x4] sm:$0x1] %vm7801_vm7, %v7786_v33  ;;  %v7979_v57 = vmax.f32 %v7947_v30, %v7963_v16  ;;  %v7337_v3 = vpop.f32.mrf.mxu1 }
 0x818   :  { %7867 = vst.msk [vmem:[#allocation7 + $0x5] sm:$0x1] %vm7801_vm7, %v7851_v7  ;;  %v7707_v28 = vadd.f32 %v13177_v35, %v7687_v15  ;;  %v7375_v44 = vadd.f32 %v7337_v3, %v13053_v55 }
 0x819   :  { %7931 = vst.msk [vmem:[#allocation7 + $0x6] sm:$0x1] %vm7801_vm7, %v7915_v50  ;;  %v7481_v61 = vpop.f32.mrf.mxu2 }
 0x81a   :  { %7995 = vst.msk [vmem:[#allocation7 + $0x7] sm:$0x1] %vm7801_vm7, %v7979_v57  ;;  %v7723_v6 = vmax.f32 %v7707_v28, 0.0  ;;  %v7521_v52 = vadd.f32 %v7481_v61, %v7374_v5  ;;  %v7628_v11 = vpop.f32.mrf.mxu3 }
 0x81c   :  { %7740 = vst.msk [vmem:[#allocation6 + $0x18] sm:$0xff] %vm7736_vm6, %v7723_v6  ;;  %v7668_v9 = vadd.f32 %v7628_v11, %v7521_v52 }
 0x81d   :  { %v7755_v4 = vld [vmem:[#allocation6 + $0x10] sm:$0x1]  ;;  %v7771_v48 = vld [vmem:[#allocation6 + $0x11] sm:$0x1]  ;;  %v7820_v14 = vld [vmem:[#allocation6 + $0x12] sm:$0x1] }
 0x81e   :  { %v7787_v0 = vmax.f32 %v7755_v4, %v7771_v48  ;;  %v7836_v32 = vld [vmem:[#allocation6 + $0x13] sm:$0x1]  ;;  %v7884_v51 = vld [vmem:[#allocation6 + $0x14] sm:$0x1]  ;;  %v7900_v62 = vld [vmem:[#allocation6 + $0x15] sm:$0x1]  ;;  %v7688_v29 = vmul.f32 %v13172_v60, %v7668_v9 }
 0x81f   :  { %v7852_v56 = vmax.f32 %v7820_v14, %v7836_v32  ;;  %v7916_v40 = vmax.f32 %v7884_v51, %v7900_v62  ;;  %v7948_v12 = vld [vmem:[#allocation6 + $0x16] sm:$0x1]  ;;  %v7964_v26 = vld [vmem:[#allocation6 + $0x17] sm:$0x1]  ;;  %v7340_v50 = vpop.f32.mrf.mxu1  ;;  %v8010_v4 = vld [vmem:[#allocation7] sm:$0xf] }
 0x820   :  { %7804 = vst.msk [vmem:[#allocation7 + $0x8] sm:$0x1] %vm7801_vm7, %v7787_v0  ;;  %v7980_v27 = vmax.f32 %v7948_v12, %v7964_v26  ;;  %v7708_v21 = vadd.f32 %v13177_v35, %v7688_v29  ;;  %v7376_v0 = vadd.f32 %v7340_v50, %v13064_v8  ;;  %v13978_v51 = vld [vmem:[#allocation20_spill] sm:$0xff]  ;;  %v13979_v62 = vld [vmem:[#allocation21_spill] sm:$0xff] }
 0x821   :  { %7868 = vst.msk [vmem:[#allocation7 + $0x9] sm:$0x1] %vm7801_vm7, %v7852_v56  ;;  %v7484_v54 = vpop.f32.mrf.mxu2  ;;  %v8013_v2 = vld [vmem:[#allocation7 + $0x4] sm:$0xf]  ;;  %v6628_v29 = vadd.f32 %v13979_v62, %v13978_v51 }
 0x822   :  { %7932 = vst.msk [vmem:[#allocation7 + $0xa] sm:$0x1] %vm7801_vm7, %v7916_v40  ;;  %v7522_v33 = vadd.f32 %v7484_v54, %v7375_v44  ;;  %v7631_v20 = vpop.f32.mrf.mxu3  ;;  %v7724_v3 = vmax.f32 %v7708_v21, 0.0  ;;  %v8015_v48 = vmax.f32 %v8010_v4, %v8013_v2  ;;  %v13980_v44 = vld [vmem:[#allocation22_spill] sm:$0xff]  ;;  %v13982_v2 = vld [vmem:[#allocation25_spill] sm:$0xff] }
 0x823   :  { %7996 = vst.msk [vmem:[#allocation7 + $0xb] sm:$0x1] %vm7801_vm7, %v7980_v27  ;;  %v7756_v41 = vld [vmem:[#allocation6 + $0x18] sm:$0x1]  ;;  %v7772_v7 = vld [vmem:[#allocation6 + $0x19] sm:$0x1]  ;;  %v6790_v8 = vadd.f32 %v13980_v44, %v6628_v29 }
 0x824   :  { %v7788_v30 = vmax.f32 %v7756_v41, %v7772_v7  ;;  %v7821_v16 = vld [vmem:[#allocation6 + $0x1a] sm:$0x1]  ;;  %v7837_v15 = vld [vmem:[#allocation6 + $0x1b] sm:$0x1]  ;;  %v7885_v57 = vld [vmem:[#allocation6 + $0x1c] sm:$0x1]  ;;  %v7669_v55 = vadd.f32 %v7631_v20, %v7522_v33 }
 0x825   :  { %v7853_v28 = vmax.f32 %v7821_v16, %v7837_v15  ;;  %v7901_v5 = vld [vmem:[#allocation6 + $0x1d] sm:$0x1]  ;;  %v7949_v61 = vld [vmem:[#allocation6 + $0x1e] sm:$0x1]  ;;  %v7965_v6 = vld [vmem:[#allocation6 + $0x1f] sm:$0x1]  ;;  %v6937_v54 = vadd.f32 %v13070_v22, %v6790_v8 }
 0x826   :  { %7805 = vst.msk [vmem:[#allocation7 + $0xc] sm:$0x1] %vm7801_vm7, %v7788_v30  ;;  %v7917_v52 = vmax.f32 %v7885_v57, %v7901_v5  ;;  %v7981_v11 = vmax.f32 %v7949_v61, %v7965_v6  ;;  %v7689_v9 = vmul.f32 %v13172_v60, %v7669_v55  ;;  %v13981_v20 = vld [vmem:[#allocation23_spill] sm:$0xff] }
 0x827   :  { %7869 = vst.msk [vmem:[#allocation7 + $0xd] sm:$0x1] %vm7801_vm7, %v7853_v28  ;;  %v7343_v26 = vpop.f32.mrf.mxu1  ;;  %v6631_v41 = vadd.f32 %v13982_v2, %v13981_v20  ;;  %v7084_v15 = vadd.f32 %v13080_v53, %v6937_v54 }
 0x828   :  { %7933 = vst.msk [vmem:[#allocation7 + $0xe] sm:$0x1] %vm7801_vm7, %v7917_v52  ;;  %v7709_v14 = vadd.f32 %v13177_v35, %v7689_v9  ;;  %v7377_v33 = vadd.f32 %v7343_v26, %v13072_v1 }
 0x829   :  { %7997 = vst.msk [vmem:[#allocation7 + $0xf] sm:$0x1] %vm7801_vm7, %v7981_v11  ;;  %v7487_v32 = vpop.f32.mrf.mxu2 }
 0x82a   :  { %7741 = vst.msk [vmem:[#allocation6 + $0x20] sm:$0xff] %vm7736_vm6, %v7724_v3  ;;  %v7725_v56 = vmax.f32 %v7709_v14, 0.0  ;;  %v7523_v40 = vadd.f32 %v7487_v32, %v7376_v0  ;;  %v7634_v12 = vpop.f32.mrf.mxu3  ;;  %v13983_v32 = vld [vmem:[#allocation14_spill] sm:$0xff] }
 0x82b   :  { %8018 = vst.msk [vmem:[#allocation8] sm:$0xf] %vm8017_vm8, %v8015_v48  ;;  %v6791_v51 = vadd.f32 %v13983_v32, %v6631_v41 }
 0x82c   :  { %7742 = vst.msk [vmem:[#allocation6 + $0x28] sm:$0xff] %vm7736_vm6, %v7725_v56  ;;  %v7670_v27 = vadd.f32 %v7634_v12, %v7523_v40  ;;  %v7231_v40 = vadd.f32 %v13082_v45, %v7084_v15  ;;  %v8021_v15 = vld [vmem:[#allocation7 + $0x8] sm:$0xf] }
 0x82d   :  { %v6938_v8 = vadd.f32 %v13084_v42, %v6791_v51 }
 0x82e   :  { %v7690_v21 = vmul.f32 %v13172_v60, %v7670_v27 }
 0x82f   :  { %v7346_v9 = vpop.f32.mrf.mxu1  ;;  %v7085_v42 = vadd.f32 %v13089_v34, %v6938_v8  ;;  %v10206_v34 = vld [vmem:[%s13826_s7 + $0x20] sm:$0xff] }
 0x830   :  { %v7710_v0 = vadd.f32 %v13177_v35, %v7690_v21  ;;  %v7378_v41 = vadd.f32 %v7346_v9, %v7231_v40  ;;  %8141 = vmatpush.msra.mxu3 %v10206_v34  ;;  %v13990_v34 = vld [vmem:[#allocation29_spill] sm:$0xff] }
 0x831   :  { %v7757_v7 = vld [vmem:[#allocation6 + $0x20] sm:$0x1]  ;;  %v7773_v50 = vld [vmem:[#allocation6 + $0x21] sm:$0x1]  ;;  %v7822_v30 = vld [vmem:[#allocation6 + $0x22] sm:$0x1]  ;;  %v7490_v16 = vpop.f32.mrf.mxu2 }
 0x832   :  { %v7789_v57 = vmax.f32 %v7757_v7, %v7773_v50  ;;  %v7838_v55 = vld [vmem:[#allocation6 + $0x23] sm:$0x1]  ;;  %v7886_v28 = vld [vmem:[#allocation6 + $0x24] sm:$0x1]  ;;  %v7902_v5 = vld [vmem:[#allocation6 + $0x25] sm:$0x1]  ;;  %v7524_v61 = vadd.f32 %v7490_v16, %v7377_v33  ;;  %v7637_v6 = vpop.f32.mrf.mxu3 }
 0x833   :  { %v7854_v22 = vmax.f32 %v7822_v30, %v7838_v55  ;;  %v7918_v52 = vmax.f32 %v7886_v28, %v7902_v5  ;;  %v7950_v11 = vld [vmem:[#allocation6 + $0x26] sm:$0x1]  ;;  %v7966_v3 = vld [vmem:[#allocation6 + $0x27] sm:$0x1]  ;;  %v7758_v1 = vld [vmem:[#allocation6 + $0x28] sm:$0x1] }
 0x834   :  { %7806 = vst.msk [vmem:[#allocation7 + $0x10] sm:$0x1] %vm7801_vm7, %v7789_v57  ;;  %v7982_v4 = vmax.f32 %v7950_v11, %v7966_v3  ;;  %v7774_v48 = vld [vmem:[#allocation6 + $0x29] sm:$0x1]  ;;  %v7823_v14 = vld [vmem:[#allocation6 + $0x2a] sm:$0x1]  ;;  %v7671_v53 = vadd.f32 %v7637_v6, %v7524_v61  ;;  %v7232_v3 = vadd.f32 %v13091_v46, %v7085_v42 }
 0x835   :  { %7870 = vst.msk [vmem:[#allocation7 + $0x11] sm:$0x1] %vm7801_vm7, %v7854_v22  ;;  %v7790_v62 = vmax.f32 %v7758_v1, %v7774_v48  ;;  %v7839_v29 = vld [vmem:[#allocation6 + $0x2b] sm:$0x1]  ;;  %v7887_v56 = vld [vmem:[#allocation6 + $0x2c] sm:$0x1] }
 0x836   :  { %7934 = vst.msk [vmem:[#allocation7 + $0x12] sm:$0x1] %vm7801_vm7, %v7918_v52  ;;  %v7855_v12 = vmax.f32 %v7823_v14, %v7839_v29  ;;  %v7903_v26 = vld [vmem:[#allocation6 + $0x2d] sm:$0x1]  ;;  %v7951_v27 = vld [vmem:[#allocation6 + $0x2e] sm:$0x1]  ;;  %v7691_v44 = vmul.f32 %v13172_v60, %v7671_v53 }
 0x837   :  { %7998 = vst.msk [vmem:[#allocation7 + $0x13] sm:$0x1] %vm7801_vm7, %v7982_v4  ;;  %v7919_v54 = vmax.f32 %v7887_v56, %v7903_v26  ;;  %v7967_v21 = vld [vmem:[#allocation6 + $0x2f] sm:$0x1]  ;;  %v7726_v2 = vmax.f32 %v7710_v0, 0.0  ;;  %v13984_v7 = vld [vmem:[#allocation26_spill] sm:$0xff]  ;;  %v7349_v61 = vpop.f32.mrf.mxu1 }
 0x838   :  { %v8024_v33 = vld [vmem:[#allocation7 + $0xc] sm:$0xf]  ;;  %7807 = vst.msk [vmem:[#allocation7 + $0x14] sm:$0x1] %vm7801_vm7, %v7790_v62  ;;  %v7983_v20 = vmax.f32 %v7951_v27, %v7967_v21  ;;  %v7711_v45 = vadd.f32 %v13177_v35, %v7691_v44  ;;  %v8055_v6 = vld [vmem:[%s13826_s7] sm:$0xff]  ;;  %v10202_v22 = vld [vmem:[%s13826_s7 + $0x10] sm:$0xff]  ;;  %v7379_v4 = vadd.f32 %v7349_v61, %v7232_v3 }
 0x839   :  { %v13985_v50 = vld [vmem:[#allocation15_spill] sm:$0xff]  ;;  %7871 = vst.msk [vmem:[#allocation7 + $0x15] sm:$0x1] %vm7801_vm7, %v7855_v12  ;;  %v7493_v16 = vpop.f32.mrf.mxu2  ;;  %v8026_v5 = vmax.f32 %v8021_v15, %v8024_v33  ;;  %8110 = vmatpush.msrb.mxu2 %v8055_v6  ;;  %8084 = vmatpush.msrb.mxu1 %v10202_v22  ;;  %v13987_v48 = vld [vmem:[#allocation16_spill] sm:$0xff] }
 0x83a   :  { %v6634_v30 = vadd.f32 %v13985_v50, %v13984_v7  ;;  %7935 = vst.msk [vmem:[#allocation7 + $0x16] sm:$0x1] %vm7801_vm7, %v7919_v54  ;;  %v7727_v57 = vmax.f32 %v7711_v45, 0.0  ;;  %v7525_v55 = vadd.f32 %v7493_v16, %v7378_v41  ;;  %v7640_v28 = vpop.f32.mrf.mxu3  ;;  %v13986_v52 = vld [vmem:[#allocation27_spill] sm:$0xff]  ;;  %v13988_v14 = vld [vmem:[#allocation28_spill] sm:$0xff]  ;;  %v13989_v54 = vld [vmem:[#allocation17_spill] sm:$0xff] }
 0x83b   :  { %7999 = vst.msk [vmem:[#allocation7 + $0x17] sm:$0x1] %vm7801_vm7, %v7983_v20  ;;  %v6637_v0 = vadd.f32 %v13988_v14, %v13987_v48 }
 0x83c   :  { %7743 = vst.msk [vmem:[#allocation6 + $0x30] sm:$0xff] %vm7736_vm6, %v7726_v2  ;;  %v6792_v11 = vadd.f32 %v13986_v52, %v6634_v30  ;;  %v7672_v1 = vadd.f32 %v7640_v28, %v7525_v55  ;;  %v13991_v52 = vld [vmem:[#allocation42_spill] sm:$0xff] }
 0x83d   :  { %7744 = vst.msk [vmem:[#allocation6 + $0x38] sm:$0xff] %vm7736_vm6, %v7727_v57  ;;  %v6793_v21 = vadd.f32 %v13989_v54, %v6637_v0  ;;  %v13994_v54 = vld [vmem:[#allocation31_spill] sm:$0xff] }
 0x83e   :  { %8029 = vst.msk [vmem:[#allocation8 + $0x4] sm:$0xf] %vm8017_vm8, %v8026_v5  ;;  %v6939_v9 = vadd.f32 %v13093_v37, %v6792_v11  ;;  %v7692_v51 = vmul.f32 %v13172_v60, %v7672_v1  ;;  %v6640_v11 = vadd.f32 %v13991_v52, %v13990_v34 }
 0x83f   :  { %v7352_v46 = vpop.f32.mrf.mxu1  ;;  %v6940_v28 = vadd.f32 %v13102_v24, %v6793_v21 }
 0x840   :  { %v7086_v32 = vadd.f32 %v13098_v47, %v6939_v9  ;;  %v7712_v16 = vadd.f32 %v13177_v35, %v7692_v51 }
 0x841   :  { %v7496_v53 = vpop.f32.mrf.mxu2  ;;  %v7087_v48 = vadd.f32 %v13110_v25, %v6940_v28 }
 0x842   :  { %v7526_v62 = vadd.f32 %v7496_v53, %v7379_v4  ;;  %v7643_v29 = vpop.f32.mrf.mxu3  ;;  %v7233_v41 = vadd.f32 %v13100_v58, %v7086_v32  ;;  %v8035_v4 = vld [vmem:[#allocation7 + $0x14] sm:$0xf]  ;;  %v7728_v14 = vmax.f32 %v7712_v16, 0.0 }
 0x843   :  { %v7759_v56 = vld [vmem:[#allocation6 + $0x30] sm:$0x1]  ;;  %v7775_v40 = vld [vmem:[#allocation6 + $0x31] sm:$0x1]  ;;  %v7824_v12 = vld [vmem:[#allocation6 + $0x32] sm:$0x1]  ;;  %v7234_v25 = vadd.f32 %v13112_v38, %v7087_v48 }
 0x844   :  { %v7791_v26 = vmax.f32 %v7759_v56, %v7775_v40  ;;  %v7840_v27 = vld [vmem:[#allocation6 + $0x33] sm:$0x1]  ;;  %v7888_v44 = vld [vmem:[#allocation6 + $0x34] sm:$0x1]  ;;  %v7904_v8 = vld [vmem:[#allocation6 + $0x35] sm:$0x1]  ;;  %v7673_v37 = vadd.f32 %v7643_v29, %v7526_v62  ;;  %v7380_v22 = vadd.f32 %v7352_v46, %v7233_v41 }
 0x845   :  { %v7856_v33 = vmax.f32 %v7824_v12, %v7840_v27  ;;  %v7920_v20 = vmax.f32 %v7888_v44, %v7904_v8  ;;  %v7952_v2 = vld [vmem:[#allocation6 + $0x36] sm:$0x1]  ;;  %v7968_v45 = vld [vmem:[#allocation6 + $0x37] sm:$0x1]  ;;  %v7760_v47 = vld [vmem:[#allocation6 + $0x38] sm:$0x1] }
 0x846   :  { %7808 = vst.msk [vmem:[#allocation7 + $0x18] sm:$0x1] %vm7801_vm7, %v7791_v26  ;;  %v7984_v7 = vmax.f32 %v7952_v2, %v7968_v45  ;;  %v7776_v50 = vld [vmem:[#allocation6 + $0x39] sm:$0x1]  ;;  %v7825_v30 = vld [vmem:[#allocation6 + $0x3a] sm:$0x1]  ;;  %v7693_v15 = vmul.f32 %v13172_v60, %v7673_v37 }
 0x847   :  { %7872 = vst.msk [vmem:[#allocation7 + $0x19] sm:$0x1] %vm7801_vm7, %v7856_v33  ;;  %v7792_v42 = vmax.f32 %v7760_v47, %v7776_v50  ;;  %v7841_v57 = vld [vmem:[#allocation6 + $0x3b] sm:$0x1]  ;;  %v7889_v55 = vld [vmem:[#allocation6 + $0x3c] sm:$0x1]  ;;  %v7355_v51 = vpop.f32.mrf.mxu1 }
 0x848   :  { %7936 = vst.msk [vmem:[#allocation7 + $0x1a] sm:$0x1] %vm7801_vm7, %v7920_v20  ;;  %v7857_v5 = vmax.f32 %v7825_v30, %v7841_v57  ;;  %v7905_v58 = vld [vmem:[#allocation6 + $0x3d] sm:$0x1]  ;;  %v7953_v61 = vld [vmem:[#allocation6 + $0x3e] sm:$0x1]  ;;  %v7713_v6 = vadd.f32 %v13177_v35, %v7693_v15  ;;  %v7381_v44 = vadd.f32 %v7355_v51, %v7234_v25 }
 0x849   :  { %8000 = vst.msk [vmem:[#allocation7 + $0x1b] sm:$0x1] %vm7801_vm7, %v7984_v7  ;;  %v7921_v3 = vmax.f32 %v7889_v55, %v7905_v58  ;;  %v7969_v1 = vld [vmem:[#allocation6 + $0x3f] sm:$0x1]  ;;  %v7499_v9 = vpop.f32.mrf.mxu2  ;;  %v8032_v62 = vld [vmem:[#allocation7 + $0x10] sm:$0xf] }
 0x84a   :  { %7809 = vst.msk [vmem:[#allocation7 + $0x1c] sm:$0x1] %vm7801_vm7, %v7792_v42  ;;  %v7985_v24 = vmax.f32 %v7953_v61, %v7969_v1  ;;  %v7527_v0 = vadd.f32 %v7499_v9, %v7380_v22  ;;  %v7646_v53 = vpop.f32.mrf.mxu3  ;;  %v7729_v32 = vmax.f32 %v7713_v6, 0.0  ;;  %v8037_v56 = vmax.f32 %v8032_v62, %v8035_v4  ;;  %v13992_v40 = vld [vmem:[#allocation30_spill] sm:$0xff]  ;;  %v13993_v37 = vld [vmem:[#allocation43_spill] sm:$0xff]  ;;  %v13995_v50 = vld [vmem:[#allocation44_spill] sm:$0xff] }
 0x84b   :  { %7873 = vst.msk [vmem:[#allocation7 + $0x1d] sm:$0x1] %vm7801_vm7, %v7857_v5  ;;  %v6794_v12 = vadd.f32 %v13992_v40, %v6640_v11  ;;  %v6643_v21 = vadd.f32 %v13994_v54, %v13993_v37  ;;  %v13997_v1 = vld [vmem:[#allocation45_spill] sm:$0xff] }
 0x84c   :  { %7937 = vst.msk [vmem:[#allocation7 + $0x1e] sm:$0x1] %vm7801_vm7, %v7921_v3  ;;  %v7674_v29 = vadd.f32 %v7646_v53, %v7527_v0 }
 0x84d   :  { %8001 = vst.msk [vmem:[#allocation7 + $0x1f] sm:$0x1] %vm7801_vm7, %v7985_v24  ;;  %v6941_v26 = vadd.f32 %v13114_v19, %v6794_v12  ;;  %v6795_v30 = vadd.f32 %v13995_v50, %v6643_v21 }
 0x84e   :  { %7745 = vst.msk [vmem:[#allocation6 + $0x40] sm:$0xff] %vm7736_vm6, %v7728_v14  ;;  %v7694_v46 = vmul.f32 %v13172_v60, %v7674_v29 }
 0x84f   :  { %7746 = vst.msk [vmem:[#allocation6 + $0x48] sm:$0xff] %vm7736_vm6, %v7729_v32  ;;  %v7088_v33 = vadd.f32 %v13122_v31, %v6941_v26  ;;  %v7358_v45 = vpop.f32.mrf.mxu1  ;;  %v6942_v6 = vadd.f32 %v13126_v59, %v6795_v30 }
 0x850   :  { %v7714_v27 = vadd.f32 %v13177_v35, %v7694_v46  ;;  %8040 = vst.msk [vmem:[#allocation8 + $0x8] sm:$0xf] %vm8017_vm8, %v8037_v56 }
 0x851   :  { %v7502_v8 = vpop.f32.mrf.mxu2  ;;  %v7235_v16 = vadd.f32 %v13124_v63, %v7088_v33  ;;  %v13996_v63 = vld [vmem:[#allocation32_spill] sm:$0xff]  ;;  %v7089_v0 = vadd.f32 %v13134_v18, %v6942_v6 }
 0x852   :  { %v7730_v38 = vmax.f32 %v7714_v27, 0.0  ;;  %v7528_v20 = vadd.f32 %v7502_v8, %v7381_v44  ;;  %v7649_v2 = vpop.f32.mrf.mxu3  ;;  %v6646_v9 = vadd.f32 %v13997_v1, %v13996_v63  ;;  %v13998_v44 = vld [vmem:[#allocation33_spill] sm:$0xff] }
 0x853   :  { %v7382_v3 = vadd.f32 %v7358_v45, %v7235_v16  ;;  %v7236_v33 = vadd.f32 %v13136_v23, %v7089_v0 }
 0x854   :  { %7747 = vst.msk [vmem:[#allocation6 + $0x50] sm:$0xff] %vm7736_vm6, %v7730_v38  ;;  %v7675_v47 = vadd.f32 %v7649_v2, %v7528_v20  ;;  %v6796_v8 = vadd.f32 %v13998_v44, %v6646_v9 }
 0x855   :  { %v7761_v41 = vld [vmem:[#allocation6 + $0x40] sm:$0x1]  ;;  %v7777_v19 = vld [vmem:[#allocation6 + $0x41] sm:$0x1]  ;;  %v7826_v7 = vld [vmem:[#allocation6 + $0x42] sm:$0x1] }
 0x856   :  { %v7793_v15 = vmax.f32 %v7761_v41, %v7777_v19  ;;  %v7842_v42 = vld [vmem:[#allocation6 + $0x43] sm:$0x1]  ;;  %v7890_v57 = vld [vmem:[#allocation6 + $0x44] sm:$0x1]  ;;  %v7906_v55 = vld [vmem:[#allocation6 + $0x45] sm:$0x1]  ;;  %v7695_v11 = vmul.f32 %v13172_v60, %v7675_v47  ;;  %v6943_v47 = vadd.f32 %v13138_v36, %v6796_v8 }
 0x857   :  { %v7858_v28 = vmax.f32 %v7826_v7, %v7842_v42  ;;  %v7922_v31 = vmax.f32 %v7890_v57, %v7906_v55  ;;  %v7954_v5 = vld [vmem:[#allocation6 + $0x46] sm:$0x1]  ;;  %v7970_v58 = vld [vmem:[#allocation6 + $0x47] sm:$0x1]  ;;  %v7762_v61 = vld [vmem:[#allocation6 + $0x48] sm:$0x1]  ;;  %v7361_v12 = vpop.f32.mrf.mxu1 }
 0x858   :  { %7810 = vst.msk [vmem:[#allocation7 + $0x20] sm:$0x1] %vm7801_vm7, %v7793_v15  ;;  %v7986_v22 = vmax.f32 %v7954_v5, %v7970_v58  ;;  %v7778_v34 = vld [vmem:[#allocation6 + $0x49] sm:$0x1]  ;;  %v7827_v52 = vld [vmem:[#allocation6 + $0x4a] sm:$0x1]  ;;  %v7715_v18 = vadd.f32 %v13177_v35, %v7695_v11  ;;  %v7383_v16 = vadd.f32 %v7361_v12, %v7236_v33  ;;  %v7090_v57 = vadd.f32 %v13146_v43, %v6943_v47 }
 0x859   :  { %7874 = vst.msk [vmem:[#allocation7 + $0x21] sm:$0x1] %vm7801_vm7, %v7858_v28  ;;  %v7794_v4 = vmax.f32 %v7762_v61, %v7778_v34  ;;  %v7843_v48 = vld [vmem:[#allocation6 + $0x4b] sm:$0x1]  ;;  %v7891_v24 = vld [vmem:[#allocation6 + $0x4c] sm:$0x1]  ;;  %v7505_v14 = vpop.f32.mrf.mxu2 }
 0x85a   :  { %7938 = vst.msk [vmem:[#allocation7 + $0x22] sm:$0x1] %vm7801_vm7, %v7922_v31  ;;  %v7859_v59 = vmax.f32 %v7827_v52, %v7843_v48  ;;  %v7907_v53 = vld [vmem:[#allocation6 + $0x4d] sm:$0x1]  ;;  %v7955_v32 = vld [vmem:[#allocation6 + $0x4e] sm:$0x1]  ;;  %v7529_v51 = vadd.f32 %v7505_v14, %v7382_v3  ;;  %v7652_v62 = vpop.f32.mrf.mxu3  ;;  %v7237_v43 = vadd.f32 %v13148_v17, %v7090_v57  ;;  %v6944_v3 = vadd.f32 %v13150_v13, %v12987_v10 }
 0x85b   :  { %8002 = vst.msk [vmem:[#allocation7 + $0x23] sm:$0x1] %vm7801_vm7, %v7986_v22  ;;  %v7923_v29 = vmax.f32 %v7891_v24, %v7907_v53  ;;  %v7971_v56 = vld [vmem:[#allocation6 + $0x4f] sm:$0x1]  ;;  %v7763_v40 = vld [vmem:[#allocation6 + $0x50] sm:$0x1] }
 0x85c   :  { %7811 = vst.msk [vmem:[#allocation7 + $0x24] sm:$0x1] %vm7801_vm7, %v7794_v4  ;;  %v7987_v25 = vmax.f32 %v7955_v32, %v7971_v56  ;;  %v7779_v46 = vld [vmem:[#allocation6 + $0x51] sm:$0x1]  ;;  %v7828_v26 = vld [vmem:[#allocation6 + $0x52] sm:$0x1]  ;;  %v7676_v27 = vadd.f32 %v7652_v62, %v7529_v51  ;;  %v7091_v17 = vadd.f32 %v13155_v49, %v6944_v3 }
 0x85d   :  { %7875 = vst.msk [vmem:[#allocation7 + $0x25] sm:$0x1] %vm7801_vm7, %v7859_v59  ;;  %v7795_v37 = vmax.f32 %v7763_v40, %v7779_v46  ;;  %v7844_v54 = vld [vmem:[#allocation6 + $0x53] sm:$0x1]  ;;  %v7892_v21 = vld [vmem:[#allocation6 + $0x54] sm:$0x1] }
 0x85e   :  { %7939 = vst.msk [vmem:[#allocation7 + $0x26] sm:$0x1] %vm7801_vm7, %v7923_v29  ;;  %v7860_v38 = vmax.f32 %v7828_v26, %v7844_v54  ;;  %v7908_v20 = vld [vmem:[#allocation6 + $0x55] sm:$0x1]  ;;  %v7956_v2 = vld [vmem:[#allocation6 + $0x56] sm:$0x1]  ;;  %v7696_v45 = vmul.f32 %v13172_v60, %v7676_v27  ;;  %v7238_v49 = vadd.f32 %v13166_v39, %v7091_v17 }
 0x85f   :  { %8003 = vst.msk [vmem:[#allocation7 + $0x27] sm:$0x1] %vm7801_vm7, %v7987_v25  ;;  %v7924_v41 = vmax.f32 %v7892_v21, %v7908_v20  ;;  %v7972_v19 = vld [vmem:[#allocation6 + $0x57] sm:$0x1]  ;;  %v8046_v7 = vld [vmem:[#allocation7 + $0x1c] sm:$0xf]  ;;  %v7364_v5 = vpop.f32.mrf.mxu1 }
 0x860   :  { %7812 = vst.msk [vmem:[#allocation7 + $0x28] sm:$0x1] %vm7801_vm7, %v7795_v37  ;;  %v7988_v50 = vmax.f32 %v7956_v2, %v7972_v19  ;;  %v7731_v30 = vmax.f32 %v7715_v18, 0.0  ;;  %v7716_v23 = vadd.f32 %v13177_v35, %v7696_v45  ;;  %v8043_v42 = vld [vmem:[#allocation7 + $0x18] sm:$0xf]  ;;  %v10209_v52 = vld [vmem:[%s13826_s7 + $0x30] sm:$0xff]  ;;  %v7384_v1 = vadd.f32 %v7364_v5, %v7237_v43 }
 0x861   :  { %7876 = vst.msk [vmem:[#allocation7 + $0x29] sm:$0x1] %vm7801_vm7, %v7860_v38  ;;  %v7508_v15 = vpop.f32.mrf.mxu2  ;;  %v8048_v31 = vmax.f32 %v8043_v42, %v8046_v7  ;;  %v10210_v61 = vld [vmem:[%s13826_s7 + $0x38] sm:$0xff]  ;;  %v8057_v45 = vld [vmem:[#allocation8 + $0x1] sm:$0x1]  ;;  %v10219_v43 = vld [vmem:[%s13826_s7 + $0x68] sm:$0xff] }
 0x862   :  { %7940 = vst.msk [vmem:[#allocation7 + $0x2a] sm:$0x1] %vm7801_vm7, %v7924_v41  ;;  %v7732_v36 = vmax.f32 %v7716_v23, 0.0  ;;  %v7530_v55 = vadd.f32 %v7508_v15, %v7383_v16  ;;  %v7655_v28 = vpop.f32.mrf.mxu3  ;;  %v8011_v6 = vld [vmem:[#allocation7 + $0x20] sm:$0xf]  ;;  %8172 = vmatpush.msra.mxu1 %v10210_v61  ;;  %v10216_v61 = vld [vmem:[%s13826_s7 + $0x58] sm:$0xff] }
 0x863   :  { %8004 = vst.msk [vmem:[#allocation7 + $0x2b] sm:$0x1] %vm7801_vm7, %v7988_v50  ;;  %v8115_v57 = vld [vmem:[#allocation8 + $0x2] sm:$0x1]  ;;  %8236 = vmatpush.msrb.mxu3 %v10216_v61 }
 0x864   :  { %7748 = vst.msk [vmem:[#allocation6 + $0x58] sm:$0xff] %vm7736_vm6, %v7731_v30  ;;  %v7677_v58 = vadd.f32 %v7655_v28, %v7530_v55  ;;  %8173 = vmatpush.msra.mxu1 %v10209_v52  ;;  %v8053_v30 = vld [vmem:[#allocation8] sm:$0x1]  ;;  %v10213_v55 = vld [vmem:[%s13826_s7 + $0x48] sm:$0xff] }
 0x865   :  { %7749 = vst.msk [vmem:[#allocation6 + $0x60] sm:$0xff] %vm7736_vm6, %v7732_v36  ;;  %8204 = vmatpush.msra.mxu2 %v10213_v55  ;;  %v10218_v3 = vld [vmem:[%s13826_s7 + $0x60] sm:$0xff] }
 0x866   :  { %v7697_v22 = vmul.f32 %v13172_v60, %v7677_v58  ;;  %v8014_v34 = vld [vmem:[#allocation7 + $0x24] sm:$0xf]  ;;  %8051 = vst.msk [vmem:[#allocation8 + $0xc] sm:$0xf] %vm8017_vm8, %v8048_v31 }
 0x867   :  { %v8016_v11 = vmax.f32 %v8011_v6, %v8014_v34  ;;  %v7367_v25 = vpop.f32.mrf.mxu1  ;;  %v10215_v34 = vld [vmem:[%s13826_s7 + $0x50] sm:$0xff] }
 0x868   :  { %v13334_v63 = vadd.f32 %v13177_v35, %v7697_v22  ;;  %v7385_v39 = vadd.f32 %v7367_v25, %v7238_v49  ;;  %v10212_v22 = vld [vmem:[%s13826_s7 + $0x40] sm:$0xff]  ;;  %8237 = vmatpush.msrb.mxu3 %v10215_v34  ;;  %v10234_v34 = vld [vmem:[%s13826_s7 + $0xb8] sm:$0xff] }
 0x869   :  { %v7511_v9 = vpop.f32.mrf.mxu2  ;;  %8019 = vst.msk [vmem:[#allocation8 + $0x10] sm:$0xf] %vm8017_vm8, %v8016_v11  ;;  %8205 = vmatpush.msra.mxu2 %v10212_v22  ;;  %v10230_v22 = vld [vmem:[%s13826_s7 + $0xa0] sm:$0xff] }
 0x86a   :  { %v7733_v4 = vmax.f32 %v13334_v63, 0.0  ;;  %v7531_v48 = vadd.f32 %v7511_v9, %v7384_v1  ;;  %v7658_v24 = vpop.f32.mrf.mxu3  ;;  %v10222_v1 = vld [vmem:[%s13826_s7 + $0x78] sm:$0xff]  ;;  %v8022_v63 = vld [vmem:[#allocation7 + $0x28] sm:$0xf] }
 0x86b   :  { %v7764_v14 = vld [vmem:[#allocation6 + $0x58] sm:$0x1]  ;;  %v7780_v0 = vld [vmem:[#allocation6 + $0x59] sm:$0x1]  ;;  %v7829_v59 = vld [vmem:[#allocation6 + $0x5a] sm:$0x1] }
 0x86c   :  { %v7796_v53 = vmax.f32 %v7764_v14, %v7780_v0  ;;  %v7845_v32 = vld [vmem:[#allocation6 + $0x5b] sm:$0x1]  ;;  %v7893_v10 = vld [vmem:[#allocation6 + $0x5c] sm:$0x1]  ;;  %v7909_v13 = vld [vmem:[#allocation6 + $0x5d] sm:$0x1]  ;;  %v7678_v51 = vadd.f32 %v7658_v24, %v7531_v48 }
 0x86d   :  { %v7861_v62 = vmax.f32 %v7829_v59, %v7845_v32  ;;  %v7925_v29 = vmax.f32 %v7893_v10, %v7909_v13  ;;  %v7957_v56 = vld [vmem:[#allocation6 + $0x5e] sm:$0x1]  ;;  %v7973_v40 = vld [vmem:[#allocation6 + $0x5f] sm:$0x1]  ;;  %v7765_v12 = vld [vmem:[#allocation6 + $0x60] sm:$0x1] }
 0x86e   :  { %7813 = vst.msk [vmem:[#allocation7 + $0x2c] sm:$0x1] %vm7801_vm7, %v7796_v53  ;;  %v7989_v46 = vmax.f32 %v7957_v56, %v7973_v40  ;;  %v7781_v26 = vld [vmem:[#allocation6 + $0x61] sm:$0x1]  ;;  %v7830_v18 = vld [vmem:[#allocation6 + $0x62] sm:$0x1]  ;;  %v7698_v27 = vmul.f32 %v13172_v60, %v7678_v51 }
 0x86f   :  { %7877 = vst.msk [vmem:[#allocation7 + $0x2d] sm:$0x1] %vm7801_vm7, %v7861_v62  ;;  %v7797_v44 = vmax.f32 %v7765_v12, %v7781_v26  ;;  %v7846_v8 = vld [vmem:[#allocation6 + $0x63] sm:$0x1]  ;;  %v7894_v37 = vld [vmem:[#allocation6 + $0x64] sm:$0x1] }
 0x870   :  { %7941 = vst.msk [vmem:[#allocation7 + $0x2e] sm:$0x1] %vm7801_vm7, %v7925_v29  ;;  %v7862_v54 = vmax.f32 %v7830_v18, %v7846_v8  ;;  %v7910_v21 = vld [vmem:[#allocation6 + $0x65] sm:$0x1]  ;;  %v7958_v33 = vld [vmem:[#allocation6 + $0x66] sm:$0x1]  ;;  %v7718_v38 = vadd.f32 %v13177_v35, %v7698_v27 }
 0x871   :  { %8005 = vst.msk [vmem:[#allocation7 + $0x2f] sm:$0x1] %vm7801_vm7, %v7989_v46  ;;  %v7926_v20 = vmax.f32 %v7894_v37, %v7910_v21  ;;  %v7974_v2 = vld [vmem:[#allocation6 + $0x67] sm:$0x1]  ;;  %v8058_v47 = vld [vmem:[#allocation8 + $0x11] sm:$0x1]  ;;  %v7514_v41 = vpop.f32.mrf.mxu2 }
 0x872   :  { %7814 = vst.msk [vmem:[#allocation7 + $0x30] sm:$0x1] %vm7801_vm7, %v7797_v44  ;;  %v7990_v19 = vmax.f32 %v7958_v33, %v7974_v2  ;;  %v7734_v7 = vmax.f32 %v7718_v38, 0.0  ;;  %v8064_v50 = vrot.slane %v8058_v47, 7  ;;  %v8054_v23 = vld [vmem:[#allocation8 + $0x10] sm:$0x1]  ;;  %v7532_v16 = vadd.f32 %v7514_v41, %v7385_v39  ;;  %v7661_v15 = vpop.f32.mrf.mxu3 }
 0x873   :  { %7878 = vst.msk [vmem:[#allocation7 + $0x31] sm:$0x1] %vm7801_vm7, %v7862_v54  ;;  %v8091_v42 = vrot.slane %v8054_v23, 7  ;;  %v8116_v36 = vld [vmem:[#allocation8 + $0x12] sm:$0x1]  ;;  %v10225_v9 = vld [vmem:[%s13826_s7 + $0x88] sm:$0xff] }
 0x874   :  { %7942 = vst.msk [vmem:[#allocation7 + $0x32] sm:$0x1] %vm7801_vm7, %v7926_v20  ;;  %v8066_v28 = vsel %vm8065_vm9, %v8064_v50, %v8057_v45  ;;  %v8122_v31 = vrot.slane %v8116_v36, 7  ;;  %v7679_v5 = vadd.f32 %v7661_v15, %v7532_v16  ;;  %v8148_v58 = vld [vmem:[#allocation8 + $0x13] sm:$0x1]  ;;  %v10224_v24 = vld [vmem:[%s13826_s7 + $0x80] sm:$0xff] }
 0x875   :  { %8006 = vst.msk [vmem:[#allocation7 + $0x33] sm:$0x1] %vm7801_vm7, %v7990_v19  ;;  %10204 = vmatmul.msk.f32.vlgmr.msrb.gmra.mxu1 %vm7736_vm6, %v8066_v28  ;;  %v8092_v6 = vsel %vm8065_vm9, %v8091_v42, %v8053_v30  ;;  %v8154_v17 = vrot.slane %v8148_v58, 7  ;;  %v10221_v48 = vld [vmem:[%s13826_s7 + $0x70] sm:$0xff]  ;;  %v8147_v59 = vld [vmem:[#allocation8 + $0x3] sm:$0x1] }
 0x876   :  { %7750 = vst.msk [vmem:[#allocation6 + $0x68] sm:$0xff] %vm7736_vm6, %v7733_v4  ;;  %10205 = vmatmul.msk.f32.vlgmr.msrb.gmra.mxu2 %vm7736_vm6, %v8092_v6  ;;  %v8123_v52 = vsel %vm8065_vm9, %v8122_v31, %v8115_v57  ;;  %v7699_v11 = vmul.f32 %v13172_v60, %v7679_v5  ;;  %8268 = vmatpush.msrb.mxu1 %v10219_v43  ;;  %v10227_v32 = vld [vmem:[%s13826_s7 + $0x90] sm:$0xff]  ;;  %v8179_v57 = vld [vmem:[#allocation8 + $0x4] sm:$0x1]  ;;  %v8211_v31 = vld [vmem:[#allocation8 + $0x5] sm:$0x1] }
 0x877   :  { %7751 = vst.msk [vmem:[#allocation6 + $0x70] sm:$0xff] %vm7736_vm6, %v7734_v7  ;;  %10208 = vmatmul.msk.f32.vlgmr.msra.gmra.mxu3 %vm7736_vm6, %v8123_v52  ;;  %8300 = vmatpush.msrb.mxu2 %v10222_v1  ;;  %v8155_v53 = vsel %vm8065_vm9, %v8154_v17, %v8147_v59  ;;  %v10231_v58 = vld [vmem:[%s13826_s7 + $0xa8] sm:$0xff]  ;;  %v8243_v6 = vld [vmem:[#allocation8 + $0x6] sm:$0x1]  ;;  %v10240_v59 = vld [vmem:[%s13826_s7 + $0xd8] sm:$0xff] }
 0x878   :  { %v7719_v60 = vadd.f32 %v13177_v35, %v7699_v11  ;;  %8269 = vmatpush.msrb.mxu1 %v10218_v3  ;;  %v8025_v4 = vld [vmem:[#allocation7 + $0x2c] sm:$0xf]  ;;  %8332 = vmatpush.msra.mxu3 %v10225_v9  ;;  %v10228_v35 = vld [vmem:[%s13826_s7 + $0x98] sm:$0xff] }
 0x879   :  { %v8027_v14 = vmax.f32 %v8022_v63, %v8025_v4  ;;  %8301 = vmatpush.msrb.mxu2 %v10221_v48  ;;  %v10237_v1 = vld [vmem:[%s13826_s7 + $0xc8] sm:$0xff]  ;;  %v10233_v48 = vld [vmem:[%s13826_s7 + $0xb0] sm:$0xff] }
 0x87a   :  { %v7735_v0 = vmax.f32 %v7719_v60, 0.0  ;;  %8333 = vmatpush.msra.mxu3 %v10224_v24  ;;  %v10236_v24 = vld [vmem:[%s13826_s7 + $0xc0] sm:$0xff] }
 0x87b   :  { %8030 = vst.msk [vmem:[#allocation8 + $0x14] sm:$0xf] %vm8017_vm8, %v8027_v14 }
 0x87c   :  { %7752 = vst.msk [vmem:[#allocation6 + $0x78] sm:$0xff] %vm7736_vm6, %v7735_v0  ;;  %v8033_v3 = vld [vmem:[#allocation7 + $0x30] sm:$0xf]  ;;  %v8275_v0 = vld [vmem:[#allocation8 + $0x7] sm:$0x1] }
 0x87d   :  { %v7766_v10 = vld [vmem:[#allocation6 + $0x68] sm:$0x1]  ;;  %v7782_v13 = vld [vmem:[#allocation6 + $0x69] sm:$0x1]  ;;  %v7831_v51 = vld [vmem:[#allocation6 + $0x6a] sm:$0x1]  ;;  %10211 = vmatmul.msk.f32.vlgmr.msra.gmra.mxu1 %vm7736_vm6, %v8155_v53 }
 0x87e   :  { %v7798_v62 = vmax.f32 %v7766_v10, %v7782_v13  ;;  %v7847_v29 = vld [vmem:[#allocation6 + $0x6b] sm:$0x1]  ;;  %v7895_v56 = vld [vmem:[#allocation6 + $0x6c] sm:$0x1]  ;;  %v7911_v40 = vld [vmem:[#allocation6 + $0x6d] sm:$0x1]  ;;  %8364 = vmatpush.msra.mxu1 %v10228_v35 }
 0x87f   :  { %v7863_v12 = vmax.f32 %v7831_v51, %v7847_v29  ;;  %v7927_v25 = vmax.f32 %v7895_v56, %v7911_v40  ;;  %v7959_v49 = vld [vmem:[#allocation6 + $0x6e] sm:$0x1]  ;;  %v7975_v46 = vld [vmem:[#allocation6 + $0x6f] sm:$0x1]  ;;  %v7767_v26 = vld [vmem:[#allocation6 + $0x70] sm:$0x1] }
 0x880   :  { %7815 = vst.msk [vmem:[#allocation7 + $0x34] sm:$0x1] %vm7801_vm7, %v7798_v62  ;;  %v7991_v18 = vmax.f32 %v7959_v49, %v7975_v46  ;;  %v7783_v27 = vld [vmem:[#allocation6 + $0x71] sm:$0x1]  ;;  %v7832_v44 = vld [vmem:[#allocation6 + $0x72] sm:$0x1]  ;;  %8365 = vmatpush.msra.mxu1 %v10227_v32 }
 0x881   :  { %7879 = vst.msk [vmem:[#allocation7 + $0x35] sm:$0x1] %vm7801_vm7, %v7863_v12  ;;  %v7799_v8 = vmax.f32 %v7767_v26, %v7783_v27  ;;  %v7848_v37 = vld [vmem:[#allocation6 + $0x73] sm:$0x1]  ;;  %v7896_v54 = vld [vmem:[#allocation6 + $0x74] sm:$0x1] }
 0x882   :  { %7943 = vst.msk [vmem:[#allocation7 + $0x36] sm:$0x1] %vm7801_vm7, %v7927_v25  ;;  %v7864_v21 = vmax.f32 %v7832_v44, %v7848_v37  ;;  %v7912_v33 = vld [vmem:[#allocation6 + $0x75] sm:$0x1]  ;;  %v7960_v38 = vld [vmem:[#allocation6 + $0x76] sm:$0x1] }
 0x883   :  { %8007 = vst.msk [vmem:[#allocation7 + $0x37] sm:$0x1] %vm7801_vm7, %v7991_v18  ;;  %v7928_v39 = vmax.f32 %v7896_v54, %v7912_v33  ;;  %v7976_v20 = vld [vmem:[#allocation6 + $0x77] sm:$0x1]  ;;  %v7768_v2 = vld [vmem:[#allocation6 + $0x78] sm:$0x1] }
 0x884   :  { %7816 = vst.msk [vmem:[#allocation7 + $0x38] sm:$0x1] %vm7801_vm7, %v7799_v8  ;;  %v7992_v45 = vmax.f32 %v7960_v38, %v7976_v20  ;;  %v7784_v47 = vld [vmem:[#allocation6 + $0x79] sm:$0x1]  ;;  %v7833_v41 = vld [vmem:[#allocation6 + $0x7a] sm:$0x1] }
 0x885   :  { %7880 = vst.msk [vmem:[#allocation7 + $0x39] sm:$0x1] %vm7801_vm7, %v7864_v21  ;;  %v7800_v19 = vmax.f32 %v7768_v2, %v7784_v47  ;;  %v7849_v7 = vld [vmem:[#allocation6 + $0x7b] sm:$0x1]  ;;  %v7897_v50 = vld [vmem:[#allocation6 + $0x7c] sm:$0x1] }
 0x886   :  { %7944 = vst.msk [vmem:[#allocation7 + $0x3a] sm:$0x1] %vm7801_vm7, %v7928_v39  ;;  %v7865_v30 = vmax.f32 %v7833_v41, %v7849_v7  ;;  %v7913_v23 = vld [vmem:[#allocation6 + $0x7d] sm:$0x1]  ;;  %v7961_v16 = vld [vmem:[#allocation6 + $0x7e] sm:$0x1] }
 0x887   :  { %8008 = vst.msk [vmem:[#allocation7 + $0x3b] sm:$0x1] %vm7801_vm7, %v7992_v45  ;;  %v7929_v15 = vmax.f32 %v7897_v50, %v7913_v23  ;;  %v7977_v42 = vld [vmem:[#allocation6 + $0x7f] sm:$0x1]  ;;  %v8180_v36 = vld [vmem:[#allocation8 + $0x14] sm:$0x1] }
 0x888   :  { %7817 = vst.msk [vmem:[#allocation7 + $0x3c] sm:$0x1] %vm7801_vm7, %v7800_v19  ;;  %v7993_v55 = vmax.f32 %v7961_v16, %v7977_v42  ;;  %v8186_v28 = vrot.slane %v8180_v36, 7  ;;  %v8212_v5 = vld [vmem:[#allocation8 + $0x15] sm:$0x1]  ;;  %v10243_v26 = vld [vmem:[%s13826_s7 + $0xe8] sm:$0xff] }
 0x889   :  { %7881 = vst.msk [vmem:[#allocation7 + $0x3d] sm:$0x1] %vm7801_vm7, %v7865_v30  ;;  %v8218_v61 = vrot.slane %v8212_v5, 7  ;;  %v8244_v43 = vld [vmem:[#allocation8 + $0x16] sm:$0x1]  ;;  %v10246_v18 = vld [vmem:[%s13826_s7 + $0xf8] sm:$0xff] }
 0x88a   :  { %7945 = vst.msk [vmem:[#allocation7 + $0x3e] sm:$0x1] %vm7801_vm7, %v7929_v15  ;;  %v8187_v52 = vsel %vm8065_vm9, %v8186_v28, %v8179_v57  ;;  %v8250_v11 = vrot.slane %v8244_v43, 7  ;;  %v8276_v9 = vld [vmem:[#allocation8 + $0x17] sm:$0x1]  ;;  %v10242_v54 = vld [vmem:[%s13826_s7 + $0xe0] sm:$0xff] }
 0x88b   :  { %8009 = vst.msk [vmem:[#allocation7 + $0x3f] sm:$0x1] %vm7801_vm7, %v7993_v55  ;;  %10214 = vmatmul.msk.f32.vlgmr.msra.gmra.mxu2 %vm7736_vm6, %v8187_v52  ;;  %v8219_v63 = vsel %vm8065_vm9, %v8218_v61, %v8211_v31  ;;  %v8036_v60 = vld [vmem:[#allocation7 + $0x34] sm:$0xf]  ;;  %v8282_v14 = vrot.slane %v8276_v9, 7  ;;  %v8571_v43 = vld [vmem:[%s13828_s9 + $0x18] sm:$0xff] }
 0x88c   :  { %10217 = vmatmul.msk.f32.vlgmr.msrb.gmra.mxu3 %vm7736_vm6, %v8219_v63  ;;  %v8251_v17 = vsel %vm8065_vm9, %v8250_v11, %v8243_v6  ;;  %8396 = vmatpush.msra.mxu2 %v10231_v58  ;;  %v8038_v4 = vmax.f32 %v8033_v3, %v8036_v60  ;;  %v10239_v10 = vld [vmem:[%s13826_s7 + $0xd0] sm:$0xff]  ;;  %v8307_v51 = vld [vmem:[#allocation8 + $0x8] sm:$0x1]  ;;  %v8339_v12 = vld [vmem:[#allocation8 + $0x9] sm:$0x1] }
 0x88d   :  { %10220 = vmatmul.msk.f32.vlgmr.msrb.gmra.mxu1 %vm7736_vm6, %v8251_v17  ;;  %8428 = vmatpush.msrb.mxu3 %v10234_v34  ;;  %v8283_v35 = vsel %vm8065_vm9, %v8282_v14, %v8275_v0  ;;  %v8371_v46 = vld [vmem:[#allocation8 + $0xa] sm:$0x1]  ;;  %v10245_v21 = vld [vmem:[%s13826_s7 + $0xf0] sm:$0xff]  ;;  %v8403_v20 = vld [vmem:[#allocation8 + $0xb] sm:$0x1] }
 0x88e   :  { %8397 = vmatpush.msra.mxu2 %v10230_v22  ;;  %8041 = vst.msk [vmem:[#allocation8 + $0x18] sm:$0xf] %vm8017_vm8, %v8038_v4  ;;  %8460 = vmatpush.msrb.mxu1 %v10237_v1  ;;  %v8044_v53 = vld [vmem:[#allocation7 + $0x38] sm:$0xf]  ;;  %v8435_v19 = vld [vmem:[#allocation8 + $0xc] sm:$0x1] }
 0x88f   :  { %8429 = vmatpush.msrb.mxu3 %v10233_v48  ;;  %v8467_v7 = vld [vmem:[#allocation8 + $0xd] sm:$0x1]  ;;  %v8499_v15 = vld [vmem:[#allocation8 + $0xe] sm:$0x1]  ;;  %v8531_v36 = vld [vmem:[#allocation8 + $0xf] sm:$0x1] }
 0x890   :  { %8461 = vmatpush.msrb.mxu1 %v10236_v24  ;;  %v8570_v11 = vld [vmem:[%s13828_s9 + $0x10] sm:$0xff]  ;;  %v13485_v3 = vld [vmem:[%s13829_s10 + $0x18] sm:$0xff]  ;;  %v8569_v1 = vld [vmem:[%s13828_s9 + $0x8] sm:$0xff] }
 0x891   :  { %v13494_v63 = vld [vmem:[%s13829_s10 + $0x10] sm:$0xff]  ;;  %v8568_v9 = vld [vmem:[%s13828_s9] sm:$0xff]  ;;  %v13502_v60 = vld [vmem:[%s13829_s10 + $0x8] sm:$0xff]  ;;  %s10336_s9 = smov 32  }
 0x892   :  { %v8047_v32 = vld [vmem:[#allocation7 + $0x3c] sm:$0xf]  ;;  %v13513_v24 = vld [vmem:[%s13831_s12 + $0x30] sm:$0xff]  ;;  %v13518_v0 = vld [vmem:[%s13829_s10] sm:$0xff]  ;;  %s9443_s10 = sshll.u32 %s10337_s27, 4  ;;  %s9444_s10 = int_to_ptr.vmem [resolvable:$true] %s9443_s10 }
 0x893   :  { %10223 = vmatmul.msk.f32.vlgmr.msrb.gmra.mxu2 %vm7736_vm6, %v8283_v35  ;;  %v8049_v13 = vmax.f32 %v8044_v53, %v8047_v32  ;;  %v13507_v17 = vld [vmem:[%s13831_s12 + $0x38] sm:$0xff]  ;;  %v13526_v35 = vld [vmem:[%s13831_s12 + $0x28] sm:$0xff]  ;;  %v13534_v53 = vld [vmem:[%s13831_s12 + $0x20] sm:$0xff] }
 0x894   :  { %8492 = vmatpush.msrb.mxu2 %v10240_v59  ;;  %9390 = vmatpush.msrb.mxu0 %v13507_v17 }
 0x895   :  { %v8308_v62 = vld [vmem:[#allocation8 + $0x18] sm:$0x1]  ;;  %v8340_v29 = vld [vmem:[#allocation8 + $0x19] sm:$0x1]  ;;  %v8372_v56 = vld [vmem:[#allocation8 + $0x1a] sm:$0x1] }
 0x896   :  { %v8314_v40 = vrot.slane %v8308_v62, 7  ;;  %v8346_v25 = vrot.slane %v8340_v29, 7  ;;  %v8378_v49 = vrot.slane %v8372_v56, 7  ;;  %8493 = vmatpush.msrb.mxu2 %v10239_v10  ;;  %8052 = vst.msk [vmem:[#allocation8 + $0x1c] sm:$0xf] %vm8017_vm8, %v8049_v13  ;;  %9391 = vmatpush.msrb.mxu0 %v13513_v24  ;;  %v13999_v10 = vmov 0.0  }
 0x897   :  { %v8404_v37 = vld [vmem:[#allocation8 + $0x1b] sm:$0x1] }
 0x898   :  { %v8315_v27 = vsel %vm8065_vm9, %v8314_v40, %v8307_v51  ;;  %v8347_v44 = vsel %vm8065_vm9, %v8346_v25, %v8339_v12  ;;  %v8379_v8 = vsel %vm8065_vm9, %v8378_v49, %v8371_v46  ;;  %v8410_v33 = vrot.slane %v8404_v37, 7  ;;  %9392 = vmatpush.msrb.mxu0 %v13526_v35  ;;  %v10282_v37 = vld [vmem:[%s13827_s8] ss:$0 sm:$0xff] }
 0x899   :  { %10226 = vmatmul.msk.f32.vlgmr.msra.gmra.mxu3 %vm7736_vm6, %v8315_v27  ;;  %10229 = vmatmul.msk.f32.vlgmr.msra.gmra.mxu1 %vm7736_vm6, %v8347_v44 }
 0x89a   :  { %8524 = vmatpush.msra.mxu3 %v10243_v26  ;;  %8556 = vmatpush.msra.mxu1 %v10246_v18  ;;  %v8411_v41 = vsel %vm8065_vm9, %v8410_v33, %v8403_v20  ;;  %v13564_v20 = vld [vmem:[%s13831_s12 + $0x8] sm:$0xff] }
 0x89b   :  { %10232 = vmatmul.msk.f32.vlgmr.msra.gmra.mxu2 %vm7736_vm6, %v8379_v8  ;;  %9393 = vmatpush.msrb.mxu0 %v13534_v53 }
 0x89c   :  { %8525 = vmatpush.msra.mxu3 %v10242_v54  ;;  %8557 = vmatpush.msra.mxu1 %v10245_v21 }
 0x89d   :  { %v8436_v38 = vld [vmem:[#allocation8 + $0x1c] sm:$0x1]  ;;  %v8468_v39 = vld [vmem:[#allocation8 + $0x1d] sm:$0x1]  ;;  %v8500_v47 = vld [vmem:[#allocation8 + $0x1e] sm:$0x1]  ;;  %8592 = vmatpush.msra.mxu2 %v8571_v43 }
 0x89e   :  { %v8442_v2 = vrot.slane %v8436_v38, 7  ;;  %v8474_v45 = vrot.slane %v8468_v39, 7  ;;  %v8506_v23 = vrot.slane %v8500_v47, 7  ;;  %v8532_v16 = vld [vmem:[#allocation8 + $0x1f] sm:$0x1]  ;;  %v13559_v39 = vld [vmem:[%s13831_s12 + $0x10] sm:$0xff] }
 0x89f   :  { %v8538_v42 = vrot.slane %v8532_v16, 7  ;;  %8593 = vmatpush.msra.mxu2 %v8570_v11  ;;  %v13552_v38 = vld [vmem:[%s13831_s12 + $0x18] sm:$0xff]  ;;  %v10283_v47 = vld [vmem:[%s13830_s11] ss:$0 sm:$0xff]  ;;  %v13601_v16 = vld [vmem:[%s13833_s14 + $0x10] sm:$0xff] }
 0x8a0   :  { %v8443_v50 = vsel %vm8065_vm9, %v8442_v2, %v8435_v19  ;;  %v8475_v30 = vsel %vm8065_vm9, %v8474_v45, %v8467_v7  ;;  %v8507_v57 = vsel %vm8065_vm9, %v8506_v23, %v8499_v15  ;;  %9394 = vmatpush.msrb.mxu0 %v13552_v38  ;;  %v13570_v2 = vld [vmem:[%s13833_s14 + $0x18] sm:$0xff]  ;;  %v13576_v45 = vld [vmem:[%s13831_s12] sm:$0xff]  ;;  %v13606_v15 = vld [vmem:[%s13833_s14 + $0x8] sm:$0xff] }
 0x8a1   :  { %10235 = vmatmul.msk.f32.vlgmr.msrb.gmra.mxu3 %vm7736_vm6, %v8411_v41  ;;  %10238 = vmatmul.msk.f32.vlgmr.msrb.gmra.mxu1 %vm7736_vm6, %v8443_v50  ;;  %v8539_v55 = vsel %vm8065_vm9, %v8538_v42, %v8531_v36  ;;  %v13613_v42 = vld [vmem:[%s13833_s14] sm:$0xff] }
 0x8a2   :  { %8619 = vmatpush.msrb.mxu3 %v13485_v3  ;;  %8594 = vmatpush.msra.mxu2 %v8569_v1  ;;  %v10285_v43 = vld [vmem:[%s13834_s15] ss:$0 sm:$0xff] }
 0x8a3   :  { %10241 = vmatmul.msk.f32.vlgmr.msrb.gmra.mxu2 %vm7736_vm6, %v8475_v30  ;;  %8654 = vmatpush.msrb.mxu1 %v13507_v17 }
 0x8a4   :  { %8620 = vmatpush.msrb.mxu3 %v13494_v63  ;;  %8595 = vmatpush.msra.mxu2 %v8568_v9 }
 0x8a5   :  { %8655 = vmatpush.msrb.mxu1 %v13513_v24  ;;  %9395 = vmatpush.msrb.mxu0 %v13559_v39 }
 0x8a6   :  { %8621 = vmatpush.msrb.mxu3 %v13502_v60  ;;  %8690 = vmatpush.msrb.mxu2 %v13570_v2 }
 0x8a7   :  { %8656 = vmatpush.msrb.mxu1 %v13526_v35  ;;  %9396 = vmatpush.msrb.mxu0 %v13564_v20 }
 0x8a8   :  { %8622 = vmatpush.msrb.mxu3 %v13518_v0  ;;  %8691 = vmatpush.msrb.mxu2 %v13601_v16 }
 0x8a9   :  { %10244 = vmatmul.msk.f32.vlgmr.msra.gmra.mxu3 %vm7736_vm6, %v8507_v57  ;;  %10247 = vmatmul.msk.f32.vlgmr.msra.gmra.mxu1 %vm7736_vm6, %v8539_v55  ;;  %v10284_v57 = vld [vmem:[%s13832_s13] ss:$0 sm:$0xff] }
 0x8aa   :  { %8723 = vmatpush.msra.mxu3 %v13485_v3  ;;  %8657 = vmatpush.msrb.mxu1 %v13534_v53 }
 0x8ab   :  { %9397 = vmatpush.msrb.mxu0 %v13576_v45  ;;  %8692 = vmatpush.msrb.mxu2 %v13606_v15 }
 0x8ac   :  { %8724 = vmatpush.msra.mxu3 %v13494_v63  ;;  %8658 = vmatpush.msrb.mxu1 %v13552_v38 }
 0x8ad   :  { %8693 = vmatpush.msrb.mxu2 %v13613_v42 }
 0x8ae   :  { %8725 = vmatpush.msra.mxu3 %v13502_v60  ;;  %8659 = vmatpush.msrb.mxu1 %v13559_v39 }
 0x8b0   :  { %8726 = vmatpush.msra.mxu3 %v13518_v0  ;;  %8660 = vmatpush.msrb.mxu1 %v13564_v20 }
 0x8b1   :  { %8623 = vmatmul.f32.vlgmr.msrb.gmra.mxu3 %v13999_v10 }
 0x8b2   :  { %8796 = vmatpush.msrb.mxu3 %v13570_v2  ;;  %8661 = vmatpush.msrb.mxu1 %v13576_v45 }
 0x8b4   :  { %8828 = vmatpush.msra.mxu1 %v13485_v3  ;;  %8797 = vmatpush.msrb.mxu3 %v13601_v16 }
 0x8b6   :  { %8829 = vmatpush.msra.mxu1 %v13494_v63  ;;  %8798 = vmatpush.msrb.mxu3 %v13606_v15 }
 0x8b8   :  { %8830 = vmatpush.msra.mxu1 %v13502_v60  ;;  %8799 = vmatpush.msrb.mxu3 %v13613_v42 }
 0x8ba   :  { %8831 = vmatpush.msra.mxu1 %v13518_v0 }
 0x8f2   :  { %v8086_v28 = vpop.f32.mrf.mxu1 }
 0x8f9   :  { %v8112_v31 = vpop.f32.mrf.mxu2 }
 0x8fa   :  { %v8113_v5 = vadd.f32 %v8112_v31, %v8086_v28  ;;  %v8143_v58 = vpop.f32.mrf.mxu3  ;;  %v8175_v61 = vpop.f32.mrf.mxu1 }
 0x8fc   :  { %v8146_v6 = vadd.f32 %v8143_v58, %v8113_v5 }
 0x8fe   :  { %v8178_v34 = vadd.f32 %v8175_v61, %v8146_v6 }
 0x90a   :  { %v8271_v4 = vpop.f32.mrf.mxu1 }
 0x90e   :  { %v8207_v22 = vpop.f32.mrf.mxu2 }
 0x90f   :  { %v8210_v52 = vadd.f32 %v8207_v22, %v8178_v34  ;;  %v8239_v48 = vpop.f32.mrf.mxu3 }
 0x911   :  { %v8242_v14 = vadd.f32 %v8239_v48, %v8210_v52 }
 0x913   :  { %v8274_v32 = vadd.f32 %v8271_v4, %v8242_v14  ;;  %v10286_v4 = vld [vmem:[%s13832_s13] ss:$0 sm:$0xff] }
 0x916   :  { %v8303_v59 = vpop.f32.mrf.mxu2  ;;  %v8367_v51 = vpop.f32.mrf.mxu1 }
 0x917   :  { %v8306_v13 = vadd.f32 %v8303_v59, %v8274_v32 }
 0x91c   :  { %v8335_v62 = vpop.f32.mrf.mxu3 }
 0x91d   :  { %v8338_v29 = vadd.f32 %v8335_v62, %v8306_v13 }
 0x91e   :  { %v8399_v56 = vpop.f32.mrf.mxu2  ;;  %v8463_v49 = vpop.f32.mrf.mxu1 }
 0x91f   :  { %v8370_v40 = vadd.f32 %v8367_v51, %v8338_v29  ;;  %v10287_v29 = vld [vmem:[%s13834_s15] ss:$0 sm:$0xff] }
 0x921   :  { %v8402_v12 = vadd.f32 %v8399_v56, %v8370_v40 }
 0x924   :  { %v8431_v25 = vpop.f32.mrf.mxu3 }
 0x925   :  { %v8434_v46 = vadd.f32 %v8431_v25, %v8402_v12  ;;  %v10288_v25 = vld [vmem:[%s13832_s13] ss:$0 sm:$0xff] }
 0x926   :  { %v8495_v26 = vpop.f32.mrf.mxu2  ;;  %v8559_v54 = vpop.f32.mrf.mxu1 }
 0x927   :  { %v8466_v18 = vadd.f32 %v8463_v49, %v8434_v46 }
 0x929   :  { %v8498_v27 = vadd.f32 %v8495_v26, %v8466_v18 }
 0x92c   :  { %v8527_v44 = vpop.f32.mrf.mxu3 }
 0x92d   :  { %v8530_v8 = vadd.f32 %v8527_v44, %v8498_v27 }
 0x92f   :  { %v8562_v21 = vadd.f32 %v8559_v54, %v8530_v8  ;;  %v10289_v54 = vld [vmem:[%s13834_s15] ss:$0 sm:$0xff] }
 0x931   :  { %v8567_v33 = vadd.f32 %v10282_v37, %v8562_v21 }
 0x933   :  { %10248 = vmatmul.msk.f32.vlgmr.msra.gmra.mxu2 %vm8576_vm10, %v8567_v33 }
 0x934   :  { %v8624_v19 = vpop.f32.mrf.mxu3  ;;  %8760 = vmatpush.msra.mxu2 %v13507_v17 }
 0x936   :  { %8761 = vmatpush.msra.mxu2 %v13513_v24 }
 0x938   :  { %8762 = vmatpush.msra.mxu2 %v13526_v35 }
 0x93a   :  { %8763 = vmatpush.msra.mxu2 %v13534_v53 }
 0x93c   :  { %8764 = vmatpush.msra.mxu2 %v13552_v38 }
 0x93e   :  { %8765 = vmatpush.msra.mxu2 %v13559_v39 }
 0x940   :  { %8766 = vmatpush.msra.mxu2 %v13564_v20 }
 0x942   :  { %8767 = vmatpush.msra.mxu2 %v13576_v45 }
 0x9b6   :  { %v8597_v41 = vpop.f32.mrf.mxu2 }
 0x9b7   :  { %v13591_v7 = vadd.f32 %v10283_v47, %v8597_v41 }
 0x9b9   :  { %v8627_v50 = vadd.f32 %v8624_v19, %v13591_v7 }
 0x9bb   :  { %v8628_v30 = vmax.f32 %v8627_v50, 0.0 }
 0x9bd   :  { %v8629_v23 = vsel %vm8576_vm10, %v8628_v30, 0.0  ;;  %10251 = vmatmul.msk.f32.vlgmr.msra.gmra.mxu3 %vm8576_vm10, %v8628_v30 }
 0x9be   :  { %10249 = vmatmul.msk.f32.vlgmr.msrb.gmra.mxu1 %vm8642_vm11, %v8629_v23  ;;  %8865 = vmatpush.msra.mxu3 %v13507_v17 }
 0x9bf   :  { %8901 = vmatpush.msrb.mxu1 %v13570_v2 }
 0x9c0   :  { %8866 = vmatpush.msra.mxu3 %v13513_v24 }
 0x9c1   :  { %8902 = vmatpush.msrb.mxu1 %v13601_v16 }
 0x9c2   :  { %8867 = vmatpush.msra.mxu3 %v13526_v35 }
 0x9c3   :  { %8903 = vmatpush.msrb.mxu1 %v13606_v15 }
 0x9c4   :  { %8868 = vmatpush.msra.mxu3 %v13534_v53 }
 0x9c5   :  { %8904 = vmatpush.msrb.mxu1 %v13613_v42 }
 0x9c6   :  { %8869 = vmatpush.msra.mxu3 %v13552_v38 }
 0x9c8   :  { %8870 = vmatpush.msra.mxu3 %v13559_v39 }
 0x9ca   :  { %8871 = vmatpush.msra.mxu3 %v13564_v20 }
 0x9cc   :  { %8872 = vmatpush.msra.mxu3 %v13576_v45 }
 0xa3b   :  { %v8663_v36 = vpop.f32.mrf.mxu1 }
 0xa3c   :  { %v8664_v55 = vadd.f32 %v10284_v57, %v8663_v36 }
 0xa3e   :  { %v8666_v28 = vmax.f32 %v8664_v55, 0.0 }
 0xa40   :  { %v8728_v31 = vpop.f32.mrf.mxu3  ;;  %8733 = vrot.lane.b32.xlu0 %v8666_v28, %s10336_s9  ;;  %10250 = vmatmul.msk.f32.vlgmr.msrb.gmra.mxu2 %vm8576_vm10, %v8666_v28 }
 0xa41   :  { %v8731_v5 = vadd.f32 %v8728_v31, %v13591_v7  ;;  %8933 = vmatpush.msrb.mxu2 %v13485_v3 }
 0xa43   :  { %v8732_v58 = vmax.f32 %v8731_v5, 0.0  ;;  %8934 = vmatpush.msrb.mxu2 %v13494_v63 }
 0xa45   :  { %10254 = vmatmul.msk.f32.vlgmr.msra.gmra.mxu1 %vm8576_vm10, %v8732_v58  ;;  %8935 = vmatpush.msrb.mxu2 %v13502_v60 }
 0xa46   :  { %8970 = vmatpush.msra.mxu1 %v13507_v17 }
 0xa47   :  { %8936 = vmatpush.msrb.mxu2 %v13518_v0 }
 0xa48   :  { %8971 = vmatpush.msra.mxu1 %v13513_v24 }
 0xa4a   :  { %8972 = vmatpush.msra.mxu1 %v13526_v35 }
 0xa4c   :  { %8973 = vmatpush.msra.mxu1 %v13534_v53 }
 0xa4e   :  { %8974 = vmatpush.msra.mxu1 %v13552_v38 }
 0xa50   :  { %8975 = vmatpush.msra.mxu1 %v13559_v39 }
 0xa52   :  { %8976 = vmatpush.msra.mxu1 %v13564_v20 }
 0xa54   :  { %8977 = vmatpush.msra.mxu1 %v13576_v45 }
 0xab2   :  { %v8734_v61 = vpop.permute.xlu0 %8733 }
 0xab3   :  { %v8736_v6 = vsel %vm8576_vm10, %v8732_v58, %v8734_v61 }
 0xab4   :  { %10252 = vmatmul.msk.f32.vlgmr.msra.gmra.mxu2 %vm8642_vm11, %v8736_v6 }
 0xab5   :  { %9006 = vmatpush.msra.mxu2 %v13570_v2 }
 0xab7   :  { %9007 = vmatpush.msra.mxu2 %v13601_v16 }
 0xab9   :  { %9008 = vmatpush.msra.mxu2 %v13606_v15 }
 0xabb   :  { %9009 = vmatpush.msra.mxu2 %v13613_v42 }
 0xac2   :  { %v8833_v22 = vpop.f32.mrf.mxu1 }
 0xac3   :  { %v8836_v34 = vadd.f32 %v8833_v22, %v13591_v7  ;;  %v8695_v52 = vpop.f32.mrf.mxu2 }
 0xac4   :  { %v8696_v11 = vadd.f32 %v10285_v43, %v8695_v52 }
 0xac5   :  { %v8837_v1 = vmax.f32 %v8836_v34, 0.0  ;;  %v10295_v34 = vld [vmem:[%s13834_s15] ss:$0 sm:$0xff] }
 0xac6   :  { %v8699_v9 = vrot.slane %v8696_v11, 1  ;;  %8702 = vst.msk [vmem:[#allocation9] sm:$0x1] %vm8701_vm12, %v8696_v11 }
 0xac7   :  { %10257 = vmatmul.msk.f32.vlgmr.msrb.gmra.mxu2 %vm8576_vm10, %v8837_v1 }
 0xac8   :  { %8703 = vst.msk [vmem:[#allocation9 + $0x8] sm:$0x1] %vm8701_vm12, %v8699_v9  ;;  %9075 = vmatpush.msrb.mxu2 %v13507_v17  ;;  %v10296_v9 = vld [vmem:[%s13832_s13] ss:$0 sm:$0xff] }
 0xaca   :  { %9076 = vmatpush.msrb.mxu2 %v13513_v24 }
 0xacc   :  { %9077 = vmatpush.msrb.mxu2 %v13526_v35 }
 0xace   :  { %9078 = vmatpush.msrb.mxu2 %v13534_v53 }
 0xad0   :  { %9079 = vmatpush.msrb.mxu2 %v13552_v38 }
 0xad2   :  { %9080 = vmatpush.msrb.mxu2 %v13559_v39 }
 0xad4   :  { %9081 = vmatpush.msrb.mxu2 %v13564_v20 }
 0xad6   :  { %9082 = vmatpush.msrb.mxu2 %v13576_v45 }
 0xb37   :  { %v8769_v48 = vpop.f32.mrf.mxu2 }
 0xb38   :  { %v8770_v14 = vadd.f32 %v10286_v4, %v8769_v48 }
 0xb3a   :  { %v8772_v59 = vmax.f32 %v8770_v14, 0.0 }
 0xb3c   :  { %8838 = vrot.lane.b32.xlu0 %v8772_v59, %s10336_s9  ;;  %10253 = vmatmul.msk.f32.vlgmr.msrb.gmra.mxu3 %vm8576_vm10, %v8772_v59 }
 0xb3d   :  { %9038 = vmatpush.msrb.mxu3 %v13485_v3 }
 0xb3f   :  { %9039 = vmatpush.msrb.mxu3 %v13494_v63 }
 0xb41   :  { %9040 = vmatpush.msrb.mxu3 %v13502_v60 }
 0xb43   :  { %9041 = vmatpush.msrb.mxu3 %v13518_v0 }
 0xb4a   :  { %v8938_v10 = vpop.f32.mrf.mxu2 }
 0xb4b   :  { %v8941_v51 = vadd.f32 %v8938_v10, %v13591_v7 }
 0xb4d   :  { %v8942_v62 = vmax.f32 %v8941_v51, 0.0 }
 0xbae   :  { %v8839_v32 = vpop.permute.xlu0 %8838 }
 0xbaf   :  { %v8841_v13 = vsel %vm8576_vm10, %v8837_v1, %v8839_v32 }
 0xbb0   :  { %10255 = vmatmul.msk.f32.vlgmr.msra.gmra.mxu3 %vm8642_vm11, %v8841_v13 }
 0xbb1   :  { %9111 = vmatpush.msra.mxu3 %v13570_v2 }
 0xbb3   :  { %9112 = vmatpush.msra.mxu3 %v13601_v16 }
 0xbb5   :  { %9113 = vmatpush.msra.mxu3 %v13606_v15 }
 0xbb7   :  { %9114 = vmatpush.msra.mxu3 %v13613_v42 }
 0xbb8   :  { %10260 = vmatmul.msk.f32.vlgmr.msrb.gmra.mxu3 %vm8576_vm10, %v8942_v62 }
 0xbb9   :  { %9180 = vmatpush.msrb.mxu3 %v13507_v17 }
 0xbbb   :  { %9181 = vmatpush.msrb.mxu3 %v13513_v24 }
 0xbbd   :  { %9182 = vmatpush.msrb.mxu3 %v13526_v35 }
 0xbbf   :  { %v8801_v56 = vpop.f32.mrf.mxu3  ;;  %9183 = vmatpush.msrb.mxu3 %v13534_v53 }
 0xbc0   :  { %v8802_v40 = vadd.f32 %v10287_v29, %v8801_v56 }
 0xbc1   :  { %9184 = vmatpush.msrb.mxu3 %v13552_v38 }
 0xbc2   :  { %v8805_v12 = vrot.slane %v8802_v40, 1  ;;  %8807 = vst.msk [vmem:[#allocation9 + $0x1] sm:$0x1] %vm8701_vm12, %v8802_v40 }
 0xbc3   :  { %9185 = vmatpush.msrb.mxu3 %v13559_v39 }
 0xbc4   :  { %8808 = vst.msk [vmem:[#allocation9 + $0x9] sm:$0x1] %vm8701_vm12, %v8805_v12 }
 0xbc5   :  { %9186 = vmatpush.msrb.mxu3 %v13564_v20 }
 0xbc7   :  { %9187 = vmatpush.msrb.mxu3 %v13576_v45 }
 0xc33   :  { %v8874_v49 = vpop.f32.mrf.mxu3 }
 0xc34   :  { %v8875_v46 = vadd.f32 %v10288_v25, %v8874_v49 }
 0xc36   :  { %v8877_v26 = vmax.f32 %v8875_v46, 0.0  ;;  %v10299_v46 = vld [vmem:[%s13834_s15] ss:$0 sm:$0xff] }
 0xc38   :  { %8943 = vrot.lane.b32.xlu1 %v8877_v26, %s10336_s9  ;;  %10256 = vmatmul.msk.f32.vlgmr.msrb.gmra.mxu1 %vm8576_vm10, %v8877_v26 }
 0xc39   :  { %9143 = vmatpush.msrb.mxu1 %v13485_v3 }
 0xc3b   :  { %9144 = vmatpush.msrb.mxu1 %v13494_v63  ;;  %v9043_v27 = vpop.f32.mrf.mxu3 }
 0xc3c   :  { %v9046_v8 = vadd.f32 %v9043_v27, %v13591_v7 }
 0xc3d   :  { %9145 = vmatpush.msrb.mxu1 %v13502_v60 }
 0xc3e   :  { %v9047_v37 = vmax.f32 %v9046_v8, 0.0 }
 0xc3f   :  { %9146 = vmatpush.msrb.mxu1 %v13518_v0 }
 0xcaa   :  { %v8944_v18 = vpop.permute.xlu1 %8943 }
 0xcab   :  { %v8946_v44 = vsel %vm8576_vm10, %v8942_v62, %v8944_v18  ;;  %v10297_v62 = vld [vmem:[%s13834_s15] ss:$0 sm:$0xff] }
 0xcac   :  { %10258 = vmatmul.msk.f32.vlgmr.msra.gmra.mxu1 %vm8642_vm11, %v8946_v44 }
 0xcad   :  { %9216 = vmatpush.msra.mxu1 %v13570_v2 }
 0xcaf   :  { %9217 = vmatpush.msra.mxu1 %v13601_v16 }
 0xcb1   :  { %9218 = vmatpush.msra.mxu1 %v13606_v15 }
 0xcb3   :  { %9219 = vmatpush.msra.mxu1 %v13613_v42 }
 0xcb4   :  { %10263 = vmatmul.msk.f32.vlgmr.msrb.gmra.mxu1 %vm8576_vm10, %v9047_v37 }
 0xcb5   :  { %v8906_v21 = vpop.f32.mrf.mxu1  ;;  %9285 = vmatpush.msrb.mxu1 %v13507_v17  ;;  %v10290_v17 = vld [vmem:[%s13832_s13] ss:$0 sm:$0xff] }
 0xcb6   :  { %v8907_v33 = vadd.f32 %v10289_v54, %v8906_v21 }
 0xcb7   :  { %9286 = vmatpush.msrb.mxu1 %v13513_v24 }
 0xcb8   :  { %v8910_v47 = vrot.slane %v8907_v33, 1  ;;  %8912 = vst.msk [vmem:[#allocation9 + $0x2] sm:$0x1] %vm8701_vm12, %v8907_v33 }
 0xcb9   :  { %9287 = vmatpush.msrb.mxu1 %v13526_v35 }
 0xcba   :  { %8913 = vst.msk [vmem:[#allocation9 + $0xa] sm:$0x1] %vm8701_vm12, %v8910_v47 }
 0xcbb   :  { %9288 = vmatpush.msrb.mxu1 %v13534_v53 }
 0xcbd   :  { %9289 = vmatpush.msrb.mxu1 %v13552_v38 }
 0xcbf   :  { %9290 = vmatpush.msrb.mxu1 %v13559_v39 }
 0xcc1   :  { %9291 = vmatpush.msrb.mxu1 %v13564_v20 }
 0xcc3   :  { %9292 = vmatpush.msrb.mxu1 %v13576_v45  ;;  %v10291_v45 = vld [vmem:[%s13834_s15] ss:$0 sm:$0xff] }
 0xd29   :  { %v8979_v24 = vpop.f32.mrf.mxu1 }
 0xd2a   :  { %v8980_v41 = vadd.f32 %v10290_v17, %v8979_v24 }
 0xd2c   :  { %v8982_v19 = vmax.f32 %v8980_v41, 0.0 }
 0xd2e   :  { %9048 = vrot.lane.b32.xlu1 %v8982_v19, %s10336_s9  ;;  %10259 = vmatmul.msk.f32.vlgmr.msra.gmra.mxu2 %vm8576_vm10, %v8982_v19 }
 0xd2f   :  { %9248 = vmatpush.msra.mxu2 %v13485_v3 }
 0xd31   :  { %9249 = vmatpush.msra.mxu2 %v13494_v63  ;;  %v9148_v53 = vpop.f32.mrf.mxu1 }
 0xd32   :  { %v9151_v39 = vadd.f32 %v9148_v53, %v13591_v7 }
 0xd33   :  { %9250 = vmatpush.msra.mxu2 %v13502_v60 }
 0xd34   :  { %v9152_v20 = vmax.f32 %v9151_v39, 0.0 }
 0xd35   :  { %9251 = vmatpush.msra.mxu2 %v13518_v0 }
 0xda0   :  { %v9049_v35 = vpop.permute.xlu1 %9048 }
 0xda1   :  { %v9051_v38 = vsel %vm8576_vm10, %v9047_v37, %v9049_v35 }
 0xda2   :  { %10261 = vmatmul.msk.f32.vlgmr.msrb.gmra.mxu2 %vm8642_vm11, %v9051_v38 }
 0xda3   :  { %9321 = vmatpush.msrb.mxu2 %v13570_v2 }
 0xda5   :  { %9322 = vmatpush.msrb.mxu2 %v13601_v16 }
 0xda7   :  { %9323 = vmatpush.msrb.mxu2 %v13606_v15 }
 0xda9   :  { %9324 = vmatpush.msrb.mxu2 %v13613_v42 }
 0xdaa   :  { %10266 = vmatmul.msk.f32.vlgmr.msra.gmra.mxu2 %vm8576_vm10, %v9152_v20 }
 0xdab   :  { %9426 = vmatpush.msra.mxu2 %v13570_v2  ;;  %v10292_v2 = vld [vmem:[%s13832_s13] ss:$0 sm:$0xff] }
 0xdad   :  { %9427 = vmatpush.msra.mxu2 %v13601_v16 }
 0xdaf   :  { %9428 = vmatpush.msra.mxu2 %v13606_v15 }
 0xdb1   :  { %v9011_v50 = vpop.f32.mrf.mxu2  ;;  %9429 = vmatpush.msra.mxu2 %v13613_v42 }
 0xdb2   :  { %v9012_v30 = vadd.f32 %v10291_v45, %v9011_v50 }
 0xdb4   :  { %v9015_v23 = vrot.slane %v9012_v30, 1  ;;  %9017 = vst.msk [vmem:[#allocation9 + $0x3] sm:$0x1] %vm8701_vm12, %v9012_v30 }
 0xdb6   :  { %9018 = vst.msk [vmem:[#allocation9 + $0xb] sm:$0x1] %vm8701_vm12, %v9015_v23 }
 0xe25   :  { %v9084_v16 = vpop.f32.mrf.mxu2 }
 0xe26   :  { %v9085_v57 = vadd.f32 %v10292_v2, %v9084_v16 }
 0xe28   :  { %v9087_v36 = vmax.f32 %v9085_v57, 0.0 }
 0xe2a   :  { %9153 = vrot.lane.b32.xlu2 %v9087_v36, %s10336_s9  ;;  %10262 = vmatmul.msk.f32.vlgmr.msra.gmra.mxu3 %vm8576_vm10, %v9087_v36 }
 0xe2b   :  { %9353 = vmatpush.msra.mxu3 %v13485_v3  ;;  %v10293_v3 = vld [vmem:[%s13834_s15] ss:$0 sm:$0xff] }
 0xe2d   :  { %9354 = vmatpush.msra.mxu3 %v13494_v63  ;;  %v9253_v42 = vpop.f32.mrf.mxu2 }
 0xe2e   :  { %v9256_v28 = vadd.f32 %v9253_v42, %v13591_v7 }
 0xe2f   :  { %9355 = vmatpush.msra.mxu3 %v13502_v60 }
 0xe30   :  { %v9257_v31 = vmax.f32 %v9256_v28, 0.0 }
 0xe31   :  { %9356 = vmatpush.msra.mxu3 %v13518_v0  ;;  %v10294_v0 = vld [vmem:[%s13832_s13] ss:$0 sm:$0xff] }
 0xe84   :  { %v9154_v15 = vpop.permute.xlu2 %9153 }
 0xe85   :  { %v9156_v55 = vsel %vm8576_vm10, %v9152_v20, %v9154_v15 }
 0xe86   :  { %10264 = vmatmul.msk.f32.vlgmr.msrb.gmra.mxu3 %vm8642_vm11, %v9156_v55 }
 0xe8e   :  { %10269 = vmatmul.msk.f32.vlgmr.msra.gmra.mxu3 %vm8576_vm10, %v9257_v31 }
 0xead   :  { %v9116_v63 = vpop.f32.mrf.mxu3 }
 0xeae   :  { %v9117_v5 = vadd.f32 %v10293_v3, %v9116_v63 }
 0xeb0   :  { %v9120_v60 = vrot.slane %v9117_v5, 1  ;;  %9122 = vst.msk [vmem:[#allocation9 + $0x4] sm:$0x1] %vm8701_vm12, %v9117_v5 }
 0xeb2   :  { %9123 = vst.msk [vmem:[#allocation9 + $0xc] sm:$0x1] %vm8701_vm12, %v9120_v60 }
 0xf09   :  { %v9189_v58 = vpop.f32.mrf.mxu3 }
 0xf0a   :  { %v9190_v61 = vadd.f32 %v10294_v0, %v9189_v58 }
 0xf0c   :  { %v9192_v6 = vmax.f32 %v9190_v61, 0.0 }
 0xf0e   :  { %9258 = vrot.lane.b32.xlu2 %v9192_v6, %s10336_s9  ;;  %10265 = vmatmul.msk.f32.vlgmr.msra.gmra.mxu1 %vm8576_vm10, %v9192_v6 }
 0xf11   :  { %v9358_v59 = vpop.f32.mrf.mxu3 }
 0xf12   :  { %v9361_v32 = vadd.f32 %v9358_v59, %v13591_v7  ;;  %v10298_v7 = vld [vmem:[%s13832_s13] ss:$0 sm:$0xff]  ;;  %s10338_s13 = smov 128  }
 0xf14   :  { %v9362_v10 = vmax.f32 %v9361_v32, 0.0 }
 0xf68   :  { %v9259_v43 = vpop.permute.xlu2 %9258 }
 0xf69   :  { %v9261_v22 = vsel %vm8576_vm10, %v9257_v31, %v9259_v43 }
 0xf6a   :  { %10267 = vmatmul.msk.f32.vlgmr.msrb.gmra.mxu1 %vm8642_vm11, %v9261_v22 }
 0xf8b   :  { %v9221_v52 = vpop.f32.mrf.mxu1 }
 0xf8c   :  { %v9222_v11 = vadd.f32 %v10295_v34, %v9221_v52 }
 0xf8e   :  { %v9225_v1 = vrot.slane %v9222_v11, 1  ;;  %9227 = vst.msk [vmem:[#allocation9 + $0x5] sm:$0x1] %vm8701_vm12, %v9222_v11 }
 0xf90   :  { %9228 = vst.msk [vmem:[#allocation9 + $0xd] sm:$0x1] %vm8701_vm12, %v9225_v1 }
 0xfe7   :  { %v9294_v4 = vpop.f32.mrf.mxu1 }
 0xfe8   :  { %v9295_v48 = vadd.f32 %v10296_v9, %v9294_v4 }
 0xfea   :  { %v9297_v14 = vmax.f32 %v9295_v48, 0.0 }
 0xfec   :  { %9363 = vrot.lane.b32.xlu0 %v9297_v14, %s10336_s9  ;;  %10268 = vmatmul.msk.f32.vlgmr.msrb.gmra.mxu2 %vm8576_vm10, %v9297_v14 }
0x105e   :  { %v9364_v13 = vpop.permute.xlu0 %9363 }
0x105f   :  { %v9366_v51 = vsel %vm8576_vm10, %v9362_v10, %v9364_v13 }
0x1060   :  { %10270 = vmatmul.msk.f32.vlgmr.msrb.gmra.mxu0 %vm8642_vm11, %v9366_v51 }
0x106f   :  { %v9326_v29 = vpop.f32.mrf.mxu2 }
0x1070   :  { %v9327_v56 = vadd.f32 %v10297_v62, %v9326_v29 }
0x1072   :  { %v9330_v40 = vrot.slane %v9327_v56, 1  ;;  %9332 = vst.msk [vmem:[#allocation9 + $0x6] sm:$0x1] %vm8701_vm12, %v9327_v56 }
0x1074   :  { %9333 = vst.msk [vmem:[#allocation9 + $0xe] sm:$0x1] %vm8701_vm12, %v9330_v40 }
0x10dd   :  { %v9399_v12 = vpop.f32.mrf.mxu0 }
0x10de   :  { %v9400_v25 = vadd.f32 %v10298_v7, %v9399_v12 }
0x10e0   :  { %v9402_v49 = vmax.f32 %v9400_v25, 0.0 }
0x10e2   :  { %10271 = vmatmul.msk.f32.vlgmr.msra.gmra.mxu2 %vm8576_vm10, %v9402_v49 }
0x1165   :  { %v9431_v26 = vpop.f32.mrf.mxu2 }
0x1166   :  { %v9432_v18 = vadd.f32 %v10299_v46, %v9431_v26 }
0x1168   :  { %v9435_v27 = vrot.slane %v9432_v18, 1  ;;  %9437 = vst.msk [vmem:[#allocation9 + $0x7] sm:$0x1] %vm8701_vm12, %v9432_v18 }
0x116a   :  { %9438 = vst.msk [vmem:[#allocation9 + $0xf] sm:$0x1] %vm8701_vm12, %v9435_v27 }
0x116b   :  { %9451 = dma.vmem_to_hbm [thread:$0]  %s9444_s10, 256, %s9446_s29, [#allocation10], %s10338_s13, %s10338_s13, %s10339_s30  }
0x116c   :  { %10333 = dma.done.wait [#allocation10], 256  }
0x116d   :  { %10334 = vsyncadd [#allocation10], 4294967040 }
0x116e   :  { %9456 = vsyncpa [#allocation10], 1 }

</bundles_post_ra>
